<compile_context>
chip_gen: v5e
topology: v5e:2x2
jax: 0.10.0
libtpu: 0.0.40
codegen_flags: <defaults>
</compile_context>

<pallas_src>
import functools

import jax
import jax.numpy as jnp
from jax import lax
from jax.experimental import pallas as pl
from jax.experimental.pallas import tpu as pltpu

EPS = 1e-6
NEG_SLOPE = 0.2
MM_DTYPE = jnp.bfloat16      # matmul / DMA dtype; elementwise math stays f32


# ----------------------------------------------------------------------------
# Shared in-kernel VN block: stacked VNLinear + eval-BatchNorm + VN-LeakyReLU
# ----------------------------------------------------------------------------
def _vn_block(xs, w, scale, shift, cout, cd):
    """xs: 3 x (Cin, T); w: (Cout+Cd, Cin) stacked [map_to_feat; map_to_dir];
    scale/shift: (Cout, 1) folded eval BN.  Returns 3 x (Cout, T) f32."""
    ys = [jnp.dot(w, xc, preferred_element_type=jnp.float32) for xc in xs]
    ps = [y[:cout] for y in ys]                       # (Cout, T)
    ds = [y[cout:cout + cd] for y in ys]              # (Cd,  T), Cd == Cout or 1

    # VNBatchNorm (eval): p *= scale + shift / ||p||  -- divide-free via reciprocal.
    sumsq = ps[0] * ps[0] + ps[1] * ps[1] + ps[2] * ps[2]
    norm = jnp.sqrt(sumsq) + EPS
    ratio = scale + shift * pl.reciprocal(norm, approx=True)
    ps = [p * ratio for p in ps]

    # VN LeakyReLU: reflect the part pointing against the learned direction d.
    dot = ps[0] * ds[0] + ps[1] * ds[1] + ps[2] * ds[2]        # (Cout, T)
    dsq = ds[0] * ds[0] + ds[1] * ds[1] + ds[2] * ds[2]        # (Cd,  T)
    coef = dot * pl.reciprocal(dsq + EPS, approx=True)
    is_neg = dot < 0.0
    return [NEG_SLOPE * p + (1.0 - NEG_SLOPE) * jnp.where(is_neg, p - coef * d, p)
            for p, d in zip(ps, ds)]


# ----------------------------------------------------------------------------
# Pallas kernels
# ----------------------------------------------------------------------------
def _vn_chain_pool_kernel(x_ref, *refs, channels, inv_pool):
    """1 or 2 fused VN conv layers on one neighbour slab + mean over k (grid axis 1).

    x_ref: (1, 3, Cin, TM) bf16 edge block for neighbour slab j = program_id(1)
    refs:  (w, scale, shift) per layer, then o_ref (3, CoutLast, TM) f32 resident
           across the k axis (accumulates 1/k of each slab's output).
    """
    o_ref = refs[-1]
    j = pl.program_id(1)

    @pl.when(j == 0)
    def _():
        o_ref[...] = jnp.zeros_like(o_ref)

    xs = [x_ref[0, c] for c in range(3)]              # 3 x (Cin, TM) bf16
    for li, (cout, cd) in enumerate(channels):
        w = refs[3 * li][...]
        scale = refs[3 * li + 1][...]
        shift = refs[3 * li + 2][...]
        if li > 0:
            xs = [a.astype(w.dtype) for a in xs]       # back to bf16 for the next MXU pass
        xs = _vn_block(xs, w, scale, shift, cout, cd)

    for c in range(3):
        o_ref[c] = o_ref[c] + xs[c] * inv_pool


def _vn_conv_mean_kernel(x_ref, w_ref, s_ref, t_ref, o_ref, *, cout, cd, inv_n):
    """conv6 on one (batch, N-tile) block + mean over points (grid axis 1).

    x_ref: (3, 1, C123, TN) bf16; o_ref: (3, 1, Cout, 1) f32 resident across N tiles.
    """
    t = pl.program_id(1)

    @pl.when(t == 0)
    def _():
        o_ref[...] = jnp.zeros_like(o_ref)

    xs = [x_ref[c, 0] for c in range(3)]              # 3 x (C123, TN)
    ys = _vn_block(xs, w_ref[...], s_ref[...], t_ref[...], cout, cd)
    for c in range(3):
        o_ref[c, 0] = o_ref[c, 0] + jnp.sum(ys[c], axis=-1, keepdims=True) * inv_n


def _pdist_kernel(x_ref, sqt_ref, o_ref):
    """out[i, j] = -||x_i - x_j||^2 for one batch element (kNN scores)."""
    x = x_ref[0]                                      # (N, C3)
    inner = lax.dot_general(x, x, (((1,), (1,)), ((), ())),
                            preferred_element_type=jnp.float32)
    sq = jnp.sum(x * x, axis=1, keepdims=True)
    o_ref[0] = (2.0 * inner - sq - sqt_ref[0]).astype(o_ref.dtype)


def _vn_std_tail_kernel(x_ref, wp1_ref, wd1_ref, s1_ref, t1_ref,
                        wp2_ref, wd2_ref, s2_ref, t2_ref,
                        wlin_ref, w0_ref, b0_ref, o_ref):
    """VNStdFeature (vn1 -> vn2 -> vn_lin frame) + nn.Linear(3, 1024), whole batch
    in one grid step (B is small; the per-batch frame math is Python-unrolled)."""
    wp1, wd1, s1, t1 = wp1_ref[...], wd1_ref[...], s1_ref[...], t1_ref[...]
    wp2, wd2, s2, t2 = wp2_ref[...], wd2_ref[...], s2_ref[...], t2_ref[...]
    wlin = wlin_ref[...]                              # (3, F//2)
    w0 = w0_ref[...]                                  # (3, 1024)
    b0 = b0_ref[...]                                  # (1, 1024)

    def vn_layer(xin, wp, wd, scale, shift):
        p = jnp.dot(wp, xin, preferred_element_type=jnp.float32)
        d = jnp.dot(wd, xin, preferred_element_type=jnp.float32)
        norm = jnp.sqrt(jnp.sum(p * p, axis=-1, keepdims=True)) + EPS
        p = p * (scale + shift * pl.reciprocal(norm, approx=True))
        dot = jnp.sum(p * d, axis=-1, keepdims=True)
        dsq = jnp.sum(d * d, axis=-1, keepdims=True)
        neg = p - dot * pl.reciprocal(dsq + EPS, approx=True) * d
        return NEG_SLOPE * p + (1.0 - NEG_SLOPE) * jnp.where(dot < 0.0, neg, p)

    for b in range(x_ref.shape[0]):
        xb = x_ref[b]                                 # (2F, 3)
        z = vn_layer(xb, wp1, wd1, s1, t1)            # (F, 3)
        z = vn_layer(z, wp2, wd2, s2, t2)             # (F//2, 3)
        # Reference: x_std[i,k] = sum_s x[i,s] * sum_c Wlin[k,c] * z[c,s]
        # -> two "NT" matmuls, no transposes.
        a = lax.dot_general(xb, z, (((1,), (1,)), ((), ())),
                            preferred_element_type=jnp.float32)        # (2F, F//2)
        x_std = lax.dot_general(a, wlin, (((1,), (1,)), ((), ())),
                                preferred_element_type=jnp.float32)    # (2F, 3)
        # nn.Linear(3, 1024) as 3 VPU broadcast-mul-adds (K=3 would waste the MXU).
        o_ref[b] = (x_std[:, 0:1] * w0[0:1, :] + x_std[:, 1:2] * w0[1:2, :]
                    + x_std[:, 2:3] * w0[2:3, :] + b0)


# ----------------------------------------------------------------------------
# Tiling helpers
# ----------------------------------------------------------------------------
def _vmem_capacity_bytes():
    try:
        return int(pltpu.get_tpu_info().vmem_capacity_bytes)
    except Exception:
        return 64 * 1024 * 1024


def _choose_tile(extent, bytes_per_lane, max_tile=2048):
    """Largest 128-aligned tile dividing `extent` that fits a conservative VMEM
    budget; falls back to the full extent when it is smaller than 128."""
    budget = _vmem_capacity_bytes() // 4              # headroom: double buffers, temps
    cap = max(128, min(max_tile, (budget // max(bytes_per_lane, 1)) // 128 * 128))
    divisors = [t for t in range(128, extent + 1, 128) if extent % t == 0]
    fitting = [t for t in divisors if t <= cap]
    if fitting:
        return fitting[-1]
    if divisors:
        return divisors[0]
    return extent


# ----------------------------------------------------------------------------
# pallas_call wrappers
# ----------------------------------------------------------------------------
def vn_chain_pool(edge, layers, *, pool):
    """edge: (k, 3, Cin, M) bf16 -> back-to-back VN convs + mean over k: (3, CoutLast, M) f32."""
    kk, _, cin, m = edge.shape
    cout_last = layers[-1]['cout']
    bytes_per_lane = 3 * (cin * 2 * 2 + cout_last * 4 * 2)
    for l in layers:
        bytes_per_lane += 3 * (cin + 3 * l['cout']) * 4
    tm = _choose_tile(m, bytes_per_lane)

    channels = tuple((l['cout'], l['cd']) for l in layers)
    kernel = functools.partial(_vn_chain_pool_kernel, channels=channels,
                               inv_pool=1.0 / pool)

    args = [edge]
    in_specs = [pl.BlockSpec((1, 3, cin, tm), lambda i, j: (j, 0, 0, i))]
    for l in layers:
        for name in ('w', 'scale', 'shift'):
            a = l[name]
            args.append(a)
            in_specs.append(pl.BlockSpec(a.shape, lambda i, j: (0, 0)))

    return pl.pallas_call(
        kernel,
        out_shape=jax.ShapeDtypeStruct((3, cout_last, m), jnp.float32),
        grid=(m // tm, kk),                           # k axis = reduction (minor)
        in_specs=in_specs,
        out_specs=pl.BlockSpec((3, cout_last, tm), lambda i, j: (0, 0, i)),
        compiler_params=pltpu.CompilerParams(
            dimension_semantics=("parallel", "arbitrary"),
            vmem_limit_bytes=32 * 1024 * 1024),
    )(*args)


def vn_conv_mean_points(x123, layer, B, N):
    """x123: (3, C123, B*N) f32 -> per-batch mean over points of conv6: (3, B, Cout) f32."""
    C = x123.shape[1]
    xb = jnp.transpose(x123.reshape(3, C, B, N), (0, 2, 1, 3)).astype(MM_DTYPE)
    cout, cd = layer['cout'], layer['cd']
    bytes_per_lane = 3 * (C * 2 * 2 + (C + 3 * cout) * 4)
    tn = _choose_tile(N, bytes_per_lane)
    kernel = functools.partial(_vn_conv_mean_kernel, cout=cout, cd=cd, inv_n=1.0 / N)

    out = pl.pallas_call(
        kernel,
        out_shape=jax.ShapeDtypeStruct((3, B, cout, 1), jnp.float32),
        grid=(B, N // tn),                            # N tiles = reduction (minor)
        in_specs=[pl.BlockSpec((3, 1, C, tn), lambda b, t: (0, b, 0, t)),
                  pl.BlockSpec(layer['w'].shape, lambda b, t: (0, 0)),
                  pl.BlockSpec(layer['scale'].shape, lambda b, t: (0, 0)),
                  pl.BlockSpec(layer['shift'].shape, lambda b, t: (0, 0))],
        out_specs=pl.BlockSpec((3, 1, cout, 1), lambda b, t: (0, b, 0, 0)),
        compiler_params=pltpu.CompilerParams(
            dimension_semantics=("parallel", "arbitrary"),
            vmem_limit_bytes=32 * 1024 * 1024),
    )(xb, layer['w'], layer['scale'], layer['shift'])
    return out[:, :, :, 0]                            # (3, B, Cout)


def knn_idx(pts, k, dist_dtype=jnp.float32):
    """pts: (B, N, C3) -> (B, N, k) nearest-neighbour indices.
    (dist_dtype=bf16 would halve the distance-matrix HBM traffic at the cost of
    possibly reordering near-tied neighbours; kept f32 for reference parity.)"""
    B, N, C3 = pts.shape
    sqt = jnp.sum(pts * pts, axis=-1)[:, None, :]      # (B, 1, N)
    dist = pl.pallas_call(
        _pdist_kernel,
        out_shape=jax.ShapeDtypeStruct((B, N, N), dist_dtype),
        grid=(B,),
        in_specs=[pl.BlockSpec((1, N, C3), lambda b: (b, 0, 0)),
                  pl.BlockSpec((1, 1, N), lambda b: (b, 0, 0))],
        out_specs=pl.BlockSpec((1, N, N), lambda b: (b, 0, 0)),
        compiler_params=pltpu.CompilerParams(dimension_semantics=("parallel",)),
    )(pts, sqt)
    # TODO(synk): top-k neighbour selection has no clean Mosaic lowering; plain JAX.
    return lax.top_k(dist, k)[1]


def get_graph_feature_native(x_native, B, N, k):
    """(3, C, B*N) f32 -> edge features (k, 3, 2C, B*N) bf16 = [neighbour - center, center].

    k is the leading (grid-reduction) axis so each neighbour slab is a lane-dense
    (2C, B*N) slice; no pool matrix is ever needed downstream."""
    C = x_native.shape[1]
    pts = jnp.transpose(x_native, (2, 1, 0)).reshape(B, N, C * 3)
    idx = knn_idx(pts, k)                              # (B, N, k)
    # TODO(synk): fuse this gather into the conv kernel (scalar-prefetch idx + manual
    # DMA gather) so the edge tensor is never written to HBM at production sizes.
    nbrs = jax.vmap(lambda p, i: p[i])(pts, idx)       # (B, N, k, C*3)
    nbrs = nbrs.reshape(B, N, k, C, 3)
    center = pts.reshape(B, N, 1, C, 3)
    feat = jnp.concatenate(
        [nbrs - center, jnp.broadcast_to(center, nbrs.shape)], axis=3)  # (B,N,k,2C,3)
    feat = jnp.transpose(feat, (2, 4, 3, 0, 1)).reshape(k, 3, 2 * C, B * N)
    return feat.astype(MM_DTYPE)


def vn_std_linear0(x_feat, params):
    """x_feat: (B, 2F, 3) -> nn.Linear(3,1024)(VNStdFeature(x_feat)[0]): (B, 2F, 1024)."""
    B, c2f, _ = x_feat.shape
    p1, p2 = params['vn1'], params['vn2']
    return pl.pallas_call(
        _vn_std_tail_kernel,
        out_shape=jax.ShapeDtypeStruct((B, c2f, 1024), jnp.float32),
    )(x_feat, p1['wp'], p1['wd'], p1['scale'], p1['shift'],
      p2['wp'], p2['wd'], p2['scale'], p2['shift'],
      params['vn_lin_w'], params['lin0_w'], params['lin0_b'])


# ----------------------------------------------------------------------------
# Parameter preparation: pad channels to 8-aligned counts, stack [wp; wd], bf16
# ----------------------------------------------------------------------------
def _rup(v, m):
    return (v + m - 1) // m * m


def _pad_rows(a, rows):
    pad = rows - a.shape[0]
    if pad <= 0:
        return a
    return jnp.concatenate([a, jnp.zeros((pad,) + a.shape[1:], a.dtype)], axis=0)


def _pad_cols_grouped(w, g_in, g_pad, n_groups):
    if g_in == g_pad:
        return w
    parts = []
    for g in range(n_groups):
        parts.append(w[:, g * g_in:(g + 1) * g_in])
        parts.append(jnp.zeros((w.shape[0], g_pad - g_in), w.dtype))
    return jnp.concatenate(parts, axis=1)


def _prep_layer(layer, *, g_in, g_pad, n_groups, cout_pad):
    """Reference-layout VN layer -> kernel-ready stacked/padded bf16 weight + f32 BN."""
    wp = _pad_cols_grouped(layer['wp'], g_in, g_pad, n_groups)
    wd = _pad_cols_grouped(layer['wd'], g_in, g_pad, n_groups)
    cd = layer['wd'].shape[0]
    wp = _pad_rows(wp, cout_pad)
    if cd == 1:                                        # share_nonlinearity
        wd = _pad_rows(wd, 8)
        cd_k = 1
    else:
        wd = _pad_rows(wd, cout_pad)
        cd_k = cout_pad
    return dict(w=jnp.concatenate([wp, wd], axis=0).astype(MM_DTYPE),
                scale=_pad_rows(layer['scale'], cout_pad).astype(jnp.float32),
                shift=_pad_rows(layer['shift'], cout_pad).astype(jnp.float32),
                cout=cout_pad, cd=cd_k)


def _prepare_params(params):
    C = params['conv1']['wp'].shape[0]                 # 64 // 3 = 21
    CP = _rup(C, 8)                                    # 24
    F = params['conv6']['wp'].shape[0]                 # feat_dim
    FP = _rup(F, 8)
    return dict(
        conv1=_prep_layer(params['conv1'], g_in=1, g_pad=1, n_groups=2, cout_pad=CP),
        conv2=_prep_layer(params['conv2'], g_in=C, g_pad=CP, n_groups=1, cout_pad=CP),
        conv3=_prep_layer(params['conv3'], g_in=C, g_pad=CP, n_groups=2, cout_pad=CP),
        conv4=_prep_layer(params['conv4'], g_in=C, g_pad=CP, n_groups=1, cout_pad=CP),
        conv5=_prep_layer(params['conv5'], g_in=C, g_pad=CP, n_groups=2, cout_pad=CP),
        conv6=_prep_layer(params['conv6'], g_in=C, g_pad=CP, n_groups=3, cout_pad=FP),
    )


# ----------------------------------------------------------------------------
# Full forward pass
# ----------------------------------------------------------------------------
def vn_dgcnn_forward(x, params, disentangle=True, k=20):
    """x: (B, 3, N) -> (x_feat: (B, 2*feat, 3), x1: (B, 2*feat, 1024) or None)."""
    B, _, N = x.shape
    kp = _prepare_params(params)
    feat = params['conv6']['wp'].shape[0]

    # Points in kernel-native layout (3, C=1, M=B*N), point dim on lanes.
    x0 = jnp.transpose(x, (1, 0, 2)).reshape(3, 1, B * N)

    e = get_graph_feature_native(x0, B, N, k)                   # (k, 3, 2,  M)
    x1 = vn_chain_pool(e, [kp['conv1'], kp['conv2']], pool=k)   # (3, 24, M) conv1+conv2+pool1

    e = get_graph_feature_native(x1, B, N, k)                   # (k, 3, 48, M)
    x2 = vn_chain_pool(e, [kp['conv3'], kp['conv4']], pool=k)   # conv3+conv4+pool2

    e = get_graph_feature_native(x2, B, N, k)
    x3 = vn_chain_pool(e, [kp['conv5']], pool=k)                # conv5+pool3

    x123 = jnp.concatenate([x1, x2, x3], axis=1)                # (3, 72, M)

    # Reference: y = conv6(x123); cat([y, y.mean(N)],1) then mean-pool over N
    # == cat([m, m],1) with m = conv6(x123).mean(N)  (exact for mean pooling).
    m = vn_conv_mean_points(x123, kp['conv6'], B, N)            # (3, B, feat_pad)
    m = m[:, :, :feat]                                          # drop pad channels
    mb = jnp.transpose(m, (1, 2, 0))                            # (B, feat, 3)
    x_feat = jnp.concatenate([mb, mb], axis=1)                  # (B, 2*feat, 3)

    x1_out = vn_std_linear0(x_feat, params) if disentangle else None
    return x_feat, x1_out


# ----------------------------------------------------------------------------
# Deterministic synthetic parameters (torch Linear layout: weight = (out, in))
# ----------------------------------------------------------------------------
def make_vn_layer(key, cin, cout, share_nonlinearity=False):
    k1, k2, k3, k4, k5, k6 = jax.random.split(key, 6)
    wp = 0.2 * jax.random.normal(k1, (cout, cin), jnp.float32)
    cd = 1 if share_nonlinearity else cout
    wd = 0.2 * jax.random.normal(k2, (cd, cin), jnp.float32)
    gamma = 1.0 + 0.1 * jax.random.normal(k3, (cout,), jnp.float32)
    beta = 0.1 * jax.random.normal(k4, (cout,), jnp.float32)
    rmean = 0.1 * jax.random.normal(k5, (cout,), jnp.float32)
    rvar = 0.5 + jnp.abs(jax.random.normal(k6, (cout,), jnp.float32))
    scale = gamma / jnp.sqrt(rvar + 1e-5)    # eval-mode BatchNorm folded affine
    shift = beta - rmean * scale
    return dict(wp=wp, wd=wd,
                scale=scale.reshape(cout, 1), shift=shift.reshape(cout, 1))


if __name__ == "__main__":
    key = jax.random.PRNGKey(0)
    B, N, FEAT, K = 2, 32, 12, 20
    c64_3 = 64 // 3                                    # 21
    keys = jax.random.split(key, 12)

    params = {
        'conv1': make_vn_layer(keys[0], 2, c64_3),
        'conv2': make_vn_layer(keys[1], c64_3, c64_3),
        'conv3': make_vn_layer(keys[2], c64_3 * 2, c64_3),
        'conv4': make_vn_layer(keys[3], c64_3, c64_3),
        'conv5': make_vn_layer(keys[4], c64_3 * 2, c64_3),
        'conv6': make_vn_layer(keys[5], c64_3 * 3, FEAT, share_nonlinearity=True),
        'vn1': make_vn_layer(keys[6], 2 * FEAT, FEAT),          # VNStdFeature.vn1
        'vn2': make_vn_layer(keys[7], FEAT, FEAT // 2),         # VNStdFeature.vn2
        'vn_lin_w': 0.2 * jax.random.normal(keys[8], (3, FEAT // 2), jnp.float32),
        'lin0_w': 0.2 * jax.random.normal(keys[9], (3, 1024), jnp.float32),
        'lin0_b': 0.1 * jax.random.normal(keys[10], (1, 1024), jnp.float32),
    }

    x_in = jax.random.normal(keys[11], (B, 3, N), jnp.float32)

    fwd = jax.jit(functools.partial(vn_dgcnn_forward, disentangle=True, k=K))
    out_x, out_x1 = fwd(x_in, params)
    jax.block_until_ready(out_x)
    jax.block_until_ready(out_x1)

    assert out_x.shape == (B, 2 * FEAT, 3), out_x.shape
    assert out_x1.shape == (B, 2 * FEAT, 1024), out_x1.shape
    assert jnp.all(jnp.isfinite(out_x)) and jnp.all(jnp.isfinite(out_x1))
    print("KERNEL_OK")
</pallas_src>

<mosaic_0001>
module attributes {stable_mosaic.version = 11 : i64} {
  func.func @_pdist_kernel(%arg0: i32, %arg1: memref<1x32x3xf32, #tpu.memory_space<vmem>>, %arg2: memref<1x1x32xf32, #tpu.memory_space<vmem>>, %arg3: memref<1x32x32xf32, #tpu.memory_space<vmem>>) attributes {dimension_semantics = [#tpu.dimension_semantics<parallel>], iteration_bounds = array<i64: 2>, scalar_prefetch = 0 : i64, scratch_operands = 0 : i64, tpu.core_type = #tpu.core_type<tc>, window_params = [{transform_indices = @transform_0, window_bounds = array<i64: 1, 32, 3>}, {transform_indices = @transform_1, window_bounds = array<i64: 1, 1, 32>}, {transform_indices = @transform_2, window_bounds = array<i64: 1, 32, 32>}]} {
    %c0 = arith.constant 0 : index
    %c0_0 = arith.constant 0 : index
    %c0_1 = arith.constant 0 : index
    %0 = vector.load %arg1[%c0, %c0_0, %c0_1] : memref<1x32x3xf32, #tpu.memory_space<vmem>>, vector<1x32x3xf32>
    %1 = vector.shape_cast %0 : vector<1x32x3xf32> to vector<32x3xf32>
    %cst = arith.constant dense<0.000000e+00> : vector<32x32xf32>
    %2 = tpu.matmul %1, %1, %cst {dimension_numbers = #tpu.dot_dimension_numbers<[1], [1], [0], [0], [0, 0, 1, 0], [], []>} : vector<32x3xf32>, vector<32x3xf32>, vector<32x32xf32> -> vector<32x32xf32>
    %3 = arith.mulf %1, %1 : vector<32x3xf32>
    %cst_2 = arith.constant dense<0.000000e+00> : vector<32xf32>
    %4 = vector.multi_reduction <add>, %3, %cst_2 [1] : vector<32x3xf32> to vector<32xf32>
    %5 = vector.shape_cast %4 : vector<32xf32> to vector<32x1xf32>
    %cst_3 = arith.constant 2.000000e+00 : f32
    %6 = vector.broadcast %cst_3 : f32 to vector<32x32xf32>
    %7 = arith.mulf %6, %2 : vector<32x32xf32>
    %8 = vector.broadcast %5 : vector<32x1xf32> to vector<32x32xf32>
    %9 = arith.subf %7, %8 : vector<32x32xf32>
    %c0_4 = arith.constant 0 : index
    %c0_5 = arith.constant 0 : index
    %c0_6 = arith.constant 0 : index
    %10 = vector.load %arg2[%c0_4, %c0_5, %c0_6] : memref<1x1x32xf32, #tpu.memory_space<vmem>>, vector<1x1x32xf32>
    %11 = vector.shape_cast %10 : vector<1x1x32xf32> to vector<1x32xf32>
    %12 = vector.broadcast %11 : vector<1x32xf32> to vector<32x32xf32>
    %13 = arith.subf %9, %12 : vector<32x32xf32>
    %c0_7 = arith.constant 0 : index
    %c0_8 = arith.constant 0 : index
    %c0_9 = arith.constant 0 : index
    %14 = vector.load %arg3[%c0_7, %c0_8, %c0_9] : memref<1x32x32xf32, #tpu.memory_space<vmem>>, vector<1x32x32xf32>
    %15 = vector.shape_cast %14 : vector<1x32x32xf32> to vector<32x32xf32>
    %16 = vector.shape_cast %13 : vector<32x32xf32> to vector<1x32x32xf32>
    tpu.vector_store %arg3[%c0_7, %c0_8, %c0_9], %16 {strides = array<i32>} : memref<1x32x32xf32, #tpu.memory_space<vmem>>, vector<1x32x32xf32>,
    return
  }
  func.func @transform_0(%arg0: i32) -> (i32, i32, i32) {
    %c0_i32 = arith.constant 0 : i32
    %c0_i32_0 = arith.constant 0 : i32
    %c0_i32_1 = arith.constant 0 : i32
    return %arg0, %c0_i32, %c0_i32_0 : i32, i32, i32
  }
  func.func @transform_1(%arg0: i32) -> (i32, i32, i32) {
    %c0_i32 = arith.constant 0 : i32
    %c0_i32_0 = arith.constant 0 : i32
    %c0_i32_1 = arith.constant 0 : i32
    return %arg0, %c0_i32, %c0_i32_0 : i32, i32, i32
  }
  func.func @transform_2(%arg0: i32) -> (i32, i32, i32) {
    %c0_i32 = arith.constant 0 : i32
    %c0_i32_0 = arith.constant 0 : i32
    %c0_i32_1 = arith.constant 0 : i32
    return %arg0, %c0_i32, %c0_i32_0 : i32, i32, i32
  }
}

module attributes {stable_mosaic.version = 11 : i64} {
  func.func @_vn_chain_pool_kernel(%arg0: i32, %arg1: i32, %arg2: memref<1x3x2x64xbf16, #tpu.memory_space<vmem>>, %arg3: memref<48x2xbf16, #tpu.memory_space<vmem>>, %arg4: memref<24x1xf32, #tpu.memory_space<vmem>>, %arg5: memref<24x1xf32, #tpu.memory_space<vmem>>, %arg6: memref<48x24xbf16, #tpu.memory_space<vmem>>, %arg7: memref<24x1xf32, #tpu.memory_space<vmem>>, %arg8: memref<24x1xf32, #tpu.memory_space<vmem>>, %arg9: memref<3x24x64xf32, #tpu.memory_space<vmem>>) attributes {dimension_semantics = [#tpu.dimension_semantics<parallel>, #tpu.dimension_semantics<arbitrary>], iteration_bounds = array<i64: 1, 20>, scalar_prefetch = 0 : i64, scratch_operands = 0 : i64, tpu.core_type = #tpu.core_type<tc>, window_params = [{transform_indices = @transform_0, window_bounds = array<i64: 1, 3, 2, 64>}, {pipeline_mode = #tpu.pipeline_mode<synchronous>, transform_indices = @transform_1, window_bounds = array<i64: 48, 2>}, {pipeline_mode = #tpu.pipeline_mode<synchronous>, transform_indices = @transform_2, window_bounds = array<i64: 24, 1>}, {pipeline_mode = #tpu.pipeline_mode<synchronous>, transform_indices = @transform_3, window_bounds = array<i64: 24, 1>}, {pipeline_mode = #tpu.pipeline_mode<synchronous>, transform_indices = @transform_4, window_bounds = array<i64: 48, 24>}, {pipeline_mode = #tpu.pipeline_mode<synchronous>, transform_indices = @transform_5, window_bounds = array<i64: 24, 1>}, {pipeline_mode = #tpu.pipeline_mode<synchronous>, transform_indices = @transform_6, window_bounds = array<i64: 24, 1>}, {transform_indices = @transform_7, window_bounds = array<i64: 3, 24, 64>}]} {
    %c0_i32 = arith.constant 0 : i32
    %0 = arith.cmpi eq, %arg1, %c0_i32 : i32
    %1 = arith.extui %0 : i1 to i32
    %c0_i32_0 = arith.constant 0 : i32
    %2 = arith.cmpi ne, %1, %c0_i32_0 : i32
    scf.if %2 {
      %cst_66 = arith.constant 0.000000e+00 : f32
      %172 = vector.broadcast %cst_66 : f32 to vector<3x24x64xf32>
      %c0_67 = arith.constant 0 : index
      %c0_68 = arith.constant 0 : index
      %c0_69 = arith.constant 0 : index
      %173 = vector.load %arg9[%c0_67, %c0_68, %c0_69] : memref<3x24x64xf32, #tpu.memory_space<vmem>>, vector<3x24x64xf32>
      tpu.vector_store %arg9[%c0_67, %c0_68, %c0_69], %172 {strides = array<i32>} : memref<3x24x64xf32, #tpu.memory_space<vmem>>, vector<3x24x64xf32>,
    } else {
    }
    %c0 = arith.constant 0 : index
    %c0_1 = arith.constant 0 : index
    %c0_2 = arith.constant 0 : index
    %c0_3 = arith.constant 0 : index
    %3 = vector.load %arg2[%c0, %c0_1, %c0_2, %c0_3] : memref<1x3x2x64xbf16, #tpu.memory_space<vmem>>, vector<1x1x2x64xbf16>
    %4 = vector.shape_cast %3 : vector<1x1x2x64xbf16> to vector<2x64xbf16>
    %c0_4 = arith.constant 0 : index
    %c1 = arith.constant 1 : index
    %c0_5 = arith.constant 0 : index
    %c0_6 = arith.constant 0 : index
    %5 = vector.load %arg2[%c0_4, %c1, %c0_5, %c0_6] : memref<1x3x2x64xbf16, #tpu.memory_space<vmem>>, vector<1x1x2x64xbf16>
    %6 = vector.shape_cast %5 : vector<1x1x2x64xbf16> to vector<2x64xbf16>
    %c0_7 = arith.constant 0 : index
    %c2 = arith.constant 2 : index
    %c0_8 = arith.constant 0 : index
    %c0_9 = arith.constant 0 : index
    %7 = vector.load %arg2[%c0_7, %c2, %c0_8, %c0_9] : memref<1x3x2x64xbf16, #tpu.memory_space<vmem>>, vector<1x1x2x64xbf16>
    %8 = vector.shape_cast %7 : vector<1x1x2x64xbf16> to vector<2x64xbf16>
    %c0_10 = arith.constant 0 : index
    %c0_11 = arith.constant 0 : index
    %9 = vector.load %arg3[%c0_10, %c0_11] : memref<48x2xbf16, #tpu.memory_space<vmem>>, vector<48x2xbf16>
    %c0_12 = arith.constant 0 : index
    %c0_13 = arith.constant 0 : index
    %10 = vector.load %arg4[%c0_12, %c0_13] : memref<24x1xf32, #tpu.memory_space<vmem>>, vector<24x1xf32>
    %c0_14 = arith.constant 0 : index
    %c0_15 = arith.constant 0 : index
    %11 = vector.load %arg5[%c0_14, %c0_15] : memref<24x1xf32, #tpu.memory_space<vmem>>, vector<24x1xf32>
    %cst = arith.constant dense<0.000000e+00> : vector<48x64xf32>
    %12 = tpu.matmul %9, %4, %cst {dimension_numbers = #tpu.dot_dimension_numbers<[1], [0], [0], [1], [0, 0, 1, 1], [], []>} : vector<48x2xbf16>, vector<2x64xbf16>, vector<48x64xf32> -> vector<48x64xf32>
    %cst_16 = arith.constant dense<0.000000e+00> : vector<48x64xf32>
    %13 = tpu.matmul %9, %6, %cst_16 {dimension_numbers = #tpu.dot_dimension_numbers<[1], [0], [0], [1], [0, 0, 1, 1], [], []>} : vector<48x2xbf16>, vector<2x64xbf16>, vector<48x64xf32> -> vector<48x64xf32>
    %cst_17 = arith.constant dense<0.000000e+00> : vector<48x64xf32>
    %14 = tpu.matmul %9, %8, %cst_17 {dimension_numbers = #tpu.dot_dimension_numbers<[1], [0], [0], [1], [0, 0, 1, 1], [], []>} : vector<48x2xbf16>, vector<2x64xbf16>, vector<48x64xf32> -> vector<48x64xf32>
    %15 = vector.extract_strided_slice %12 {offsets = [0, 0], sizes = [24, 64], strides = [1, 1]} : vector<48x64xf32> to vector<24x64xf32>
    %16 = vector.extract_strided_slice %13 {offsets = [0, 0], sizes = [24, 64], strides = [1, 1]} : vector<48x64xf32> to vector<24x64xf32>
    %17 = vector.extract_strided_slice %14 {offsets = [0, 0], sizes = [24, 64], strides = [1, 1]} : vector<48x64xf32> to vector<24x64xf32>
    %18 = vector.extract_strided_slice %12 {offsets = [24, 0], sizes = [24, 64], strides = [1, 1]} : vector<48x64xf32> to vector<24x64xf32>
    %19 = vector.extract_strided_slice %13 {offsets = [24, 0], sizes = [24, 64], strides = [1, 1]} : vector<48x64xf32> to vector<24x64xf32>
    %20 = vector.extract_strided_slice %14 {offsets = [24, 0], sizes = [24, 64], strides = [1, 1]} : vector<48x64xf32> to vector<24x64xf32>
    %21 = arith.mulf %15, %15 : vector<24x64xf32>
    %22 = arith.mulf %16, %16 : vector<24x64xf32>
    %23 = arith.addf %21, %22 : vector<24x64xf32>
    %24 = arith.mulf %17, %17 : vector<24x64xf32>
    %25 = arith.addf %23, %24 : vector<24x64xf32>
    %26 = math.sqrt %25 : vector<24x64xf32>
    %cst_18 = arith.constant 9.99999997E-7 : f32
    %27 = vector.broadcast %cst_18 : f32 to vector<24x64xf32>
    %28 = arith.addf %26, %27 : vector<24x64xf32>
    %29 = tpu.reciprocal %28 {approx = true} : vector<24x64xf32> -> vector<24x64xf32>
    %30 = vector.broadcast %11 : vector<24x1xf32> to vector<24x64xf32>
    %31 = arith.mulf %30, %29 : vector<24x64xf32>
    %32 = vector.broadcast %10 : vector<24x1xf32> to vector<24x64xf32>
    %33 = arith.addf %32, %31 : vector<24x64xf32>
    %34 = arith.mulf %15, %33 : vector<24x64xf32>
    %35 = arith.mulf %16, %33 : vector<24x64xf32>
    %36 = arith.mulf %17, %33 : vector<24x64xf32>
    %37 = arith.mulf %34, %18 : vector<24x64xf32>
    %38 = arith.mulf %35, %19 : vector<24x64xf32>
    %39 = arith.addf %37, %38 : vector<24x64xf32>
    %40 = arith.mulf %36, %20 : vector<24x64xf32>
    %41 = arith.addf %39, %40 : vector<24x64xf32>
    %42 = arith.mulf %18, %18 : vector<24x64xf32>
    %43 = arith.mulf %19, %19 : vector<24x64xf32>
    %44 = arith.addf %42, %43 : vector<24x64xf32>
    %45 = arith.mulf %20, %20 : vector<24x64xf32>
    %46 = arith.addf %44, %45 : vector<24x64xf32>
    %cst_19 = arith.constant 9.99999997E-7 : f32
    %47 = vector.broadcast %cst_19 : f32 to vector<24x64xf32>
    %48 = arith.addf %46, %47 : vector<24x64xf32>
    %49 = tpu.reciprocal %48 {approx = true} : vector<24x64xf32> -> vector<24x64xf32>
    %50 = arith.mulf %41, %49 : vector<24x64xf32>
    %cst_20 = arith.constant 0.000000e+00 : f32
    %51 = vector.broadcast %cst_20 : f32 to vector<24x64xf32>
    %52 = arith.cmpf olt, %41, %51 : vector<24x64xf32>
    %cst_21 = arith.constant 2.000000e-01 : f32
    %53 = vector.broadcast %cst_21 : f32 to vector<24x64xf32>
    %54 = arith.mulf %53, %34 : vector<24x64xf32>
    %55 = arith.mulf %50, %18 : vector<24x64xf32>
    %56 = arith.subf %34, %55 : vector<24x64xf32>
    %57 = arith.select %52, %56, %34 : vector<24x64xi1>, vector<24x64xf32>
    %cst_22 = arith.constant 8.000000e-01 : f32
    %58 = vector.broadcast %cst_22 : f32 to vector<24x64xf32>
    %59 = arith.mulf %58, %57 : vector<24x64xf32>
    %60 = arith.addf %54, %59 : vector<24x64xf32>
    %cst_23 = arith.constant 2.000000e-01 : f32
    %61 = vector.broadcast %cst_23 : f32 to vector<24x64xf32>
    %62 = arith.mulf %61, %35 : vector<24x64xf32>
    %63 = arith.mulf %50, %19 : vector<24x64xf32>
    %64 = arith.subf %35, %63 : vector<24x64xf32>
    %65 = arith.select %52, %64, %35 : vector<24x64xi1>, vector<24x64xf32>
    %cst_24 = arith.constant 8.000000e-01 : f32
    %66 = vector.broadcast %cst_24 : f32 to vector<24x64xf32>
    %67 = arith.mulf %66, %65 : vector<24x64xf32>
    %68 = arith.addf %62, %67 : vector<24x64xf32>
    %cst_25 = arith.constant 2.000000e-01 : f32
    %69 = vector.broadcast %cst_25 : f32 to vector<24x64xf32>
    %70 = arith.mulf %69, %36 : vector<24x64xf32>
    %71 = arith.mulf %50, %20 : vector<24x64xf32>
    %72 = arith.subf %36, %71 : vector<24x64xf32>
    %73 = arith.select %52, %72, %36 : vector<24x64xi1>, vector<24x64xf32>
    %cst_26 = arith.constant 8.000000e-01 : f32
    %74 = vector.broadcast %cst_26 : f32 to vector<24x64xf32>
    %75 = arith.mulf %74, %73 : vector<24x64xf32>
    %76 = arith.addf %70, %75 : vector<24x64xf32>
    %c0_27 = arith.constant 0 : index
    %c0_28 = arith.constant 0 : index
    %77 = vector.load %arg6[%c0_27, %c0_28] : memref<48x24xbf16, #tpu.memory_space<vmem>>, vector<48x24xbf16>
    %c0_29 = arith.constant 0 : index
    %c0_30 = arith.constant 0 : index
    %78 = vector.load %arg7[%c0_29, %c0_30] : memref<24x1xf32, #tpu.memory_space<vmem>>, vector<24x1xf32>
    %c0_31 = arith.constant 0 : index
    %c0_32 = arith.constant 0 : index
    %79 = vector.load %arg8[%c0_31, %c0_32] : memref<24x1xf32, #tpu.memory_space<vmem>>, vector<24x1xf32>
    %80 = arith.truncf %60 : vector<24x64xf32> to vector<24x64xbf16>
    %81 = arith.truncf %68 : vector<24x64xf32> to vector<24x64xbf16>
    %82 = arith.truncf %76 : vector<24x64xf32> to vector<24x64xbf16>
    %cst_33 = arith.constant dense<0.000000e+00> : vector<48x64xf32>
    %83 = tpu.matmul %77, %80, %cst_33 {dimension_numbers = #tpu.dot_dimension_numbers<[1], [0], [0], [1], [0, 0, 1, 1], [], []>} : vector<48x24xbf16>, vector<24x64xbf16>, vector<48x64xf32> -> vector<48x64xf32>
    %cst_34 = arith.constant dense<0.000000e+00> : vector<48x64xf32>
    %84 = tpu.matmul %77, %81, %cst_34 {dimension_numbers = #tpu.dot_dimension_numbers<[1], [0], [0], [1], [0, 0, 1, 1], [], []>} : vector<48x24xbf16>, vector<24x64xbf16>, vector<48x64xf32> -> vector<48x64xf32>
    %cst_35 = arith.constant dense<0.000000e+00> : vector<48x64xf32>
    %85 = tpu.matmul %77, %82, %cst_35 {dimension_numbers = #tpu.dot_dimension_numbers<[1], [0], [0], [1], [0, 0, 1, 1], [], []>} : vector<48x24xbf16>, vector<24x64xbf16>, vector<48x64xf32> -> vector<48x64xf32>
    %86 = vector.extract_strided_slice %83 {offsets = [0, 0], sizes = [24, 64], strides = [1, 1]} : vector<48x64xf32> to vector<24x64xf32>
    %87 = vector.extract_strided_slice %84 {offsets = [0, 0], sizes = [24, 64], strides = [1, 1]} : vector<48x64xf32> to vector<24x64xf32>
    %88 = vector.extract_strided_slice %85 {offsets = [0, 0], sizes = [24, 64], strides = [1, 1]} : vector<48x64xf32> to vector<24x64xf32>
    %89 = vector.extract_strided_slice %83 {offsets = [24, 0], sizes = [24, 64], strides = [1, 1]} : vector<48x64xf32> to vector<24x64xf32>
    %90 = vector.extract_strided_slice %84 {offsets = [24, 0], sizes = [24, 64], strides = [1, 1]} : vector<48x64xf32> to vector<24x64xf32>
    %91 = vector.extract_strided_slice %85 {offsets = [24, 0], sizes = [24, 64], strides = [1, 1]} : vector<48x64xf32> to vector<24x64xf32>
    %92 = arith.mulf %86, %86 : vector<24x64xf32>
    %93 = arith.mulf %87, %87 : vector<24x64xf32>
    %94 = arith.addf %92, %93 : vector<24x64xf32>
    %95 = arith.mulf %88, %88 : vector<24x64xf32>
    %96 = arith.addf %94, %95 : vector<24x64xf32>
    %97 = math.sqrt %96 : vector<24x64xf32>
    %cst_36 = arith.constant 9.99999997E-7 : f32
    %98 = vector.broadcast %cst_36 : f32 to vector<24x64xf32>
    %99 = arith.addf %97, %98 : vector<24x64xf32>
    %100 = tpu.reciprocal %99 {approx = true} : vector<24x64xf32> -> vector<24x64xf32>
    %101 = vector.broadcast %79 : vector<24x1xf32> to vector<24x64xf32>
    %102 = arith.mulf %101, %100 : vector<24x64xf32>
    %103 = vector.broadcast %78 : vector<24x1xf32> to vector<24x64xf32>
    %104 = arith.addf %103, %102 : vector<24x64xf32>
    %105 = arith.mulf %86, %104 : vector<24x64xf32>
    %106 = arith.mulf %87, %104 : vector<24x64xf32>
    %107 = arith.mulf %88, %104 : vector<24x64xf32>
    %108 = arith.mulf %105, %89 : vector<24x64xf32>
    %109 = arith.mulf %106, %90 : vector<24x64xf32>
    %110 = arith.addf %108, %109 : vector<24x64xf32>
    %111 = arith.mulf %107, %91 : vector<24x64xf32>
    %112 = arith.addf %110, %111 : vector<24x64xf32>
    %113 = arith.mulf %89, %89 : vector<24x64xf32>
    %114 = arith.mulf %90, %90 : vector<24x64xf32>
    %115 = arith.addf %113, %114 : vector<24x64xf32>
    %116 = arith.mulf %91, %91 : vector<24x64xf32>
    %117 = arith.addf %115, %116 : vector<24x64xf32>
    %cst_37 = arith.constant 9.99999997E-7 : f32
    %118 = vector.broadcast %cst_37 : f32 to vector<24x64xf32>
    %119 = arith.addf %117, %118 : vector<24x64xf32>
    %120 = tpu.reciprocal %119 {approx = true} : vector<24x64xf32> -> vector<24x64xf32>
    %121 = arith.mulf %112, %120 : vector<24x64xf32>
    %cst_38 = arith.constant 0.000000e+00 : f32
    %122 = vector.broadcast %cst_38 : f32 to vector<24x64xf32>
    %123 = arith.cmpf olt, %112, %122 : vector<24x64xf32>
    %cst_39 = arith.constant 2.000000e-01 : f32
    %124 = vector.broadcast %cst_39 : f32 to vector<24x64xf32>
    %125 = arith.mulf %124, %105 : vector<24x64xf32>
    %126 = arith.mulf %121, %89 : vector<24x64xf32>
    %127 = arith.subf %105, %126 : vector<24x64xf32>
    %128 = arith.select %123, %127, %105 : vector<24x64xi1>, vector<24x64xf32>
    %cst_40 = arith.constant 8.000000e-01 : f32
    %129 = vector.broadcast %cst_40 : f32 to vector<24x64xf32>
    %130 = arith.mulf %129, %128 : vector<24x64xf32>
    %131 = arith.addf %125, %130 : vector<24x64xf32>
    %cst_41 = arith.constant 2.000000e-01 : f32
    %132 = vector.broadcast %cst_41 : f32 to vector<24x64xf32>
    %133 = arith.mulf %132, %106 : vector<24x64xf32>
    %134 = arith.mulf %121, %90 : vector<24x64xf32>
    %135 = arith.subf %106, %134 : vector<24x64xf32>
    %136 = arith.select %123, %135, %106 : vector<24x64xi1>, vector<24x64xf32>
    %cst_42 = arith.constant 8.000000e-01 : f32
    %137 = vector.broadcast %cst_42 : f32 to vector<24x64xf32>
    %138 = arith.mulf %137, %136 : vector<24x64xf32>
    %139 = arith.addf %133, %138 : vector<24x64xf32>
    %cst_43 = arith.constant 2.000000e-01 : f32
    %140 = vector.broadcast %cst_43 : f32 to vector<24x64xf32>
    %141 = arith.mulf %140, %107 : vector<24x64xf32>
    %142 = arith.mulf %121, %91 : vector<24x64xf32>
    %143 = arith.subf %107, %142 : vector<24x64xf32>
    %144 = arith.select %123, %143, %107 : vector<24x64xi1>, vector<24x64xf32>
    %cst_44 = arith.constant 8.000000e-01 : f32
    %145 = vector.broadcast %cst_44 : f32 to vector<24x64xf32>
    %146 = arith.mulf %145, %144 : vector<24x64xf32>
    %147 = arith.addf %141, %146 : vector<24x64xf32>
    %c0_45 = arith.constant 0 : index
    %c0_46 = arith.constant 0 : index
    %c0_47 = arith.constant 0 : index
    %148 = vector.load %arg9[%c0_45, %c0_46, %c0_47] : memref<3x24x64xf32, #tpu.memory_space<vmem>>, vector<1x24x64xf32>
    %149 = vector.shape_cast %148 : vector<1x24x64xf32> to vector<24x64xf32>
    %cst_48 = arith.constant 5.000000e-02 : f32
    %150 = vector.broadcast %cst_48 : f32 to vector<24x64xf32>
    %151 = arith.mulf %131, %150 : vector<24x64xf32>
    %152 = arith.addf %149, %151 : vector<24x64xf32>
    %c0_49 = arith.constant 0 : index
    %c0_50 = arith.constant 0 : index
    %c0_51 = arith.constant 0 : index
    %153 = vector.load %arg9[%c0_49, %c0_50, %c0_51] : memref<3x24x64xf32, #tpu.memory_space<vmem>>, vector<1x24x64xf32>
    %154 = vector.shape_cast %153 : vector<1x24x64xf32> to vector<24x64xf32>
    %155 = vector.shape_cast %152 : vector<24x64xf32> to vector<1x24x64xf32>
    tpu.vector_store %arg9[%c0_49, %c0_50, %c0_51], %155 {strides = array<i32>} : memref<3x24x64xf32, #tpu.memory_space<vmem>>, vector<1x24x64xf32>,
    %c1_52 = arith.constant 1 : index
    %c0_53 = arith.constant 0 : index
    %c0_54 = arith.constant 0 : index
    %156 = vector.load %arg9[%c1_52, %c0_53, %c0_54] : memref<3x24x64xf32, #tpu.memory_space<vmem>>, vector<1x24x64xf32>
    %157 = vector.shape_cast %156 : vector<1x24x64xf32> to vector<24x64xf32>
    %cst_55 = arith.constant 5.000000e-02 : f32
    %158 = vector.broadcast %cst_55 : f32 to vector<24x64xf32>
    %159 = arith.mulf %139, %158 : vector<24x64xf32>
    %160 = arith.addf %157, %159 : vector<24x64xf32>
    %c1_56 = arith.constant 1 : index
    %c0_57 = arith.constant 0 : index
    %c0_58 = arith.constant 0 : index
    %161 = vector.load %arg9[%c1_56, %c0_57, %c0_58] : memref<3x24x64xf32, #tpu.memory_space<vmem>>, vector<1x24x64xf32>
    %162 = vector.shape_cast %161 : vector<1x24x64xf32> to vector<24x64xf32>
    %163 = vector.shape_cast %160 : vector<24x64xf32> to vector<1x24x64xf32>
    tpu.vector_store %arg9[%c1_56, %c0_57, %c0_58], %163 {strides = array<i32>} : memref<3x24x64xf32, #tpu.memory_space<vmem>>, vector<1x24x64xf32>,
    %c2_59 = arith.constant 2 : index
    %c0_60 = arith.constant 0 : index
    %c0_61 = arith.constant 0 : index
    %164 = vector.load %arg9[%c2_59, %c0_60, %c0_61] : memref<3x24x64xf32, #tpu.memory_space<vmem>>, vector<1x24x64xf32>
    %165 = vector.shape_cast %164 : vector<1x24x64xf32> to vector<24x64xf32>
    %cst_62 = arith.constant 5.000000e-02 : f32
    %166 = vector.broadcast %cst_62 : f32 to vector<24x64xf32>
    %167 = arith.mulf %147, %166 : vector<24x64xf32>
    %168 = arith.addf %165, %167 : vector<24x64xf32>
    %c2_63 = arith.constant 2 : index
    %c0_64 = arith.constant 0 : index
    %c0_65 = arith.constant 0 : index
    %169 = vector.load %arg9[%c2_63, %c0_64, %c0_65] : memref<3x24x64xf32, #tpu.memory_space<vmem>>, vector<1x24x64xf32>
    %170 = vector.shape_cast %169 : vector<1x24x64xf32> to vector<24x64xf32>
    %171 = vector.shape_cast %168 : vector<24x64xf32> to vector<1x24x64xf32>
    tpu.vector_store %arg9[%c2_63, %c0_64, %c0_65], %171 {strides = array<i32>} : memref<3x24x64xf32, #tpu.memory_space<vmem>>, vector<1x24x64xf32>,
    return
  }
  func.func @transform_0(%arg0: i32, %arg1: i32) -> (i32, i32, i32, i32) {
    %c0_i32 = arith.constant 0 : i32
    %c0_i32_0 = arith.constant 0 : i32
    %c0_i32_1 = arith.constant 0 : i32
    return %arg1, %c0_i32, %c0_i32_0, %arg0 : i32, i32, i32, i32
  }
  func.func @transform_1(%arg0: i32, %arg1: i32) -> (i32, i32) {
    %c0_i32 = arith.constant 0 : i32
    %c0_i32_0 = arith.constant 0 : i32
    %c0_i32_1 = arith.constant 0 : i32
    return %c0_i32, %c0_i32_0 : i32, i32
  }
  func.func @transform_2(%arg0: i32, %arg1: i32) -> (i32, i32) {
    %c0_i32 = arith.constant 0 : i32
    %c0_i32_0 = arith.constant 0 : i32
    %c0_i32_1 = arith.constant 0 : i32
    return %c0_i32, %c0_i32_0 : i32, i32
  }
  func.func @transform_3(%arg0: i32, %arg1: i32) -> (i32, i32) {
    %c0_i32 = arith.constant 0 : i32
    %c0_i32_0 = arith.constant 0 : i32
    %c0_i32_1 = arith.constant 0 : i32
    return %c0_i32, %c0_i32_0 : i32, i32
  }
  func.func @transform_4(%arg0: i32, %arg1: i32) -> (i32, i32) {
    %c0_i32 = arith.constant 0 : i32
    %c0_i32_0 = arith.constant 0 : i32
    %c0_i32_1 = arith.constant 0 : i32
    return %c0_i32, %c0_i32_0 : i32, i32
  }
  func.func @transform_5(%arg0: i32, %arg1: i32) -> (i32, i32) {
    %c0_i32 = arith.constant 0 : i32
    %c0_i32_0 = arith.constant 0 : i32
    %c0_i32_1 = arith.constant 0 : i32
    return %c0_i32, %c0_i32_0 : i32, i32
  }
  func.func @transform_6(%arg0: i32, %arg1: i32) -> (i32, i32) {
    %c0_i32 = arith.constant 0 : i32
    %c0_i32_0 = arith.constant 0 : i32
    %c0_i32_1 = arith.constant 0 : i32
    return %c0_i32, %c0_i32_0 : i32, i32
  }
  func.func @transform_7(%arg0: i32, %arg1: i32) -> (i32, i32, i32) {
    %c0_i32 = arith.constant 0 : i32
    %c0_i32_0 = arith.constant 0 : i32
    %c0_i32_1 = arith.constant 0 : i32
    return %c0_i32, %c0_i32_0, %arg0 : i32, i32, i32
  }
}

module attributes {stable_mosaic.version = 11 : i64} {
  func.func @_pdist_kernel(%arg0: i32, %arg1: memref<1x32x72xf32, #tpu.memory_space<vmem>>, %arg2: memref<1x1x32xf32, #tpu.memory_space<vmem>>, %arg3: memref<1x32x32xf32, #tpu.memory_space<vmem>>) attributes {dimension_semantics = [#tpu.dimension_semantics<parallel>], iteration_bounds = array<i64: 2>, scalar_prefetch = 0 : i64, scratch_operands = 0 : i64, tpu.core_type = #tpu.core_type<tc>, window_params = [{transform_indices = @transform_0, window_bounds = array<i64: 1, 32, 72>}, {transform_indices = @transform_1, window_bounds = array<i64: 1, 1, 32>}, {transform_indices = @transform_2, window_bounds = array<i64: 1, 32, 32>}]} {
    %c0 = arith.constant 0 : index
    %c0_0 = arith.constant 0 : index
    %c0_1 = arith.constant 0 : index
    %0 = vector.load %arg1[%c0, %c0_0, %c0_1] : memref<1x32x72xf32, #tpu.memory_space<vmem>>, vector<1x32x72xf32>
    %1 = vector.shape_cast %0 : vector<1x32x72xf32> to vector<32x72xf32>
    %cst = arith.constant dense<0.000000e+00> : vector<32x32xf32>
    %2 = tpu.matmul %1, %1, %cst {dimension_numbers = #tpu.dot_dimension_numbers<[1], [1], [0], [0], [0, 0, 1, 0], [], []>} : vector<32x72xf32>, vector<32x72xf32>, vector<32x32xf32> -> vector<32x32xf32>
    %3 = arith.mulf %1, %1 : vector<32x72xf32>
    %cst_2 = arith.constant dense<0.000000e+00> : vector<32xf32>
    %4 = vector.multi_reduction <add>, %3, %cst_2 [1] : vector<32x72xf32> to vector<32xf32>
    %5 = vector.shape_cast %4 : vector<32xf32> to vector<32x1xf32>
    %cst_3 = arith.constant 2.000000e+00 : f32
    %6 = vector.broadcast %cst_3 : f32 to vector<32x32xf32>
    %7 = arith.mulf %6, %2 : vector<32x32xf32>
    %8 = vector.broadcast %5 : vector<32x1xf32> to vector<32x32xf32>
    %9 = arith.subf %7, %8 : vector<32x32xf32>
    %c0_4 = arith.constant 0 : index
    %c0_5 = arith.constant 0 : index
    %c0_6 = arith.constant 0 : index
    %10 = vector.load %arg2[%c0_4, %c0_5, %c0_6] : memref<1x1x32xf32, #tpu.memory_space<vmem>>, vector<1x1x32xf32>
    %11 = vector.shape_cast %10 : vector<1x1x32xf32> to vector<1x32xf32>
    %12 = vector.broadcast %11 : vector<1x32xf32> to vector<32x32xf32>
    %13 = arith.subf %9, %12 : vector<32x32xf32>
    %c0_7 = arith.constant 0 : index
    %c0_8 = arith.constant 0 : index
    %c0_9 = arith.constant 0 : index
    %14 = vector.load %arg3[%c0_7, %c0_8, %c0_9] : memref<1x32x32xf32, #tpu.memory_space<vmem>>, vector<1x32x32xf32>
    %15 = vector.shape_cast %14 : vector<1x32x32xf32> to vector<32x32xf32>
    %16 = vector.shape_cast %13 : vector<32x32xf32> to vector<1x32x32xf32>
    tpu.vector_store %arg3[%c0_7, %c0_8, %c0_9], %16 {strides = array<i32>} : memref<1x32x32xf32, #tpu.memory_space<vmem>>, vector<1x32x32xf32>,
    return
  }
  func.func @transform_0(%arg0: i32) -> (i32, i32, i32) {
    %c0_i32 = arith.constant 0 : i32
    %c0_i32_0 = arith.constant 0 : i32
    %c0_i32_1 = arith.constant 0 : i32
    return %arg0, %c0_i32, %c0_i32_0 : i32, i32, i32
  }
  func.func @transform_1(%arg0: i32) -> (i32, i32, i32) {
    %c0_i32 = arith.constant 0 : i32
    %c0_i32_0 = arith.constant 0 : i32
    %c0_i32_1 = arith.constant 0 : i32
    return %arg0, %c0_i32, %c0_i32_0 : i32, i32, i32
  }
  func.func @transform_2(%arg0: i32) -> (i32, i32, i32) {
    %c0_i32 = arith.constant 0 : i32
    %c0_i32_0 = arith.constant 0 : i32
    %c0_i32_1 = arith.constant 0 : i32
    return %arg0, %c0_i32, %c0_i32_0 : i32, i32, i32
  }
}

module attributes {stable_mosaic.version = 11 : i64} {
  func.func @_vn_chain_pool_kernel(%arg0: i32, %arg1: i32, %arg2: memref<1x3x48x64xbf16, #tpu.memory_space<vmem>>, %arg3: memref<48x48xbf16, #tpu.memory_space<vmem>>, %arg4: memref<24x1xf32, #tpu.memory_space<vmem>>, %arg5: memref<24x1xf32, #tpu.memory_space<vmem>>, %arg6: memref<3x24x64xf32, #tpu.memory_space<vmem>>) attributes {dimension_semantics = [#tpu.dimension_semantics<parallel>, #tpu.dimension_semantics<arbitrary>], iteration_bounds = array<i64: 1, 20>, scalar_prefetch = 0 : i64, scratch_operands = 0 : i64, tpu.core_type = #tpu.core_type<tc>, window_params = [{transform_indices = @transform_0, window_bounds = array<i64: 1, 3, 48, 64>}, {pipeline_mode = #tpu.pipeline_mode<synchronous>, transform_indices = @transform_1, window_bounds = array<i64: 48, 48>}, {pipeline_mode = #tpu.pipeline_mode<synchronous>, transform_indices = @transform_2, window_bounds = array<i64: 24, 1>}, {pipeline_mode = #tpu.pipeline_mode<synchronous>, transform_indices = @transform_3, window_bounds = array<i64: 24, 1>}, {transform_indices = @transform_4, window_bounds = array<i64: 3, 24, 64>}]} {
    %c0_i32 = arith.constant 0 : i32
    %0 = arith.cmpi eq, %arg1, %c0_i32 : i32
    %1 = arith.extui %0 : i1 to i32
    %c0_i32_0 = arith.constant 0 : i32
    %2 = arith.cmpi ne, %1, %c0_i32_0 : i32
    scf.if %2 {
      %cst_48 = arith.constant 0.000000e+00 : f32
      %101 = vector.broadcast %cst_48 : f32 to vector<3x24x64xf32>
      %c0_49 = arith.constant 0 : index
      %c0_50 = arith.constant 0 : index
      %c0_51 = arith.constant 0 : index
      %102 = vector.load %arg6[%c0_49, %c0_50, %c0_51] : memref<3x24x64xf32, #tpu.memory_space<vmem>>, vector<3x24x64xf32>
      tpu.vector_store %arg6[%c0_49, %c0_50, %c0_51], %101 {strides = array<i32>} : memref<3x24x64xf32, #tpu.memory_space<vmem>>, vector<3x24x64xf32>,
    } else {
    }
    %c0 = arith.constant 0 : index
    %c0_1 = arith.constant 0 : index
    %c0_2 = arith.constant 0 : index
    %c0_3 = arith.constant 0 : index
    %3 = vector.load %arg2[%c0, %c0_1, %c0_2, %c0_3] : memref<1x3x48x64xbf16, #tpu.memory_space<vmem>>, vector<1x1x48x64xbf16>
    %4 = vector.shape_cast %3 : vector<1x1x48x64xbf16> to vector<48x64xbf16>
    %c0_4 = arith.constant 0 : index
    %c1 = arith.constant 1 : index
    %c0_5 = arith.constant 0 : index
    %c0_6 = arith.constant 0 : index
    %5 = vector.load %arg2[%c0_4, %c1, %c0_5, %c0_6] : memref<1x3x48x64xbf16, #tpu.memory_space<vmem>>, vector<1x1x48x64xbf16>
    %6 = vector.shape_cast %5 : vector<1x1x48x64xbf16> to vector<48x64xbf16>
    %c0_7 = arith.constant 0 : index
    %c2 = arith.constant 2 : index
    %c0_8 = arith.constant 0 : index
    %c0_9 = arith.constant 0 : index
    %7 = vector.load %arg2[%c0_7, %c2, %c0_8, %c0_9] : memref<1x3x48x64xbf16, #tpu.memory_space<vmem>>, vector<1x1x48x64xbf16>
    %8 = vector.shape_cast %7 : vector<1x1x48x64xbf16> to vector<48x64xbf16>
    %c0_10 = arith.constant 0 : index
    %c0_11 = arith.constant 0 : index
    %9 = vector.load %arg3[%c0_10, %c0_11] : memref<48x48xbf16, #tpu.memory_space<vmem>>, vector<48x48xbf16>
    %c0_12 = arith.constant 0 : index
    %c0_13 = arith.constant 0 : index
    %10 = vector.load %arg4[%c0_12, %c0_13] : memref<24x1xf32, #tpu.memory_space<vmem>>, vector<24x1xf32>
    %c0_14 = arith.constant 0 : index
    %c0_15 = arith.constant 0 : index
    %11 = vector.load %arg5[%c0_14, %c0_15] : memref<24x1xf32, #tpu.memory_space<vmem>>, vector<24x1xf32>
    %cst = arith.constant dense<0.000000e+00> : vector<48x64xf32>
    %12 = tpu.matmul %9, %4, %cst {dimension_numbers = #tpu.dot_dimension_numbers<[1], [0], [0], [1], [0, 0, 1, 1], [], []>} : vector<48x48xbf16>, vector<48x64xbf16>, vector<48x64xf32> -> vector<48x64xf32>
    %cst_16 = arith.constant dense<0.000000e+00> : vector<48x64xf32>
    %13 = tpu.matmul %9, %6, %cst_16 {dimension_numbers = #tpu.dot_dimension_numbers<[1], [0], [0], [1], [0, 0, 1, 1], [], []>} : vector<48x48xbf16>, vector<48x64xbf16>, vector<48x64xf32> -> vector<48x64xf32>
    %cst_17 = arith.constant dense<0.000000e+00> : vector<48x64xf32>
    %14 = tpu.matmul %9, %8, %cst_17 {dimension_numbers = #tpu.dot_dimension_numbers<[1], [0], [0], [1], [0, 0, 1, 1], [], []>} : vector<48x48xbf16>, vector<48x64xbf16>, vector<48x64xf32> -> vector<48x64xf32>
    %15 = vector.extract_strided_slice %12 {offsets = [0, 0], sizes = [24, 64], strides = [1, 1]} : vector<48x64xf32> to vector<24x64xf32>
    %16 = vector.extract_strided_slice %13 {offsets = [0, 0], sizes = [24, 64], strides = [1, 1]} : vector<48x64xf32> to vector<24x64xf32>
    %17 = vector.extract_strided_slice %14 {offsets = [0, 0], sizes = [24, 64], strides = [1, 1]} : vector<48x64xf32> to vector<24x64xf32>
    %18 = vector.extract_strided_slice %12 {offsets = [24, 0], sizes = [24, 64], strides = [1, 1]} : vector<48x64xf32> to vector<24x64xf32>
    %19 = vector.extract_strided_slice %13 {offsets = [24, 0], sizes = [24, 64], strides = [1, 1]} : vector<48x64xf32> to vector<24x64xf32>
    %20 = vector.extract_strided_slice %14 {offsets = [24, 0], sizes = [24, 64], strides = [1, 1]} : vector<48x64xf32> to vector<24x64xf32>
    %21 = arith.mulf %15, %15 : vector<24x64xf32>
    %22 = arith.mulf %16, %16 : vector<24x64xf32>
    %23 = arith.addf %21, %22 : vector<24x64xf32>
    %24 = arith.mulf %17, %17 : vector<24x64xf32>
    %25 = arith.addf %23, %24 : vector<24x64xf32>
    %26 = math.sqrt %25 : vector<24x64xf32>
    %cst_18 = arith.constant 9.99999997E-7 : f32
    %27 = vector.broadcast %cst_18 : f32 to vector<24x64xf32>
    %28 = arith.addf %26, %27 : vector<24x64xf32>
    %29 = tpu.reciprocal %28 {approx = true} : vector<24x64xf32> -> vector<24x64xf32>
    %30 = vector.broadcast %11 : vector<24x1xf32> to vector<24x64xf32>
    %31 = arith.mulf %30, %29 : vector<24x64xf32>
    %32 = vector.broadcast %10 : vector<24x1xf32> to vector<24x64xf32>
    %33 = arith.addf %32, %31 : vector<24x64xf32>
    %34 = arith.mulf %15, %33 : vector<24x64xf32>
    %35 = arith.mulf %16, %33 : vector<24x64xf32>
    %36 = arith.mulf %17, %33 : vector<24x64xf32>
    %37 = arith.mulf %34, %18 : vector<24x64xf32>
    %38 = arith.mulf %35, %19 : vector<24x64xf32>
    %39 = arith.addf %37, %38 : vector<24x64xf32>
    %40 = arith.mulf %36, %20 : vector<24x64xf32>
    %41 = arith.addf %39, %40 : vector<24x64xf32>
    %42 = arith.mulf %18, %18 : vector<24x64xf32>
    %43 = arith.mulf %19, %19 : vector<24x64xf32>
    %44 = arith.addf %42, %43 : vector<24x64xf32>
    %45 = arith.mulf %20, %20 : vector<24x64xf32>
    %46 = arith.addf %44, %45 : vector<24x64xf32>
    %cst_19 = arith.constant 9.99999997E-7 : f32
    %47 = vector.broadcast %cst_19 : f32 to vector<24x64xf32>
    %48 = arith.addf %46, %47 : vector<24x64xf32>
    %49 = tpu.reciprocal %48 {approx = true} : vector<24x64xf32> -> vector<24x64xf32>
    %50 = arith.mulf %41, %49 : vector<24x64xf32>
    %cst_20 = arith.constant 0.000000e+00 : f32
    %51 = vector.broadcast %cst_20 : f32 to vector<24x64xf32>
    %52 = arith.cmpf olt, %41, %51 : vector<24x64xf32>
    %cst_21 = arith.constant 2.000000e-01 : f32
    %53 = vector.broadcast %cst_21 : f32 to vector<24x64xf32>
    %54 = arith.mulf %53, %34 : vector<24x64xf32>
    %55 = arith.mulf %50, %18 : vector<24x64xf32>
    %56 = arith.subf %34, %55 : vector<24x64xf32>
    %57 = arith.select %52, %56, %34 : vector<24x64xi1>, vector<24x64xf32>
    %cst_22 = arith.constant 8.000000e-01 : f32
    %58 = vector.broadcast %cst_22 : f32 to vector<24x64xf32>
    %59 = arith.mulf %58, %57 : vector<24x64xf32>
    %60 = arith.addf %54, %59 : vector<24x64xf32>
    %cst_23 = arith.constant 2.000000e-01 : f32
    %61 = vector.broadcast %cst_23 : f32 to vector<24x64xf32>
    %62 = arith.mulf %61, %35 : vector<24x64xf32>
    %63 = arith.mulf %50, %19 : vector<24x64xf32>
    %64 = arith.subf %35, %63 : vector<24x64xf32>
    %65 = arith.select %52, %64, %35 : vector<24x64xi1>, vector<24x64xf32>
    %cst_24 = arith.constant 8.000000e-01 : f32
    %66 = vector.broadcast %cst_24 : f32 to vector<24x64xf32>
    %67 = arith.mulf %66, %65 : vector<24x64xf32>
    %68 = arith.addf %62, %67 : vector<24x64xf32>
    %cst_25 = arith.constant 2.000000e-01 : f32
    %69 = vector.broadcast %cst_25 : f32 to vector<24x64xf32>
    %70 = arith.mulf %69, %36 : vector<24x64xf32>
    %71 = arith.mulf %50, %20 : vector<24x64xf32>
    %72 = arith.subf %36, %71 : vector<24x64xf32>
    %73 = arith.select %52, %72, %36 : vector<24x64xi1>, vector<24x64xf32>
    %cst_26 = arith.constant 8.000000e-01 : f32
    %74 = vector.broadcast %cst_26 : f32 to vector<24x64xf32>
    %75 = arith.mulf %74, %73 : vector<24x64xf32>
    %76 = arith.addf %70, %75 : vector<24x64xf32>
    %c0_27 = arith.constant 0 : index
    %c0_28 = arith.constant 0 : index
    %c0_29 = arith.constant 0 : index
    %77 = vector.load %arg6[%c0_27, %c0_28, %c0_29] : memref<3x24x64xf32, #tpu.memory_space<vmem>>, vector<1x24x64xf32>
    %78 = vector.shape_cast %77 : vector<1x24x64xf32> to vector<24x64xf32>
    %cst_30 = arith.constant 5.000000e-02 : f32
    %79 = vector.broadcast %cst_30 : f32 to vector<24x64xf32>
    %80 = arith.mulf %60, %79 : vector<24x64xf32>
    %81 = arith.addf %78, %80 : vector<24x64xf32>
    %c0_31 = arith.constant 0 : index
    %c0_32 = arith.constant 0 : index
    %c0_33 = arith.constant 0 : index
    %82 = vector.load %arg6[%c0_31, %c0_32, %c0_33] : memref<3x24x64xf32, #tpu.memory_space<vmem>>, vector<1x24x64xf32>
    %83 = vector.shape_cast %82 : vector<1x24x64xf32> to vector<24x64xf32>
    %84 = vector.shape_cast %81 : vector<24x64xf32> to vector<1x24x64xf32>
    tpu.vector_store %arg6[%c0_31, %c0_32, %c0_33], %84 {strides = array<i32>} : memref<3x24x64xf32, #tpu.memory_space<vmem>>, vector<1x24x64xf32>,
    %c1_34 = arith.constant 1 : index
    %c0_35 = arith.constant 0 : index
    %c0_36 = arith.constant 0 : index
    %85 = vector.load %arg6[%c1_34, %c0_35, %c0_36] : memref<3x24x64xf32, #tpu.memory_space<vmem>>, vector<1x24x64xf32>
    %86 = vector.shape_cast %85 : vector<1x24x64xf32> to vector<24x64xf32>
    %cst_37 = arith.constant 5.000000e-02 : f32
    %87 = vector.broadcast %cst_37 : f32 to vector<24x64xf32>
    %88 = arith.mulf %68, %87 : vector<24x64xf32>
    %89 = arith.addf %86, %88 : vector<24x64xf32>
    %c1_38 = arith.constant 1 : index
    %c0_39 = arith.constant 0 : index
    %c0_40 = arith.constant 0 : index
    %90 = vector.load %arg6[%c1_38, %c0_39, %c0_40] : memref<3x24x64xf32, #tpu.memory_space<vmem>>, vector<1x24x64xf32>
    %91 = vector.shape_cast %90 : vector<1x24x64xf32> to vector<24x64xf32>
    %92 = vector.shape_cast %89 : vector<24x64xf32> to vector<1x24x64xf32>
    tpu.vector_store %arg6[%c1_38, %c0_39, %c0_40], %92 {strides = array<i32>} : memref<3x24x64xf32, #tpu.memory_space<vmem>>, vector<1x24x64xf32>,
    %c2_41 = arith.constant 2 : index
    %c0_42 = arith.constant 0 : index
    %c0_43 = arith.constant 0 : index
    %93 = vector.load %arg6[%c2_41, %c0_42, %c0_43] : memref<3x24x64xf32, #tpu.memory_space<vmem>>, vector<1x24x64xf32>
    %94 = vector.shape_cast %93 : vector<1x24x64xf32> to vector<24x64xf32>
    %cst_44 = arith.constant 5.000000e-02 : f32
    %95 = vector.broadcast %cst_44 : f32 to vector<24x64xf32>
    %96 = arith.mulf %76, %95 : vector<24x64xf32>
    %97 = arith.addf %94, %96 : vector<24x64xf32>
    %c2_45 = arith.constant 2 : index
    %c0_46 = arith.constant 0 : index
    %c0_47 = arith.constant 0 : index
    %98 = vector.load %arg6[%c2_45, %c0_46, %c0_47] : memref<3x24x64xf32, #tpu.memory_space<vmem>>, vector<1x24x64xf32>
    %99 = vector.shape_cast %98 : vector<1x24x64xf32> to vector<24x64xf32>
    %100 = vector.shape_cast %97 : vector<24x64xf32> to vector<1x24x64xf32>
    tpu.vector_store %arg6[%c2_45, %c0_46, %c0_47], %100 {strides = array<i32>} : memref<3x24x64xf32, #tpu.memory_space<vmem>>, vector<1x24x64xf32>,
    return
  }
  func.func @transform_0(%arg0: i32, %arg1: i32) -> (i32, i32, i32, i32) {
    %c0_i32 = arith.constant 0 : i32
    %c0_i32_0 = arith.constant 0 : i32
    %c0_i32_1 = arith.constant 0 : i32
    return %arg1, %c0_i32, %c0_i32_0, %arg0 : i32, i32, i32, i32
  }
  func.func @transform_1(%arg0: i32, %arg1: i32) -> (i32, i32) {
    %c0_i32 = arith.constant 0 : i32
    %c0_i32_0 = arith.constant 0 : i32
    %c0_i32_1 = arith.constant 0 : i32
    return %c0_i32, %c0_i32_0 : i32, i32
  }
  func.func @transform_2(%arg0: i32, %arg1: i32) -> (i32, i32) {
    %c0_i32 = arith.constant 0 : i32
    %c0_i32_0 = arith.constant 0 : i32
    %c0_i32_1 = arith.constant 0 : i32
    return %c0_i32, %c0_i32_0 : i32, i32
  }
  func.func @transform_3(%arg0: i32, %arg1: i32) -> (i32, i32) {
    %c0_i32 = arith.constant 0 : i32
    %c0_i32_0 = arith.constant 0 : i32
    %c0_i32_1 = arith.constant 0 : i32
    return %c0_i32, %c0_i32_0 : i32, i32
  }
  func.func @transform_4(%arg0: i32, %arg1: i32) -> (i32, i32, i32) {
    %c0_i32 = arith.constant 0 : i32
    %c0_i32_0 = arith.constant 0 : i32
    %c0_i32_1 = arith.constant 0 : i32
    return %c0_i32, %c0_i32_0, %arg0 : i32, i32, i32
  }
}

module attributes {stable_mosaic.version = 11 : i64} {
  func.func @_vn_chain_pool_kernel(%arg0: i32, %arg1: i32, %arg2: memref<1x3x48x64xbf16, #tpu.memory_space<vmem>>, %arg3: memref<48x48xbf16, #tpu.memory_space<vmem>>, %arg4: memref<24x1xf32, #tpu.memory_space<vmem>>, %arg5: memref<24x1xf32, #tpu.memory_space<vmem>>, %arg6: memref<48x24xbf16, #tpu.memory_space<vmem>>, %arg7: memref<24x1xf32, #tpu.memory_space<vmem>>, %arg8: memref<24x1xf32, #tpu.memory_space<vmem>>, %arg9: memref<3x24x64xf32, #tpu.memory_space<vmem>>) attributes {dimension_semantics = [#tpu.dimension_semantics<parallel>, #tpu.dimension_semantics<arbitrary>], iteration_bounds = array<i64: 1, 20>, scalar_prefetch = 0 : i64, scratch_operands = 0 : i64, tpu.core_type = #tpu.core_type<tc>, window_params = [{transform_indices = @transform_0, window_bounds = array<i64: 1, 3, 48, 64>}, {pipeline_mode = #tpu.pipeline_mode<synchronous>, transform_indices = @transform_1, window_bounds = array<i64: 48, 48>}, {pipeline_mode = #tpu.pipeline_mode<synchronous>, transform_indices = @transform_2, window_bounds = array<i64: 24, 1>}, {pipeline_mode = #tpu.pipeline_mode<synchronous>, transform_indices = @transform_3, window_bounds = array<i64: 24, 1>}, {pipeline_mode = #tpu.pipeline_mode<synchronous>, transform_indices = @transform_4, window_bounds = array<i64: 48, 24>}, {pipeline_mode = #tpu.pipeline_mode<synchronous>, transform_indices = @transform_5, window_bounds = array<i64: 24, 1>}, {pipeline_mode = #tpu.pipeline_mode<synchronous>, transform_indices = @transform_6, window_bounds = array<i64: 24, 1>}, {transform_indices = @transform_7, window_bounds = array<i64: 3, 24, 64>}]} {
    %c0_i32 = arith.constant 0 : i32
    %0 = arith.cmpi eq, %arg1, %c0_i32 : i32
    %1 = arith.extui %0 : i1 to i32
    %c0_i32_0 = arith.constant 0 : i32
    %2 = arith.cmpi ne, %1, %c0_i32_0 : i32
    scf.if %2 {
      %cst_66 = arith.constant 0.000000e+00 : f32
      %172 = vector.broadcast %cst_66 : f32 to vector<3x24x64xf32>
      %c0_67 = arith.constant 0 : index
      %c0_68 = arith.constant 0 : index
      %c0_69 = arith.constant 0 : index
      %173 = vector.load %arg9[%c0_67, %c0_68, %c0_69] : memref<3x24x64xf32, #tpu.memory_space<vmem>>, vector<3x24x64xf32>
      tpu.vector_store %arg9[%c0_67, %c0_68, %c0_69], %172 {strides = array<i32>} : memref<3x24x64xf32, #tpu.memory_space<vmem>>, vector<3x24x64xf32>,
    } else {
    }
    %c0 = arith.constant 0 : index
    %c0_1 = arith.constant 0 : index
    %c0_2 = arith.constant 0 : index
    %c0_3 = arith.constant 0 : index
    %3 = vector.load %arg2[%c0, %c0_1, %c0_2, %c0_3] : memref<1x3x48x64xbf16, #tpu.memory_space<vmem>>, vector<1x1x48x64xbf16>
    %4 = vector.shape_cast %3 : vector<1x1x48x64xbf16> to vector<48x64xbf16>
    %c0_4 = arith.constant 0 : index
    %c1 = arith.constant 1 : index
    %c0_5 = arith.constant 0 : index
    %c0_6 = arith.constant 0 : index
    %5 = vector.load %arg2[%c0_4, %c1, %c0_5, %c0_6] : memref<1x3x48x64xbf16, #tpu.memory_space<vmem>>, vector<1x1x48x64xbf16>
    %6 = vector.shape_cast %5 : vector<1x1x48x64xbf16> to vector<48x64xbf16>
    %c0_7 = arith.constant 0 : index
    %c2 = arith.constant 2 : index
    %c0_8 = arith.constant 0 : index
    %c0_9 = arith.constant 0 : index
    %7 = vector.load %arg2[%c0_7, %c2, %c0_8, %c0_9] : memref<1x3x48x64xbf16, #tpu.memory_space<vmem>>, vector<1x1x48x64xbf16>
    %8 = vector.shape_cast %7 : vector<1x1x48x64xbf16> to vector<48x64xbf16>
    %c0_10 = arith.constant 0 : index
    %c0_11 = arith.constant 0 : index
    %9 = vector.load %arg3[%c0_10, %c0_11] : memref<48x48xbf16, #tpu.memory_space<vmem>>, vector<48x48xbf16>
    %c0_12 = arith.constant 0 : index
    %c0_13 = arith.constant 0 : index
    %10 = vector.load %arg4[%c0_12, %c0_13] : memref<24x1xf32, #tpu.memory_space<vmem>>, vector<24x1xf32>
    %c0_14 = arith.constant 0 : index
    %c0_15 = arith.constant 0 : index
    %11 = vector.load %arg5[%c0_14, %c0_15] : memref<24x1xf32, #tpu.memory_space<vmem>>, vector<24x1xf32>
    %cst = arith.constant dense<0.000000e+00> : vector<48x64xf32>
    %12 = tpu.matmul %9, %4, %cst {dimension_numbers = #tpu.dot_dimension_numbers<[1], [0], [0], [1], [0, 0, 1, 1], [], []>} : vector<48x48xbf16>, vector<48x64xbf16>, vector<48x64xf32> -> vector<48x64xf32>
    %cst_16 = arith.constant dense<0.000000e+00> : vector<48x64xf32>
    %13 = tpu.matmul %9, %6, %cst_16 {dimension_numbers = #tpu.dot_dimension_numbers<[1], [0], [0], [1], [0, 0, 1, 1], [], []>} : vector<48x48xbf16>, vector<48x64xbf16>, vector<48x64xf32> -> vector<48x64xf32>
    %cst_17 = arith.constant dense<0.000000e+00> : vector<48x64xf32>
    %14 = tpu.matmul %9, %8, %cst_17 {dimension_numbers = #tpu.dot_dimension_numbers<[1], [0], [0], [1], [0, 0, 1, 1], [], []>} : vector<48x48xbf16>, vector<48x64xbf16>, vector<48x64xf32> -> vector<48x64xf32>
    %15 = vector.extract_strided_slice %12 {offsets = [0, 0], sizes = [24, 64], strides = [1, 1]} : vector<48x64xf32> to vector<24x64xf32>
    %16 = vector.extract_strided_slice %13 {offsets = [0, 0], sizes = [24, 64], strides = [1, 1]} : vector<48x64xf32> to vector<24x64xf32>
    %17 = vector.extract_strided_slice %14 {offsets = [0, 0], sizes = [24, 64], strides = [1, 1]} : vector<48x64xf32> to vector<24x64xf32>
    %18 = vector.extract_strided_slice %12 {offsets = [24, 0], sizes = [24, 64], strides = [1, 1]} : vector<48x64xf32> to vector<24x64xf32>
    %19 = vector.extract_strided_slice %13 {offsets = [24, 0], sizes = [24, 64], strides = [1, 1]} : vector<48x64xf32> to vector<24x64xf32>
    %20 = vector.extract_strided_slice %14 {offsets = [24, 0], sizes = [24, 64], strides = [1, 1]} : vector<48x64xf32> to vector<24x64xf32>
    %21 = arith.mulf %15, %15 : vector<24x64xf32>
    %22 = arith.mulf %16, %16 : vector<24x64xf32>
    %23 = arith.addf %21, %22 : vector<24x64xf32>
    %24 = arith.mulf %17, %17 : vector<24x64xf32>
    %25 = arith.addf %23, %24 : vector<24x64xf32>
    %26 = math.sqrt %25 : vector<24x64xf32>
    %cst_18 = arith.constant 9.99999997E-7 : f32
    %27 = vector.broadcast %cst_18 : f32 to vector<24x64xf32>
    %28 = arith.addf %26, %27 : vector<24x64xf32>
    %29 = tpu.reciprocal %28 {approx = true} : vector<24x64xf32> -> vector<24x64xf32>
    %30 = vector.broadcast %11 : vector<24x1xf32> to vector<24x64xf32>
    %31 = arith.mulf %30, %29 : vector<24x64xf32>
    %32 = vector.broadcast %10 : vector<24x1xf32> to vector<24x64xf32>
    %33 = arith.addf %32, %31 : vector<24x64xf32>
    %34 = arith.mulf %15, %33 : vector<24x64xf32>
    %35 = arith.mulf %16, %33 : vector<24x64xf32>
    %36 = arith.mulf %17, %33 : vector<24x64xf32>
    %37 = arith.mulf %34, %18 : vector<24x64xf32>
    %38 = arith.mulf %35, %19 : vector<24x64xf32>
    %39 = arith.addf %37, %38 : vector<24x64xf32>
    %40 = arith.mulf %36, %20 : vector<24x64xf32>
    %41 = arith.addf %39, %40 : vector<24x64xf32>
    %42 = arith.mulf %18, %18 : vector<24x64xf32>
    %43 = arith.mulf %19, %19 : vector<24x64xf32>
    %44 = arith.addf %42, %43 : vector<24x64xf32>
    %45 = arith.mulf %20, %20 : vector<24x64xf32>
    %46 = arith.addf %44, %45 : vector<24x64xf32>
    %cst_19 = arith.constant 9.99999997E-7 : f32
    %47 = vector.broadcast %cst_19 : f32 to vector<24x64xf32>
    %48 = arith.addf %46, %47 : vector<24x64xf32>
    %49 = tpu.reciprocal %48 {approx = true} : vector<24x64xf32> -> vector<24x64xf32>
    %50 = arith.mulf %41, %49 : vector<24x64xf32>
    %cst_20 = arith.constant 0.000000e+00 : f32
    %51 = vector.broadcast %cst_20 : f32 to vector<24x64xf32>
    %52 = arith.cmpf olt, %41, %51 : vector<24x64xf32>
    %cst_21 = arith.constant 2.000000e-01 : f32
    %53 = vector.broadcast %cst_21 : f32 to vector<24x64xf32>
    %54 = arith.mulf %53, %34 : vector<24x64xf32>
    %55 = arith.mulf %50, %18 : vector<24x64xf32>
    %56 = arith.subf %34, %55 : vector<24x64xf32>
    %57 = arith.select %52, %56, %34 : vector<24x64xi1>, vector<24x64xf32>
    %cst_22 = arith.constant 8.000000e-01 : f32
    %58 = vector.broadcast %cst_22 : f32 to vector<24x64xf32>
    %59 = arith.mulf %58, %57 : vector<24x64xf32>
    %60 = arith.addf %54, %59 : vector<24x64xf32>
    %cst_23 = arith.constant 2.000000e-01 : f32
    %61 = vector.broadcast %cst_23 : f32 to vector<24x64xf32>
    %62 = arith.mulf %61, %35 : vector<24x64xf32>
    %63 = arith.mulf %50, %19 : vector<24x64xf32>
    %64 = arith.subf %35, %63 : vector<24x64xf32>
    %65 = arith.select %52, %64, %35 : vector<24x64xi1>, vector<24x64xf32>
    %cst_24 = arith.constant 8.000000e-01 : f32
    %66 = vector.broadcast %cst_24 : f32 to vector<24x64xf32>
    %67 = arith.mulf %66, %65 : vector<24x64xf32>
    %68 = arith.addf %62, %67 : vector<24x64xf32>
    %cst_25 = arith.constant 2.000000e-01 : f32
    %69 = vector.broadcast %cst_25 : f32 to vector<24x64xf32>
    %70 = arith.mulf %69, %36 : vector<24x64xf32>
    %71 = arith.mulf %50, %20 : vector<24x64xf32>
    %72 = arith.subf %36, %71 : vector<24x64xf32>
    %73 = arith.select %52, %72, %36 : vector<24x64xi1>, vector<24x64xf32>
    %cst_26 = arith.constant 8.000000e-01 : f32
    %74 = vector.broadcast %cst_26 : f32 to vector<24x64xf32>
    %75 = arith.mulf %74, %73 : vector<24x64xf32>
    %76 = arith.addf %70, %75 : vector<24x64xf32>
    %c0_27 = arith.constant 0 : index
    %c0_28 = arith.constant 0 : index
    %77 = vector.load %arg6[%c0_27, %c0_28] : memref<48x24xbf16, #tpu.memory_space<vmem>>, vector<48x24xbf16>
    %c0_29 = arith.constant 0 : index
    %c0_30 = arith.constant 0 : index
    %78 = vector.load %arg7[%c0_29, %c0_30] : memref<24x1xf32, #tpu.memory_space<vmem>>, vector<24x1xf32>
    %c0_31 = arith.constant 0 : index
    %c0_32 = arith.constant 0 : index
    %79 = vector.load %arg8[%c0_31, %c0_32] : memref<24x1xf32, #tpu.memory_space<vmem>>, vector<24x1xf32>
    %80 = arith.truncf %60 : vector<24x64xf32> to vector<24x64xbf16>
    %81 = arith.truncf %68 : vector<24x64xf32> to vector<24x64xbf16>
    %82 = arith.truncf %76 : vector<24x64xf32> to vector<24x64xbf16>
    %cst_33 = arith.constant dense<0.000000e+00> : vector<48x64xf32>
    %83 = tpu.matmul %77, %80, %cst_33 {dimension_numbers = #tpu.dot_dimension_numbers<[1], [0], [0], [1], [0, 0, 1, 1], [], []>} : vector<48x24xbf16>, vector<24x64xbf16>, vector<48x64xf32> -> vector<48x64xf32>
    %cst_34 = arith.constant dense<0.000000e+00> : vector<48x64xf32>
    %84 = tpu.matmul %77, %81, %cst_34 {dimension_numbers = #tpu.dot_dimension_numbers<[1], [0], [0], [1], [0, 0, 1, 1], [], []>} : vector<48x24xbf16>, vector<24x64xbf16>, vector<48x64xf32> -> vector<48x64xf32>
    %cst_35 = arith.constant dense<0.000000e+00> : vector<48x64xf32>
    %85 = tpu.matmul %77, %82, %cst_35 {dimension_numbers = #tpu.dot_dimension_numbers<[1], [0], [0], [1], [0, 0, 1, 1], [], []>} : vector<48x24xbf16>, vector<24x64xbf16>, vector<48x64xf32> -> vector<48x64xf32>
    %86 = vector.extract_strided_slice %83 {offsets = [0, 0], sizes = [24, 64], strides = [1, 1]} : vector<48x64xf32> to vector<24x64xf32>
    %87 = vector.extract_strided_slice %84 {offsets = [0, 0], sizes = [24, 64], strides = [1, 1]} : vector<48x64xf32> to vector<24x64xf32>
    %88 = vector.extract_strided_slice %85 {offsets = [0, 0], sizes = [24, 64], strides = [1, 1]} : vector<48x64xf32> to vector<24x64xf32>
    %89 = vector.extract_strided_slice %83 {offsets = [24, 0], sizes = [24, 64], strides = [1, 1]} : vector<48x64xf32> to vector<24x64xf32>
    %90 = vector.extract_strided_slice %84 {offsets = [24, 0], sizes = [24, 64], strides = [1, 1]} : vector<48x64xf32> to vector<24x64xf32>
    %91 = vector.extract_strided_slice %85 {offsets = [24, 0], sizes = [24, 64], strides = [1, 1]} : vector<48x64xf32> to vector<24x64xf32>
    %92 = arith.mulf %86, %86 : vector<24x64xf32>
    %93 = arith.mulf %87, %87 : vector<24x64xf32>
    %94 = arith.addf %92, %93 : vector<24x64xf32>
    %95 = arith.mulf %88, %88 : vector<24x64xf32>
    %96 = arith.addf %94, %95 : vector<24x64xf32>
    %97 = math.sqrt %96 : vector<24x64xf32>
    %cst_36 = arith.constant 9.99999997E-7 : f32
    %98 = vector.broadcast %cst_36 : f32 to vector<24x64xf32>
    %99 = arith.addf %97, %98 : vector<24x64xf32>
    %100 = tpu.reciprocal %99 {approx = true} : vector<24x64xf32> -> vector<24x64xf32>
    %101 = vector.broadcast %79 : vector<24x1xf32> to vector<24x64xf32>
    %102 = arith.mulf %101, %100 : vector<24x64xf32>
    %103 = vector.broadcast %78 : vector<24x1xf32> to vector<24x64xf32>
    %104 = arith.addf %103, %102 : vector<24x64xf32>
    %105 = arith.mulf %86, %104 : vector<24x64xf32>
    %106 = arith.mulf %87, %104 : vector<24x64xf32>
    %107 = arith.mulf %88, %104 : vector<24x64xf32>
    %108 = arith.mulf %105, %89 : vector<24x64xf32>
    %109 = arith.mulf %106, %90 : vector<24x64xf32>
    %110 = arith.addf %108, %109 : vector<24x64xf32>
    %111 = arith.mulf %107, %91 : vector<24x64xf32>
    %112 = arith.addf %110, %111 : vector<24x64xf32>
    %113 = arith.mulf %89, %89 : vector<24x64xf32>
    %114 = arith.mulf %90, %90 : vector<24x64xf32>
    %115 = arith.addf %113, %114 : vector<24x64xf32>
    %116 = arith.mulf %91, %91 : vector<24x64xf32>
    %117 = arith.addf %115, %116 : vector<24x64xf32>
    %cst_37 = arith.constant 9.99999997E-7 : f32
    %118 = vector.broadcast %cst_37 : f32 to vector<24x64xf32>
    %119 = arith.addf %117, %118 : vector<24x64xf32>
    %120 = tpu.reciprocal %119 {approx = true} : vector<24x64xf32> -> vector<24x64xf32>
    %121 = arith.mulf %112, %120 : vector<24x64xf32>
    %cst_38 = arith.constant 0.000000e+00 : f32
    %122 = vector.broadcast %cst_38 : f32 to vector<24x64xf32>
    %123 = arith.cmpf olt, %112, %122 : vector<24x64xf32>
    %cst_39 = arith.constant 2.000000e-01 : f32
    %124 = vector.broadcast %cst_39 : f32 to vector<24x64xf32>
    %125 = arith.mulf %124, %105 : vector<24x64xf32>
    %126 = arith.mulf %121, %89 : vector<24x64xf32>
    %127 = arith.subf %105, %126 : vector<24x64xf32>
    %128 = arith.select %123, %127, %105 : vector<24x64xi1>, vector<24x64xf32>
    %cst_40 = arith.constant 8.000000e-01 : f32
    %129 = vector.broadcast %cst_40 : f32 to vector<24x64xf32>
    %130 = arith.mulf %129, %128 : vector<24x64xf32>
    %131 = arith.addf %125, %130 : vector<24x64xf32>
    %cst_41 = arith.constant 2.000000e-01 : f32
    %132 = vector.broadcast %cst_41 : f32 to vector<24x64xf32>
    %133 = arith.mulf %132, %106 : vector<24x64xf32>
    %134 = arith.mulf %121, %90 : vector<24x64xf32>
    %135 = arith.subf %106, %134 : vector<24x64xf32>
    %136 = arith.select %123, %135, %106 : vector<24x64xi1>, vector<24x64xf32>
    %cst_42 = arith.constant 8.000000e-01 : f32
    %137 = vector.broadcast %cst_42 : f32 to vector<24x64xf32>
    %138 = arith.mulf %137, %136 : vector<24x64xf32>
    %139 = arith.addf %133, %138 : vector<24x64xf32>
    %cst_43 = arith.constant 2.000000e-01 : f32
    %140 = vector.broadcast %cst_43 : f32 to vector<24x64xf32>
    %141 = arith.mulf %140, %107 : vector<24x64xf32>
    %142 = arith.mulf %121, %91 : vector<24x64xf32>
    %143 = arith.subf %107, %142 : vector<24x64xf32>
    %144 = arith.select %123, %143, %107 : vector<24x64xi1>, vector<24x64xf32>
    %cst_44 = arith.constant 8.000000e-01 : f32
    %145 = vector.broadcast %cst_44 : f32 to vector<24x64xf32>
    %146 = arith.mulf %145, %144 : vector<24x64xf32>
    %147 = arith.addf %141, %146 : vector<24x64xf32>
    %c0_45 = arith.constant 0 : index
    %c0_46 = arith.constant 0 : index
    %c0_47 = arith.constant 0 : index
    %148 = vector.load %arg9[%c0_45, %c0_46, %c0_47] : memref<3x24x64xf32, #tpu.memory_space<vmem>>, vector<1x24x64xf32>
    %149 = vector.shape_cast %148 : vector<1x24x64xf32> to vector<24x64xf32>
    %cst_48 = arith.constant 5.000000e-02 : f32
    %150 = vector.broadcast %cst_48 : f32 to vector<24x64xf32>
    %151 = arith.mulf %131, %150 : vector<24x64xf32>
    %152 = arith.addf %149, %151 : vector<24x64xf32>
    %c0_49 = arith.constant 0 : index
    %c0_50 = arith.constant 0 : index
    %c0_51 = arith.constant 0 : index
    %153 = vector.load %arg9[%c0_49, %c0_50, %c0_51] : memref<3x24x64xf32, #tpu.memory_space<vmem>>, vector<1x24x64xf32>
    %154 = vector.shape_cast %153 : vector<1x24x64xf32> to vector<24x64xf32>
    %155 = vector.shape_cast %152 : vector<24x64xf32> to vector<1x24x64xf32>
    tpu.vector_store %arg9[%c0_49, %c0_50, %c0_51], %155 {strides = array<i32>} : memref<3x24x64xf32, #tpu.memory_space<vmem>>, vector<1x24x64xf32>,
    %c1_52 = arith.constant 1 : index
    %c0_53 = arith.constant 0 : index
    %c0_54 = arith.constant 0 : index
    %156 = vector.load %arg9[%c1_52, %c0_53, %c0_54] : memref<3x24x64xf32, #tpu.memory_space<vmem>>, vector<1x24x64xf32>
    %157 = vector.shape_cast %156 : vector<1x24x64xf32> to vector<24x64xf32>
    %cst_55 = arith.constant 5.000000e-02 : f32
    %158 = vector.broadcast %cst_55 : f32 to vector<24x64xf32>
    %159 = arith.mulf %139, %158 : vector<24x64xf32>
    %160 = arith.addf %157, %159 : vector<24x64xf32>
    %c1_56 = arith.constant 1 : index
    %c0_57 = arith.constant 0 : index
    %c0_58 = arith.constant 0 : index
    %161 = vector.load %arg9[%c1_56, %c0_57, %c0_58] : memref<3x24x64xf32, #tpu.memory_space<vmem>>, vector<1x24x64xf32>
    %162 = vector.shape_cast %161 : vector<1x24x64xf32> to vector<24x64xf32>
    %163 = vector.shape_cast %160 : vector<24x64xf32> to vector<1x24x64xf32>
    tpu.vector_store %arg9[%c1_56, %c0_57, %c0_58], %163 {strides = array<i32>} : memref<3x24x64xf32, #tpu.memory_space<vmem>>, vector<1x24x64xf32>,
    %c2_59 = arith.constant 2 : index
    %c0_60 = arith.constant 0 : index
    %c0_61 = arith.constant 0 : index
    %164 = vector.load %arg9[%c2_59, %c0_60, %c0_61] : memref<3x24x64xf32, #tpu.memory_space<vmem>>, vector<1x24x64xf32>
    %165 = vector.shape_cast %164 : vector<1x24x64xf32> to vector<24x64xf32>
    %cst_62 = arith.constant 5.000000e-02 : f32
    %166 = vector.broadcast %cst_62 : f32 to vector<24x64xf32>
    %167 = arith.mulf %147, %166 : vector<24x64xf32>
    %168 = arith.addf %165, %167 : vector<24x64xf32>
    %c2_63 = arith.constant 2 : index
    %c0_64 = arith.constant 0 : index
    %c0_65 = arith.constant 0 : index
    %169 = vector.load %arg9[%c2_63, %c0_64, %c0_65] : memref<3x24x64xf32, #tpu.memory_space<vmem>>, vector<1x24x64xf32>
    %170 = vector.shape_cast %169 : vector<1x24x64xf32> to vector<24x64xf32>
    %171 = vector.shape_cast %168 : vector<24x64xf32> to vector<1x24x64xf32>
    tpu.vector_store %arg9[%c2_63, %c0_64, %c0_65], %171 {strides = array<i32>} : memref<3x24x64xf32, #tpu.memory_space<vmem>>, vector<1x24x64xf32>,
    return
  }
  func.func @transform_0(%arg0: i32, %arg1: i32) -> (i32, i32, i32, i32) {
    %c0_i32 = arith.constant 0 : i32
    %c0_i32_0 = arith.constant 0 : i32
    %c0_i32_1 = arith.constant 0 : i32
    return %arg1, %c0_i32, %c0_i32_0, %arg0 : i32, i32, i32, i32
  }
  func.func @transform_1(%arg0: i32, %arg1: i32) -> (i32, i32) {
    %c0_i32 = arith.constant 0 : i32
    %c0_i32_0 = arith.constant 0 : i32
    %c0_i32_1 = arith.constant 0 : i32
    return %c0_i32, %c0_i32_0 : i32, i32
  }
  func.func @transform_2(%arg0: i32, %arg1: i32) -> (i32, i32) {
    %c0_i32 = arith.constant 0 : i32
    %c0_i32_0 = arith.constant 0 : i32
    %c0_i32_1 = arith.constant 0 : i32
    return %c0_i32, %c0_i32_0 : i32, i32
  }
  func.func @transform_3(%arg0: i32, %arg1: i32) -> (i32, i32) {
    %c0_i32 = arith.constant 0 : i32
    %c0_i32_0 = arith.constant 0 : i32
    %c0_i32_1 = arith.constant 0 : i32
    return %c0_i32, %c0_i32_0 : i32, i32
  }
  func.func @transform_4(%arg0: i32, %arg1: i32) -> (i32, i32) {
    %c0_i32 = arith.constant 0 : i32
    %c0_i32_0 = arith.constant 0 : i32
    %c0_i32_1 = arith.constant 0 : i32
    return %c0_i32, %c0_i32_0 : i32, i32
  }
  func.func @transform_5(%arg0: i32, %arg1: i32) -> (i32, i32) {
    %c0_i32 = arith.constant 0 : i32
    %c0_i32_0 = arith.constant 0 : i32
    %c0_i32_1 = arith.constant 0 : i32
    return %c0_i32, %c0_i32_0 : i32, i32
  }
  func.func @transform_6(%arg0: i32, %arg1: i32) -> (i32, i32) {
    %c0_i32 = arith.constant 0 : i32
    %c0_i32_0 = arith.constant 0 : i32
    %c0_i32_1 = arith.constant 0 : i32
    return %c0_i32, %c0_i32_0 : i32, i32
  }
  func.func @transform_7(%arg0: i32, %arg1: i32) -> (i32, i32, i32) {
    %c0_i32 = arith.constant 0 : i32
    %c0_i32_0 = arith.constant 0 : i32
    %c0_i32_1 = arith.constant 0 : i32
    return %c0_i32, %c0_i32_0, %arg0 : i32, i32, i32
  }
}

module attributes {stable_mosaic.version = 11 : i64} {
  func.func @_vn_std_tail_kernel(%arg0: memref<2x24x3xf32, #tpu.memory_space<vmem>>, %arg1: memref<12x24xf32, #tpu.memory_space<vmem>>, %arg2: memref<12x24xf32, #tpu.memory_space<vmem>>, %arg3: memref<12x1xf32, #tpu.memory_space<vmem>>, %arg4: memref<12x1xf32, #tpu.memory_space<vmem>>, %arg5: memref<6x12xf32, #tpu.memory_space<vmem>>, %arg6: memref<6x12xf32, #tpu.memory_space<vmem>>, %arg7: memref<6x1xf32, #tpu.memory_space<vmem>>, %arg8: memref<6x1xf32, #tpu.memory_space<vmem>>, %arg9: memref<3x6xf32, #tpu.memory_space<vmem>>, %arg10: memref<3x1024xf32, #tpu.memory_space<vmem>>, %arg11: memref<1x1024xf32, #tpu.memory_space<vmem>>, %arg12: memref<2x24x1024xf32, #tpu.memory_space<vmem>>) attributes {dimension_semantics = [], scalar_prefetch = 0 : i64, scratch_operands = 0 : i64, tpu.core_type = #tpu.core_type<tc>} {
    %c0 = arith.constant 0 : index
    %c0_0 = arith.constant 0 : index
    %0 = vector.load %arg1[%c0, %c0_0] : memref<12x24xf32, #tpu.memory_space<vmem>>, vector<12x24xf32>
    %c0_1 = arith.constant 0 : index
    %c0_2 = arith.constant 0 : index
    %1 = vector.load %arg2[%c0_1, %c0_2] : memref<12x24xf32, #tpu.memory_space<vmem>>, vector<12x24xf32>
    %c0_3 = arith.constant 0 : index
    %c0_4 = arith.constant 0 : index
    %2 = vector.load %arg3[%c0_3, %c0_4] : memref<12x1xf32, #tpu.memory_space<vmem>>, vector<12x1xf32>
    %c0_5 = arith.constant 0 : index
    %c0_6 = arith.constant 0 : index
    %3 = vector.load %arg4[%c0_5, %c0_6] : memref<12x1xf32, #tpu.memory_space<vmem>>, vector<12x1xf32>
    %c0_7 = arith.constant 0 : index
    %c0_8 = arith.constant 0 : index
    %4 = vector.load %arg5[%c0_7, %c0_8] : memref<6x12xf32, #tpu.memory_space<vmem>>, vector<6x12xf32>
    %c0_9 = arith.constant 0 : index
    %c0_10 = arith.constant 0 : index
    %5 = vector.load %arg6[%c0_9, %c0_10] : memref<6x12xf32, #tpu.memory_space<vmem>>, vector<6x12xf32>
    %c0_11 = arith.constant 0 : index
    %c0_12 = arith.constant 0 : index
    %6 = vector.load %arg7[%c0_11, %c0_12] : memref<6x1xf32, #tpu.memory_space<vmem>>, vector<6x1xf32>
    %c0_13 = arith.constant 0 : index
    %c0_14 = arith.constant 0 : index
    %7 = vector.load %arg8[%c0_13, %c0_14] : memref<6x1xf32, #tpu.memory_space<vmem>>, vector<6x1xf32>
    %c0_15 = arith.constant 0 : index
    %c0_16 = arith.constant 0 : index
    %8 = vector.load %arg9[%c0_15, %c0_16] : memref<3x6xf32, #tpu.memory_space<vmem>>, vector<3x6xf32>
    %c0_17 = arith.constant 0 : index
    %c0_18 = arith.constant 0 : index
    %9 = vector.load %arg10[%c0_17, %c0_18] : memref<3x1024xf32, #tpu.memory_space<vmem>>, vector<3x1024xf32>
    %c0_19 = arith.constant 0 : index
    %c0_20 = arith.constant 0 : index
    %10 = vector.load %arg11[%c0_19, %c0_20] : memref<1x1024xf32, #tpu.memory_space<vmem>>, vector<1x1024xf32>
    %c0_21 = arith.constant 0 : index
    %c0_22 = arith.constant 0 : index
    %c0_23 = arith.constant 0 : index
    %11 = vector.load %arg0[%c0_21, %c0_22, %c0_23] : memref<2x24x3xf32, #tpu.memory_space<vmem>>, vector<1x24x3xf32>
    %12 = vector.shape_cast %11 : vector<1x24x3xf32> to vector<24x3xf32>
    %cst = arith.constant dense<0.000000e+00> : vector<12x3xf32>
    %13 = tpu.matmul %0, %12, %cst {dimension_numbers = #tpu.dot_dimension_numbers<[1], [0], [0], [1], [0, 0, 1, 1], [], []>} : vector<12x24xf32>, vector<24x3xf32>, vector<12x3xf32> -> vector<12x3xf32>
    %cst_24 = arith.constant dense<0.000000e+00> : vector<12x3xf32>
    %14 = tpu.matmul %1, %12, %cst_24 {dimension_numbers = #tpu.dot_dimension_numbers<[1], [0], [0], [1], [0, 0, 1, 1], [], []>} : vector<12x24xf32>, vector<24x3xf32>, vector<12x3xf32> -> vector<12x3xf32>
    %15 = arith.mulf %13, %13 : vector<12x3xf32>
    %cst_25 = arith.constant dense<0.000000e+00> : vector<12xf32>
    %16 = vector.multi_reduction <add>, %15, %cst_25 [1] : vector<12x3xf32> to vector<12xf32>
    %17 = vector.shape_cast %16 : vector<12xf32> to vector<12x1xf32>
    %18 = math.sqrt %17 : vector<12x1xf32>
    %cst_26 = arith.constant 9.99999997E-7 : f32
    %19 = vector.broadcast %cst_26 : f32 to vector<12x1xf32>
    %20 = arith.addf %18, %19 : vector<12x1xf32>
    %21 = tpu.reciprocal %20 {approx = true} : vector<12x1xf32> -> vector<12x1xf32>
    %22 = arith.mulf %3, %21 : vector<12x1xf32>
    %23 = arith.addf %2, %22 : vector<12x1xf32>
    %24 = vector.broadcast %23 : vector<12x1xf32> to vector<12x3xf32>
    %25 = arith.mulf %13, %24 : vector<12x3xf32>
    %26 = arith.mulf %25, %14 : vector<12x3xf32>
    %cst_27 = arith.constant dense<0.000000e+00> : vector<12xf32>
    %27 = vector.multi_reduction <add>, %26, %cst_27 [1] : vector<12x3xf32> to vector<12xf32>
    %28 = vector.shape_cast %27 : vector<12xf32> to vector<12x1xf32>
    %29 = arith.mulf %14, %14 : vector<12x3xf32>
    %cst_28 = arith.constant dense<0.000000e+00> : vector<12xf32>
    %30 = vector.multi_reduction <add>, %29, %cst_28 [1] : vector<12x3xf32> to vector<12xf32>
    %31 = vector.shape_cast %30 : vector<12xf32> to vector<12x1xf32>
    %cst_29 = arith.constant 9.99999997E-7 : f32
    %32 = vector.broadcast %cst_29 : f32 to vector<12x1xf32>
    %33 = arith.addf %31, %32 : vector<12x1xf32>
    %34 = tpu.reciprocal %33 {approx = true} : vector<12x1xf32> -> vector<12x1xf32>
    %35 = arith.mulf %28, %34 : vector<12x1xf32>
    %36 = vector.broadcast %35 : vector<12x1xf32> to vector<12x3xf32>
    %37 = arith.mulf %36, %14 : vector<12x3xf32>
    %38 = arith.subf %25, %37 : vector<12x3xf32>
    %cst_30 = arith.constant 2.000000e-01 : f32
    %39 = vector.broadcast %cst_30 : f32 to vector<12x3xf32>
    %40 = arith.mulf %39, %25 : vector<12x3xf32>
    %cst_31 = arith.constant 0.000000e+00 : f32
    %41 = vector.broadcast %cst_31 : f32 to vector<12x1xf32>
    %42 = arith.cmpf olt, %28, %41 : vector<12x1xf32>
    %43 = vector.shape_cast %42 : vector<12x1xi1> to vector<12x1xi1>
    %44 = vector.broadcast %43 : vector<12x1xi1> to vector<12x3xi1>
    %45 = arith.select %44, %38, %25 : vector<12x3xi1>, vector<12x3xf32>
    %cst_32 = arith.constant 8.000000e-01 : f32
    %46 = vector.broadcast %cst_32 : f32 to vector<12x3xf32>
    %47 = arith.mulf %46, %45 : vector<12x3xf32>
    %48 = arith.addf %40, %47 : vector<12x3xf32>
    %cst_33 = arith.constant dense<0.000000e+00> : vector<6x3xf32>
    %49 = tpu.matmul %4, %48, %cst_33 {dimension_numbers = #tpu.dot_dimension_numbers<[1], [0], [0], [1], [0, 0, 1, 1], [], []>} : vector<6x12xf32>, vector<12x3xf32>, vector<6x3xf32> -> vector<6x3xf32>
    %cst_34 = arith.constant dense<0.000000e+00> : vector<6x3xf32>
    %50 = tpu.matmul %5, %48, %cst_34 {dimension_numbers = #tpu.dot_dimension_numbers<[1], [0], [0], [1], [0, 0, 1, 1], [], []>} : vector<6x12xf32>, vector<12x3xf32>, vector<6x3xf32> -> vector<6x3xf32>
    %51 = arith.mulf %49, %49 : vector<6x3xf32>
    %cst_35 = arith.constant dense<0.000000e+00> : vector<6xf32>
    %52 = vector.multi_reduction <add>, %51, %cst_35 [1] : vector<6x3xf32> to vector<6xf32>
    %53 = vector.shape_cast %52 : vector<6xf32> to vector<6x1xf32>
    %54 = math.sqrt %53 : vector<6x1xf32>
    %cst_36 = arith.constant 9.99999997E-7 : f32
    %55 = vector.broadcast %cst_36 : f32 to vector<6x1xf32>
    %56 = arith.addf %54, %55 : vector<6x1xf32>
    %57 = tpu.reciprocal %56 {approx = true} : vector<6x1xf32> -> vector<6x1xf32>
    %58 = arith.mulf %7, %57 : vector<6x1xf32>
    %59 = arith.addf %6, %58 : vector<6x1xf32>
    %60 = vector.broadcast %59 : vector<6x1xf32> to vector<6x3xf32>
    %61 = arith.mulf %49, %60 : vector<6x3xf32>
    %62 = arith.mulf %61, %50 : vector<6x3xf32>
    %cst_37 = arith.constant dense<0.000000e+00> : vector<6xf32>
    %63 = vector.multi_reduction <add>, %62, %cst_37 [1] : vector<6x3xf32> to vector<6xf32>
    %64 = vector.shape_cast %63 : vector<6xf32> to vector<6x1xf32>
    %65 = arith.mulf %50, %50 : vector<6x3xf32>
    %cst_38 = arith.constant dense<0.000000e+00> : vector<6xf32>
    %66 = vector.multi_reduction <add>, %65, %cst_38 [1] : vector<6x3xf32> to vector<6xf32>
    %67 = vector.shape_cast %66 : vector<6xf32> to vector<6x1xf32>
    %cst_39 = arith.constant 9.99999997E-7 : f32
    %68 = vector.broadcast %cst_39 : f32 to vector<6x1xf32>
    %69 = arith.addf %67, %68 : vector<6x1xf32>
    %70 = tpu.reciprocal %69 {approx = true} : vector<6x1xf32> -> vector<6x1xf32>
    %71 = arith.mulf %64, %70 : vector<6x1xf32>
    %72 = vector.broadcast %71 : vector<6x1xf32> to vector<6x3xf32>
    %73 = arith.mulf %72, %50 : vector<6x3xf32>
    %74 = arith.subf %61, %73 : vector<6x3xf32>
    %cst_40 = arith.constant 2.000000e-01 : f32
    %75 = vector.broadcast %cst_40 : f32 to vector<6x3xf32>
    %76 = arith.mulf %75, %61 : vector<6x3xf32>
    %cst_41 = arith.constant 0.000000e+00 : f32
    %77 = vector.broadcast %cst_41 : f32 to vector<6x1xf32>
    %78 = arith.cmpf olt, %64, %77 : vector<6x1xf32>
    %79 = vector.shape_cast %78 : vector<6x1xi1> to vector<6x1xi1>
    %80 = vector.broadcast %79 : vector<6x1xi1> to vector<6x3xi1>
    %81 = arith.select %80, %74, %61 : vector<6x3xi1>, vector<6x3xf32>
    %cst_42 = arith.constant 8.000000e-01 : f32
    %82 = vector.broadcast %cst_42 : f32 to vector<6x3xf32>
    %83 = arith.mulf %82, %81 : vector<6x3xf32>
    %84 = arith.addf %76, %83 : vector<6x3xf32>
    %cst_43 = arith.constant dense<0.000000e+00> : vector<24x6xf32>
    %85 = tpu.matmul %12, %84, %cst_43 {dimension_numbers = #tpu.dot_dimension_numbers<[1], [1], [0], [0], [0, 0, 1, 0], [], []>} : vector<24x3xf32>, vector<6x3xf32>, vector<24x6xf32> -> vector<24x6xf32>
    %cst_44 = arith.constant dense<0.000000e+00> : vector<24x3xf32>
    %86 = tpu.matmul %85, %8, %cst_44 {dimension_numbers = #tpu.dot_dimension_numbers<[1], [1], [0], [0], [0, 0, 1, 0], [], []>} : vector<24x6xf32>, vector<3x6xf32>, vector<24x3xf32> -> vector<24x3xf32>
    %87 = vector.extract_strided_slice %86 {offsets = [0, 0], sizes = [24, 1], strides = [1, 1]} : vector<24x3xf32> to vector<24x1xf32>
    %88 = vector.extract_strided_slice %9 {offsets = [0, 0], sizes = [1, 1024], strides = [1, 1]} : vector<3x1024xf32> to vector<1x1024xf32>
    %89 = vector.broadcast %87 : vector<24x1xf32> to vector<24x1024xf32>
    %90 = vector.broadcast %88 : vector<1x1024xf32> to vector<24x1024xf32>
    %91 = arith.mulf %89, %90 : vector<24x1024xf32>
    %92 = vector.extract_strided_slice %86 {offsets = [0, 1], sizes = [24, 1], strides = [1, 1]} : vector<24x3xf32> to vector<24x1xf32>
    %93 = vector.extract_strided_slice %9 {offsets = [1, 0], sizes = [1, 1024], strides = [1, 1]} : vector<3x1024xf32> to vector<1x1024xf32>
    %94 = vector.broadcast %92 : vector<24x1xf32> to vector<24x1024xf32>
    %95 = vector.broadcast %93 : vector<1x1024xf32> to vector<24x1024xf32>
    %96 = arith.mulf %94, %95 : vector<24x1024xf32>
    %97 = arith.addf %91, %96 : vector<24x1024xf32>
    %98 = vector.extract_strided_slice %86 {offsets = [0, 2], sizes = [24, 1], strides = [1, 1]} : vector<24x3xf32> to vector<24x1xf32>
    %99 = vector.extract_strided_slice %9 {offsets = [2, 0], sizes = [1, 1024], strides = [1, 1]} : vector<3x1024xf32> to vector<1x1024xf32>
    %100 = vector.broadcast %98 : vector<24x1xf32> to vector<24x1024xf32>
    %101 = vector.broadcast %99 : vector<1x1024xf32> to vector<24x1024xf32>
    %102 = arith.mulf %100, %101 : vector<24x1024xf32>
    %103 = arith.addf %97, %102 : vector<24x1024xf32>
    %104 = vector.broadcast %10 : vector<1x1024xf32> to vector<24x1024xf32>
    %105 = arith.addf %103, %104 : vector<24x1024xf32>
    %c0_45 = arith.constant 0 : index
    %c0_46 = arith.constant 0 : index
    %c0_47 = arith.constant 0 : index
    %106 = vector.load %arg12[%c0_45, %c0_46, %c0_47] : memref<2x24x1024xf32, #tpu.memory_space<vmem>>, vector<1x24x1024xf32>
    %107 = vector.shape_cast %106 : vector<1x24x1024xf32> to vector<24x1024xf32>
    %108 = vector.shape_cast %105 : vector<24x1024xf32> to vector<1x24x1024xf32>
    tpu.vector_store %arg12[%c0_45, %c0_46, %c0_47], %108 {strides = array<i32>} : memref<2x24x1024xf32, #tpu.memory_space<vmem>>, vector<1x24x1024xf32>,
    %c1 = arith.constant 1 : index
    %c0_48 = arith.constant 0 : index
    %c0_49 = arith.constant 0 : index
    %109 = vector.load %arg0[%c1, %c0_48, %c0_49] : memref<2x24x3xf32, #tpu.memory_space<vmem>>, vector<1x24x3xf32>
    %110 = vector.shape_cast %109 : vector<1x24x3xf32> to vector<24x3xf32>
    %cst_50 = arith.constant dense<0.000000e+00> : vector<12x3xf32>
    %111 = tpu.matmul %0, %110, %cst_50 {dimension_numbers = #tpu.dot_dimension_numbers<[1], [0], [0], [1], [0, 0, 1, 1], [], []>} : vector<12x24xf32>, vector<24x3xf32>, vector<12x3xf32> -> vector<12x3xf32>
    %cst_51 = arith.constant dense<0.000000e+00> : vector<12x3xf32>
    %112 = tpu.matmul %1, %110, %cst_51 {dimension_numbers = #tpu.dot_dimension_numbers<[1], [0], [0], [1], [0, 0, 1, 1], [], []>} : vector<12x24xf32>, vector<24x3xf32>, vector<12x3xf32> -> vector<12x3xf32>
    %113 = arith.mulf %111, %111 : vector<12x3xf32>
    %cst_52 = arith.constant dense<0.000000e+00> : vector<12xf32>
    %114 = vector.multi_reduction <add>, %113, %cst_52 [1] : vector<12x3xf32> to vector<12xf32>
    %115 = vector.shape_cast %114 : vector<12xf32> to vector<12x1xf32>
    %116 = math.sqrt %115 : vector<12x1xf32>
    %cst_53 = arith.constant 9.99999997E-7 : f32
    %117 = vector.broadcast %cst_53 : f32 to vector<12x1xf32>
    %118 = arith.addf %116, %117 : vector<12x1xf32>
    %119 = tpu.reciprocal %118 {approx = true} : vector<12x1xf32> -> vector<12x1xf32>
    %120 = arith.mulf %3, %119 : vector<12x1xf32>
    %121 = arith.addf %2, %120 : vector<12x1xf32>
    %122 = vector.broadcast %121 : vector<12x1xf32> to vector<12x3xf32>
    %123 = arith.mulf %111, %122 : vector<12x3xf32>
    %124 = arith.mulf %123, %112 : vector<12x3xf32>
    %cst_54 = arith.constant dense<0.000000e+00> : vector<12xf32>
    %125 = vector.multi_reduction <add>, %124, %cst_54 [1] : vector<12x3xf32> to vector<12xf32>
    %126 = vector.shape_cast %125 : vector<12xf32> to vector<12x1xf32>
    %127 = arith.mulf %112, %112 : vector<12x3xf32>
    %cst_55 = arith.constant dense<0.000000e+00> : vector<12xf32>
    %128 = vector.multi_reduction <add>, %127, %cst_55 [1] : vector<12x3xf32> to vector<12xf32>
    %129 = vector.shape_cast %128 : vector<12xf32> to vector<12x1xf32>
    %cst_56 = arith.constant 9.99999997E-7 : f32
    %130 = vector.broadcast %cst_56 : f32 to vector<12x1xf32>
    %131 = arith.addf %129, %130 : vector<12x1xf32>
    %132 = tpu.reciprocal %131 {approx = true} : vector<12x1xf32> -> vector<12x1xf32>
    %133 = arith.mulf %126, %132 : vector<12x1xf32>
    %134 = vector.broadcast %133 : vector<12x1xf32> to vector<12x3xf32>
    %135 = arith.mulf %134, %112 : vector<12x3xf32>
    %136 = arith.subf %123, %135 : vector<12x3xf32>
    %cst_57 = arith.constant 2.000000e-01 : f32
    %137 = vector.broadcast %cst_57 : f32 to vector<12x3xf32>
    %138 = arith.mulf %137, %123 : vector<12x3xf32>
    %cst_58 = arith.constant 0.000000e+00 : f32
    %139 = vector.broadcast %cst_58 : f32 to vector<12x1xf32>
    %140 = arith.cmpf olt, %126, %139 : vector<12x1xf32>
    %141 = vector.shape_cast %140 : vector<12x1xi1> to vector<12x1xi1>
    %142 = vector.broadcast %141 : vector<12x1xi1> to vector<12x3xi1>
    %143 = arith.select %142, %136, %123 : vector<12x3xi1>, vector<12x3xf32>
    %cst_59 = arith.constant 8.000000e-01 : f32
    %144 = vector.broadcast %cst_59 : f32 to vector<12x3xf32>
    %145 = arith.mulf %144, %143 : vector<12x3xf32>
    %146 = arith.addf %138, %145 : vector<12x3xf32>
    %cst_60 = arith.constant dense<0.000000e+00> : vector<6x3xf32>
    %147 = tpu.matmul %4, %146, %cst_60 {dimension_numbers = #tpu.dot_dimension_numbers<[1], [0], [0], [1], [0, 0, 1, 1], [], []>} : vector<6x12xf32>, vector<12x3xf32>, vector<6x3xf32> -> vector<6x3xf32>
    %cst_61 = arith.constant dense<0.000000e+00> : vector<6x3xf32>
    %148 = tpu.matmul %5, %146, %cst_61 {dimension_numbers = #tpu.dot_dimension_numbers<[1], [0], [0], [1], [0, 0, 1, 1], [], []>} : vector<6x12xf32>, vector<12x3xf32>, vector<6x3xf32> -> vector<6x3xf32>
    %149 = arith.mulf %147, %147 : vector<6x3xf32>
    %cst_62 = arith.constant dense<0.000000e+00> : vector<6xf32>
    %150 = vector.multi_reduction <add>, %149, %cst_62 [1] : vector<6x3xf32> to vector<6xf32>
    %151 = vector.shape_cast %150 : vector<6xf32> to vector<6x1xf32>
    %152 = math.sqrt %151 : vector<6x1xf32>
    %cst_63 = arith.constant 9.99999997E-7 : f32
    %153 = vector.broadcast %cst_63 : f32 to vector<6x1xf32>
    %154 = arith.addf %152, %153 : vector<6x1xf32>
    %155 = tpu.reciprocal %154 {approx = true} : vector<6x1xf32> -> vector<6x1xf32>
    %156 = arith.mulf %7, %155 : vector<6x1xf32>
    %157 = arith.addf %6, %156 : vector<6x1xf32>
    %158 = vector.broadcast %157 : vector<6x1xf32> to vector<6x3xf32>
    %159 = arith.mulf %147, %158 : vector<6x3xf32>
    %160 = arith.mulf %159, %148 : vector<6x3xf32>
    %cst_64 = arith.constant dense<0.000000e+00> : vector<6xf32>
    %161 = vector.multi_reduction <add>, %160, %cst_64 [1] : vector<6x3xf32> to vector<6xf32>
    %162 = vector.shape_cast %161 : vector<6xf32> to vector<6x1xf32>
    %163 = arith.mulf %148, %148 : vector<6x3xf32>
    %cst_65 = arith.constant dense<0.000000e+00> : vector<6xf32>
    %164 = vector.multi_reduction <add>, %163, %cst_65 [1] : vector<6x3xf32> to vector<6xf32>
    %165 = vector.shape_cast %164 : vector<6xf32> to vector<6x1xf32>
    %cst_66 = arith.constant 9.99999997E-7 : f32
    %166 = vector.broadcast %cst_66 : f32 to vector<6x1xf32>
    %167 = arith.addf %165, %166 : vector<6x1xf32>
    %168 = tpu.reciprocal %167 {approx = true} : vector<6x1xf32> -> vector<6x1xf32>
    %169 = arith.mulf %162, %168 : vector<6x1xf32>
    %170 = vector.broadcast %169 : vector<6x1xf32> to vector<6x3xf32>
    %171 = arith.mulf %170, %148 : vector<6x3xf32>
    %172 = arith.subf %159, %171 : vector<6x3xf32>
    %cst_67 = arith.constant 2.000000e-01 : f32
    %173 = vector.broadcast %cst_67 : f32 to vector<6x3xf32>
    %174 = arith.mulf %173, %159 : vector<6x3xf32>
    %cst_68 = arith.constant 0.000000e+00 : f32
    %175 = vector.broadcast %cst_68 : f32 to vector<6x1xf32>
    %176 = arith.cmpf olt, %162, %175 : vector<6x1xf32>
    %177 = vector.shape_cast %176 : vector<6x1xi1> to vector<6x1xi1>
    %178 = vector.broadcast %177 : vector<6x1xi1> to vector<6x3xi1>
    %179 = arith.select %178, %172, %159 : vector<6x3xi1>, vector<6x3xf32>
    %cst_69 = arith.constant 8.000000e-01 : f32
    %180 = vector.broadcast %cst_69 : f32 to vector<6x3xf32>
    %181 = arith.mulf %180, %179 : vector<6x3xf32>
    %182 = arith.addf %174, %181 : vector<6x3xf32>
    %cst_70 = arith.constant dense<0.000000e+00> : vector<24x6xf32>
    %183 = tpu.matmul %110, %182, %cst_70 {dimension_numbers = #tpu.dot_dimension_numbers<[1], [1], [0], [0], [0, 0, 1, 0], [], []>} : vector<24x3xf32>, vector<6x3xf32>, vector<24x6xf32> -> vector<24x6xf32>
    %cst_71 = arith.constant dense<0.000000e+00> : vector<24x3xf32>
    %184 = tpu.matmul %183, %8, %cst_71 {dimension_numbers = #tpu.dot_dimension_numbers<[1], [1], [0], [0], [0, 0, 1, 0], [], []>} : vector<24x6xf32>, vector<3x6xf32>, vector<24x3xf32> -> vector<24x3xf32>
    %185 = vector.extract_strided_slice %184 {offsets = [0, 0], sizes = [24, 1], strides = [1, 1]} : vector<24x3xf32> to vector<24x1xf32>
    %186 = vector.extract_strided_slice %9 {offsets = [0, 0], sizes = [1, 1024], strides = [1, 1]} : vector<3x1024xf32> to vector<1x1024xf32>
    %187 = vector.broadcast %185 : vector<24x1xf32> to vector<24x1024xf32>
    %188 = vector.broadcast %186 : vector<1x1024xf32> to vector<24x1024xf32>
    %189 = arith.mulf %187, %188 : vector<24x1024xf32>
    %190 = vector.extract_strided_slice %184 {offsets = [0, 1], sizes = [24, 1], strides = [1, 1]} : vector<24x3xf32> to vector<24x1xf32>
    %191 = vector.extract_strided_slice %9 {offsets = [1, 0], sizes = [1, 1024], strides = [1, 1]} : vector<3x1024xf32> to vector<1x1024xf32>
    %192 = vector.broadcast %190 : vector<24x1xf32> to vector<24x1024xf32>
    %193 = vector.broadcast %191 : vector<1x1024xf32> to vector<24x1024xf32>
    %194 = arith.mulf %192, %193 : vector<24x1024xf32>
    %195 = arith.addf %189, %194 : vector<24x1024xf32>
    %196 = vector.extract_strided_slice %184 {offsets = [0, 2], sizes = [24, 1], strides = [1, 1]} : vector<24x3xf32> to vector<24x1xf32>
    %197 = vector.extract_strided_slice %9 {offsets = [2, 0], sizes = [1, 1024], strides = [1, 1]} : vector<3x1024xf32> to vector<1x1024xf32>
    %198 = vector.broadcast %196 : vector<24x1xf32> to vector<24x1024xf32>
    %199 = vector.broadcast %197 : vector<1x1024xf32> to vector<24x1024xf32>
    %200 = arith.mulf %198, %199 : vector<24x1024xf32>
    %201 = arith.addf %195, %200 : vector<24x1024xf32>
    %202 = vector.broadcast %10 : vector<1x1024xf32> to vector<24x1024xf32>
    %203 = arith.addf %201, %202 : vector<24x1024xf32>
    %c1_72 = arith.constant 1 : index
    %c0_73 = arith.constant 0 : index
    %c0_74 = arith.constant 0 : index
    %204 = vector.load %arg12[%c1_72, %c0_73, %c0_74] : memref<2x24x1024xf32, #tpu.memory_space<vmem>>, vector<1x24x1024xf32>
    %205 = vector.shape_cast %204 : vector<1x24x1024xf32> to vector<24x1024xf32>
    %206 = vector.shape_cast %203 : vector<24x1024xf32> to vector<1x24x1024xf32>
    tpu.vector_store %arg12[%c1_72, %c0_73, %c0_74], %206 {strides = array<i32>} : memref<2x24x1024xf32, #tpu.memory_space<vmem>>, vector<1x24x1024xf32>,
    return
  }
}

module attributes {stable_mosaic.version = 11 : i64} {
  func.func @_vn_conv_mean_kernel(%arg0: i32, %arg1: i32, %arg2: memref<3x1x72x32xbf16, #tpu.memory_space<vmem>>, %arg3: memref<24x72xbf16, #tpu.memory_space<vmem>>, %arg4: memref<16x1xf32, #tpu.memory_space<vmem>>, %arg5: memref<16x1xf32, #tpu.memory_space<vmem>>, %arg6: memref<3x1x16x1xf32, #tpu.memory_space<vmem>>) attributes {dimension_semantics = [#tpu.dimension_semantics<parallel>, #tpu.dimension_semantics<arbitrary>], iteration_bounds = array<i64: 2, 1>, scalar_prefetch = 0 : i64, scratch_operands = 0 : i64, tpu.core_type = #tpu.core_type<tc>, window_params = [{transform_indices = @transform_0, window_bounds = array<i64: 3, 1, 72, 32>}, {pipeline_mode = #tpu.pipeline_mode<synchronous>, transform_indices = @transform_1, window_bounds = array<i64: 24, 72>}, {pipeline_mode = #tpu.pipeline_mode<synchronous>, transform_indices = @transform_2, window_bounds = array<i64: 16, 1>}, {pipeline_mode = #tpu.pipeline_mode<synchronous>, transform_indices = @transform_3, window_bounds = array<i64: 16, 1>}, {transform_indices = @transform_4, window_bounds = array<i64: 3, 1, 16, 1>}]} {
    %c0_i32 = arith.constant 0 : i32
    %0 = arith.cmpi eq, %arg1, %c0_i32 : i32
    %1 = arith.extui %0 : i1 to i32
    %c0_i32_0 = arith.constant 0 : i32
    %2 = arith.cmpi ne, %1, %c0_i32_0 : i32
    scf.if %2 {
      %cst_57 = arith.constant 0.000000e+00 : f32
      %114 = vector.broadcast %cst_57 : f32 to vector<3x1x16x1xf32>
      %c0_58 = arith.constant 0 : index
      %c0_59 = arith.constant 0 : index
      %c0_60 = arith.constant 0 : index
      %c0_61 = arith.constant 0 : index
      %115 = vector.load %arg6[%c0_58, %c0_59, %c0_60, %c0_61] : memref<3x1x16x1xf32, #tpu.memory_space<vmem>>, vector<3x1x16x1xf32>
      tpu.vector_store %arg6[%c0_58, %c0_59, %c0_60, %c0_61], %114 {strides = array<i32>} : memref<3x1x16x1xf32, #tpu.memory_space<vmem>>, vector<3x1x16x1xf32>,
    } else {
    }
    %c0 = arith.constant 0 : index
    %c0_1 = arith.constant 0 : index
    %c0_2 = arith.constant 0 : index
    %c0_3 = arith.constant 0 : index
    %3 = vector.load %arg2[%c0, %c0_1, %c0_2, %c0_3] : memref<3x1x72x32xbf16, #tpu.memory_space<vmem>>, vector<1x1x72x32xbf16>
    %4 = vector.shape_cast %3 : vector<1x1x72x32xbf16> to vector<72x32xbf16>
    %c1 = arith.constant 1 : index
    %c0_4 = arith.constant 0 : index
    %c0_5 = arith.constant 0 : index
    %c0_6 = arith.constant 0 : index
    %5 = vector.load %arg2[%c1, %c0_4, %c0_5, %c0_6] : memref<3x1x72x32xbf16, #tpu.memory_space<vmem>>, vector<1x1x72x32xbf16>
    %6 = vector.shape_cast %5 : vector<1x1x72x32xbf16> to vector<72x32xbf16>
    %c2 = arith.constant 2 : index
    %c0_7 = arith.constant 0 : index
    %c0_8 = arith.constant 0 : index
    %c0_9 = arith.constant 0 : index
    %7 = vector.load %arg2[%c2, %c0_7, %c0_8, %c0_9] : memref<3x1x72x32xbf16, #tpu.memory_space<vmem>>, vector<1x1x72x32xbf16>
    %8 = vector.shape_cast %7 : vector<1x1x72x32xbf16> to vector<72x32xbf16>
    %c0_10 = arith.constant 0 : index
    %c0_11 = arith.constant 0 : index
    %9 = vector.load %arg3[%c0_10, %c0_11] : memref<24x72xbf16, #tpu.memory_space<vmem>>, vector<24x72xbf16>
    %c0_12 = arith.constant 0 : index
    %c0_13 = arith.constant 0 : index
    %10 = vector.load %arg4[%c0_12, %c0_13] : memref<16x1xf32, #tpu.memory_space<vmem>>, vector<16x1xf32>
    %c0_14 = arith.constant 0 : index
    %c0_15 = arith.constant 0 : index
    %11 = vector.load %arg5[%c0_14, %c0_15] : memref<16x1xf32, #tpu.memory_space<vmem>>, vector<16x1xf32>
    %cst = arith.constant dense<0.000000e+00> : vector<24x32xf32>
    %12 = tpu.matmul %9, %4, %cst {dimension_numbers = #tpu.dot_dimension_numbers<[1], [0], [0], [1], [0, 0, 1, 1], [], []>} : vector<24x72xbf16>, vector<72x32xbf16>, vector<24x32xf32> -> vector<24x32xf32>
    %cst_16 = arith.constant dense<0.000000e+00> : vector<24x32xf32>
    %13 = tpu.matmul %9, %6, %cst_16 {dimension_numbers = #tpu.dot_dimension_numbers<[1], [0], [0], [1], [0, 0, 1, 1], [], []>} : vector<24x72xbf16>, vector<72x32xbf16>, vector<24x32xf32> -> vector<24x32xf32>
    %cst_17 = arith.constant dense<0.000000e+00> : vector<24x32xf32>
    %14 = tpu.matmul %9, %8, %cst_17 {dimension_numbers = #tpu.dot_dimension_numbers<[1], [0], [0], [1], [0, 0, 1, 1], [], []>} : vector<24x72xbf16>, vector<72x32xbf16>, vector<24x32xf32> -> vector<24x32xf32>
    %15 = vector.extract_strided_slice %12 {offsets = [0, 0], sizes = [16, 32], strides = [1, 1]} : vector<24x32xf32> to vector<16x32xf32>
    %16 = vector.extract_strided_slice %13 {offsets = [0, 0], sizes = [16, 32], strides = [1, 1]} : vector<24x32xf32> to vector<16x32xf32>
    %17 = vector.extract_strided_slice %14 {offsets = [0, 0], sizes = [16, 32], strides = [1, 1]} : vector<24x32xf32> to vector<16x32xf32>
    %18 = vector.extract_strided_slice %12 {offsets = [16, 0], sizes = [1, 32], strides = [1, 1]} : vector<24x32xf32> to vector<1x32xf32>
    %19 = vector.extract_strided_slice %13 {offsets = [16, 0], sizes = [1, 32], strides = [1, 1]} : vector<24x32xf32> to vector<1x32xf32>
    %20 = vector.extract_strided_slice %14 {offsets = [16, 0], sizes = [1, 32], strides = [1, 1]} : vector<24x32xf32> to vector<1x32xf32>
    %21 = arith.mulf %15, %15 : vector<16x32xf32>
    %22 = arith.mulf %16, %16 : vector<16x32xf32>
    %23 = arith.addf %21, %22 : vector<16x32xf32>
    %24 = arith.mulf %17, %17 : vector<16x32xf32>
    %25 = arith.addf %23, %24 : vector<16x32xf32>
    %26 = math.sqrt %25 : vector<16x32xf32>
    %cst_18 = arith.constant 9.99999997E-7 : f32
    %27 = vector.broadcast %cst_18 : f32 to vector<16x32xf32>
    %28 = arith.addf %26, %27 : vector<16x32xf32>
    %29 = tpu.reciprocal %28 {approx = true} : vector<16x32xf32> -> vector<16x32xf32>
    %30 = vector.broadcast %11 : vector<16x1xf32> to vector<16x32xf32>
    %31 = arith.mulf %30, %29 : vector<16x32xf32>
    %32 = vector.broadcast %10 : vector<16x1xf32> to vector<16x32xf32>
    %33 = arith.addf %32, %31 : vector<16x32xf32>
    %34 = arith.mulf %15, %33 : vector<16x32xf32>
    %35 = arith.mulf %16, %33 : vector<16x32xf32>
    %36 = arith.mulf %17, %33 : vector<16x32xf32>
    %37 = vector.broadcast %18 : vector<1x32xf32> to vector<16x32xf32>
    %38 = arith.mulf %34, %37 : vector<16x32xf32>
    %39 = vector.broadcast %19 : vector<1x32xf32> to vector<16x32xf32>
    %40 = arith.mulf %35, %39 : vector<16x32xf32>
    %41 = arith.addf %38, %40 : vector<16x32xf32>
    %42 = vector.broadcast %20 : vector<1x32xf32> to vector<16x32xf32>
    %43 = arith.mulf %36, %42 : vector<16x32xf32>
    %44 = arith.addf %41, %43 : vector<16x32xf32>
    %45 = arith.mulf %18, %18 : vector<1x32xf32>
    %46 = arith.mulf %19, %19 : vector<1x32xf32>
    %47 = arith.addf %45, %46 : vector<1x32xf32>
    %48 = arith.mulf %20, %20 : vector<1x32xf32>
    %49 = arith.addf %47, %48 : vector<1x32xf32>
    %cst_19 = arith.constant 9.99999997E-7 : f32
    %50 = vector.broadcast %cst_19 : f32 to vector<1x32xf32>
    %51 = arith.addf %49, %50 : vector<1x32xf32>
    %52 = tpu.reciprocal %51 {approx = true} : vector<1x32xf32> -> vector<1x32xf32>
    %53 = vector.broadcast %52 : vector<1x32xf32> to vector<16x32xf32>
    %54 = arith.mulf %44, %53 : vector<16x32xf32>
    %cst_20 = arith.constant 0.000000e+00 : f32
    %55 = vector.broadcast %cst_20 : f32 to vector<16x32xf32>
    %56 = arith.cmpf olt, %44, %55 : vector<16x32xf32>
    %cst_21 = arith.constant 2.000000e-01 : f32
    %57 = vector.broadcast %cst_21 : f32 to vector<16x32xf32>
    %58 = arith.mulf %57, %34 : vector<16x32xf32>
    %59 = vector.broadcast %18 : vector<1x32xf32> to vector<16x32xf32>
    %60 = arith.mulf %54, %59 : vector<16x32xf32>
    %61 = arith.subf %34, %60 : vector<16x32xf32>
    %62 = arith.select %56, %61, %34 : vector<16x32xi1>, vector<16x32xf32>
    %cst_22 = arith.constant 8.000000e-01 : f32
    %63 = vector.broadcast %cst_22 : f32 to vector<16x32xf32>
    %64 = arith.mulf %63, %62 : vector<16x32xf32>
    %65 = arith.addf %58, %64 : vector<16x32xf32>
    %cst_23 = arith.constant 2.000000e-01 : f32
    %66 = vector.broadcast %cst_23 : f32 to vector<16x32xf32>
    %67 = arith.mulf %66, %35 : vector<16x32xf32>
    %68 = vector.broadcast %19 : vector<1x32xf32> to vector<16x32xf32>
    %69 = arith.mulf %54, %68 : vector<16x32xf32>
    %70 = arith.subf %35, %69 : vector<16x32xf32>
    %71 = arith.select %56, %70, %35 : vector<16x32xi1>, vector<16x32xf32>
    %cst_24 = arith.constant 8.000000e-01 : f32
    %72 = vector.broadcast %cst_24 : f32 to vector<16x32xf32>
    %73 = arith.mulf %72, %71 : vector<16x32xf32>
    %74 = arith.addf %67, %73 : vector<16x32xf32>
    %cst_25 = arith.constant 2.000000e-01 : f32
    %75 = vector.broadcast %cst_25 : f32 to vector<16x32xf32>
    %76 = arith.mulf %75, %36 : vector<16x32xf32>
    %77 = vector.broadcast %20 : vector<1x32xf32> to vector<16x32xf32>
    %78 = arith.mulf %54, %77 : vector<16x32xf32>
    %79 = arith.subf %36, %78 : vector<16x32xf32>
    %80 = arith.select %56, %79, %36 : vector<16x32xi1>, vector<16x32xf32>
    %cst_26 = arith.constant 8.000000e-01 : f32
    %81 = vector.broadcast %cst_26 : f32 to vector<16x32xf32>
    %82 = arith.mulf %81, %80 : vector<16x32xf32>
    %83 = arith.addf %76, %82 : vector<16x32xf32>
    %c0_27 = arith.constant 0 : index
    %c0_28 = arith.constant 0 : index
    %c0_29 = arith.constant 0 : index
    %c0_30 = arith.constant 0 : index
    %84 = vector.load %arg6[%c0_27, %c0_28, %c0_29, %c0_30] : memref<3x1x16x1xf32, #tpu.memory_space<vmem>>, vector<1x1x16x1xf32>
    %85 = vector.shape_cast %84 : vector<1x1x16x1xf32> to vector<16x1xf32>
    %cst_31 = arith.constant dense<0.000000e+00> : vector<16xf32>
    %86 = vector.multi_reduction <add>, %65, %cst_31 [1] : vector<16x32xf32> to vector<16xf32>
    %87 = vector.shape_cast %86 : vector<16xf32> to vector<16x1xf32>
    %cst_32 = arith.constant 3.125000e-02 : f32
    %88 = vector.broadcast %cst_32 : f32 to vector<16x1xf32>
    %89 = arith.mulf %87, %88 : vector<16x1xf32>
    %90 = arith.addf %85, %89 : vector<16x1xf32>
    %c0_33 = arith.constant 0 : index
    %c0_34 = arith.constant 0 : index
    %c0_35 = arith.constant 0 : index
    %c0_36 = arith.constant 0 : index
    %91 = vector.load %arg6[%c0_33, %c0_34, %c0_35, %c0_36] : memref<3x1x16x1xf32, #tpu.memory_space<vmem>>, vector<1x1x16x1xf32>
    %92 = vector.shape_cast %91 : vector<1x1x16x1xf32> to vector<16x1xf32>
    %93 = vector.shape_cast %90 : vector<16x1xf32> to vector<1x1x16x1xf32>
    tpu.vector_store %arg6[%c0_33, %c0_34, %c0_35, %c0_36], %93 {strides = array<i32>} : memref<3x1x16x1xf32, #tpu.memory_space<vmem>>, vector<1x1x16x1xf32>,
    %c1_37 = arith.constant 1 : index
    %c0_38 = arith.constant 0 : index
    %c0_39 = arith.constant 0 : index
    %c0_40 = arith.constant 0 : index
    %94 = vector.load %arg6[%c1_37, %c0_38, %c0_39, %c0_40] : memref<3x1x16x1xf32, #tpu.memory_space<vmem>>, vector<1x1x16x1xf32>
    %95 = vector.shape_cast %94 : vector<1x1x16x1xf32> to vector<16x1xf32>
    %cst_41 = arith.constant dense<0.000000e+00> : vector<16xf32>
    %96 = vector.multi_reduction <add>, %74, %cst_41 [1] : vector<16x32xf32> to vector<16xf32>
    %97 = vector.shape_cast %96 : vector<16xf32> to vector<16x1xf32>
    %cst_42 = arith.constant 3.125000e-02 : f32
    %98 = vector.broadcast %cst_42 : f32 to vector<16x1xf32>
    %99 = arith.mulf %97, %98 : vector<16x1xf32>
    %100 = arith.addf %95, %99 : vector<16x1xf32>
    %c1_43 = arith.constant 1 : index
    %c0_44 = arith.constant 0 : index
    %c0_45 = arith.constant 0 : index
    %c0_46 = arith.constant 0 : index
    %101 = vector.load %arg6[%c1_43, %c0_44, %c0_45, %c0_46] : memref<3x1x16x1xf32, #tpu.memory_space<vmem>>, vector<1x1x16x1xf32>
    %102 = vector.shape_cast %101 : vector<1x1x16x1xf32> to vector<16x1xf32>
    %103 = vector.shape_cast %100 : vector<16x1xf32> to vector<1x1x16x1xf32>
    tpu.vector_store %arg6[%c1_43, %c0_44, %c0_45, %c0_46], %103 {strides = array<i32>} : memref<3x1x16x1xf32, #tpu.memory_space<vmem>>, vector<1x1x16x1xf32>,
    %c2_47 = arith.constant 2 : index
    %c0_48 = arith.constant 0 : index
    %c0_49 = arith.constant 0 : index
    %c0_50 = arith.constant 0 : index
    %104 = vector.load %arg6[%c2_47, %c0_48, %c0_49, %c0_50] : memref<3x1x16x1xf32, #tpu.memory_space<vmem>>, vector<1x1x16x1xf32>
    %105 = vector.shape_cast %104 : vector<1x1x16x1xf32> to vector<16x1xf32>
    %cst_51 = arith.constant dense<0.000000e+00> : vector<16xf32>
    %106 = vector.multi_reduction <add>, %83, %cst_51 [1] : vector<16x32xf32> to vector<16xf32>
    %107 = vector.shape_cast %106 : vector<16xf32> to vector<16x1xf32>
    %cst_52 = arith.constant 3.125000e-02 : f32
    %108 = vector.broadcast %cst_52 : f32 to vector<16x1xf32>
    %109 = arith.mulf %107, %108 : vector<16x1xf32>
    %110 = arith.addf %105, %109 : vector<16x1xf32>
    %c2_53 = arith.constant 2 : index
    %c0_54 = arith.constant 0 : index
    %c0_55 = arith.constant 0 : index
    %c0_56 = arith.constant 0 : index
    %111 = vector.load %arg6[%c2_53, %c0_54, %c0_55, %c0_56] : memref<3x1x16x1xf32, #tpu.memory_space<vmem>>, vector<1x1x16x1xf32>
    %112 = vector.shape_cast %111 : vector<1x1x16x1xf32> to vector<16x1xf32>
    %113 = vector.shape_cast %110 : vector<16x1xf32> to vector<1x1x16x1xf32>
    tpu.vector_store %arg6[%c2_53, %c0_54, %c0_55, %c0_56], %113 {strides = array<i32>} : memref<3x1x16x1xf32, #tpu.memory_space<vmem>>, vector<1x1x16x1xf32>,
    return
  }
  func.func @transform_0(%arg0: i32, %arg1: i32) -> (i32, i32, i32, i32) {
    %c0_i32 = arith.constant 0 : i32
    %c0_i32_0 = arith.constant 0 : i32
    %c0_i32_1 = arith.constant 0 : i32
    return %c0_i32, %arg0, %c0_i32_0, %arg1 : i32, i32, i32, i32
  }
  func.func @transform_1(%arg0: i32, %arg1: i32) -> (i32, i32) {
    %c0_i32 = arith.constant 0 : i32
    %c0_i32_0 = arith.constant 0 : i32
    %c0_i32_1 = arith.constant 0 : i32
    return %c0_i32, %c0_i32_0 : i32, i32
  }
  func.func @transform_2(%arg0: i32, %arg1: i32) -> (i32, i32) {
    %c0_i32 = arith.constant 0 : i32
    %c0_i32_0 = arith.constant 0 : i32
    %c0_i32_1 = arith.constant 0 : i32
    return %c0_i32, %c0_i32_0 : i32, i32
  }
  func.func @transform_3(%arg0: i32, %arg1: i32) -> (i32, i32) {
    %c0_i32 = arith.constant 0 : i32
    %c0_i32_0 = arith.constant 0 : i32
    %c0_i32_1 = arith.constant 0 : i32
    return %c0_i32, %c0_i32_0 : i32, i32
  }
  func.func @transform_4(%arg0: i32, %arg1: i32) -> (i32, i32, i32, i32) {
    %c0_i32 = arith.constant 0 : i32
    %c0_i32_0 = arith.constant 0 : i32
    %c0_i32_1 = arith.constant 0 : i32
    %c0_i32_2 = arith.constant 0 : i32
    return %c0_i32, %arg0, %c0_i32_0, %c0_i32_1 : i32, i32, i32, i32
  }
}

</mosaic_0001>

<bundles_post_ra>
// kernel: vn_dgcnn_forward.8
= control target key start
LH: loop header
LB: loop body
LE: loop exit
PB: predicated region body
PF: predicated region fallthrough
CT: control target
= control target key end

     0   :  { %s370_s9 = smov 0   ;;  %s431_s0 = inlined_call_operand.vmem [shape: f32[2,32,3], index: 0, kind: input, shape index: {}]   ;;  %s432_s1 = inlined_call_operand.vmem [shape: f32[2,1,32], index: 1, kind: input, shape index: {}]   ;;  %s433_s2 = inlined_call_operand.vmem [shape: f32[2,32,32], index: 2, kind: output, shape index: {}]  }
   0x1 LB: > { %s305_s10 = sadd.s32 4294967295, %s353_s9   ;;  %p309_p0 = scmp.ge.s32.totalorder %s353_s9, 1  ;;  %s353_s9 = sphi %s370_s9, %s12_s9  }
   0x2   : > { %p120_p1 = scmp.lt.s32.totalorder %s353_s9, 3 }
   0x4   : > { %p121_p2 = pnand %p309_p0, %p120_p1 }
   0x5   : > { %p145_p3 = scmp.lt.s32.totalorder (!%p121_p2), %s305_s10, 1 }
   0x6   : > { %124 = sbr.rel (%p121_p2) target bundleno = 170 (0xaa), region = 28 }
   0xb   : > { %s435_s10 = smov (!%p145_p3, %s305_s10), 1  ;;  %vm162_vm0 = vcmask 23552   ;;  %vm236_vm1 = vcmask 261120  }
   0xc   : > { %s324_s11 = sshll.u32 %s435_s10, 5  ;;  %s152_s14 = scalar_lea.vmem %s432_s1, %s435_s10 }
   0xd   : > { %s149_s17 = scalar_lea.vmem %s431_s0, %s324_s11  ;;  %v346_v16 = vld [vmem:[%s152_s14] ss:$0 sm:$0xff]  ;;  %s157_s22 = scalar_lea.vmem %s433_s2, %s324_s11 }
   0xe   : > { %v161_v0 = vld [vmem:[%s149_s17 + $0x18] sm:$0xff]  ;;  %v160_v1 = vld [vmem:[%s149_s17 + $0x10] sm:$0xff]  ;;  %v158_v2 = vld [vmem:[%s149_s17] sm:$0xff] }
   0xf   : > { %314 = vmatpush.xpose.msk.msra.mxu0 %vm162_vm0, %v161_v0  ;;  %327 = vmatpush.xpose.msk.msra.mxu2 %vm162_vm0, %v161_v0  ;;  %v206_v3 = vmul.f32 %v160_v1, %v160_v1  ;;  %v204_v4 = vmul.f32 %v158_v2, %v158_v2  ;;  %v207_v7 = vmul.f32 %v161_v0, %v161_v0  ;;  %v159_v8 = vld [vmem:[%s149_s17 + $0x8] sm:$0xff] }
  0x10   : > { %328 = vmatpush.xpose.msk.msra.mxu3 %vm162_vm0, %v161_v0  ;;  %326 = vmatpush.xpose.msk.msra.mxu1 %vm162_vm0, %v161_v0  ;;  %v205_v9 = vmul.f32 %v159_v8, %v159_v8 }
  0x11   : > { %v214_v5 = vsel %vm162_vm0, %v206_v3, 0.0  ;;  %v208_v6 = vsel %vm162_vm0, %v204_v4, 0.0  ;;  %v217_v10 = vsel %vm162_vm0, %v207_v7, 0.0 }
  0x12   : > { %215 = vadd.xlane.f32.xlu1 %v214_v5  ;;  %209 = vadd.xlane.f32.xlu0 %v208_v6  ;;  %v211_v11 = vsel %vm162_vm0, %v205_v9, 0.0 }
  0x13   : > { %315 = vmatpush.xpose.msk.msra.mxu0 %vm162_vm0, %v160_v1  ;;  %330 = vmatpush.xpose.msk.msra.mxu2 %vm162_vm0, %v160_v1 }
  0x14   : > { %331 = vmatpush.xpose.msk.msra.mxu3 %vm162_vm0, %v160_v1  ;;  %329 = vmatpush.xpose.msk.msra.mxu1 %vm162_vm0, %v160_v1 }
  0x17   : > { %316 = vmatpush.xpose.msk.msra.mxu0 %vm162_vm0, %v159_v8  ;;  %333 = vmatpush.xpose.msk.msra.mxu2 %vm162_vm0, %v159_v8 }
  0x18   : > { %334 = vmatpush.xpose.msk.msra.mxu3 %vm162_vm0, %v159_v8  ;;  %332 = vmatpush.xpose.msk.msra.mxu1 %vm162_vm0, %v159_v8 }
  0x1a   : > { %218 = vadd.xlane.f32.xlu1 %v217_v10  ;;  %212 = vadd.xlane.f32.xlu0 %v211_v11 }
  0x1b   : > { %317 = vmatpush.xpose.msk.msra.mxu0 %vm162_vm0, %v158_v2  ;;  %336 = vmatpush.xpose.msk.msra.mxu2 %vm162_vm0, %v158_v2 }
  0x1c   : > { %337 = vmatpush.xpose.msk.msra.mxu3 %vm162_vm0, %v158_v2  ;;  %335 = vmatpush.xpose.msk.msra.mxu1 %vm162_vm0, %v158_v2 }
  0x1e   : > { %318 = vmatmul.msk.f32.vlgmr.msra.gmra.mxu0 %vm162_vm0, %v158_v2  ;;  %320 = vmatmul.msk.f32.vlgmr.msra.gmra.mxu2 %vm162_vm0, %v160_v1 }
  0x1f   : > { %321 = vmatmul.msk.f32.vlgmr.msra.gmra.mxu3 %vm162_vm0, %v161_v0  ;;  %319 = vmatmul.msk.f32.vlgmr.msra.gmra.mxu1 %vm162_vm0, %v159_v8 }
  0x85   : > { %v210_v12 = vpop.xlane.xlu0 %209  ;;  %v216_v13 = vpop.xlane.xlu1 %215 }
  0x8d   : > { %v213_v18 = vpop.xlane.xlu0 %212  ;;  %v219_v27 = vpop.xlane.xlu1 %218 }
  0x9b   : > { %v192_v14 = vpop.f32.mrf.mxu0 }
  0x9c   : > { %v220_v15 = vmul.f32 2.0, %v192_v14  ;;  %v195_v17 = vpop.f32.mrf.mxu1 }
  0x9d   : > { %v221_v19 = vmul.f32 2.0, %v195_v17 }
  0x9e   : > { %v224_v20 = vsub.f32 %v220_v15, %v210_v12 }
  0x9f   : > { %v225_v21 = vsub.f32 %v221_v19, %v213_v18 }
  0xa0   : > { %v232_v22 = vsub.f32 %v224_v20, %v346_v16 }
  0xa1   : > { %v198_v23 = vpop.f32.mrf.mxu2  ;;  %v233_v24 = vsub.f32 %v225_v21, %v346_v16 }
  0xa2   : > { %237 = vst.msk [vmem:[%s157_s22] sm:$0xff] %vm236_vm1, %v232_v22  ;;  %v222_v25 = vmul.f32 2.0, %v198_v23  ;;  %v201_v26 = vpop.f32.mrf.mxu3 }
  0xa3   : > { %v223_v28 = vmul.f32 2.0, %v201_v26  ;;  %238 = vst.msk [vmem:[%s157_s22 + $0x8] sm:$0xff] %vm236_vm1, %v233_v24 }
  0xa4   : > { %v226_v29 = vsub.f32 %v222_v25, %v216_v13 }
  0xa5   : > { %v227_v30 = vsub.f32 %v223_v28, %v219_v27 }
  0xa6   : > { %v234_v31 = vsub.f32 %v226_v29, %v346_v16 }
  0xa7   : > { %v235_v32 = vsub.f32 %v227_v30, %v346_v16 }
  0xa8   : > { %239 = vst.msk [vmem:[%s157_s22 + $0x10] sm:$0xff] %vm236_vm1, %v234_v31 }
  0xa9   : > { %240 = vst.msk [vmem:[%s157_s22 + $0x18] sm:$0xff] %vm236_vm1, %v235_v32 }
  0xaa PF: > { %s12_s9 = sadd.s32 1, %s353_s9  }
  0xab   : > { %p9_p4 = scmp.ge.s32.totalorder %s12_s9, 4  }
  0xad   :  { %11 = sbr.rel (!%p9_p4) target bundleno = 1 (0x1), region = 61 }

// kernel: vn_dgcnn_forward.10
= control target key start
LH: loop header
LB: loop body
LE: loop exit
PB: predicated region body
PF: predicated region fallthrough
CT: control target
= control target key end

     0   :  { %s370_s9 = smov 0   ;;  %s431_s0 = inlined_call_operand.vmem [shape: f32[2,32,72], index: 0, kind: input, shape index: {}]   ;;  %s432_s1 = inlined_call_operand.vmem [shape: f32[2,1,32], index: 1, kind: input, shape index: {}]   ;;  %s433_s2 = inlined_call_operand.vmem [shape: f32[2,32,32], index: 2, kind: output, shape index: {}]  }
   0x1 LB: > { %s305_s10 = sadd.s32 4294967295, %s353_s9   ;;  %p309_p0 = scmp.ge.s32.totalorder %s353_s9, 1  ;;  %s353_s9 = sphi %s370_s9, %s12_s9  }
   0x2   : > { %p120_p1 = scmp.lt.s32.totalorder %s353_s9, 3 }
   0x4   : > { %p121_p2 = pnand %p309_p0, %p120_p1 }
   0x5   : > { %p145_p3 = scmp.lt.s32.totalorder (!%p121_p2), %s305_s10, 1 }
   0x6   : > { %124 = sbr.rel (%p121_p2) target bundleno = 170 (0xaa), region = 28 }
   0xb   : > { %s435_s10 = smov (!%p145_p3, %s305_s10), 1  ;;  %vm162_vm0 = vcmask 588800   ;;  %vm236_vm1 = vcmask 261120  }
   0xc   : > { %s324_s11 = sshll.u32 %s435_s10, 5  ;;  %s152_s14 = scalar_lea.vmem %s432_s1, %s435_s10 }
   0xd   : > { %s149_s17 = scalar_lea.vmem %s431_s0, %s324_s11  ;;  %v346_v16 = vld [vmem:[%s152_s14] ss:$0 sm:$0xff]  ;;  %s157_s22 = scalar_lea.vmem %s433_s2, %s324_s11 }
   0xe   : > { %v161_v0 = vld [vmem:[%s149_s17 + $0x18] sm:$0xff]  ;;  %v160_v1 = vld [vmem:[%s149_s17 + $0x10] sm:$0xff]  ;;  %v158_v2 = vld [vmem:[%s149_s17] sm:$0xff] }
   0xf   : > { %314 = vmatpush.xpose.msk.msra.mxu0 %vm162_vm0, %v161_v0  ;;  %327 = vmatpush.xpose.msk.msra.mxu2 %vm162_vm0, %v161_v0  ;;  %v206_v3 = vmul.f32 %v160_v1, %v160_v1  ;;  %v204_v4 = vmul.f32 %v158_v2, %v158_v2  ;;  %v207_v7 = vmul.f32 %v161_v0, %v161_v0  ;;  %v159_v8 = vld [vmem:[%s149_s17 + $0x8] sm:$0xff] }
  0x10   : > { %328 = vmatpush.xpose.msk.msra.mxu3 %vm162_vm0, %v161_v0  ;;  %326 = vmatpush.xpose.msk.msra.mxu1 %vm162_vm0, %v161_v0  ;;  %v205_v9 = vmul.f32 %v159_v8, %v159_v8 }
  0x11   : > { %v214_v5 = vsel %vm162_vm0, %v206_v3, 0.0  ;;  %v208_v6 = vsel %vm162_vm0, %v204_v4, 0.0  ;;  %v217_v10 = vsel %vm162_vm0, %v207_v7, 0.0 }
  0x12   : > { %215 = vadd.xlane.f32.xlu1 %v214_v5  ;;  %209 = vadd.xlane.f32.xlu0 %v208_v6  ;;  %v211_v11 = vsel %vm162_vm0, %v205_v9, 0.0 }
  0x13   : > { %315 = vmatpush.xpose.msk.msra.mxu0 %vm162_vm0, %v160_v1  ;;  %330 = vmatpush.xpose.msk.msra.mxu2 %vm162_vm0, %v160_v1 }
  0x14   : > { %331 = vmatpush.xpose.msk.msra.mxu3 %vm162_vm0, %v160_v1  ;;  %329 = vmatpush.xpose.msk.msra.mxu1 %vm162_vm0, %v160_v1 }
  0x17   : > { %316 = vmatpush.xpose.msk.msra.mxu0 %vm162_vm0, %v159_v8  ;;  %333 = vmatpush.xpose.msk.msra.mxu2 %vm162_vm0, %v159_v8 }
  0x18   : > { %334 = vmatpush.xpose.msk.msra.mxu3 %vm162_vm0, %v159_v8  ;;  %332 = vmatpush.xpose.msk.msra.mxu1 %vm162_vm0, %v159_v8 }
  0x1a   : > { %218 = vadd.xlane.f32.xlu1 %v217_v10  ;;  %212 = vadd.xlane.f32.xlu0 %v211_v11 }
  0x1b   : > { %317 = vmatpush.xpose.msk.msra.mxu0 %vm162_vm0, %v158_v2  ;;  %336 = vmatpush.xpose.msk.msra.mxu2 %vm162_vm0, %v158_v2 }
  0x1c   : > { %337 = vmatpush.xpose.msk.msra.mxu3 %vm162_vm0, %v158_v2  ;;  %335 = vmatpush.xpose.msk.msra.mxu1 %vm162_vm0, %v158_v2 }
  0x1e   : > { %318 = vmatmul.msk.f32.vlgmr.msra.gmra.mxu0 %vm162_vm0, %v158_v2  ;;  %320 = vmatmul.msk.f32.vlgmr.msra.gmra.mxu2 %vm162_vm0, %v160_v1 }
  0x1f   : > { %321 = vmatmul.msk.f32.vlgmr.msra.gmra.mxu3 %vm162_vm0, %v161_v0  ;;  %319 = vmatmul.msk.f32.vlgmr.msra.gmra.mxu1 %vm162_vm0, %v159_v8 }
  0x85   : > { %v210_v12 = vpop.xlane.xlu0 %209  ;;  %v216_v13 = vpop.xlane.xlu1 %215 }
  0x8d   : > { %v213_v18 = vpop.xlane.xlu0 %212  ;;  %v219_v27 = vpop.xlane.xlu1 %218 }
  0x9b   : > { %v192_v14 = vpop.f32.mrf.mxu0 }
  0x9c   : > { %v220_v15 = vmul.f32 2.0, %v192_v14  ;;  %v195_v17 = vpop.f32.mrf.mxu1 }
  0x9d   : > { %v221_v19 = vmul.f32 2.0, %v195_v17 }
  0x9e   : > { %v224_v20 = vsub.f32 %v220_v15, %v210_v12 }
  0x9f   : > { %v225_v21 = vsub.f32 %v221_v19, %v213_v18 }
  0xa0   : > { %v232_v22 = vsub.f32 %v224_v20, %v346_v16 }
  0xa1   : > { %v198_v23 = vpop.f32.mrf.mxu2  ;;  %v233_v24 = vsub.f32 %v225_v21, %v346_v16 }
  0xa2   : > { %237 = vst.msk [vmem:[%s157_s22] sm:$0xff] %vm236_vm1, %v232_v22  ;;  %v222_v25 = vmul.f32 2.0, %v198_v23  ;;  %v201_v26 = vpop.f32.mrf.mxu3 }
  0xa3   : > { %v223_v28 = vmul.f32 2.0, %v201_v26  ;;  %238 = vst.msk [vmem:[%s157_s22 + $0x8] sm:$0xff] %vm236_vm1, %v233_v24 }
  0xa4   : > { %v226_v29 = vsub.f32 %v222_v25, %v216_v13 }
  0xa5   : > { %v227_v30 = vsub.f32 %v223_v28, %v219_v27 }
  0xa6   : > { %v234_v31 = vsub.f32 %v226_v29, %v346_v16 }
  0xa7   : > { %v235_v32 = vsub.f32 %v227_v30, %v346_v16 }
  0xa8   : > { %239 = vst.msk [vmem:[%s157_s22 + $0x10] sm:$0xff] %vm236_vm1, %v234_v31 }
  0xa9   : > { %240 = vst.msk [vmem:[%s157_s22 + $0x18] sm:$0xff] %vm236_vm1, %v235_v32 }
  0xaa PF: > { %s12_s9 = sadd.s32 1, %s353_s9  }
  0xab   : > { %p9_p4 = scmp.ge.s32.totalorder %s12_s9, 4  }
  0xad   :  { %11 = sbr.rel (!%p9_p4) target bundleno = 1 (0x1), region = 61 }

// kernel: vn_dgcnn_forward.9
= control target key start
LH: loop header
LB: loop body
LE: loop exit
PB: predicated region body
PF: predicated region fallthrough
CT: control target
= control target key end

     0   :  { %s1262_s24 = smov 0   ;;  %s1264_s25 = smov 0   ;;  %s1731_s0 = inlined_call_operand.vmem [shape: bf16[20,3,2,64], index: 0, kind: input, shape index: {}]   ;;  %s1732_s1 = inlined_call_operand.vmem [shape: bf16[48,2], index: 1, kind: input, shape index: {}]   ;;  %s1733_s2 = inlined_call_operand.vmem [shape: f32[24,1], index: 2, kind: input, shape index: {}]   ;;  %s1734_s3 = inlined_call_operand.vmem [shape: f32[24,1], index: 3, kind: input, shape index: {}]   ;;  %s1735_s4 = inlined_call_operand.vmem [shape: bf16[48,24], index: 4, kind: input, shape index: {}]   ;;  %s1736_s5 = inlined_call_operand.vmem [shape: f32[24,1], index: 5, kind: input, shape index: {}]   ;;  %s1737_s6 = inlined_call_operand.vmem [shape: f32[24,1], index: 6, kind: input, shape index: {}]   ;;  %s1738_s7 = inlined_call_operand.vmem [shape: f32[3,24,64], index: 7, kind: output, shape index: {}]  }
   0x1   :  { %s1266_s26 = smov 0  }
   0x2 LB: > { %s26_s27 = sadd.s32 1, %s1214_s25  ;;  %p1061_p0 = scmp.ge.s32.totalorder %s1218_s26, 1  ;;  %s1218_s26 = sphi %s1266_s26, %s17_s26   ;;  %s1214_s25 = sphi %s1264_s25, %s1740_s25   ;;  %s1210_s24 = sphi %s1262_s24, %s1739_s24  }
   0x3   : > { %p27_p1 = scmp.ge.s32.totalorder %s26_s27, 20  ;;  %p253_p2 = scmp.lt.s32.totalorder %s1218_s26, 21 }
   0x5   : > { %s1742_s27 = smov (%p27_p1, %s26_s27), 0  ;;  %p254_p3 = pnand %p1061_p0, %p253_p2 }
   0x6   : > { %p286_p4 = scmp.lt.s32.totalorder (!%p254_p3), %s1210_s24, 19  ;;  %p1062_p5 = scmp.ne.s32.totalorder (!%p254_p3), %s1210_s24, 0 }
   0x7   : > { %257 = sbr.rel (%p254_p3) target bundleno = 494 (0x1ee), region = 48 }
   0xc   : > { %s287_s28 = scalar_select %p286_p4, %s1210_s24, 19 }
   0xd   : > { %301 = sbr.rel (%p1062_p5) target bundleno = 28 (0x1c), region = 52 }
   0xe   : > { %s1130_s29 = smul.u32 3, %s287_s28 }
  0x10   : > { %s292_s9 = scalar_lea.vmem %s1731_s0, %s1130_s29 }
  0x12   : > { %vm302_vm0 = vcmask 523264   ;;  %v1220_v0 = vmov 0.0  }
  0x13   : > { %303 = vst.msk [vmem:[%s1738_s7] sm:$0xff] %vm302_vm0, %v1220_v0 }
  0x14   : > { %304 = vst.msk [vmem:[%s1738_s7 + $0x8] sm:$0xff] %vm302_vm0, %v1220_v0 }
  0x15   : > { %305 = vst.msk [vmem:[%s1738_s7 + $0x10] sm:$0xff] %vm302_vm0, %v1220_v0 }
  0x16   : > { %306 = vst.msk [vmem:[%s1738_s7 + $0x18] sm:$0xff] %vm302_vm0, %v1220_v0 }
  0x17   : > { %307 = vst.msk [vmem:[%s1738_s7 + $0x20] sm:$0xff] %vm302_vm0, %v1220_v0 }
  0x18   : > { %308 = vst.msk [vmem:[%s1738_s7 + $0x28] sm:$0xff] %vm302_vm0, %v1220_v0 }
  0x19   : > { %309 = vst.msk [vmem:[%s1738_s7 + $0x30] sm:$0xff] %vm302_vm0, %v1220_v0 }
  0x1a   : > { %310 = vst.msk [vmem:[%s1738_s7 + $0x38] sm:$0xff] %vm302_vm0, %v1220_v0 }
  0x1b   : > { %311 = vst.msk [vmem:[%s1738_s7 + $0x40] sm:$0xff] %vm302_vm0, %v1220_v0 }
  0x1c PF: > { %v312_v1 = vld [vmem:[%s292_s9] sm:$0x1]  ;;  %vm354_vm1 = vcmask 1040384   ;;  %v1063_v2 = vld [vmem:[%s292_s9 + $0x1] sm:$0x1]  ;;  %v1123_v5 = vld [vmem:[%s1732_s1 + $0x8] sm:$0xff] }
  0x1d   : > { %v356_v3 = vsel %vm354_vm1, %v312_v1, 0  ;;  %v383_v4 = vsel %vm354_vm1, %v1063_v2, 0  ;;  %v1064_v6 = vld [vmem:[%s292_s9 + $0x2] sm:$0x1]  ;;  %vm344_vm2 = vcmask 15360   ;;  %v1124_v9 = vld [vmem:[%s1732_s1 + $0x10] sm:$0xff] }
  0x1e   : > { %1128 = vmatpush.bf16.msra.mxu2 %v356_v3  ;;  %1129 = vmatpush.bf16.msra.mxu3 %v383_v4  ;;  %v410_v7 = vsel %vm354_vm1, %v1064_v6, 0  ;;  %v1122_v8 = vld [vmem:[%s1732_s1] sm:$0xff]  ;;  %v328_v10 = vld [vmem:[%s1734_s3 + $0x10] sm:$0xff]  ;;  %v1221_v12 = vmov 0   ;;  %v327_v15 = vld [vmem:[%s1734_s3 + $0x8] sm:$0xff]  ;;  %vm677_vm10 = vcmask 1043456  }
  0x1f   : > { %365 = vmatpush.bf16.msra.mxu0 %v356_v3  ;;  %392 = vmatpush.bf16.msra.mxu1 %v383_v4  ;;  %v326_v11 = vld [vmem:[%s1734_s3] sm:$0xff]  ;;  %v325_v14 = vld [vmem:[%s1733_s2 + $0x10] sm:$0xff]  ;;  %v324_v16 = vld [vmem:[%s1733_s2 + $0x8] sm:$0xff]  ;;  %vm667_vm13 = vcmask 195584  }
  0x20   : > { %1157 = vset.pattern.permute.xlu0 %v1221_v12  ;;  %1158 = vset.pattern.permute.xlu1 %v1221_v12  ;;  %v323_v13 = vld [vmem:[%s1733_s2] sm:$0xff]  ;;  %v644_v18 = vld [vmem:[%s1737_s6 + $0x8] sm:$0xff]  ;;  %v645_v19 = vld [vmem:[%s1737_s6 + $0x10] sm:$0xff] }
  0x21   : > { %1078 = vmatmul.msk.bf16.vlgmr.msra.gmra.mxu2 %vm344_vm2, %v1123_v5  ;;  %1081 = vmatmul.msk.bf16.vlgmr.msra.gmra.mxu3 %vm344_vm2, %v1123_v5  ;;  %v643_v17 = vld [vmem:[%s1737_s6] sm:$0xff]  ;;  %v641_v21 = vld [vmem:[%s1736_s5 + $0x8] sm:$0xff]  ;;  %v642_v22 = vld [vmem:[%s1736_s5 + $0x10] sm:$0xff] }
  0x22   : > { %419 = vmatpush.bf16.msrb.mxu2 %v410_v7  ;;  %1077 = vmatmul.msk.bf16.vlgmr.msra.gmra.mxu0 %vm344_vm2, %v1122_v8  ;;  %v640_v20 = vld [vmem:[%s1736_s5] sm:$0xff] }
  0x23   : > { %1080 = vmatmul.msk.bf16.vlgmr.msra.gmra.mxu1 %vm344_vm2, %v1122_v8  ;;  %505 = vperm.xlu0 %1157, %v328_v10  }
  0x24   : > { %495 = vperm.xlu1 %1158, %v326_v11   ;;  %1159 = vset.pattern.permute.xlu2 %v1221_v12 }
  0x25   : > { %513 = vperm.xlu2 %1159, %v323_v13  }
  0x2b   : > { %523 = vperm.xlu0 %1157, %v325_v14  }
  0x2c   : > { %500 = vperm.xlu1 %1158, %v327_v15  }
  0x2d   : > { %518 = vperm.xlu2 %1159, %v324_v16  }
  0x31   : > { %1079 = vmatmul.msk.bf16.gmra.mxu2 %vm344_vm2, %v1124_v9  ;;  %1082 = vmatmul.msk.bf16.gmra.mxu3 %vm344_vm2, %v1124_v9 }
  0x33   : > { %818 = vperm.xlu0 %1157, %v643_v17  }
  0x34   : > { %823 = vperm.xlu1 %1158, %v644_v18  }
  0x35   : > { %828 = vperm.xlu2 %1159, %v645_v19  }
  0x3b   : > { %836 = vperm.xlu0 %1157, %v640_v20  }
  0x3c   : > { %841 = vperm.xlu1 %1158, %v641_v21  }
  0x3d   : > { %846 = vperm.xlu2 %1159, %v642_v22  }
  0x41   : > { %1083 = vmatmul.msk.bf16.vlgmr.msrb.gmra.mxu2 %vm344_vm2, %v1122_v8 }
  0x51   : > { %1084 = vmatmul.msk.bf16.gmra.mxu2 %vm344_vm2, %v1123_v5 }
  0x61   : > { %1085 = vmatmul.msk.bf16.gmra.mxu2 %vm344_vm2, %v1124_v9 }
  0x7f   : > { %v514_v22 = vpop.permute.xlu2 %513 }
  0x96   : > { %v496_v13 = vpop.permute.xlu1 %495 }
  0x9f   : > { %v1370_v26 = vpop.f32.mrf.mxu0 }
  0xa0   : > { %v1372_v27 = vpop.f32.mrf.mxu1  ;;  %v436_v29 = vmul.f32 %v1370_v26, %v1370_v26 }
  0xa1   : > { %v439_v30 = vmul.f32 %v1372_v27, %v1372_v27 }
  0xa3   : > { %v442_v31 = vadd.f32 %v439_v30, %v436_v29 }
  0xa4   : > { %v1364_v23 = vpop.f32.mrf.mxu2  ;;  %v1394_v41 = vpop.f32.mrf.mxu3 }
  0xa5   : > { %v438_v46 = vmul.f32 %v1364_v23, %v1364_v23  ;;  %v441_v47 = vmul.f32 %v1394_v41, %v1394_v41 }
  0xa7   : > { %v1380_v32 = vpop.f32.mrf.mxu0  ;;  %v444_v51 = vadd.f32 %v441_v47, %v438_v46 }
  0xa8   : > { %v1384_v34 = vpop.f32.mrf.mxu1  ;;  %v437_v37 = vmul.f32 %v1380_v32, %v1380_v32 }
  0xa9   : > { %v440_v38 = vmul.f32 %v1384_v34, %v1384_v34 }
  0xab   : > { %v443_v39 = vadd.f32 %v440_v38, %v437_v37 }
  0xac   : > { %v1366_v24 = vpop.f32.mrf.mxu2  ;;  %v1406_v55 = vpop.f32.mrf.mxu3 }
  0xad   : > { %v553_v15 = vmul.f32 %v1366_v24, %v1366_v24  ;;  %v556_v16 = vmul.f32 %v1406_v55, %v1406_v55 }
  0xb4   : > { %v1368_v25 = vpop.f32.mrf.mxu2  ;;  %v1410_v7 = vpop.f32.mrf.mxu3 }
  0xb5   : > { %v554_v19 = vmul.f32 %v1368_v25, %v1368_v25  ;;  %v557_v20 = vmul.f32 %v1410_v7, %v1410_v7 }
  0xbc   : > { %v1374_v28 = vpop.f32.mrf.mxu2 }
  0xc4   : > { %v1382_v33 = vpop.f32.mrf.mxu2 }
  0xc5   : > { %v445_v35 = vmul.f32 %v1382_v33, %v1382_v33 }
  0xc7   : > { %v448_v36 = vadd.f32 %v445_v35, %v442_v31 }
  0xc9   : > { %1160 = vrsqrt.f32 %v448_v36  ;;  %vm458_vm3 = vcmp.eq.f32.partialorder %v448_v36, inf  ;;  %v461_v61 = vand.u32 2147483648, %v448_v36  ;;  %vm460_vm4 = vcmp.eq.f32.partialorder %v448_v36, 0.0 }
  0xcc   : > { %v1392_v40 = vpop.f32.mrf.mxu2 }
  0xcd   : > { %v446_v42 = vmul.f32 %v1392_v40, %v1392_v40 }
  0xcf   : > { %v1161_v43 = vpop.eup %1160  ;;  %v449_v44 = vadd.f32 %v446_v42, %v443_v39  ;;  %v560_v39 = vadd.f32 %v557_v20, %v554_v19 }
  0xd0   : > { %v452_v45 = vmul.f32 %v1161_v43, %v448_v36 }
  0xd1   : > { %1162 = vrsqrt.f32 %v449_v44  ;;  %vm470_vm5 = vcmp.eq.f32.partialorder %v449_v44, inf  ;;  %v473_v10 = vand.u32 2147483648, %v449_v44  ;;  %vm472_vm6 = vcmp.eq.f32.partialorder %v449_v44, 0.0 }
  0xd2   : > { %v453_v48 = vmul.f32 %v1161_v43, %v452_v45 }
  0xd4   : > { %v1402_v49 = vpop.f32.mrf.mxu2  ;;  %v454_v50 = vmul.f32 0.5, %v453_v48 }
  0xd5   : > { %v447_v52 = vmul.f32 %v1402_v49, %v1402_v49 }
  0xd6   : > { %v455_v53 = vsub.f32 1.5, %v454_v50  ;;  %v555_v50 = vmul.f32 %v1374_v28, %v1374_v28 }
  0xd7   : > { %v1163_v54 = vpop.eup %1162  ;;  %v450_v56 = vadd.f32 %v447_v52, %v444_v51 }
  0xd8   : > { %v456_v57 = vmul.f32 %v1161_v43, %v455_v53  ;;  %v464_v58 = vmul.f32 %v1163_v54, %v449_v44  ;;  %v1426_v43 = vpop.f32.mrf.mxu3 }
  0xd9   : > { %1164 = vrsqrt.f32 %v450_v56  ;;  %vm482_vm7 = vcmp.eq.f32.partialorder %v450_v56, inf  ;;  %vm484_vm8 = vcmp.eq.f32.partialorder %v450_v56, 0.0 }
  0xda   : > { %v457_v59 = vmul.f32 %v456_v57, %v448_v36  ;;  %v465_v60 = vmul.f32 %v1163_v54, %v464_v58  ;;  %v558_v57 = vmul.f32 %v1426_v43, %v1426_v43  ;;  %v506_v58 = vpop.permute.xlu0 %505 }
  0xdc   : > { %v1408_v62 = vpop.f32.mrf.mxu2  ;;  %v459_v63 = vsel %vm458_vm3, %v448_v36, %v457_v59  ;;  %v466_v0 = vmul.f32 0.5, %v465_v60  ;;  %v559_v36 = vadd.f32 %v556_v16, %v553_v15 }
  0xdd   : > { %v462_v1 = vsel %vm460_vm4, %v461_v61, %v459_v63  ;;  %v562_v30 = vmul.f32 %v1408_v62, %v1408_v62 }
  0xde   : > { %v487_v2 = vadd.f32 1e-06, %v462_v1  ;;  %v467_v3 = vsub.f32 1.5, %v466_v0  ;;  %v519_v1 = vpop.permute.xlu2 %518 }
  0xdf   : > { %v1165_v4 = vpop.eup %1164  ;;  %v565_v45 = vadd.f32 %v562_v30, %v559_v36 }
  0xe0   : > { %v476_v5 = vmul.f32 %v1165_v4, %v450_v56  ;;  %1166 = vrcp.f32 %v487_v2  ;;  %v468_v6 = vmul.f32 %v1163_v54, %v467_v3 }
  0xe1   : > { %v568_v60 = vadd.f32 1e-06, %v565_v45 }
  0xe2   : > { %v477_v8 = vmul.f32 %v1165_v4, %v476_v5  ;;  %v469_v9 = vmul.f32 %v468_v6, %v449_v44 }
  0xe4   : > { %v478_v11 = vmul.f32 0.5, %v477_v8  ;;  %v1412_v12 = vpop.f32.mrf.mxu2  ;;  %v471_v14 = vsel %vm470_vm5, %v449_v44, %v469_v9  ;;  %v485_v44 = vand.u32 2147483648, %v450_v56  ;;  %vm966_vm5 = vcmask 523264  }
  0xe5   : > { %v474_v17 = vsel %vm472_vm6, %v473_v10, %v471_v14  ;;  %v563_v37 = vmul.f32 %v1412_v12, %v1412_v12 }
  0xe6   : > { %v1167_v18 = vpop.eup %1166  ;;  %v479_v21 = vsub.f32 1.5, %v478_v11  ;;  %v488_v29 = vadd.f32 1e-06, %v474_v17 }
  0xe7   : > { %v508_v31 = vmul.f32 %v1167_v18, %v496_v13  ;;  %v566_v52 = vadd.f32 %v563_v37, %v560_v39 }
  0xe8   : > { %v480_v35 = vmul.f32 %v1165_v4, %v479_v21  ;;  %1168 = vrcp.f32 %v488_v29  ;;  %v561_v4 = vadd.f32 %v558_v57, %v555_v50 }
  0xe9   : > { %v526_v38 = vadd.f32 %v514_v22, %v508_v31  ;;  %v569_v2 = vadd.f32 1e-06, %v566_v52 }
  0xea   : > { %v481_v42 = vmul.f32 %v480_v35, %v450_v56 }
  0xeb   : > { %v1429_v46 = vmul.f32 %v526_v38, %v1370_v26  ;;  %v1432_v47 = vmul.f32 %v526_v38, %v1372_v27  ;;  %v1445_v63 = vmul.f32 %v526_v38, %v1382_v33 }
  0xec   : > { %v483_v48 = vsel %vm482_vm7, %v450_v56, %v481_v42  ;;  %v1436_v53 = vpop.f32.mrf.mxu2  ;;  %v501_v56 = vpop.permute.xlu1 %500 }
  0xed   : > { %v486_v51 = vsel %vm484_vm8, %v485_v44, %v483_v48  ;;  %v538_v26 = vmul.f32 %v1429_v46, %v1366_v24  ;;  %v541_v27 = vmul.f32 %v1432_v47, %v1406_v55  ;;  %v564_v0 = vmul.f32 %v1436_v53, %v1436_v53 }
  0xee   : > { %v1169_v54 = vpop.eup %1168  ;;  %v489_v59 = vadd.f32 1e-06, %v486_v51  ;;  %v547_v33 = vmul.f32 %v1445_v63, %v1408_v62 }
  0xef   : > { %v509_v61 = vmul.f32 %v1169_v54, %v501_v56  ;;  %v544_v5 = vadd.f32 %v541_v27, %v538_v26  ;;  %v567_v10 = vadd.f32 %v564_v0, %v561_v4 }
  0xf0   : > { %1170 = vrcp.f32 %v489_v59 }
  0xf1   : > { %v527_v3 = vadd.f32 %v519_v1, %v509_v61  ;;  %1172 = vrcp.f32 %v568_v60  ;;  %v1461_v15 = vadd.f32 %v547_v33, %v544_v5  ;;  %v570_v17 = vadd.f32 1e-06, %v567_v10 }
  0xf2   : > { %1174 = vrcp.f32 %v569_v2 }
  0xf3   : > { %v530_v6 = vmul.f32 %v527_v3, %v1380_v32  ;;  %v1451_v8 = vmul.f32 %v527_v3, %v1384_v34  ;;  %v1454_v9 = vmul.f32 %v527_v3, %v1392_v40  ;;  %v524_v40 = vpop.permute.xlu0 %523  ;;  %1176 = vrcp.f32 %v570_v17 }
  0xf4   : > { %vm577_vm9 = vcmp.lt.f32.partialorder %v1461_v15, 0.0 }
  0xf5   : > { %v539_v11 = vmul.f32 %v530_v6, %v1368_v25  ;;  %v542_v13 = vmul.f32 %v1451_v8, %v1410_v7  ;;  %v548_v34 = vmul.f32 %v1454_v9, %v1412_v12  ;;  %v581_v54 = vmul.f32 0.2, %v530_v6 }
  0xf6   : > { %v1171_v14 = vpop.eup %1170 }
  0xf7   : > { %v510_v32 = vmul.f32 %v1171_v14, %v506_v58  ;;  %v545_v16 = vadd.f32 %v542_v13, %v539_v11  ;;  %v1173_v18 = vpop.eup %1172  ;;  %v599_v13 = vmul.f32 0.2, %v1451_v8 }
  0xf8   : > { %v574_v21 = vmul.f32 %v1173_v18, %v1461_v15  ;;  %v1175_v22 = vpop.eup %1174 }
  0xf9   : > { %v528_v19 = vadd.f32 %v524_v40, %v510_v32  ;;  %v551_v20 = vadd.f32 %v548_v34, %v545_v16  ;;  %v1177_v48 = vpop.eup %1176 }
  0xfa   : > { %v583_v38 = vmul.f32 %v574_v21, %v1366_v24  ;;  %v601_v45 = vmul.f32 %v574_v21, %v1406_v55  ;;  %v619_v51 = vmul.f32 %v574_v21, %v1408_v62  ;;  %v580_v24 = vmul.f32 0.2, %v1429_v46 }
  0xfb   : > { %v531_v29 = vmul.f32 %v528_v19, %v1364_v23  ;;  %v534_v30 = vmul.f32 %v528_v19, %v1394_v41  ;;  %v537_v31 = vmul.f32 %v528_v19, %v1402_v49  ;;  %v575_v35 = vmul.f32 %v1175_v22, %v551_v20 }
  0xfc   : > { %v586_v50 = vsub.f32 %v1429_v46, %v583_v38  ;;  %vm578_vm11 = vcmp.lt.f32.partialorder %v551_v20, 0.0  ;;  %v622_v27 = vsub.f32 %v1445_v63, %v619_v51  ;;  %v617_v19 = vmul.f32 0.2, %v1454_v9 }
  0xfd   : > { %v540_v36 = vmul.f32 %v531_v29, %v1374_v28  ;;  %v543_v37 = vmul.f32 %v534_v30, %v1426_v43  ;;  %v549_v42 = vmul.f32 %v537_v31, %v1436_v53  ;;  %v584_v44 = vmul.f32 %v575_v35, %v1368_v25 }
  0xfe   : > { %v602_v23 = vmul.f32 %v575_v35, %v1410_v7  ;;  %v620_v49 = vmul.f32 %v575_v35, %v1412_v12  ;;  %v604_v25 = vsub.f32 %v1432_v47, %v601_v45  ;;  %v582_v59 = vmul.f32 0.2, %v531_v29 }
  0xff   : > { %v546_v39 = vadd.f32 %v543_v37, %v540_v36  ;;  %v587_v57 = vsub.f32 %v530_v6, %v584_v44  ;;  %v589_v26 = vsel %vm577_vm9, %v586_v50, %v1429_v46  ;;  %v600_v61 = vmul.f32 0.2, %v534_v30 }
 0x100   : > { %v605_v55 = vsub.f32 %v1451_v8, %v602_v23  ;;  %v623_v62 = vsub.f32 %v1454_v9, %v620_v49  ;;  %v607_v46 = vsel %vm577_vm9, %v604_v25, %v1432_v47  ;;  %v592_v17 = vmul.f32 0.8, %v589_v26 }
 0x101   : > { %v552_v41 = vadd.f32 %v549_v42, %v546_v39  ;;  %v610_v18 = vmul.f32 0.8, %v607_v46  ;;  %v616_v35 = vmul.f32 0.2, %v1445_v63 }
 0x102   : > { %v626_v4 = vsel %vm578_vm11, %v623_v62, %v1454_v9  ;;  %v595_v9 = vadd.f32 %v592_v17, %v580_v24 }
 0x103   : > { %v576_v52 = vmul.f32 %v1177_v48, %v552_v41  ;;  %vm579_vm12 = vcmp.lt.f32.partialorder %v552_v41, 0.0  ;;  %v629_v40 = vmul.f32 0.8, %v626_v4  ;;  %v1127_v41 = vld [vmem:[%s1735_s4 + $0x10] sm:$0xff] }
 0x105   : > { %v585_v7 = vmul.f32 %v576_v52, %v1374_v28  ;;  %v603_v12 = vmul.f32 %v576_v52, %v1426_v43  ;;  %v621_v58 = vmul.f32 %v576_v52, %v1436_v53  ;;  %v618_v28 = vmul.f32 0.2, %v537_v31 }
 0x106   : > { %v590_v43 = vsel %vm578_vm11, %v587_v57, %v530_v6  ;;  %v608_v53 = vsel %vm578_vm11, %v605_v55, %v1451_v8  ;;  %v625_v6 = vsel %vm577_vm9, %v622_v27, %v1445_v63  ;;  %v598_v8 = vmul.f32 0.2, %v1432_v47  ;;  %v1125_v47 = vld [vmem:[%s1735_s4] sm:$0xff]  ;;  %v1126_v63 = vld [vmem:[%s1735_s4 + $0x8] sm:$0xff] }
 0x107   : > { %v624_v56 = vsub.f32 %v537_v31, %v621_v58  ;;  %v588_v60 = vsub.f32 %v531_v29, %v585_v7  ;;  %v606_v0 = vsub.f32 %v534_v30, %v603_v12  ;;  %v593_v11 = vmul.f32 0.8, %v590_v43 }
 0x108   : > { %v611_v14 = vmul.f32 0.8, %v608_v53  ;;  %v632_v38 = vadd.f32 %v629_v40, %v617_v19  ;;  %v613_v39 = vadd.f32 %v610_v18, %v598_v8  ;;  %v819_v19 = vpop.permute.xlu0 %818 }
 0x109   : > { %v591_v1 = vsel %vm579_vm12, %v588_v60, %v531_v29  ;;  %v609_v2 = vsel %vm579_vm12, %v606_v0, %v534_v30  ;;  %v627_v3 = vsel %vm579_vm12, %v624_v56, %v537_v31  ;;  %v628_v29 = vmul.f32 0.8, %v625_v6 }
 0x10a   : > { %v594_v5 = vmul.f32 0.8, %v591_v1  ;;  %v612_v10 = vmul.f32 0.8, %v609_v2  ;;  %v630_v33 = vmul.f32 0.8, %v627_v3  ;;  %v596_v30 = vadd.f32 %v593_v11, %v581_v54 }
 0x10b   : > { %v614_v31 = vadd.f32 %v611_v14, %v599_v13  ;;  %v631_v42 = vadd.f32 %v628_v29, %v616_v35 }
 0x10c   : > { %v597_v32 = vadd.f32 %v594_v5, %v582_v59  ;;  %v615_v16 = vadd.f32 %v612_v10, %v600_v61  ;;  %v633_v34 = vadd.f32 %v630_v33, %v618_v28  ;;  %v646_v44 = vpack.c.bf16 %v596_v30, %v595_v9 }
 0x10d   : > { %v648_v45 = vpack.c.bf16 %v614_v31, %v613_v39  ;;  %v650_v23 = vpack.c.bf16 %v632_v38, %v631_v42 }
 0x10e   : > { %v647_v20 = vpack.c.bf16 %v597_v32, %v597_v32  ;;  %v649_v21 = vpack.c.bf16 %v615_v16, %v615_v16  ;;  %v651_v22 = vpack.c.bf16 %v633_v34, %v633_v34 }
 0x110   : > { %v679_v15 = vsel %vm677_vm10, %v647_v20, 0  ;;  %v706_v36 = vsel %vm677_vm10, %v649_v21, 0  ;;  %v733_v37 = vsel %vm677_vm10, %v651_v22, 0 }
 0x111   : > { %687 = vmatpush.bf16.msrb.mxu3 %v679_v15  ;;  %714 = vmatpush.bf16.msrb.mxu0 %v706_v36 }
 0x112   : > { %741 = vmatpush.bf16.msrb.mxu1 %v733_v37 }
 0x115   : > { %688 = vmatpush.bf16.msrb.mxu3 %v646_v44  ;;  %715 = vmatpush.bf16.msrb.mxu0 %v648_v45 }
 0x116   : > { %742 = vmatpush.bf16.msrb.mxu1 %v650_v23 }
 0x118   : > { %1098 = vmatmul.msk.bf16.vlgmr.msrb.gmra.mxu3 %vm667_vm13, %v1125_v47  ;;  %1101 = vmatmul.msk.bf16.vlgmr.msrb.gmra.mxu0 %vm667_vm13, %v1125_v47 }
 0x119   : > { %1104 = vmatmul.msk.bf16.vlgmr.msrb.gmra.mxu1 %vm667_vm13, %v1125_v47 }
 0x128   : > { %1099 = vmatmul.msk.bf16.gmra.mxu3 %vm667_vm13, %v1126_v63  ;;  %1102 = vmatmul.msk.bf16.gmra.mxu0 %vm667_vm13, %v1126_v63 }
 0x129   : > { %1105 = vmatmul.msk.bf16.gmra.mxu1 %vm667_vm13, %v1126_v63 }
 0x138   : > { %1100 = vmatmul.msk.bf16.gmra.mxu3 %vm667_vm13, %v1127_v41  ;;  %1103 = vmatmul.msk.bf16.gmra.mxu0 %vm667_vm13, %v1127_v41 }
 0x139   : > { %1106 = vmatmul.msk.bf16.gmra.mxu1 %vm667_vm13, %v1127_v41 }
 0x195   : > { %v1515_v49 = vpop.f32.mrf.mxu0 }
 0x196   : > { %v1517_v48 = vpop.f32.mrf.mxu1  ;;  %v762_v50 = vmul.f32 %v1515_v49, %v1515_v49 }
 0x197   : > { %v768_v24 = vmul.f32 %v1517_v48, %v1517_v48 }
 0x19b   : > { %v1521_v51 = vpop.f32.mrf.mxu3 }
 0x19c   : > { %v759_v52 = vmul.f32 %v1521_v51, %v1521_v51 }
 0x19d   : > { %v1527_v54 = vpop.f32.mrf.mxu0 }
 0x19e   : > { %v765_v57 = vadd.f32 %v762_v50, %v759_v52  ;;  %v1529_v25 = vpop.f32.mrf.mxu1  ;;  %v763_v58 = vmul.f32 %v1527_v54, %v1527_v54  ;;  %v824_v50 = vpop.permute.xlu1 %823 }
 0x19f   : > { %v769_v26 = vmul.f32 %v1529_v25, %v1529_v25 }
 0x1a0   : > { %v771_v55 = vadd.f32 %v768_v24, %v765_v57 }
 0x1a2   : > { %1178 = vrsqrt.f32 %v771_v55  ;;  %vm781_vm14 = vcmp.eq.f32.partialorder %v771_v55, inf  ;;  %v784_v16 = vand.u32 2147483648, %v771_v55  ;;  %vm783_vm15 = vcmp.eq.f32.partialorder %v771_v55, 0.0 }
 0x1a3   : > { %v1531_v7 = vpop.f32.mrf.mxu3 }
 0x1a4   : > { %v760_v12 = vmul.f32 %v1531_v7, %v1531_v7 }
 0x1a5   : > { %v1537_v62 = vpop.f32.mrf.mxu0 }
 0x1a6   : > { %v766_v59 = vadd.f32 %v763_v58, %v760_v12  ;;  %v1541_v60 = vpop.f32.mrf.mxu1  ;;  %v764_v0 = vmul.f32 %v1537_v62, %v1537_v62  ;;  %v837_v58 = vpop.permute.xlu0 %836 }
 0x1a7   : > { %v770_v1 = vmul.f32 %v1541_v60, %v1541_v60 }
 0x1a8   : > { %v1179_v27 = vpop.eup %1178  ;;  %v772_v56 = vadd.f32 %v769_v26, %v766_v59 }
 0x1a9   : > { %v775_v61 = vmul.f32 %v1179_v27, %v771_v55 }
 0x1aa   : > { %1180 = vrsqrt.f32 %v772_v56  ;;  %vm793_vm0 = vcmp.eq.f32.partialorder %v772_v56, inf  ;;  %v796_v42 = vand.u32 2147483648, %v772_v56  ;;  %vm795_vm1 = vcmp.eq.f32.partialorder %v772_v56, 0.0 }
 0x1ab   : > { %v776_v28 = vmul.f32 %v1179_v27, %v775_v61  ;;  %v1545_v43 = vpop.f32.mrf.mxu3 }
 0x1ac   : > { %v761_v53 = vmul.f32 %v1545_v43, %v1545_v43 }
 0x1ad   : > { %v777_v2 = vmul.f32 0.5, %v776_v28  ;;  %v1551_v5 = vpop.f32.mrf.mxu0 }
 0x1ae   : > { %v767_v3 = vadd.f32 %v764_v0, %v761_v53  ;;  %v1556_v13 = vpop.f32.mrf.mxu1  ;;  %v879_v22 = vmul.f32 %v1551_v5, %v1551_v5 }
 0x1af   : > { %v778_v4 = vsub.f32 1.5, %v777_v2  ;;  %v885_v38 = vmul.f32 %v1556_v13, %v1556_v13 }
 0x1b0   : > { %v1181_v10 = vpop.eup %1180  ;;  %v1553_v33 = vadd.f32 %v770_v1, %v767_v3 }
 0x1b1   : > { %v779_v46 = vmul.f32 %v1179_v27, %v778_v4  ;;  %v787_v11 = vmul.f32 %v1181_v10, %v772_v56 }
 0x1b2   : > { %1182 = vrsqrt.f32 %v1553_v33  ;;  %vm805_vm2 = vcmp.eq.f32.partialorder %v1553_v33, inf  ;;  %v808_v0 = vand.u32 2147483648, %v1553_v33  ;;  %vm807_vm3 = vcmp.eq.f32.partialorder %v1553_v33, 0.0 }
 0x1b3   : > { %v780_v14 = vmul.f32 %v779_v46, %v771_v55  ;;  %v788_v6 = vmul.f32 %v1181_v10, %v787_v11  ;;  %v1558_v32 = vpop.f32.mrf.mxu3 }
 0x1b4   : > { %v876_v17 = vmul.f32 %v1558_v32, %v1558_v32 }
 0x1b5   : > { %v782_v34 = vsel %vm781_vm14, %v771_v55, %v780_v14  ;;  %v789_v40 = vmul.f32 0.5, %v788_v6  ;;  %v1564_v29 = vpop.f32.mrf.mxu0 }
 0x1b6   : > { %v785_v18 = vsel %vm783_vm15, %v784_v16, %v782_v34  ;;  %v882_v35 = vadd.f32 %v879_v22, %v876_v17  ;;  %v1567_v15 = vpop.f32.mrf.mxu1  ;;  %v880_v39 = vmul.f32 %v1564_v29, %v1564_v29 }
 0x1b7   : > { %v810_v20 = vadd.f32 1e-06, %v785_v18  ;;  %v790_v21 = vsub.f32 1.5, %v789_v40  ;;  %v886_v55 = vmul.f32 %v1567_v15, %v1567_v15 }
 0x1b8   : > { %v1183_v30 = vpop.eup %1182  ;;  %v888_v47 = vadd.f32 %v885_v38, %v882_v35 }
 0x1b9   : > { %1184 = vrcp.f32 %v810_v20  ;;  %v791_v8 = vmul.f32 %v1181_v10, %v790_v21  ;;  %v799_v31 = vmul.f32 %v1183_v30, %v1553_v33  ;;  %v842_v20 = vpop.permute.xlu1 %841 }
 0x1ba   : > { %v891_v26 = vadd.f32 1e-06, %v888_v47 }
 0x1bb   : > { %v792_v36 = vmul.f32 %v791_v8, %v772_v56  ;;  %v800_v37 = vmul.f32 %v1183_v30, %v799_v31  ;;  %v1571_v9 = vpop.f32.mrf.mxu3 }
 0x1bc   : > { %v877_v44 = vmul.f32 %v1571_v9, %v1571_v9 }
 0x1bd   : > { %v794_v45 = vsel %vm793_vm0, %v772_v56, %v792_v36  ;;  %v801_v23 = vmul.f32 0.5, %v800_v37  ;;  %v1579_v27 = vpop.f32.mrf.mxu0 }
 0x1be   : > { %v797_v63 = vsel %vm795_vm1, %v796_v42, %v794_v45  ;;  %v883_v57 = vadd.f32 %v880_v39, %v877_v44  ;;  %v881_v4 = vmul.f32 %v1579_v27, %v1579_v27  ;;  %v1591_v10 = vpop.f32.mrf.mxu1 }
 0x1bf   : > { %v1185_v41 = vpop.eup %1184  ;;  %v811_v52 = vadd.f32 1e-06, %v797_v63  ;;  %v802_v24 = vsub.f32 1.5, %v801_v23  ;;  %v887_v40 = vmul.f32 %v1591_v10, %v1591_v10 }
 0x1c0   : > { %v831_v12 = vmul.f32 %v1185_v41, %v819_v19  ;;  %v889_v28 = vadd.f32 %v886_v55, %v883_v57 }
 0x1c1   : > { %1186 = vrcp.f32 %v811_v52  ;;  %v803_v59 = vmul.f32 %v1183_v30, %v802_v24 }
 0x1c2   : > { %v849_v61 = vadd.f32 %v837_v58, %v831_v12  ;;  %1188 = vrcp.f32 %v891_v26  ;;  %v892_v34 = vadd.f32 1e-06, %v889_v28 }
 0x1c3   : > { %v804_v56 = vmul.f32 %v803_v59, %v1553_v33  ;;  %v1584_v53 = vpop.f32.mrf.mxu3 }
 0x1c4   : > { %v852_v1 = vmul.f32 %v849_v61, %v1521_v51  ;;  %v855_v2 = vmul.f32 %v849_v61, %v1515_v49  ;;  %v858_v3 = vmul.f32 %v849_v61, %v1517_v48  ;;  %v878_v11 = vmul.f32 %v1584_v53, %v1584_v53  ;;  %v829_v48 = vpop.permute.xlu2 %828 }
 0x1c5   : > { %v806_v46 = vsel %vm805_vm2, %v1553_v33, %v804_v56 }
 0x1c6   : > { %v809_v14 = vsel %vm807_vm3, %v808_v0, %v806_v46  ;;  %v861_v51 = vmul.f32 %v852_v1, %v1558_v32  ;;  %v864_v49 = vmul.f32 %v855_v2, %v1551_v5  ;;  %v870_v33 = vmul.f32 %v858_v3, %v1556_v13 }
 0x1c7   : > { %v1187_v6 = vpop.eup %1186  ;;  %v812_v16 = vadd.f32 1e-06, %v809_v14  ;;  %v884_v19 = vadd.f32 %v881_v4, %v878_v11  ;;  %v939_v38 = vmul.f32 0.2, %v858_v3  ;;  %v903_v23 = vmul.f32 0.2, %v852_v1 }
 0x1c8   : > { %v832_v17 = vmul.f32 %v1187_v6, %v824_v50  ;;  %v867_v18 = vadd.f32 %v864_v49, %v861_v51  ;;  %v1189_v30 = vpop.eup %1188 }
 0x1c9   : > { %1190 = vrcp.f32 %v812_v16  ;;  %v890_v8 = vadd.f32 %v887_v40, %v884_v19 }
 0x1ca   : > { %v850_v21 = vadd.f32 %v842_v20, %v832_v17  ;;  %v873_v22 = vadd.f32 %v870_v33, %v867_v18  ;;  %1192 = vrcp.f32 %v892_v34 }
 0x1cb   : > { %v893_v47 = vadd.f32 1e-06, %v890_v8 }
 0x1cc   : > { %v1603_v31 = vmul.f32 %v850_v21, %v1531_v7  ;;  %v1606_v35 = vmul.f32 %v850_v21, %v1527_v54  ;;  %v897_v36 = vmul.f32 %v1189_v30, %v873_v22  ;;  %v1609_v37 = vmul.f32 %v850_v21, %v1529_v25  ;;  %v847_v52 = vpop.permute.xlu2 %846 }
 0x1cd   : > { %vm900_vm4 = vcmp.lt.f32.partialorder %v873_v22, 0.0  ;;  %1194 = vrcp.f32 %v893_v47 }
 0x1ce   : > { %v906_v39 = vmul.f32 %v897_v36, %v1558_v32  ;;  %v924_v42 = vmul.f32 %v897_v36, %v1551_v5  ;;  %v942_v44 = vmul.f32 %v897_v36, %v1556_v13  ;;  %v862_v7 = vmul.f32 %v1603_v31, %v1571_v9 }
 0x1cf   : > { %v1191_v45 = vpop.eup %1190  ;;  %v865_v54 = vmul.f32 %v1606_v35, %v1564_v29  ;;  %v921_v32 = vmul.f32 0.2, %v855_v2  ;;  %v871_v5 = vmul.f32 %v1609_v37, %v1567_v15  ;;  %v922_v36 = vmul.f32 0.2, %v1606_v35 }
 0x1d0   : > { %v833_v63 = vmul.f32 %v1191_v45, %v829_v48  ;;  %v909_v41 = vsub.f32 %v852_v1, %v906_v39  ;;  %v927_v25 = vsub.f32 %v855_v2, %v924_v42  ;;  %v945_v50 = vsub.f32 %v858_v3, %v942_v44  ;;  %v1193_v13 = vpop.eup %1192 }
 0x1d1   : > { %v868_v24 = vadd.f32 %v865_v54, %v862_v7 }
 0x1d2   : > { %v851_v57 = vadd.f32 %v847_v52, %v833_v63  ;;  %v912_v55 = vsel %vm900_vm4, %v909_v41, %v852_v1  ;;  %v930_v12 = vsel %vm900_vm4, %v927_v25, %v855_v2  ;;  %v948_v58 = vsel %vm900_vm4, %v945_v50, %v858_v3  ;;  %v957_v3 = vld [vmem:[%s1738_s7] sm:$0xff] }
 0x1d3   : > { %v915_v59 = vmul.f32 0.8, %v912_v55  ;;  %v933_v26 = vmul.f32 0.8, %v930_v12  ;;  %v951_v61 = vmul.f32 0.8, %v948_v58  ;;  %v874_v56 = vadd.f32 %v871_v5, %v868_v24  ;;  %v1195_v22 = vpop.eup %1194 }
 0x1d4   : > { %v1621_v0 = vmul.f32 %v851_v57, %v1541_v60  ;;  %v1624_v28 = vmul.f32 %v851_v57, %v1545_v43  ;;  %v1627_v4 = vmul.f32 %v851_v57, %v1537_v62  ;;  %v940_v2 = vmul.f32 0.2, %v1609_v37  ;;  %v1107_v60 = vld [vmem:[%s1738_s7 + $0x18] sm:$0xff]  ;;  %v1113_v62 = vld [vmem:[%s1738_s7 + $0x30] sm:$0xff]  ;;  %v1108_v52 = vld [vmem:[%s1738_s7 + $0x20] sm:$0xff] }
 0x1d5   : > { %v918_v46 = vadd.f32 %v915_v59, %v903_v23  ;;  %v936_v11 = vadd.f32 %v933_v26, %v921_v32  ;;  %v954_v14 = vadd.f32 %v951_v61, %v939_v38  ;;  %v898_v1 = vmul.f32 %v1193_v13, %v874_v56 }
 0x1d6   : > { %v863_v43 = vmul.f32 %v1624_v28, %v1584_v53  ;;  %v866_v51 = vmul.f32 %v1627_v4, %v1579_v27  ;;  %v872_v18 = vmul.f32 %v1621_v0, %v1591_v10  ;;  %vm901_vm6 = vcmp.lt.f32.partialorder %v874_v56, 0.0 }
 0x1d7   : > { %v960_v49 = vmul.f32 0.05, %v918_v46  ;;  %v974_v6 = vmul.f32 0.05, %v936_v11  ;;  %v987_v48 = vmul.f32 0.05, %v954_v14  ;;  %v907_v16 = vmul.f32 %v898_v1, %v1571_v9 }
 0x1d8   : > { %v925_v34 = vmul.f32 %v898_v1, %v1564_v29  ;;  %v943_v40 = vmul.f32 %v898_v1, %v1567_v15  ;;  %v869_v17 = vadd.f32 %v866_v51, %v863_v43  ;;  %v904_v29 = vmul.f32 0.2, %v1603_v31  ;;  %v1109_v14 = vld [vmem:[%s1738_s7 + $0x28] sm:$0xff] }
 0x1d9   : > { %v963_v33 = vadd.f32 %v960_v49, %v957_v3  ;;  %v977_v19 = vadd.f32 %v1107_v60, %v974_v6  ;;  %v990_v20 = vadd.f32 %v1113_v62, %v987_v48  ;;  %v910_v21 = vsub.f32 %v1603_v31, %v907_v16  ;;  %v1115_v3 = vld [vmem:[%s1738_s7 + $0x40] sm:$0xff] }
 0x1da   : > { %v928_v30 = vsub.f32 %v1606_v35, %v925_v34  ;;  %v946_v8 = vsub.f32 %v1609_v37, %v943_v40  ;;  %v875_v9 = vadd.f32 %v872_v18, %v869_v17  ;;  %v923_v25 = vmul.f32 0.2, %v1627_v4 }
 0x1db   : > { %967 = vst.msk [vmem:[%s1738_s7] sm:$0xff] %vm966_vm5, %v963_v33  ;;  %v913_v15 = vsel %vm901_vm6, %v910_v21, %v1603_v31  ;;  %v941_v56 = vmul.f32 0.2, %v1621_v0 }
 0x1dc   : > { %1110 = vst.msk [vmem:[%s1738_s7 + $0x18] sm:$0xff] %vm966_vm5, %v977_v19  ;;  %v916_v38 = vmul.f32 0.8, %v913_v15  ;;  %v931_v39 = vsel %vm901_vm6, %v928_v30, %v1606_v35  ;;  %v949_v42 = vsel %vm901_vm6, %v946_v8, %v1609_v37  ;;  %v899_v44 = vmul.f32 %v1195_v22, %v875_v9  ;;  %v958_v35 = vld [vmem:[%s1738_s7 + $0x8] sm:$0xff] }
 0x1dd   : > { %1116 = vst.msk [vmem:[%s1738_s7 + $0x30] sm:$0xff] %vm966_vm5, %v990_v20  ;;  %v934_v45 = vmul.f32 0.8, %v931_v39  ;;  %v952_v31 = vmul.f32 0.8, %v949_v42  ;;  %vm902_vm7 = vcmp.lt.f32.partialorder %v875_v9, 0.0 }
 0x1de   : > { %v919_v23 = vadd.f32 %v916_v38, %v904_v29  ;;  %v908_v7 = vmul.f32 %v899_v44, %v1584_v53  ;;  %v926_v54 = vmul.f32 %v899_v44, %v1579_v27  ;;  %v944_v47 = vmul.f32 %v899_v44, %v1591_v10  ;;  %v1114_v27 = vld [vmem:[%s1738_s7 + $0x38] sm:$0xff] }
 0x1df   : > { %v937_v63 = vadd.f32 %v934_v45, %v922_v36  ;;  %v955_v41 = vadd.f32 %v952_v31, %v940_v2  ;;  %v905_v37 = vmul.f32 0.2, %v1624_v28 }
 0x1e0   : > { %v961_v50 = vmul.f32 0.05, %v919_v23  ;;  %v911_v53 = vsub.f32 %v1624_v28, %v908_v7  ;;  %v929_v10 = vsub.f32 %v1627_v4, %v926_v54  ;;  %v947_v32 = vsub.f32 %v1621_v0, %v944_v47 }
 0x1e1   : > { %v975_v24 = vmul.f32 0.05, %v937_v63  ;;  %v988_v5 = vmul.f32 0.05, %v955_v41 }
 0x1e2   : > { %v964_v13 = vadd.f32 %v961_v50, %v958_v35  ;;  %v914_v57 = vsel %vm902_vm7, %v911_v53, %v1624_v28  ;;  %v932_v55 = vsel %vm902_vm7, %v929_v10, %v1627_v4  ;;  %v950_v12 = vsel %vm902_vm7, %v947_v32, %v1621_v0  ;;  %v959_v0 = vld [vmem:[%s1738_s7 + $0x10] sm:$0xff] }
 0x1e3   : > { %v978_v58 = vadd.f32 %v1108_v52, %v975_v24  ;;  %v991_v59 = vadd.f32 %v1114_v27, %v988_v5  ;;  %v917_v26 = vmul.f32 0.8, %v914_v57  ;;  %v935_v61 = vmul.f32 0.8, %v932_v55 }
 0x1e4   : > { %968 = vst.msk [vmem:[%s1738_s7 + $0x8] sm:$0xff] %vm966_vm5, %v964_v13  ;;  %v953_v46 = vmul.f32 0.8, %v950_v12 }
 0x1e5   : > { %1111 = vst.msk [vmem:[%s1738_s7 + $0x20] sm:$0xff] %vm966_vm5, %v978_v58  ;;  %v920_v28 = vadd.f32 %v917_v26, %v905_v37  ;;  %v938_v4 = vadd.f32 %v935_v61, %v923_v25 }
 0x1e6   : > { %1117 = vst.msk [vmem:[%s1738_s7 + $0x38] sm:$0xff] %vm966_vm5, %v991_v59  ;;  %v956_v11 = vadd.f32 %v953_v46, %v941_v56 }
 0x1e7   : > { %v962_v1 = vmul.f32 0.05, %v920_v28  ;;  %v976_v2 = vmul.f32 0.05, %v938_v4 }
 0x1e8   : > { %v989_v60 = vmul.f32 0.05, %v956_v11 }
 0x1e9   : > { %v965_v62 = vadd.f32 %v962_v1, %v959_v0  ;;  %v979_v43 = vadd.f32 %v1109_v14, %v976_v2 }
 0x1ea   : > { %v992_v51 = vadd.f32 %v1115_v3, %v989_v60 }
 0x1eb   : > { %969 = vst.msk [vmem:[%s1738_s7 + $0x10] sm:$0xff] %vm966_vm5, %v965_v62 }
 0x1ec   : > { %1112 = vst.msk [vmem:[%s1738_s7 + $0x28] sm:$0xff] %vm966_vm5, %v979_v43 }
 0x1ed   : > { %1118 = vst.msk [vmem:[%s1738_s7 + $0x40] sm:$0xff] %vm966_vm5, %v992_v51 }
 0x1ee PF: > { %s17_s26 = sadd.s32 1, %s1218_s26   ;;  %s1739_s24 = smov %s1214_s25 }
 0x1ef   : > { %p14_p6 = scmp.ge.s32.totalorder %s17_s26, 22   ;;  %s1740_s25 = smov %s1742_s27 }
 0x1f1   :  { %16 = sbr.rel (!%p14_p6) target bundleno = 2 (0x2), region = 86 }

// kernel: sub.17
= control target key start
LH: loop header
LB: loop body
LE: loop exit
PB: predicated region body
PF: predicated region fallthrough
CT: control target
= control target key end

     0   :  { %s662_s10 = smov 96   ;;  %vm3_vm0 = vcmask 261120   ;;  %s960_s0 = inlined_call_operand.vmem [shape: f32[64,24,3], index: 0, kind: input, shape index: {}]   ;;  %s961_s1 = inlined_call_operand.vmem [shape: f32[2,32,24,3], index: 1, kind: output, shape index: {}]  }
   0x1   :  { %v583_v0 = vld [vmem:[%s960_s0 + $0x10] sm:$0xff]   ;;  %v62_v1 = vld [vmem:[%s960_s0] sm:$0xff]   ;;  %v584_v3 = vld [vmem:[%s960_s0 + $0x18] sm:$0xff]  }
   0x2   :  { %81 = vrot.lane.b32.xlu1 %v583_v0, %s662_s10  ;;  %63 = vrot.lane.b32.xlu0 %v62_v1, %s662_s10  ;;  %v585_v2 = vld [vmem:[%s960_s0 + $0x20] sm:$0xff]   ;;  %v582_v4 = vld [vmem:[%s960_s0 + $0x8] sm:$0xff]   ;;  %17 = vst.msk [vmem:[#allocation0 + $0x80] ss:$8 sm:$0xf] %vm3_vm0, %v583_v0  }
   0x3   :  { %99 = vrot.lane.b32.xlu2 %v585_v2, %s662_s10  ;;  %v586_v5 = vld [vmem:[%s960_s0 + $0x28] sm:$0xff]   ;;  %v588_v6 = vld [vmem:[%s960_s0 + $0x38] sm:$0xff]   ;;  %v587_v7 = vld [vmem:[%s960_s0 + $0x30] sm:$0xff]   ;;  %31 = vst.msk [vmem:[#allocation0 + $0x100] ss:$8 sm:$0xf] %vm3_vm0, %v585_v2  }
   0x4   :  { %v589_v8 = vld [vmem:[%s960_s0 + $0x40] sm:$0xff]   ;;  %33 = vst.msk [vmem:[#allocation0 + $0x100] ss:$8 sm:$0xf0] %vm3_vm0, %v585_v2  }
   0x5   :  { %19 = vst.msk [vmem:[#allocation0 + $0x80] ss:$8 sm:$0xf0] %vm3_vm0, %v583_v0  }
   0x6   :  { %4 = vst.msk [vmem:[#allocation0] ss:$8 sm:$0xf] %vm3_vm0, %v62_v1  }
   0x7   :  { %5 = vst.msk [vmem:[#allocation0] ss:$8 sm:$0xf0] %vm3_vm0, %v62_v1  }
   0x8   :  { %38 = vst.msk [vmem:[#allocation0 + $0x140] ss:$8 sm:$0xf] %vm3_vm0, %v586_v5  }
   0x9   :  { %40 = vst.msk [vmem:[#allocation0 + $0x140] ss:$8 sm:$0xf0] %vm3_vm0, %v586_v5  }
   0xa   :  { %90 = vrot.lane.b32.xlu1 %v584_v3, %s662_s10  ;;  %72 = vrot.lane.b32.xlu0 %v582_v4, %s662_s10  ;;  %24 = vst.msk [vmem:[#allocation0 + $0xc0] ss:$8 sm:$0xf] %vm3_vm0, %v584_v3  }
   0xb   :  { %108 = vrot.lane.b32.xlu2 %v586_v5, %s662_s10  ;;  %26 = vst.msk [vmem:[#allocation0 + $0xc0] ss:$8 sm:$0xf0] %vm3_vm0, %v584_v3  }
   0xc   :  { %10 = vst.msk [vmem:[#allocation0 + $0x40] ss:$8 sm:$0xf] %vm3_vm0, %v582_v4  }
   0xd   :  { %12 = vst.msk [vmem:[#allocation0 + $0x40] ss:$8 sm:$0xf0] %vm3_vm0, %v582_v4  }
   0xe   :  { %59 = vst.msk [vmem:[#allocation0 + $0x200] ss:$8 sm:$0xf] %vm3_vm0, %v589_v8  }
   0xf   :  { %61 = vst.msk [vmem:[#allocation0 + $0x200] ss:$8 sm:$0xf0] %vm3_vm0, %v589_v8  }
  0x10   :  { %52 = vst.msk [vmem:[#allocation0 + $0x1c0] ss:$8 sm:$0xf] %vm3_vm0, %v588_v6  }
  0x11   :  { %54 = vst.msk [vmem:[#allocation0 + $0x1c0] ss:$8 sm:$0xf0] %vm3_vm0, %v588_v6  }
  0x12   :  { %126 = vrot.lane.b32.xlu1 %v588_v6, %s662_s10  ;;  %117 = vrot.lane.b32.xlu0 %v587_v7, %s662_s10  ;;  %45 = vst.msk [vmem:[#allocation0 + $0x180] ss:$8 sm:$0xf] %vm3_vm0, %v587_v7  }
  0x13   :  { %135 = vrot.lane.b32.xlu2 %v589_v8, %s662_s10  ;;  %47 = vst.msk [vmem:[#allocation0 + $0x180] ss:$8 sm:$0xf0] %vm3_vm0, %v587_v7  }
  0x5d   :  { %v100_v9 = vpop.permute.xlu2 %99  }
  0x5e   :  { %103 = vst.msk [vmem:[#allocation0 + $0x101] ss:$8 sm:$0xf] %vm3_vm0, %v100_v9  }
  0x5f   :  { %105 = vst.msk [vmem:[#allocation0 + $0x101] ss:$8 sm:$0xf0] %vm3_vm0, %v100_v9  }
  0x65   :  { %v335_v10 = vld [vmem:[#allocation0 + $0x100] sm:$0x3]  ;;  %v341_v11 = vld [vmem:[#allocation0 + $0x108] sm:$0x3]  ;;  %v347_v12 = vld [vmem:[#allocation0 + $0x110] sm:$0x3]  ;;  %v109_v18 = vpop.permute.xlu2 %108  }
  0x66   :  { %621 = vst [vmem:[%s961_s1 + $0x40] sm:$0x3] %v335_v10  ;;  %v353_v13 = vld [vmem:[#allocation0 + $0x118] sm:$0x3]  ;;  %v359_v14 = vld [vmem:[#allocation0 + $0x120] sm:$0x3] }
  0x67   :  { %622 = vst [vmem:[%s961_s1 + $0x42] sm:$0x3] %v341_v11  ;;  %v365_v15 = vld [vmem:[#allocation0 + $0x128] sm:$0x3]  ;;  %v371_v16 = vld [vmem:[#allocation0 + $0x130] sm:$0x3] }
  0x68   :  { %623 = vst [vmem:[%s961_s1 + $0x44] sm:$0x3] %v347_v12  ;;  %v377_v17 = vld [vmem:[#allocation0 + $0x138] sm:$0x3] }
  0x69   :  { %624 = vst [vmem:[%s961_s1 + $0x46] sm:$0x3] %v353_v13 }
  0x6a   :  { %625 = vst [vmem:[%s961_s1 + $0x48] sm:$0x3] %v359_v14 }
  0x6b   :  { %626 = vst [vmem:[%s961_s1 + $0x4a] sm:$0x3] %v365_v15 }
  0x6c   :  { %627 = vst [vmem:[%s961_s1 + $0x4c] sm:$0x3] %v371_v16 }
  0x6d   :  { %628 = vst [vmem:[%s961_s1 + $0x4e] sm:$0x3] %v377_v17  ;;  %v136_v41 = vpop.permute.xlu2 %135  }
  0x6e   :  { %112 = vst.msk [vmem:[#allocation0 + $0x141] ss:$8 sm:$0xf] %vm3_vm0, %v109_v18  }
  0x6f   :  { %114 = vst.msk [vmem:[#allocation0 + $0x141] ss:$8 sm:$0xf0] %vm3_vm0, %v109_v18  }
  0x70   :  { %139 = vst.msk [vmem:[#allocation0 + $0x201] ss:$8 sm:$0xf] %vm3_vm0, %v136_v41  }
  0x71   :  { %141 = vst.msk [vmem:[#allocation0 + $0x201] ss:$8 sm:$0xf0] %vm3_vm0, %v136_v41  }
  0x74   :  { %v82_v19 = vpop.permute.xlu1 %81   ;;  %v64_v20 = vpop.permute.xlu0 %63  }
  0x75   :  { %85 = vst.msk [vmem:[#allocation0 + $0x81] ss:$8 sm:$0xf] %vm3_vm0, %v82_v19   ;;  %v383_v21 = vld [vmem:[#allocation0 + $0x140] sm:$0x3] }
  0x76   :  { %87 = vst.msk [vmem:[#allocation0 + $0x81] ss:$8 sm:$0xf0] %vm3_vm0, %v82_v19   ;;  %v389_v22 = vld [vmem:[#allocation0 + $0x148] sm:$0x3] }
  0x77   :  { %67 = vst.msk [vmem:[#allocation0 + $0x1] ss:$8 sm:$0xf] %vm3_vm0, %v64_v20   ;;  %v395_v23 = vld [vmem:[#allocation0 + $0x150] sm:$0x3] }
  0x78   :  { %69 = vst.msk [vmem:[#allocation0 + $0x1] ss:$8 sm:$0xf0] %vm3_vm0, %v64_v20   ;;  %v401_v44 = vld [vmem:[#allocation0 + $0x158] sm:$0x3] }
  0x79   :  { %629 = vst [vmem:[%s961_s1 + $0x50] sm:$0x3] %v383_v21  ;;  %v407_v45 = vld [vmem:[#allocation0 + $0x160] sm:$0x3]  ;;  %v413_v46 = vld [vmem:[#allocation0 + $0x168] sm:$0x3] }
  0x7a   :  { %630 = vst [vmem:[%s961_s1 + $0x52] sm:$0x3] %v389_v22  ;;  %v419_v47 = vld [vmem:[#allocation0 + $0x170] sm:$0x3]  ;;  %v425_v48 = vld [vmem:[#allocation0 + $0x178] sm:$0x3] }
  0x7b   :  { %631 = vst [vmem:[%s961_s1 + $0x54] sm:$0x3] %v395_v23  ;;  %v527_v2 = vld [vmem:[#allocation0 + $0x200] sm:$0x3]  ;;  %v533_v3 = vld [vmem:[#allocation0 + $0x208] sm:$0x3] }
  0x7c   :  { %v239_v24 = vld [vmem:[#allocation0 + $0x80] sm:$0x3]  ;;  %v245_v25 = vld [vmem:[#allocation0 + $0x88] sm:$0x3]  ;;  %v251_v26 = vld [vmem:[#allocation0 + $0x90] sm:$0x3]  ;;  %v91_v27 = vpop.permute.xlu1 %90   ;;  %v73_v28 = vpop.permute.xlu0 %72  }
  0x7d   :  { %605 = vst [vmem:[%s961_s1 + $0x20] sm:$0x3] %v239_v24  ;;  %v257_v29 = vld [vmem:[#allocation0 + $0x98] sm:$0x3]  ;;  %v263_v30 = vld [vmem:[#allocation0 + $0xa0] sm:$0x3] }
  0x7e   :  { %606 = vst [vmem:[%s961_s1 + $0x22] sm:$0x3] %v245_v25  ;;  %v269_v31 = vld [vmem:[#allocation0 + $0xa8] sm:$0x3]  ;;  %v275_v32 = vld [vmem:[#allocation0 + $0xb0] sm:$0x3] }
  0x7f   :  { %607 = vst [vmem:[%s961_s1 + $0x24] sm:$0x3] %v251_v26  ;;  %v281_v33 = vld [vmem:[#allocation0 + $0xb8] sm:$0x3]  ;;  %v144_v34 = vld [vmem:[#allocation0] sm:$0x3] }
  0x80   :  { %608 = vst [vmem:[%s961_s1 + $0x26] sm:$0x3] %v257_v29  ;;  %v149_v35 = vld [vmem:[#allocation0 + $0x8] sm:$0x3]  ;;  %v155_v36 = vld [vmem:[#allocation0 + $0x10] sm:$0x3] }
  0x81   :  { %609 = vst [vmem:[%s961_s1 + $0x28] sm:$0x3] %v263_v30  ;;  %v161_v37 = vld [vmem:[#allocation0 + $0x18] sm:$0x3]  ;;  %v167_v38 = vld [vmem:[#allocation0 + $0x20] sm:$0x3] }
  0x82   :  { %610 = vst [vmem:[%s961_s1 + $0x2a] sm:$0x3] %v269_v31  ;;  %v173_v39 = vld [vmem:[#allocation0 + $0x28] sm:$0x3]  ;;  %v179_v40 = vld [vmem:[#allocation0 + $0x30] sm:$0x3] }
  0x83   :  { %611 = vst [vmem:[%s961_s1 + $0x2c] sm:$0x3] %v275_v32  ;;  %v185_v43 = vld [vmem:[#allocation0 + $0x38] sm:$0x3]  ;;  %v539_v4 = vld [vmem:[#allocation0 + $0x210] sm:$0x3] }
  0x84   :  { %612 = vst [vmem:[%s961_s1 + $0x2e] sm:$0x3] %v281_v33  ;;  %v795_v42 = vpop.permute.xlu1 %126   ;;  %v827_v49 = vpop.permute.xlu0 %117   ;;  %v545_v5 = vld [vmem:[#allocation0 + $0x218] sm:$0x3]  ;;  %v551_v6 = vld [vmem:[#allocation0 + $0x220] sm:$0x3] }
  0x85   :  { %147 = vst [vmem:[%s961_s1] sm:$0x3] %v144_v34  ;;  %v557_v7 = vld [vmem:[#allocation0 + $0x228] sm:$0x3]  ;;  %v563_v8 = vld [vmem:[#allocation0 + $0x230] sm:$0x3] }
  0x86   :  { %590 = vst [vmem:[%s961_s1 + $0x2] sm:$0x3] %v149_v35  ;;  %v569_v9 = vld [vmem:[#allocation0 + $0x238] sm:$0x3] }
  0x87   :  { %591 = vst [vmem:[%s961_s1 + $0x4] sm:$0x3] %v155_v36 }
  0x88   :  { %592 = vst [vmem:[%s961_s1 + $0x6] sm:$0x3] %v161_v37 }
  0x89   :  { %593 = vst [vmem:[%s961_s1 + $0x8] sm:$0x3] %v167_v38 }
  0x8a   :  { %594 = vst [vmem:[%s961_s1 + $0xa] sm:$0x3] %v173_v39 }
  0x8b   :  { %595 = vst [vmem:[%s961_s1 + $0xc] sm:$0x3] %v179_v40 }
  0x8c   :  { %596 = vst [vmem:[%s961_s1 + $0xe] sm:$0x3] %v185_v43 }
  0x8d   :  { %632 = vst [vmem:[%s961_s1 + $0x56] sm:$0x3] %v401_v44 }
  0x8e   :  { %633 = vst [vmem:[%s961_s1 + $0x58] sm:$0x3] %v407_v45 }
  0x8f   :  { %634 = vst [vmem:[%s961_s1 + $0x5a] sm:$0x3] %v413_v46 }
  0x90   :  { %635 = vst [vmem:[%s961_s1 + $0x5c] sm:$0x3] %v419_v47 }
  0x91   :  { %636 = vst [vmem:[%s961_s1 + $0x5e] sm:$0x3] %v425_v48 }
  0x92   :  { %94 = vst.msk [vmem:[#allocation0 + $0xc1] ss:$8 sm:$0xf] %vm3_vm0, %v91_v27  }
  0x93   :  { %96 = vst.msk [vmem:[#allocation0 + $0xc1] ss:$8 sm:$0xf0] %vm3_vm0, %v91_v27  }
  0x94   :  { %76 = vst.msk [vmem:[#allocation0 + $0x41] ss:$8 sm:$0xf] %vm3_vm0, %v73_v28  }
  0x95   :  { %78 = vst.msk [vmem:[#allocation0 + $0x41] ss:$8 sm:$0xf0] %vm3_vm0, %v73_v28  }
  0x96   :  { %130 = vst.msk [vmem:[#allocation0 + $0x1c1] ss:$8 sm:$0xf] %vm3_vm0, %v795_v42  }
  0x97   :  { %653 = vst [vmem:[%s961_s1 + $0x80] sm:$0x3] %v527_v2 }
  0x98   :  { %654 = vst [vmem:[%s961_s1 + $0x82] sm:$0x3] %v533_v3 }
  0x99   :  { %v287_v50 = vld [vmem:[#allocation0 + $0xc0] sm:$0x3]  ;;  %v293_v51 = vld [vmem:[#allocation0 + $0xc8] sm:$0x3]  ;;  %v299_v52 = vld [vmem:[#allocation0 + $0xd0] sm:$0x3] }
  0x9a   :  { %613 = vst [vmem:[%s961_s1 + $0x30] sm:$0x3] %v287_v50  ;;  %v305_v53 = vld [vmem:[#allocation0 + $0xd8] sm:$0x3]  ;;  %v311_v54 = vld [vmem:[#allocation0 + $0xe0] sm:$0x3] }
  0x9b   :  { %614 = vst [vmem:[%s961_s1 + $0x32] sm:$0x3] %v293_v51  ;;  %v317_v55 = vld [vmem:[#allocation0 + $0xe8] sm:$0x3]  ;;  %v323_v56 = vld [vmem:[#allocation0 + $0xf0] sm:$0x3] }
  0x9c   :  { %615 = vst [vmem:[%s961_s1 + $0x34] sm:$0x3] %v299_v52  ;;  %v329_v57 = vld [vmem:[#allocation0 + $0xf8] sm:$0x3]  ;;  %v191_v58 = vld [vmem:[#allocation0 + $0x40] sm:$0x3] }
  0x9d   :  { %616 = vst [vmem:[%s961_s1 + $0x36] sm:$0x3] %v305_v53  ;;  %v197_v59 = vld [vmem:[#allocation0 + $0x48] sm:$0x3]  ;;  %v203_v60 = vld [vmem:[#allocation0 + $0x50] sm:$0x3] }
  0x9e   :  { %617 = vst [vmem:[%s961_s1 + $0x38] sm:$0x3] %v311_v54  ;;  %v209_v61 = vld [vmem:[#allocation0 + $0x58] sm:$0x3]  ;;  %v215_v62 = vld [vmem:[#allocation0 + $0x60] sm:$0x3] }
  0x9f   :  { %618 = vst [vmem:[%s961_s1 + $0x3a] sm:$0x3] %v317_v55  ;;  %v221_v63 = vld [vmem:[#allocation0 + $0x68] sm:$0x3]  ;;  %v227_v0 = vld [vmem:[#allocation0 + $0x70] sm:$0x3] }
  0xa0   :  { %619 = vst [vmem:[%s961_s1 + $0x3c] sm:$0x3] %v323_v56  ;;  %v233_v1 = vld [vmem:[#allocation0 + $0x78] sm:$0x3]  ;;  %v479_v10 = vld [vmem:[#allocation0 + $0x1c0] sm:$0x3] }
  0xa1   :  { %620 = vst [vmem:[%s961_s1 + $0x3e] sm:$0x3] %v329_v57  ;;  %v485_v11 = vld [vmem:[#allocation0 + $0x1c8] sm:$0x3]  ;;  %v491_v12 = vld [vmem:[#allocation0 + $0x1d0] sm:$0x3] }
  0xa2   :  { %597 = vst [vmem:[%s961_s1 + $0x10] sm:$0x3] %v191_v58  ;;  %v497_v13 = vld [vmem:[#allocation0 + $0x1d8] sm:$0x3] }
  0xa3   :  { %598 = vst [vmem:[%s961_s1 + $0x12] sm:$0x3] %v197_v59 }
  0xa4   :  { %599 = vst [vmem:[%s961_s1 + $0x14] sm:$0x3] %v203_v60 }
  0xa5   :  { %600 = vst [vmem:[%s961_s1 + $0x16] sm:$0x3] %v209_v61 }
  0xa6   :  { %601 = vst [vmem:[%s961_s1 + $0x18] sm:$0x3] %v215_v62 }
  0xa7   :  { %602 = vst [vmem:[%s961_s1 + $0x1a] sm:$0x3] %v221_v63 }
  0xa8   :  { %603 = vst [vmem:[%s961_s1 + $0x1c] sm:$0x3] %v227_v0 }
  0xa9   :  { %604 = vst [vmem:[%s961_s1 + $0x1e] sm:$0x3] %v233_v1 }
  0xaa   :  { %655 = vst [vmem:[%s961_s1 + $0x84] sm:$0x3] %v539_v4 }
  0xab   :  { %656 = vst [vmem:[%s961_s1 + $0x86] sm:$0x3] %v545_v5 }
  0xac   :  { %657 = vst [vmem:[%s961_s1 + $0x88] sm:$0x3] %v551_v6 }
  0xad   :  { %658 = vst [vmem:[%s961_s1 + $0x8a] sm:$0x3] %v557_v7 }
  0xae   :  { %659 = vst [vmem:[%s961_s1 + $0x8c] sm:$0x3] %v563_v8 }
  0xaf   :  { %660 = vst [vmem:[%s961_s1 + $0x8e] sm:$0x3] %v569_v9 }
  0xb0   :  { %132 = vst.msk [vmem:[#allocation0 + $0x1c1] ss:$8 sm:$0xf0] %vm3_vm0, %v795_v42  }
  0xb1   :  { %645 = vst [vmem:[%s961_s1 + $0x70] sm:$0x3] %v479_v10 }
  0xb2   :  { %646 = vst [vmem:[%s961_s1 + $0x72] sm:$0x3] %v485_v11 }
  0xb3   :  { %647 = vst [vmem:[%s961_s1 + $0x74] sm:$0x3] %v491_v12 }
  0xb4   :  { %648 = vst [vmem:[%s961_s1 + $0x76] sm:$0x3] %v497_v13 }
  0xb5   :  { %121 = vst.msk [vmem:[#allocation0 + $0x181] ss:$8 sm:$0xf] %vm3_vm0, %v827_v49  }
  0xb6   :  { %123 = vst.msk [vmem:[#allocation0 + $0x181] ss:$8 sm:$0xf0] %vm3_vm0, %v827_v49  }
  0xb7   :  { %v503_v14 = vld [vmem:[#allocation0 + $0x1e0] sm:$0x3]  ;;  %v509_v15 = vld [vmem:[#allocation0 + $0x1e8] sm:$0x3]  ;;  %v515_v16 = vld [vmem:[#allocation0 + $0x1f0] sm:$0x3] }
  0xb8   :  { %649 = vst [vmem:[%s961_s1 + $0x78] sm:$0x3] %v503_v14  ;;  %v521_v17 = vld [vmem:[#allocation0 + $0x1f8] sm:$0x3] }
  0xb9   :  { %650 = vst [vmem:[%s961_s1 + $0x7a] sm:$0x3] %v509_v15 }
  0xba   :  { %651 = vst [vmem:[%s961_s1 + $0x7c] sm:$0x3] %v515_v16 }
  0xbb   :  { %652 = vst [vmem:[%s961_s1 + $0x7e] sm:$0x3] %v521_v17 }
  0xbc   :  { %v431_v18 = vld [vmem:[#allocation0 + $0x180] sm:$0x3]  ;;  %v437_v19 = vld [vmem:[#allocation0 + $0x188] sm:$0x3]  ;;  %v443_v20 = vld [vmem:[#allocation0 + $0x190] sm:$0x3] }
  0xbd   :  { %637 = vst [vmem:[%s961_s1 + $0x60] sm:$0x3] %v431_v18  ;;  %v449_v21 = vld [vmem:[#allocation0 + $0x198] sm:$0x3]  ;;  %v455_v22 = vld [vmem:[#allocation0 + $0x1a0] sm:$0x3] }
  0xbe   :  { %638 = vst [vmem:[%s961_s1 + $0x62] sm:$0x3] %v437_v19  ;;  %v461_v23 = vld [vmem:[#allocation0 + $0x1a8] sm:$0x3]  ;;  %v467_v24 = vld [vmem:[#allocation0 + $0x1b0] sm:$0x3] }
  0xbf   :  { %639 = vst [vmem:[%s961_s1 + $0x64] sm:$0x3] %v443_v20  ;;  %v473_v25 = vld [vmem:[#allocation0 + $0x1b8] sm:$0x3] }
  0xc0   :  { %640 = vst [vmem:[%s961_s1 + $0x66] sm:$0x3] %v449_v21 }
  0xc1   :  { %641 = vst [vmem:[%s961_s1 + $0x68] sm:$0x3] %v455_v22 }
  0xc2   :  { %642 = vst [vmem:[%s961_s1 + $0x6a] sm:$0x3] %v461_v23 }
  0xc3   :  { %643 = vst [vmem:[%s961_s1 + $0x6c] sm:$0x3] %v467_v24 }
  0xc4   :  { %644 = vst [vmem:[%s961_s1 + $0x6e] sm:$0x3] %v473_v25 }

// kernel: vn_dgcnn_forward.13
= control target key start
LH: loop header
LB: loop body
LE: loop exit
PB: predicated region body
PF: predicated region fallthrough
CT: control target
= control target key end

     0   :  { %s923_s15 = smov 0   ;;  %s925_s16 = smov 0   ;;  %s1226_s0 = inlined_call_operand.vmem [shape: bf16[20,3,48,64], index: 0, kind: input, shape index: {}]   ;;  %s1227_s1 = inlined_call_operand.vmem [shape: bf16[48,48], index: 1, kind: input, shape index: {}]   ;;  %s1228_s2 = inlined_call_operand.vmem [shape: f32[24,1], index: 2, kind: input, shape index: {}]   ;;  %s1229_s3 = inlined_call_operand.vmem [shape: f32[24,1], index: 3, kind: input, shape index: {}]   ;;  %s1230_s4 = inlined_call_operand.vmem [shape: f32[3,24,64], index: 4, kind: output, shape index: {}]  }
   0x1   :  { %s927_s17 = smov 0  }
   0x2 LB: > { %s23_s18 = sadd.s32 1, %s890_s16  ;;  %p722_p0 = scmp.ge.s32.totalorder %s894_s17, 1  ;;  %s894_s17 = sphi %s927_s17, %s14_s17   ;;  %s890_s16 = sphi %s925_s16, %s1232_s16   ;;  %s886_s15 = sphi %s923_s15, %s1231_s15  }
   0x3   : > { %p24_p1 = scmp.ge.s32.totalorder %s23_s18, 20  ;;  %p179_p2 = scmp.lt.s32.totalorder %s894_s17, 21 }
   0x5   : > { %s1234_s18 = smov (%p24_p1, %s23_s18), 0  ;;  %p180_p3 = pnand %p722_p0, %p179_p2 }
   0x6   : > { %p207_p4 = scmp.lt.s32.totalorder (!%p180_p3), %s886_s15, 19  ;;  %p724_p5 = scmp.ne.s32.totalorder (!%p180_p3), %s886_s15, 0 }
   0x7   : > { %183 = sbr.rel (%p180_p3) target bundleno = 253 (0xfd), region = 36 }
   0xc   : > { %s208_s19 = scalar_select %p207_p4, %s886_s15, 19 }
   0xd   : > { %223 = sbr.rel (%p724_p5) target bundleno = 28 (0x1c), region = 40 }
   0xe   : > { %s824_s20 = smul.u32 72, %s208_s19 }
  0x10   : > { %s214_s23 = scalar_lea.vmem %s1226_s0, %s824_s20 }
  0x12   : > { %vm224_vm0 = vcmask 523264   ;;  %v896_v0 = vmov 0.0  }
  0x13   : > { %225 = vst.msk [vmem:[%s1230_s4] sm:$0xff] %vm224_vm0, %v896_v0 }
  0x14   : > { %226 = vst.msk [vmem:[%s1230_s4 + $0x8] sm:$0xff] %vm224_vm0, %v896_v0 }
  0x15   : > { %227 = vst.msk [vmem:[%s1230_s4 + $0x10] sm:$0xff] %vm224_vm0, %v896_v0 }
  0x16   : > { %228 = vst.msk [vmem:[%s1230_s4 + $0x18] sm:$0xff] %vm224_vm0, %v896_v0 }
  0x17   : > { %229 = vst.msk [vmem:[%s1230_s4 + $0x20] sm:$0xff] %vm224_vm0, %v896_v0 }
  0x18   : > { %230 = vst.msk [vmem:[%s1230_s4 + $0x28] sm:$0xff] %vm224_vm0, %v896_v0 }
  0x19   : > { %231 = vst.msk [vmem:[%s1230_s4 + $0x30] sm:$0xff] %vm224_vm0, %v896_v0 }
  0x1a   : > { %232 = vst.msk [vmem:[%s1230_s4 + $0x38] sm:$0xff] %vm224_vm0, %v896_v0 }
  0x1b   : > { %233 = vst.msk [vmem:[%s1230_s4 + $0x40] sm:$0xff] %vm224_vm0, %v896_v0 }
  0x1c PF: > { %v811_v1 = vld [vmem:[%s214_s23 + $0x10] sm:$0xff]  ;;  %v814_v2 = vld [vmem:[%s214_s23 + $0x28] sm:$0xff]  ;;  %v817_v3 = vld [vmem:[%s214_s23 + $0x40] sm:$0xff]  ;;  %vm299_vm1 = vcmask 392192   ;;  %v897_v14 = vmov 0   ;;  %vm624_vm9 = vcmask 523264  }
  0x1d   : > { %314 = vmatpush.bf16.msra.mxu0 %v811_v1  ;;  %356 = vmatpush.bf16.msra.mxu1 %v814_v2  ;;  %v810_v4 = vld [vmem:[%s214_s23 + $0x8] sm:$0xff]  ;;  %v813_v5 = vld [vmem:[%s214_s23 + $0x20] sm:$0xff]  ;;  %v816_v6 = vld [vmem:[%s214_s23 + $0x38] sm:$0xff] }
  0x1e   : > { %398 = vmatpush.bf16.msra.mxu2 %v817_v3  ;;  %821 = vmatpush.bf16.msra.mxu3 %v811_v1  ;;  %v809_v7 = vld [vmem:[%s214_s23] sm:$0xff]  ;;  %v812_v8 = vld [vmem:[%s214_s23 + $0x18] sm:$0xff]  ;;  %v815_v9 = vld [vmem:[%s214_s23 + $0x30] sm:$0xff] }
  0x1f   : > { %v818_v10 = vld [vmem:[%s1227_s1] sm:$0xff]  ;;  %v819_v11 = vld [vmem:[%s1227_s1 + $0x8] sm:$0xff]  ;;  %v265_v12 = vld [vmem:[%s1229_s3 + $0x10] sm:$0xff]  ;;  %852 = vset.pattern.permute.xlu1 %v897_v14  ;;  %851 = vset.pattern.permute.xlu0 %v897_v14 }
  0x20   : > { %v263_v13 = vld [vmem:[%s1229_s3] sm:$0xff]  ;;  %v261_v15 = vld [vmem:[%s1228_s2 + $0x8] sm:$0xff]  ;;  %486 = vperm.xlu1 %852, %v265_v12   ;;  %853 = vset.pattern.permute.xlu2 %v897_v14  ;;  %v262_v18 = vld [vmem:[%s1228_s2 + $0x10] sm:$0xff] }
  0x21   : > { %315 = vmatpush.bf16.msra.mxu0 %v810_v4  ;;  %357 = vmatpush.bf16.msra.mxu1 %v813_v5  ;;  %v260_v16 = vld [vmem:[%s1228_s2] sm:$0xff]  ;;  %v264_v17 = vld [vmem:[%s1229_s3 + $0x8] sm:$0xff]  ;;  %v820_v19 = vld [vmem:[%s1227_s1 + $0x10] sm:$0xff] }
  0x22   : > { %399 = vmatpush.bf16.msra.mxu2 %v816_v6  ;;  %822 = vmatpush.bf16.msra.mxu3 %v810_v4 }
  0x23   : > { %476 = vperm.xlu0 %851, %v263_v13   ;;  %499 = vperm.xlu2 %853, %v261_v15  }
  0x25   : > { %316 = vmatpush.bf16.msra.mxu0 %v809_v7  ;;  %358 = vmatpush.bf16.msra.mxu1 %v812_v8 }
  0x26   : > { %400 = vmatpush.bf16.msra.mxu2 %v815_v9  ;;  %823 = vmatpush.bf16.msra.mxu3 %v809_v7 }
  0x28   : > { %761 = vmatmul.msk.bf16.vlgmr.msra.gmra.mxu0 %vm299_vm1, %v818_v10  ;;  %776 = vmatmul.msk.bf16.vlgmr.msra.gmra.mxu1 %vm299_vm1, %v818_v10 }
  0x29   : > { %791 = vmatmul.msk.bf16.vlgmr.msra.gmra.mxu2 %vm299_vm1, %v818_v10  ;;  %762 = vmatmul.msk.bf16.vlgmr.msra.gmra.mxu3 %vm299_vm1, %v819_v11 }
  0x2a   : > { %494 = vperm.xlu1 %852, %v260_v16  }
  0x2b   : > { %481 = vperm.xlu0 %851, %v264_v17   ;;  %504 = vperm.xlu2 %853, %v262_v18  }
  0x38   : > { %777 = vmatmul.msk.bf16.gmra.mxu1 %vm299_vm1, %v819_v11 }
  0x39   : > { %792 = vmatmul.msk.bf16.gmra.mxu2 %vm299_vm1, %v819_v11  ;;  %763 = vmatmul.msk.bf16.gmra.mxu3 %vm299_vm1, %v820_v19 }
  0x48   : > { %778 = vmatmul.msk.bf16.gmra.mxu1 %vm299_vm1, %v820_v19 }
  0x49   : > { %793 = vmatmul.msk.bf16.gmra.mxu2 %vm299_vm1, %v820_v19 }
  0x92   : > { %v1052_v58 = vpop.permute.xlu1 %486 }
  0x95   : > { %v477_v10 = vpop.permute.xlu0 %476 }
  0xa5   : > { %v1007_v20 = vpop.f32.mrf.mxu0  ;;  %v1009_v21 = vpop.f32.mrf.mxu1 }
  0xa6   : > { %v417_v22 = vmul.f32 %v1007_v20, %v1007_v20  ;;  %v420_v23 = vmul.f32 %v1009_v21, %v1009_v21 }
  0xa8   : > { %v423_v24 = vadd.f32 %v420_v23, %v417_v22 }
  0xac   : > { %v1015_v25 = vpop.f32.mrf.mxu2  ;;  %v1027_v32 = vpop.f32.mrf.mxu3 }
  0xad   : > { %v426_v26 = vmul.f32 %v1015_v25, %v1015_v25  ;;  %v1019_v27 = vpop.f32.mrf.mxu1  ;;  %v1021_v28 = vpop.f32.mrf.mxu0  ;;  %v419_v38 = vmul.f32 %v1027_v32, %v1027_v32 }
  0xae   : > { %v418_v30 = vmul.f32 %v1021_v28, %v1021_v28  ;;  %v421_v31 = vmul.f32 %v1019_v27, %v1019_v27 }
  0xaf   : > { %v429_v29 = vadd.f32 %v426_v26, %v423_v24  ;;  %v495_v24 = vpop.permute.xlu1 %494 }
  0xb0   : > { %v424_v34 = vadd.f32 %v421_v31, %v418_v30 }
  0xb1   : > { %854 = vrsqrt.f32 %v429_v29  ;;  %vm439_vm2 = vcmp.eq.f32.partialorder %v429_v29, inf  ;;  %v442_v56 = vand.u32 2147483648, %v429_v29  ;;  %vm441_vm3 = vcmp.eq.f32.partialorder %v429_v29, 0.0 }
  0xb4   : > { %v1029_v33 = vpop.f32.mrf.mxu2  ;;  %v1041_v46 = vpop.f32.mrf.mxu3 }
  0xb5   : > { %v427_v35 = vmul.f32 %v1029_v33, %v1029_v33  ;;  %v1033_v36 = vpop.f32.mrf.mxu1  ;;  %v534_v4 = vmul.f32 %v1041_v46, %v1041_v46 }
  0xb6   : > { %v422_v40 = vmul.f32 %v1033_v36, %v1033_v36 }
  0xb7   : > { %v855_v37 = vpop.eup %854  ;;  %v430_v39 = vadd.f32 %v427_v35, %v424_v34 }
  0xb8   : > { %v433_v41 = vmul.f32 %v855_v37, %v429_v29  ;;  %v425_v43 = vadd.f32 %v422_v40, %v419_v38 }
  0xb9   : > { %856 = vrsqrt.f32 %v430_v39  ;;  %vm451_vm4 = vcmp.eq.f32.partialorder %v430_v39, inf  ;;  %v454_v14 = vand.u32 2147483648, %v430_v39  ;;  %vm453_vm5 = vcmp.eq.f32.partialorder %v430_v39, 0.0 }
  0xba   : > { %v434_v42 = vmul.f32 %v855_v37, %v433_v41 }
  0xbc   : > { %v1039_v44 = vpop.f32.mrf.mxu2  ;;  %v435_v45 = vmul.f32 0.5, %v434_v42  ;;  %v1054_v61 = vpop.f32.mrf.mxu3 }
  0xbd   : > { %v428_v47 = vmul.f32 %v1039_v44, %v1039_v44  ;;  %v1045_v48 = vpop.f32.mrf.mxu1  ;;  %v535_v12 = vmul.f32 %v1054_v61, %v1054_v61 }
  0xbe   : > { %v436_v49 = vsub.f32 1.5, %v435_v45  ;;  %v537_v0 = vmul.f32 %v1045_v48, %v1045_v48 }
  0xbf   : > { %v857_v50 = vpop.eup %856  ;;  %v1047_v51 = vadd.f32 %v428_v47, %v425_v43 }
  0xc0   : > { %v437_v52 = vmul.f32 %v855_v37, %v436_v49  ;;  %v445_v53 = vmul.f32 %v857_v50, %v430_v39  ;;  %v540_v8 = vadd.f32 %v537_v0, %v534_v4 }
  0xc1   : > { %858 = vrsqrt.f32 %v1047_v51  ;;  %vm463_vm6 = vcmp.eq.f32.partialorder %v1047_v51, inf  ;;  %v466_v41 = vand.u32 2147483648, %v1047_v51  ;;  %vm465_vm7 = vcmp.eq.f32.partialorder %v1047_v51, 0.0 }
  0xc2   : > { %v438_v54 = vmul.f32 %v437_v52, %v429_v29  ;;  %v446_v55 = vmul.f32 %v857_v50, %v445_v53 }
  0xc4   : > { %v1050_v57 = vpop.f32.mrf.mxu2  ;;  %v440_v59 = vsel %vm439_vm2, %v429_v29, %v438_v54  ;;  %v447_v60 = vmul.f32 0.5, %v446_v55  ;;  %v1073_v34 = vpop.f32.mrf.mxu3 }
  0xc5   : > { %v1056_v62 = vpop.f32.mrf.mxu1  ;;  %v443_v63 = vsel %vm441_vm3, %v442_v56, %v440_v59  ;;  %v543_v5 = vmul.f32 %v1050_v57, %v1050_v57  ;;  %v536_v42 = vmul.f32 %v1073_v34, %v1073_v34  ;;  %v482_v54 = vpop.permute.xlu0 %481 }
  0xc6   : > { %v468_v1 = vadd.f32 1e-06, %v443_v63  ;;  %v448_v2 = vsub.f32 1.5, %v447_v60  ;;  %v538_v13 = vmul.f32 %v1056_v62, %v1056_v62 }
  0xc7   : > { %v859_v3 = vpop.eup %858  ;;  %v546_v15 = vadd.f32 %v543_v5, %v540_v8 }
  0xc8   : > { %v457_v6 = vmul.f32 %v859_v3, %v1047_v51  ;;  %860 = vrcp.f32 %v468_v1  ;;  %v449_v7 = vmul.f32 %v857_v50, %v448_v2  ;;  %v541_v29 = vadd.f32 %v538_v13, %v535_v12 }
  0xc9   : > { %v549_v37 = vadd.f32 1e-06, %v546_v15 }
  0xca   : > { %v458_v9 = vmul.f32 %v859_v3, %v457_v6  ;;  %v450_v11 = vmul.f32 %v449_v7, %v430_v39 }
  0xcc   : > { %v459_v16 = vmul.f32 0.5, %v458_v9  ;;  %v1069_v17 = vpop.f32.mrf.mxu2  ;;  %v452_v18 = vsel %vm451_vm4, %v430_v39, %v450_v11 }
  0xcd   : > { %v455_v19 = vsel %vm453_vm5, %v454_v14, %v452_v18  ;;  %v544_v30 = vmul.f32 %v1069_v17, %v1069_v17  ;;  %v1075_v35 = vpop.f32.mrf.mxu1 }
  0xce   : > { %v861_v22 = vpop.eup %860  ;;  %v460_v23 = vsub.f32 1.5, %v459_v16  ;;  %v469_v26 = vadd.f32 1e-06, %v455_v19  ;;  %v539_v43 = vmul.f32 %v1075_v35, %v1075_v35 }
  0xcf   : > { %v489_v31 = vmul.f32 %v861_v22, %v477_v10  ;;  %v547_v45 = vadd.f32 %v544_v30, %v541_v29 }
  0xd0   : > { %v461_v38 = vmul.f32 %v859_v3, %v460_v23  ;;  %862 = vrcp.f32 %v469_v26  ;;  %v542_v0 = vadd.f32 %v539_v43, %v536_v42 }
  0xd1   : > { %v507_v39 = vadd.f32 %v495_v24, %v489_v31  ;;  %864 = vrcp.f32 %v549_v37 }
  0xd2   : > { %v462_v40 = vmul.f32 %v461_v38, %v1047_v51 }
  0xd3   : > { %v510_v47 = vmul.f32 %v507_v39, %v1007_v20  ;;  %v513_v49 = vmul.f32 %v507_v39, %v1009_v21  ;;  %v516_v50 = vmul.f32 %v507_v39, %v1015_v25  ;;  %v500_v20 = vpop.permute.xlu2 %499  ;;  %v550_v25 = vadd.f32 1e-06, %v547_v45 }
  0xd4   : > { %v464_v52 = vsel %vm463_vm6, %v1047_v51, %v462_v40  ;;  %v1089_v53 = vpop.f32.mrf.mxu2 }
  0xd5   : > { %v467_v55 = vsel %vm465_vm7, %v466_v41, %v464_v52  ;;  %v519_v56 = vmul.f32 %v510_v47, %v1041_v46  ;;  %v522_v59 = vmul.f32 %v513_v49, %v1045_v48  ;;  %v545_v21 = vmul.f32 %v1089_v53, %v1089_v53 }
  0xd6   : > { %v863_v60 = vpop.eup %862  ;;  %v470_v63 = vadd.f32 1e-06, %v467_v55  ;;  %v528_v2 = vmul.f32 %v516_v50, %v1050_v57  ;;  %v561_v16 = vmul.f32 0.2, %v510_v47  ;;  %v579_v18 = vmul.f32 0.2, %v513_v49 }
  0xd7   : > { %v525_v1 = vadd.f32 %v522_v59, %v519_v56  ;;  %v490_v51 = vmul.f32 %v863_v60, %v482_v54  ;;  %v865_v5 = vpop.eup %864  ;;  %v548_v6 = vadd.f32 %v545_v21, %v542_v0 }
  0xd8   : > { %866 = vrcp.f32 %v470_v63 }
  0xd9   : > { %v531_v3 = vadd.f32 %v528_v2, %v525_v1  ;;  %v508_v4 = vadd.f32 %v500_v20, %v490_v51  ;;  %868 = vrcp.f32 %v550_v25 }
  0xdb   : > { %v555_v7 = vmul.f32 %v865_v5, %v531_v3  ;;  %v1097_v8 = vmul.f32 %v508_v4, %v1021_v28  ;;  %v1100_v9 = vmul.f32 %v508_v4, %v1019_v27  ;;  %v1103_v10 = vmul.f32 %v508_v4, %v1029_v33  ;;  %v505_v24 = vpop.permute.xlu2 %504 }
  0xdc   : > { %v551_v28 = vadd.f32 1e-06, %v548_v6  ;;  %vm558_vm8 = vcmp.lt.f32.partialorder %v531_v3, 0.0 }
  0xdd   : > { %v564_v11 = vmul.f32 %v555_v7, %v1041_v46  ;;  %v582_v12 = vmul.f32 %v555_v7, %v1045_v48  ;;  %v600_v13 = vmul.f32 %v555_v7, %v1050_v57  ;;  %v520_v14 = vmul.f32 %v1097_v8, %v1054_v61 }
  0xde   : > { %v867_v15 = vpop.eup %866  ;;  %v523_v27 = vmul.f32 %v1100_v9, %v1056_v62  ;;  %v597_v46 = vmul.f32 0.2, %v516_v50  ;;  %v529_v57 = vmul.f32 %v1103_v10, %v1069_v17  ;;  %870 = vrcp.f32 %v551_v28 }
  0xdf   : > { %v491_v19 = vmul.f32 %v867_v15, %v1052_v58  ;;  %v567_v33 = vsub.f32 %v510_v47, %v564_v11  ;;  %v585_v22 = vsub.f32 %v513_v49, %v582_v12  ;;  %v603_v23 = vsub.f32 %v516_v50, %v600_v13  ;;  %v869_v26 = vpop.eup %868 }
  0xe0   : > { %v526_v48 = vadd.f32 %v523_v27, %v520_v14  ;;  %v598_v7 = vmul.f32 0.2, %v1103_v10 }
  0xe1   : > { %v570_v29 = vsel %vm558_vm8, %v567_v33, %v510_v47  ;;  %v588_v30 = vsel %vm558_vm8, %v585_v22, %v513_v49  ;;  %v606_v31 = vsel %vm558_vm8, %v603_v23, %v516_v50  ;;  %v509_v37 = vadd.f32 %v505_v24, %v491_v19  ;;  %v615_v50 = vld [vmem:[%s1230_s4] sm:$0xff] }
  0xe2   : > { %v573_v38 = vmul.f32 0.8, %v570_v29  ;;  %v591_v39 = vmul.f32 0.8, %v588_v30  ;;  %v609_v40 = vmul.f32 0.8, %v606_v31  ;;  %v532_v41 = vadd.f32 %v529_v57, %v526_v48 }
  0xe3   : > { %v1116_v58 = vmul.f32 %v509_v37, %v1027_v32  ;;  %v1119_v42 = vmul.f32 %v509_v37, %v1033_v36  ;;  %v1122_v43 = vmul.f32 %v509_v37, %v1039_v44  ;;  %v794_v32 = vld [vmem:[%s1230_s4 + $0x18] sm:$0xff]  ;;  %v800_v36 = vld [vmem:[%s1230_s4 + $0x30] sm:$0xff]  ;;  %v562_v44 = vmul.f32 0.2, %v1097_v8  ;;  %v795_v23 = vld [vmem:[%s1230_s4 + $0x20] sm:$0xff] }
  0xe4   : > { %v576_v45 = vadd.f32 %v573_v38, %v561_v16  ;;  %v594_v52 = vadd.f32 %v591_v39, %v579_v18  ;;  %v612_v47 = vadd.f32 %v609_v40, %v597_v46  ;;  %v556_v49 = vmul.f32 %v869_v26, %v532_v41  ;;  %v871_v4 = vpop.eup %870 }
  0xe5   : > { %v521_v54 = vmul.f32 %v1116_v58, %v1073_v34  ;;  %v524_v55 = vmul.f32 %v1119_v42, %v1075_v35  ;;  %v530_v25 = vmul.f32 %v1122_v43, %v1089_v53  ;;  %vm559_vm10 = vcmp.lt.f32.partialorder %v532_v41, 0.0 }
  0xe6   : > { %v618_v56 = vmul.f32 0.05, %v576_v45  ;;  %v632_v59 = vmul.f32 0.05, %v594_v52  ;;  %v645_v60 = vmul.f32 0.05, %v612_v47  ;;  %v565_v63 = vmul.f32 %v556_v49, %v1054_v61 }
  0xe7   : > { %v583_v20 = vmul.f32 %v556_v49, %v1056_v62  ;;  %v601_v0 = vmul.f32 %v556_v49, %v1069_v17  ;;  %v527_v21 = vadd.f32 %v524_v55, %v521_v54  ;;  %v580_v17 = vmul.f32 0.2, %v1100_v9  ;;  %v617_v52 = vld [vmem:[%s1230_s4 + $0x10] sm:$0xff]  ;;  %v802_v49 = vld [vmem:[%s1230_s4 + $0x40] sm:$0xff] }
  0xe8   : > { %v621_v1 = vadd.f32 %v618_v56, %v615_v50  ;;  %v635_v2 = vadd.f32 %v794_v32, %v632_v59  ;;  %v648_v51 = vadd.f32 %v800_v36, %v645_v60  ;;  %v568_v3 = vsub.f32 %v1097_v8, %v565_v63 }
  0xe9   : > { %v586_v5 = vsub.f32 %v1100_v9, %v583_v20  ;;  %v604_v6 = vsub.f32 %v1103_v10, %v601_v0  ;;  %v533_v61 = vadd.f32 %v530_v25, %v527_v21  ;;  %v563_v33 = vmul.f32 0.2, %v1116_v58 }
  0xea   : > { %625 = vst.msk [vmem:[%s1230_s4] sm:$0xff] %vm624_vm9, %v621_v1  ;;  %v571_v62 = vsel %vm559_vm10, %v568_v3, %v1097_v8  ;;  %v581_v22 = vmul.f32 0.2, %v1119_v42  ;;  %v599_v41 = vmul.f32 0.2, %v1122_v43 }
  0xeb   : > { %797 = vst.msk [vmem:[%s1230_s4 + $0x18] sm:$0xff] %vm624_vm9, %v635_v2  ;;  %v574_v11 = vmul.f32 0.8, %v571_v62  ;;  %v589_v12 = vsel %vm559_vm10, %v586_v5, %v1100_v9  ;;  %v607_v13 = vsel %vm559_vm10, %v604_v6, %v1103_v10  ;;  %v557_v14 = vmul.f32 %v871_v4, %v533_v61  ;;  %v616_v9 = vld [vmem:[%s1230_s4 + $0x8] sm:$0xff] }
  0xec   : > { %803 = vst.msk [vmem:[%s1230_s4 + $0x30] sm:$0xff] %vm624_vm9, %v648_v51  ;;  %v592_v8 = vmul.f32 0.8, %v589_v12  ;;  %v610_v15 = vmul.f32 0.8, %v607_v13  ;;  %vm560_vm11 = vcmp.lt.f32.partialorder %v533_v61, 0.0 }
  0xed   : > { %v577_v16 = vadd.f32 %v574_v11, %v562_v44  ;;  %v566_v18 = vmul.f32 %v557_v14, %v1073_v34  ;;  %v584_v28 = vmul.f32 %v557_v14, %v1075_v35  ;;  %v602_v27 = vmul.f32 %v557_v14, %v1089_v53  ;;  %v801_v34 = vld [vmem:[%s1230_s4 + $0x38] sm:$0xff] }
  0xee   : > { %v595_v10 = vadd.f32 %v592_v8, %v580_v17  ;;  %v613_v19 = vadd.f32 %v610_v15, %v598_v7 }
  0xef   : > { %v619_v35 = vmul.f32 0.05, %v577_v16  ;;  %v569_v53 = vsub.f32 %v1116_v58, %v566_v18  ;;  %v587_v46 = vsub.f32 %v1119_v42, %v584_v28  ;;  %v605_v48 = vsub.f32 %v1122_v43, %v602_v27 }
  0xf0   : > { %v633_v57 = vmul.f32 0.05, %v595_v10  ;;  %v646_v24 = vmul.f32 0.05, %v613_v19 }
  0xf1   : > { %v622_v26 = vadd.f32 %v619_v35, %v616_v9  ;;  %v572_v29 = vsel %vm560_vm11, %v569_v53, %v1116_v58  ;;  %v590_v30 = vsel %vm560_vm11, %v587_v46, %v1119_v42  ;;  %v608_v31 = vsel %vm560_vm11, %v605_v48, %v1122_v43  ;;  %v796_v43 = vld [vmem:[%s1230_s4 + $0x28] sm:$0xff] }
  0xf2   : > { %v636_v37 = vadd.f32 %v795_v23, %v633_v57  ;;  %v649_v38 = vadd.f32 %v801_v34, %v646_v24  ;;  %v575_v39 = vmul.f32 0.8, %v572_v29  ;;  %v593_v40 = vmul.f32 0.8, %v590_v30 }
  0xf3   : > { %626 = vst.msk [vmem:[%s1230_s4 + $0x8] sm:$0xff] %vm624_vm9, %v622_v26  ;;  %v611_v45 = vmul.f32 0.8, %v608_v31 }
  0xf4   : > { %798 = vst.msk [vmem:[%s1230_s4 + $0x20] sm:$0xff] %vm624_vm9, %v636_v37  ;;  %v578_v58 = vadd.f32 %v575_v39, %v563_v33  ;;  %v596_v42 = vadd.f32 %v593_v40, %v581_v22 }
  0xf5   : > { %804 = vst.msk [vmem:[%s1230_s4 + $0x38] sm:$0xff] %vm624_vm9, %v649_v38  ;;  %v614_v47 = vadd.f32 %v611_v45, %v599_v41 }
  0xf6   : > { %v620_v50 = vmul.f32 0.05, %v578_v58  ;;  %v634_v32 = vmul.f32 0.05, %v596_v42 }
  0xf7   : > { %v647_v36 = vmul.f32 0.05, %v614_v47 }
  0xf8   : > { %v623_v44 = vadd.f32 %v620_v50, %v617_v52  ;;  %v637_v54 = vadd.f32 %v796_v43, %v634_v32 }
  0xf9   : > { %v650_v55 = vadd.f32 %v802_v49, %v647_v36 }
  0xfa   : > { %627 = vst.msk [vmem:[%s1230_s4 + $0x10] sm:$0xff] %vm624_vm9, %v623_v44 }
  0xfb   : > { %799 = vst.msk [vmem:[%s1230_s4 + $0x28] sm:$0xff] %vm624_vm9, %v637_v54 }
  0xfc   : > { %805 = vst.msk [vmem:[%s1230_s4 + $0x40] sm:$0xff] %vm624_vm9, %v650_v55 }
  0xfd PF: > { %s14_s17 = sadd.s32 1, %s894_s17   ;;  %s1231_s15 = smov %s890_s16 }
  0xfe   : > { %p11_p6 = scmp.ge.s32.totalorder %s14_s17, 22   ;;  %s1232_s16 = smov %s1234_s18 }
 0x100   :  { %13 = sbr.rel (!%p11_p6) target bundleno = 2 (0x2), region = 74 }

// kernel: vn_dgcnn_forward.11
= control target key start
LH: loop header
LB: loop body
LE: loop exit
PB: predicated region body
PF: predicated region fallthrough
CT: control target
= control target key end

     0   :  { %s1386_s24 = smov 0   ;;  %s1388_s25 = smov 0   ;;  %s1869_s0 = inlined_call_operand.vmem [shape: bf16[20,3,48,64], index: 0, kind: input, shape index: {}]   ;;  %s1870_s1 = inlined_call_operand.vmem [shape: bf16[48,48], index: 1, kind: input, shape index: {}]   ;;  %s1871_s2 = inlined_call_operand.vmem [shape: f32[24,1], index: 2, kind: input, shape index: {}]   ;;  %s1872_s3 = inlined_call_operand.vmem [shape: f32[24,1], index: 3, kind: input, shape index: {}]   ;;  %s1873_s4 = inlined_call_operand.vmem [shape: bf16[48,24], index: 4, kind: input, shape index: {}]   ;;  %s1874_s5 = inlined_call_operand.vmem [shape: f32[24,1], index: 5, kind: input, shape index: {}]   ;;  %s1875_s6 = inlined_call_operand.vmem [shape: f32[24,1], index: 6, kind: input, shape index: {}]   ;;  %s1876_s7 = inlined_call_operand.vmem [shape: f32[3,24,64], index: 7, kind: output, shape index: {}]  }
   0x1   :  { %s1390_s26 = smov 0  }
   0x2 LB: > { %s26_s27 = sadd.s32 1, %s1338_s25  ;;  %p1126_p0 = scmp.ge.s32.totalorder %s1342_s26, 1  ;;  %s1342_s26 = sphi %s1390_s26, %s17_s26   ;;  %s1338_s25 = sphi %s1388_s25, %s1878_s25   ;;  %s1334_s24 = sphi %s1386_s24, %s1877_s24  }
   0x3   : > { %p27_p1 = scmp.ge.s32.totalorder %s26_s27, 20  ;;  %p254_p2 = scmp.lt.s32.totalorder %s1342_s26, 21 }
   0x5   : > { %s1880_s27 = smov (%p27_p1, %s26_s27), 0  ;;  %p255_p3 = pnand %p1126_p0, %p254_p2 }
   0x6   : > { %p288_p4 = scmp.lt.s32.totalorder (!%p255_p3), %s1334_s24, 19  ;;  %p1128_p5 = scmp.ne.s32.totalorder (!%p255_p3), %s1334_s24, 0 }
   0x7   : > { %258 = sbr.rel (%p255_p3) target bundleno = 530 (0x212), region = 48 }
   0xc   : > { %s289_s28 = scalar_select %p288_p4, %s1334_s24, 19 }
   0xd   : > { %304 = sbr.rel (%p1128_p5) target bundleno = 28 (0x1c), region = 52 }
   0xe   : > { %s1254_s29 = smul.u32 72, %s289_s28 }
  0x10   : > { %s1407_s9 = scalar_lea.vmem %s1869_s0, %s1254_s29 }
  0x12   : > { %vm305_vm0 = vcmask 523264   ;;  %v1344_v0 = vmov 0.0  }
  0x13   : > { %306 = vst.msk [vmem:[%s1876_s7] sm:$0xff] %vm305_vm0, %v1344_v0 }
  0x14   : > { %307 = vst.msk [vmem:[%s1876_s7 + $0x8] sm:$0xff] %vm305_vm0, %v1344_v0 }
  0x15   : > { %308 = vst.msk [vmem:[%s1876_s7 + $0x10] sm:$0xff] %vm305_vm0, %v1344_v0 }
  0x16   : > { %309 = vst.msk [vmem:[%s1876_s7 + $0x18] sm:$0xff] %vm305_vm0, %v1344_v0 }
  0x17   : > { %310 = vst.msk [vmem:[%s1876_s7 + $0x20] sm:$0xff] %vm305_vm0, %v1344_v0 }
  0x18   : > { %311 = vst.msk [vmem:[%s1876_s7 + $0x28] sm:$0xff] %vm305_vm0, %v1344_v0 }
  0x19   : > { %312 = vst.msk [vmem:[%s1876_s7 + $0x30] sm:$0xff] %vm305_vm0, %v1344_v0 }
  0x1a   : > { %313 = vst.msk [vmem:[%s1876_s7 + $0x38] sm:$0xff] %vm305_vm0, %v1344_v0 }
  0x1b   : > { %314 = vst.msk [vmem:[%s1876_s7 + $0x40] sm:$0xff] %vm305_vm0, %v1344_v0 }
  0x1c PF: > { %v1236_v1 = vld [vmem:[%s1407_s9 + $0x10] sm:$0xff]  ;;  %v1242_v2 = vld [vmem:[%s1407_s9 + $0x40] sm:$0xff]  ;;  %v1235_v3 = vld [vmem:[%s1407_s9 + $0x8] sm:$0xff]  ;;  %vm380_vm1 = vcmask 392192   ;;  %v1345_v13 = vmov 0   ;;  %vm739_vm11 = vcmask 1043456  }
  0x1d   : > { %1249 = vmatpush.bf16.msra.mxu1 %v1236_v1  ;;  %395 = vmatpush.bf16.msra.mxu0 %v1236_v1  ;;  %v1241_v4 = vld [vmem:[%s1407_s9 + $0x38] sm:$0xff]  ;;  %v1234_v5 = vld [vmem:[%s1407_s9] sm:$0xff]  ;;  %v1239_v6 = vld [vmem:[%s1407_s9 + $0x28] sm:$0xff]  ;;  %vm729_vm12 = vcmask 195584  }
  0x1e   : > { %479 = vmatpush.bf16.msra.mxu2 %v1242_v2  ;;  %v1240_v7 = vld [vmem:[%s1407_s9 + $0x30] sm:$0xff]  ;;  %v1244_v8 = vld [vmem:[%s1870_s1 + $0x8] sm:$0xff]  ;;  %v1243_v9 = vld [vmem:[%s1870_s1] sm:$0xff]  ;;  %1281 = vset.pattern.permute.xlu0 %v1345_v13 }
  0x1f   : > { %v1238_v10 = vld [vmem:[%s1407_s9 + $0x20] sm:$0xff]  ;;  %v1237_v11 = vld [vmem:[%s1407_s9 + $0x18] sm:$0xff]  ;;  %v1245_v12 = vld [vmem:[%s1870_s1 + $0x10] sm:$0xff]  ;;  %1282 = vset.pattern.permute.xlu1 %v1345_v13  ;;  %1283 = vset.pattern.permute.xlu2 %v1345_v13 }
  0x20   : > { %v346_v14 = vld [vmem:[%s1872_s3 + $0x10] sm:$0xff]  ;;  %v344_v15 = vld [vmem:[%s1872_s3] sm:$0xff]  ;;  %v345_v18 = vld [vmem:[%s1872_s3 + $0x8] sm:$0xff] }
  0x21   : > { %1250 = vmatpush.bf16.msra.mxu1 %v1235_v3  ;;  %396 = vmatpush.bf16.msra.mxu0 %v1235_v3  ;;  %v341_v16 = vld [vmem:[%s1871_s2] sm:$0xff]  ;;  %v343_v17 = vld [vmem:[%s1871_s2 + $0x10] sm:$0xff]  ;;  %v342_v19 = vld [vmem:[%s1871_s2 + $0x8] sm:$0xff] }
  0x22   : > { %480 = vmatpush.bf16.msra.mxu2 %v1241_v4  ;;  %567 = vperm.xlu0 %1281, %v346_v14   ;;  %v705_v20 = vld [vmem:[%s1875_s6] sm:$0xff]  ;;  %v706_v21 = vld [vmem:[%s1875_s6 + $0x8] sm:$0xff]  ;;  %v707_v22 = vld [vmem:[%s1875_s6 + $0x10] sm:$0xff] }
  0x23   : > { %557 = vperm.xlu1 %1282, %v344_v15   ;;  %575 = vperm.xlu2 %1283, %v341_v16   ;;  %v702_v23 = vld [vmem:[%s1874_s5] sm:$0xff]  ;;  %v703_v24 = vld [vmem:[%s1874_s5 + $0x8] sm:$0xff]  ;;  %v704_v25 = vld [vmem:[%s1874_s5 + $0x10] sm:$0xff] }
  0x25   : > { %1251 = vmatpush.bf16.msra.mxu1 %v1234_v5  ;;  %397 = vmatpush.bf16.msra.mxu0 %v1234_v5 }
  0x26   : > { %481 = vmatpush.bf16.msra.mxu2 %v1240_v7 }
  0x28   : > { %1166 = vmatmul.msk.bf16.vlgmr.msra.gmra.mxu1 %vm380_vm1, %v1244_v8  ;;  %1165 = vmatmul.msk.bf16.vlgmr.msra.gmra.mxu0 %vm380_vm1, %v1243_v9 }
  0x29   : > { %437 = vmatpush.bf16.msrb.mxu1 %v1239_v6  ;;  %1195 = vmatmul.msk.bf16.vlgmr.msra.gmra.mxu2 %vm380_vm1, %v1243_v9 }
  0x2a   : > { %585 = vperm.xlu0 %1281, %v343_v17  }
  0x2b   : > { %562 = vperm.xlu1 %1282, %v345_v18   ;;  %580 = vperm.xlu2 %1283, %v342_v19  }
  0x2d   : > { %438 = vmatpush.bf16.msrb.mxu1 %v1238_v10 }
  0x31   : > { %439 = vmatpush.bf16.msrb.mxu1 %v1237_v11 }
  0x32   : > { %880 = vperm.xlu0 %1281, %v705_v20  }
  0x33   : > { %885 = vperm.xlu1 %1282, %v706_v21   ;;  %890 = vperm.xlu2 %1283, %v707_v22  }
  0x38   : > { %1167 = vmatmul.msk.bf16.gmra.mxu1 %vm380_vm1, %v1245_v12 }
  0x39   : > { %1196 = vmatmul.msk.bf16.gmra.mxu2 %vm380_vm1, %v1244_v8 }
  0x3a   : > { %898 = vperm.xlu0 %1281, %v702_v23  }
  0x3b   : > { %903 = vperm.xlu1 %1282, %v703_v24   ;;  %908 = vperm.xlu2 %1283, %v704_v25  }
  0x48   : > { %1180 = vmatmul.msk.bf16.vlgmr.msrb.gmra.mxu1 %vm380_vm1, %v1243_v9 }
  0x49   : > { %1197 = vmatmul.msk.bf16.gmra.mxu2 %vm380_vm1, %v1245_v12 }
  0x58   : > { %1181 = vmatmul.msk.bf16.gmra.mxu1 %vm380_vm1, %v1244_v8 }
  0x68   : > { %1182 = vmatmul.msk.bf16.gmra.mxu1 %vm380_vm1, %v1245_v12 }
  0x7d   : > { %v576_v24 = vpop.permute.xlu2 %575 }
  0x95   : > { %v558_v17 = vpop.permute.xlu1 %557 }
  0xa5   : > { %v1499_v26 = vpop.f32.mrf.mxu1  ;;  %v1507_v30 = vpop.f32.mrf.mxu0 }
  0xa6   : > { %v498_v32 = vmul.f32 %v1507_v30, %v1507_v30  ;;  %v500_v51 = vmul.f32 %v1499_v26, %v1499_v26 }
  0xac   : > { %v1509_v31 = vpop.f32.mrf.mxu2 }
  0xad   : > { %v1501_v27 = vpop.f32.mrf.mxu1  ;;  %v507_v34 = vmul.f32 %v1509_v31, %v1509_v31  ;;  %v1519_v37 = vpop.f32.mrf.mxu0 }
  0xae   : > { %v499_v40 = vmul.f32 %v1519_v37, %v1519_v37  ;;  %v615_v22 = vmul.f32 %v1501_v27, %v1501_v27 }
  0xb4   : > { %v1521_v39 = vpop.f32.mrf.mxu2 }
  0xb5   : > { %v1503_v28 = vpop.f32.mrf.mxu1  ;;  %v508_v43 = vmul.f32 %v1521_v39, %v1521_v39 }
  0xbc   : > { %v1531_v48 = vpop.f32.mrf.mxu2 }
  0xbd   : > { %v1505_v29 = vpop.f32.mrf.mxu1  ;;  %v509_v52 = vmul.f32 %v1531_v48, %v1531_v48 }
  0xc4   : > { %v1543_v0 = vpop.f32.mrf.mxu2 }
  0xc5   : > { %v1513_v33 = vpop.f32.mrf.mxu1 }
  0xc6   : > { %v501_v35 = vmul.f32 %v1513_v33, %v1513_v33 }
  0xc8   : > { %v504_v36 = vadd.f32 %v501_v35, %v498_v32  ;;  %v616_v32 = vmul.f32 %v1503_v28, %v1503_v28 }
  0xca   : > { %v510_v38 = vadd.f32 %v507_v34, %v504_v36 }
  0xcc   : > { %1284 = vrsqrt.f32 %v510_v38  ;;  %vm520_vm2 = vcmp.eq.f32.partialorder %v510_v38, inf  ;;  %v523_v1 = vand.u32 2147483648, %v510_v38  ;;  %vm522_vm3 = vcmp.eq.f32.partialorder %v510_v38, 0.0  ;;  %v1547_v14 = vpop.f32.mrf.mxu2 }
  0xcd   : > { %v1525_v41 = vpop.f32.mrf.mxu1 }
  0xce   : > { %v502_v42 = vmul.f32 %v1525_v41, %v1525_v41 }
  0xd0   : > { %v505_v44 = vadd.f32 %v502_v42, %v499_v40  ;;  %v625_v42 = vmul.f32 %v1547_v14, %v1547_v14 }
  0xd2   : > { %v1285_v45 = vpop.eup %1284  ;;  %v511_v46 = vadd.f32 %v508_v43, %v505_v44  ;;  %v624_v43 = vmul.f32 %v1543_v0, %v1543_v0 }
  0xd3   : > { %v514_v47 = vmul.f32 %v1285_v45, %v510_v38 }
  0xd4   : > { %1286 = vrsqrt.f32 %v511_v46  ;;  %vm532_vm4 = vcmp.eq.f32.partialorder %v511_v46, inf  ;;  %v535_v13 = vand.u32 2147483648, %v511_v46  ;;  %vm534_vm5 = vcmp.eq.f32.partialorder %v511_v46, 0.0 }
  0xd5   : > { %v1533_v49 = vpop.f32.mrf.mxu1  ;;  %v515_v50 = vmul.f32 %v1285_v45, %v514_v47 }
  0xd6   : > { %v503_v53 = vmul.f32 %v1533_v49, %v1533_v49 }
  0xd7   : > { %v516_v54 = vmul.f32 0.5, %v515_v50 }
  0xd8   : > { %v506_v55 = vadd.f32 %v503_v53, %v500_v51 }
  0xd9   : > { %v517_v56 = vsub.f32 1.5, %v516_v54 }
  0xda   : > { %v1287_v57 = vpop.eup %1286  ;;  %v512_v58 = vadd.f32 %v509_v52, %v506_v55 }
  0xdb   : > { %v518_v59 = vmul.f32 %v1285_v45, %v517_v56  ;;  %v526_v60 = vmul.f32 %v1287_v57, %v511_v46  ;;  %v495_v56 = vpop.f32.mrf.mxu2 }
  0xdc   : > { %1288 = vrsqrt.f32 %v512_v58  ;;  %vm544_vm6 = vcmp.eq.f32.partialorder %v512_v58, inf  ;;  %vm546_vm7 = vcmp.eq.f32.partialorder %v512_v58, 0.0 }
  0xdd   : > { %v1541_v61 = vpop.f32.mrf.mxu1  ;;  %v519_v62 = vmul.f32 %v518_v59, %v510_v38  ;;  %v527_v63 = vmul.f32 %v1287_v57, %v526_v60  ;;  %v617_v59 = vmul.f32 %v1505_v29, %v1505_v29  ;;  %v568_v60 = vpop.permute.xlu0 %567 }
  0xde   : > { %v618_v16 = vmul.f32 %v1541_v61, %v1541_v61 }
  0xdf   : > { %v521_v2 = vsel %vm520_vm2, %v510_v38, %v519_v62  ;;  %v528_v3 = vmul.f32 0.5, %v527_v63 }
  0xe0   : > { %v524_v4 = vsel %vm522_vm3, %v523_v1, %v521_v2  ;;  %v621_v36 = vadd.f32 %v618_v16, %v615_v22  ;;  %v581_v2 = vpop.permute.xlu2 %580  ;;  %vm1028_vm3 = vcmask 523264  }
  0xe1   : > { %v549_v5 = vadd.f32 1e-06, %v524_v4  ;;  %v529_v6 = vsub.f32 1.5, %v528_v3  ;;  %v626_v4 = vmul.f32 %v495_v56, %v495_v56 }
  0xe2   : > { %v1289_v7 = vpop.eup %1288  ;;  %v627_v52 = vadd.f32 %v624_v43, %v621_v36 }
  0xe3   : > { %v538_v8 = vmul.f32 %v1289_v7, %v512_v58  ;;  %1290 = vrcp.f32 %v549_v5  ;;  %v530_v9 = vmul.f32 %v1287_v57, %v529_v6 }
  0xe4   : > { %v630_v1 = vadd.f32 1e-06, %v627_v52 }
  0xe5   : > { %v539_v10 = vmul.f32 %v1289_v7, %v538_v8  ;;  %v1545_v11 = vpop.f32.mrf.mxu1  ;;  %v531_v12 = vmul.f32 %v530_v9, %v511_v46 }
  0xe6   : > { %v619_v19 = vmul.f32 %v1545_v11, %v1545_v11 }
  0xe7   : > { %v540_v15 = vmul.f32 0.5, %v539_v10  ;;  %v533_v18 = vsel %vm532_vm4, %v511_v46, %v531_v12  ;;  %v547_v46 = vand.u32 2147483648, %v512_v58 }
  0xe8   : > { %v536_v20 = vsel %vm534_vm5, %v535_v13, %v533_v18  ;;  %v622_v40 = vadd.f32 %v619_v19, %v616_v32  ;;  %v586_v19 = vpop.permute.xlu0 %585 }
  0xe9   : > { %v1291_v21 = vpop.eup %1290  ;;  %v541_v23 = vsub.f32 1.5, %v540_v15  ;;  %v550_v25 = vadd.f32 1e-06, %v536_v20 }
  0xea   : > { %v570_v34 = vmul.f32 %v1291_v21, %v558_v17  ;;  %v628_v55 = vadd.f32 %v625_v42, %v622_v40 }
  0xeb   : > { %v542_v35 = vmul.f32 %v1289_v7, %v541_v23  ;;  %1292 = vrcp.f32 %v550_v25 }
  0xec   : > { %v588_v38 = vadd.f32 %v576_v24, %v570_v34  ;;  %v631_v6 = vadd.f32 1e-06, %v628_v55 }
  0xed   : > { %v543_v44 = vmul.f32 %v542_v35, %v512_v58  ;;  %v1561_v45 = vpop.f32.mrf.mxu1 }
  0xee   : > { %v1564_v47 = vmul.f32 %v588_v38, %v1507_v30  ;;  %v1567_v50 = vmul.f32 %v588_v38, %v1513_v33  ;;  %v620_v53 = vmul.f32 %v1561_v45, %v1561_v45  ;;  %v563_v30 = vpop.permute.xlu1 %562  ;;  %v1578_v5 = vmul.f32 %v588_v38, %v1509_v31 }
  0xef   : > { %v545_v51 = vsel %vm544_vm6, %v512_v58, %v543_v44 }
  0xf0   : > { %v548_v54 = vsel %vm546_vm7, %v547_v46, %v545_v51  ;;  %v600_v33 = vmul.f32 %v1564_v47, %v1501_v27  ;;  %v603_v58 = vmul.f32 %v1567_v50, %v1541_v61  ;;  %v623_v3 = vadd.f32 %v620_v53, %v617_v59 }
  0xf1   : > { %v1293_v57 = vpop.eup %1292  ;;  %v551_v62 = vadd.f32 1e-06, %v548_v54 }
  0xf2   : > { %v571_v63 = vmul.f32 %v1293_v57, %v563_v30  ;;  %v606_v12 = vadd.f32 %v603_v58, %v600_v33  ;;  %v629_v13 = vadd.f32 %v626_v4, %v623_v3 }
  0xf3   : > { %1294 = vrcp.f32 %v551_v62 }
  0xf4   : > { %v589_v7 = vadd.f32 %v581_v2, %v571_v63  ;;  %1296 = vrcp.f32 %v630_v1  ;;  %v632_v20 = vadd.f32 1e-06, %v629_v13 }
  0xf5   : > { %1298 = vrcp.f32 %v631_v6 }
  0xf6   : > { %v1581_v8 = vmul.f32 %v589_v7, %v1519_v37  ;;  %v1584_v9 = vmul.f32 %v589_v7, %v1525_v41  ;;  %v1587_v10 = vmul.f32 %v589_v7, %v1521_v39  ;;  %v609_v37 = vmul.f32 %v1578_v5, %v1543_v0 }
  0xf7   : > { %1300 = vrcp.f32 %v632_v20 }
  0xf8   : > { %v601_v15 = vmul.f32 %v1581_v8, %v1503_v28  ;;  %v604_v31 = vmul.f32 %v1584_v9, %v1545_v11  ;;  %v610_v39 = vmul.f32 %v1587_v10, %v1547_v14  ;;  %v1597_v18 = vadd.f32 %v609_v37, %v606_v12 }
  0xf9   : > { %v1295_v16 = vpop.eup %1294 }
  0xfa   : > { %v572_v17 = vmul.f32 %v1295_v16, %v568_v60  ;;  %v607_v41 = vadd.f32 %v604_v31, %v601_v15  ;;  %v1297_v23 = vpop.eup %1296  ;;  %vm639_vm8 = vcmp.lt.f32.partialorder %v1597_v18, 0.0  ;;  %v643_v16 = vmul.f32 0.2, %v1581_v8 }
  0xfb   : > { %v1299_v24 = vpop.eup %1298  ;;  %v636_v35 = vmul.f32 %v1297_v23, %v1597_v18  ;;  %v1247_v18 = vld [vmem:[%s1873_s4 + $0x8] sm:$0xff] }
  0xfc   : > { %v590_v21 = vadd.f32 %v586_v19, %v572_v17  ;;  %v613_v22 = vadd.f32 %v610_v39, %v607_v41 }
  0xfd   : > { %v645_v44 = vmul.f32 %v636_v35, %v1501_v27  ;;  %v663_v52 = vmul.f32 %v636_v35, %v1541_v61 }
  0xfe   : > { %v593_v25 = vmul.f32 %v590_v21, %v1499_v26  ;;  %v596_v32 = vmul.f32 %v590_v21, %v1533_v49  ;;  %v599_v34 = vmul.f32 %v590_v21, %v1531_v48  ;;  %v637_v36 = vmul.f32 %v1299_v24, %v613_v22  ;;  %v1301_v49 = vpop.eup %1300 }
  0xff   : > { %v681_v48 = vmul.f32 %v636_v35, %v1543_v0  ;;  %v648_v54 = vsub.f32 %v1564_v47, %v645_v44  ;;  %v666_v61 = vsub.f32 %v1567_v50, %v663_v52  ;;  %vm640_vm9 = vcmp.lt.f32.partialorder %v613_v22, 0.0 }
 0x100   : > { %v602_v38 = vmul.f32 %v593_v25, %v1505_v29  ;;  %v605_v40 = vmul.f32 %v596_v32, %v1561_v45  ;;  %v611_v43 = vmul.f32 %v599_v34, %v495_v56  ;;  %v646_v46 = vmul.f32 %v637_v36, %v1503_v28 }
 0x101   : > { %v682_v26 = vmul.f32 %v637_v36, %v1547_v14  ;;  %v664_v28 = vmul.f32 %v637_v36, %v1545_v11  ;;  %v684_v14 = vsub.f32 %v1578_v5, %v681_v48  ;;  %v680_v2 = vmul.f32 0.2, %v599_v34 }
 0x102   : > { %v608_v42 = vadd.f32 %v605_v40, %v602_v38  ;;  %v649_v55 = vsub.f32 %v1581_v8, %v646_v46  ;;  %v662_v12 = vmul.f32 0.2, %v596_v32  ;;  %v679_v21 = vmul.f32 0.2, %v1587_v10 }
 0x103   : > { %v685_v27 = vsub.f32 %v1587_v10, %v682_v26  ;;  %v667_v63 = vsub.f32 %v1584_v9, %v664_v28  ;;  %v687_v7 = vsel %vm639_vm8, %v684_v14, %v1578_v5  ;;  %v642_v24 = vmul.f32 0.2, %v1564_v47 }
 0x104   : > { %v614_v51 = vadd.f32 %v611_v43, %v608_v42  ;;  %v652_v11 = vsel %vm640_vm9, %v649_v55, %v1581_v8  ;;  %v690_v23 = vmul.f32 0.8, %v687_v7  ;;  %v660_v44 = vmul.f32 0.2, %v1567_v50 }
 0x105   : > { %v655_v6 = vmul.f32 0.8, %v652_v11  ;;  %v670_v39 = vsel %vm640_vm9, %v667_v63, %v1584_v9 }
 0x106   : > { %v638_v53 = vmul.f32 %v1301_v49, %v614_v51  ;;  %vm641_vm10 = vcmp.lt.f32.partialorder %v614_v51, 0.0  ;;  %v673_v36 = vmul.f32 0.8, %v670_v39  ;;  %v1246_v51 = vld [vmem:[%s1873_s4] sm:$0xff] }
 0x108   : > { %v683_v57 = vmul.f32 %v638_v53, %v495_v56  ;;  %v647_v59 = vmul.f32 %v638_v53, %v1505_v29  ;;  %v665_v0 = vmul.f32 %v638_v53, %v1561_v45  ;;  %v651_v56 = vsel %vm639_vm8, %v648_v54, %v1564_v47 }
 0x109   : > { %v644_v29 = vmul.f32 0.2, %v593_v25  ;;  %v688_v45 = vsel %vm640_vm9, %v685_v27, %v1587_v10  ;;  %v654_v17 = vmul.f32 0.8, %v651_v56  ;;  %v661_v47 = vmul.f32 0.2, %v1584_v9 }
 0x10a   : > { %v686_v60 = vsub.f32 %v599_v34, %v683_v57  ;;  %v650_v62 = vsub.f32 %v593_v25, %v647_v59  ;;  %v668_v30 = vsub.f32 %v596_v32, %v665_v0  ;;  %v691_v37 = vmul.f32 0.8, %v688_v45 }
 0x10b   : > { %v657_v38 = vadd.f32 %v654_v17, %v642_v24  ;;  %v676_v46 = vadd.f32 %v673_v36, %v661_v47 }
 0x10c   : > { %v653_v33 = vsel %vm641_vm10, %v650_v62, %v593_v25  ;;  %v689_v58 = vsel %vm641_vm10, %v686_v60, %v599_v34  ;;  %v671_v4 = vsel %vm641_vm10, %v668_v30, %v596_v32  ;;  %v658_v25 = vadd.f32 %v655_v6, %v643_v16 }
 0x10d   : > { %v656_v1 = vmul.f32 0.8, %v653_v33  ;;  %v692_v3 = vmul.f32 0.8, %v689_v58  ;;  %v674_v13 = vmul.f32 0.8, %v671_v4  ;;  %v669_v34 = vsel %vm639_vm8, %v666_v61, %v1567_v50 }
 0x10e   : > { %v678_v32 = vmul.f32 0.2, %v1578_v5  ;;  %v694_v22 = vadd.f32 %v691_v37, %v679_v21  ;;  %v672_v42 = vmul.f32 0.8, %v669_v34  ;;  %v708_v5 = vpack.c.bf16 %v658_v25, %v657_v38  ;;  %v1248_v50 = vld [vmem:[%s1873_s4 + $0x10] sm:$0xff]  ;;  %v881_v34 = vpop.permute.xlu0 %880 }
 0x10f   : > { %v659_v15 = vadd.f32 %v656_v1, %v644_v29  ;;  %v695_v31 = vadd.f32 %v692_v3, %v680_v2  ;;  %v677_v41 = vadd.f32 %v674_v13, %v662_v12 }
 0x110   : > { %v693_v40 = vadd.f32 %v690_v23, %v678_v32  ;;  %v675_v9 = vadd.f32 %v672_v42, %v660_v44 }
 0x111   : > { %v709_v19 = vpack.c.bf16 %v659_v15, %v659_v15  ;;  %v713_v20 = vpack.c.bf16 %v695_v31, %v695_v31  ;;  %v711_v10 = vpack.c.bf16 %v677_v41, %v677_v41 }
 0x112   : > { %v712_v43 = vpack.c.bf16 %v694_v22, %v693_v40  ;;  %v710_v49 = vpack.c.bf16 %v676_v46, %v675_v9 }
 0x113   : > { %v741_v8 = vsel %vm739_vm11, %v709_v19, 0  ;;  %v795_v35 = vsel %vm739_vm11, %v713_v20, 0  ;;  %v768_v26 = vsel %vm739_vm11, %v711_v10, 0 }
 0x114   : > { %749 = vmatpush.bf16.msrb.mxu2 %v741_v8  ;;  %1252 = vmatpush.bf16.msra.mxu3 %v741_v8 }
 0x115   : > { %803 = vmatpush.bf16.msrb.mxu0 %v795_v35 }
 0x118   : > { %750 = vmatpush.bf16.msrb.mxu2 %v708_v5  ;;  %1253 = vmatpush.bf16.msra.mxu3 %v708_v5 }
 0x119   : > { %804 = vmatpush.bf16.msrb.mxu0 %v712_v43 }
 0x11b   : > { %1211 = vmatmul.msk.bf16.vlgmr.msra.gmra.mxu3 %vm729_vm12, %v1247_v18  ;;  %1210 = vmatmul.msk.bf16.vlgmr.msrb.gmra.mxu2 %vm729_vm12, %v1246_v51 }
 0x11c   : > { %776 = vmatpush.bf16.msrb.mxu3 %v768_v26  ;;  %1216 = vmatmul.msk.bf16.vlgmr.msrb.gmra.mxu0 %vm729_vm12, %v1246_v51 }
 0x120   : > { %777 = vmatpush.bf16.msrb.mxu3 %v710_v49 }
 0x12b   : > { %1212 = vmatmul.msk.bf16.gmra.mxu3 %vm729_vm12, %v1248_v50 }
 0x12c   : > { %1217 = vmatmul.msk.bf16.gmra.mxu0 %vm729_vm12, %v1247_v18 }
 0x13b   : > { %1213 = vmatmul.msk.bf16.vlgmr.msrb.gmra.mxu3 %vm729_vm12, %v1246_v51 }
 0x13c   : > { %1218 = vmatmul.msk.bf16.gmra.mxu0 %vm729_vm12, %v1248_v50 }
 0x14b   : > { %1214 = vmatmul.msk.bf16.gmra.mxu3 %vm729_vm12, %v1247_v18 }
 0x15b   : > { %1215 = vmatmul.msk.bf16.gmra.mxu3 %vm729_vm12, %v1248_v50 }
 0x199   : > { %v1661_v55 = vpop.f32.mrf.mxu0 }
 0x19a   : > { %v830_v28 = vmul.f32 %v1661_v55, %v1661_v55 }
 0x19e   : > { %v1653_v48 = vpop.f32.mrf.mxu3  ;;  %v1663_v57 = vpop.f32.mrf.mxu2 }
 0x19f   : > { %v821_v59 = vmul.f32 %v1663_v57, %v1663_v57  ;;  %v823_v4 = vmul.f32 %v1653_v48, %v1653_v48 }
 0x1a1   : > { %v1673_v61 = vpop.f32.mrf.mxu0 }
 0x1a2   : > { %v831_v30 = vmul.f32 %v1673_v61, %v1673_v61 }
 0x1a6   : > { %v1655_v52 = vpop.f32.mrf.mxu3  ;;  %v1675_v60 = vpop.f32.mrf.mxu2 }
 0x1a7   : > { %v822_v56 = vmul.f32 %v1675_v60, %v1675_v60  ;;  %v938_v36 = vmul.f32 %v1655_v52, %v1655_v52 }
 0x1a9   : > { %v1685_v1 = vpop.f32.mrf.mxu0 }
 0x1aa   : > { %v832_v6 = vmul.f32 %v1685_v1, %v1685_v1 }
 0x1ae   : > { %v1657_v53 = vpop.f32.mrf.mxu3 }
 0x1b1   : > { %v1698_v19 = vpop.f32.mrf.mxu0 }
 0x1b2   : > { %v947_v44 = vmul.f32 %v1698_v19, %v1698_v19 }
 0x1b6   : > { %v1659_v54 = vpop.f32.mrf.mxu3 }
 0x1b9   : > { %v1709_v43 = vpop.f32.mrf.mxu0 }
 0x1be   : > { %v1667_v27 = vpop.f32.mrf.mxu3 }
 0x1bf   : > { %v824_v14 = vmul.f32 %v1667_v27, %v1667_v27 }
 0x1c1   : > { %v827_v0 = vadd.f32 %v824_v14, %v821_v59  ;;  %v886_v59 = vpop.permute.xlu1 %885 }
 0x1c3   : > { %v833_v62 = vadd.f32 %v830_v28, %v827_v0  ;;  %v939_v0 = vmul.f32 %v1657_v53, %v1657_v53 }
 0x1c5   : > { %1302 = vrsqrt.f32 %v833_v62  ;;  %vm843_vm13 = vcmp.eq.f32.partialorder %v833_v62, inf  ;;  %v846_v21 = vand.u32 2147483648, %v833_v62  ;;  %vm845_vm14 = vcmp.eq.f32.partialorder %v833_v62, 0.0 }
 0x1c6   : > { %v1679_v29 = vpop.f32.mrf.mxu3 }
 0x1c7   : > { %v825_v11 = vmul.f32 %v1679_v29, %v1679_v29 }
 0x1c9   : > { %v828_v33 = vadd.f32 %v825_v11, %v822_v56  ;;  %v899_v56 = vpop.permute.xlu0 %898 }
 0x1cb   : > { %v1303_v58 = vpop.eup %1302  ;;  %v834_v45 = vadd.f32 %v831_v30, %v828_v33 }
 0x1cc   : > { %v837_v63 = vmul.f32 %v1303_v58, %v833_v62 }
 0x1cd   : > { %1304 = vrsqrt.f32 %v834_v45  ;;  %vm855_vm15 = vcmp.eq.f32.partialorder %v834_v45, inf  ;;  %v858_v18 = vand.u32 2147483648, %v834_v45  ;;  %vm857_vm0 = vcmp.eq.f32.partialorder %v834_v45, 0.0 }
 0x1ce   : > { %v838_v2 = vmul.f32 %v1303_v58, %v837_v63  ;;  %v1687_v3 = vpop.f32.mrf.mxu3 }
 0x1cf   : > { %v826_v7 = vmul.f32 %v1687_v3, %v1687_v3 }
 0x1d0   : > { %v839_v12 = vmul.f32 0.5, %v838_v2 }
 0x1d1   : > { %v829_v13 = vadd.f32 %v826_v7, %v823_v4 }
 0x1d2   : > { %v840_v15 = vsub.f32 1.5, %v839_v12 }
 0x1d3   : > { %v1305_v31 = vpop.eup %1304  ;;  %v1695_v37 = vadd.f32 %v832_v6, %v829_v13 }
 0x1d4   : > { %v841_v16 = vmul.f32 %v1303_v58, %v840_v15  ;;  %v849_v17 = vmul.f32 %v1305_v31, %v834_v45 }
 0x1d5   : > { %1306 = vrsqrt.f32 %v1695_v37  ;;  %vm867_vm1 = vcmp.eq.f32.partialorder %v1695_v37, inf  ;;  %v870_v7 = vand.u32 2147483648, %v1695_v37  ;;  %vm869_vm2 = vcmp.eq.f32.partialorder %v1695_v37, 0.0 }
 0x1d6   : > { %v842_v41 = vmul.f32 %v841_v16, %v833_v62  ;;  %v850_v39 = vmul.f32 %v1305_v31, %v849_v17  ;;  %v1700_v20 = vpop.f32.mrf.mxu3 }
 0x1d7   : > { %v941_v32 = vmul.f32 %v1700_v20, %v1700_v20 }
 0x1d8   : > { %v844_v23 = vsel %vm843_vm13, %v833_v62, %v842_v41  ;;  %v851_v24 = vmul.f32 0.5, %v850_v39  ;;  %v891_v41 = vpop.permute.xlu2 %890  ;;  %v940_v39 = vmul.f32 %v1659_v54, %v1659_v54 }
 0x1d9   : > { %v847_v25 = vsel %vm845_vm14, %v846_v21, %v844_v23  ;;  %v944_v40 = vadd.f32 %v941_v32, %v938_v36 }
 0x1da   : > { %v872_v8 = vadd.f32 1e-06, %v847_v25  ;;  %v852_v35 = vsub.f32 1.5, %v851_v24  ;;  %v904_v24 = vpop.permute.xlu1 %903 }
 0x1db   : > { %v1307_v22 = vpop.eup %1306  ;;  %v950_v9 = vadd.f32 %v947_v44, %v944_v40 }
 0x1dc   : > { %1308 = vrcp.f32 %v872_v8  ;;  %v853_v38 = vmul.f32 %v1305_v31, %v852_v35  ;;  %v861_v10 = vmul.f32 %v1307_v22, %v1695_v37  ;;  %v1731_v31 = vpop.f32.mrf.mxu0 }
 0x1dd   : > { %v953_v33 = vadd.f32 1e-06, %v950_v9 }
 0x1de   : > { %v854_v47 = vmul.f32 %v853_v38, %v834_v45  ;;  %v862_v42 = vmul.f32 %v1307_v22, %v861_v10  ;;  %v1707_v5 = vpop.f32.mrf.mxu3 }
 0x1df   : > { %v942_v49 = vmul.f32 %v1707_v5, %v1707_v5 }
 0x1e0   : > { %v856_v46 = vsel %vm855_vm15, %v834_v45, %v854_v47  ;;  %v863_v51 = vmul.f32 0.5, %v862_v42  ;;  %v948_v45 = vmul.f32 %v1709_v43, %v1709_v43 }
 0x1e1   : > { %v859_v26 = vsel %vm857_vm0, %v858_v18, %v856_v46  ;;  %v945_v58 = vadd.f32 %v942_v49, %v939_v0 }
 0x1e2   : > { %v1309_v50 = vpop.eup %1308  ;;  %v873_v28 = vadd.f32 1e-06, %v859_v26  ;;  %v864_v14 = vsub.f32 1.5, %v863_v51 }
 0x1e3   : > { %v893_v62 = vmul.f32 %v1309_v50, %v881_v34 }
 0x1e4   : > { %1310 = vrcp.f32 %v873_v28  ;;  %v865_v11 = vmul.f32 %v1307_v22, %v864_v14 }
 0x1e5   : > { %v911_v30 = vadd.f32 %v899_v56, %v893_v62  ;;  %1312 = vrcp.f32 %v953_v33 }
 0x1e6   : > { %v866_v63 = vmul.f32 %v865_v11, %v1695_v37  ;;  %v1720_v2 = vpop.f32.mrf.mxu3 }
 0x1e7   : > { %v914_v4 = vmul.f32 %v911_v30, %v1663_v57  ;;  %v917_v6 = vmul.f32 %v911_v30, %v1667_v27  ;;  %v920_v12 = vmul.f32 %v911_v30, %v1661_v55  ;;  %v943_v15 = vmul.f32 %v1720_v2, %v1720_v2 }
 0x1e8   : > { %v868_v13 = vsel %vm867_vm1, %v1695_v37, %v866_v63  ;;  %v951_v27 = vadd.f32 %v948_v45, %v945_v58  ;;  %v949_v37 = vmul.f32 %v1731_v31, %v1731_v31 }
 0x1e9   : > { %v871_v16 = vsel %vm869_vm2, %v870_v7, %v868_v13  ;;  %v923_v57 = vmul.f32 %v914_v4, %v1655_v52  ;;  %v926_v21 = vmul.f32 %v917_v6, %v1700_v20  ;;  %v932_v25 = vmul.f32 %v920_v12, %v1698_v19 }
 0x1ea   : > { %v1311_v17 = vpop.eup %1310  ;;  %v874_v55 = vadd.f32 1e-06, %v871_v16  ;;  %v946_v34 = vadd.f32 %v943_v15, %v940_v39  ;;  %v954_v35 = vadd.f32 1e-06, %v951_v27  ;;  %v983_v51 = vmul.f32 0.2, %v917_v6 }
 0x1eb   : > { %v894_v23 = vmul.f32 %v1311_v17, %v886_v59  ;;  %v929_v32 = vadd.f32 %v926_v21, %v923_v57  ;;  %v1313_v36 = vpop.eup %1312  ;;  %v909_v59 = vpop.permute.xlu2 %908  ;;  %v1001_v11 = vmul.f32 0.2, %v920_v12 }
 0x1ec   : > { %1314 = vrcp.f32 %v874_v55  ;;  %v952_v42 = vadd.f32 %v949_v37, %v946_v34 }
 0x1ed   : > { %v912_v8 = vadd.f32 %v904_v24, %v894_v23  ;;  %v935_v22 = vadd.f32 %v932_v25, %v929_v32  ;;  %1316 = vrcp.f32 %v954_v35 }
 0x1ee   : > { %v955_v62 = vadd.f32 1e-06, %v952_v42 }
 0x1ef   : > { %v1741_v38 = vmul.f32 %v912_v8, %v1675_v60  ;;  %v1744_v10 = vmul.f32 %v912_v8, %v1679_v29  ;;  %v1747_v40 = vmul.f32 %v912_v8, %v1673_v61  ;;  %v959_v47 = vmul.f32 %v1313_v36, %v935_v22 }
 0x1f0   : > { %v965_v61 = vmul.f32 0.2, %v914_v4  ;;  %vm962_vm4 = vcmp.lt.f32.partialorder %v935_v22, 0.0  ;;  %1318 = vrcp.f32 %v955_v62 }
 0x1f1   : > { %v924_v18 = vmul.f32 %v1741_v38, %v1657_v53  ;;  %v927_v44 = vmul.f32 %v1744_v10, %v1707_v5  ;;  %v968_v60 = vmul.f32 %v959_v47, %v1655_v52  ;;  %v986_v26 = vmul.f32 %v959_v47, %v1700_v20 }
 0x1f2   : > { %v1315_v46 = vpop.eup %1314  ;;  %v1004_v29 = vmul.f32 %v959_v47, %v1698_v19  ;;  %v933_v50 = vmul.f32 %v1747_v40, %v1709_v43  ;;  %v984_v20 = vmul.f32 0.2, %v1744_v10  ;;  %v966_v57 = vmul.f32 0.2, %v1741_v38 }
 0x1f3   : > { %v895_v9 = vmul.f32 %v1315_v46, %v891_v41  ;;  %v930_v49 = vadd.f32 %v927_v44, %v924_v18  ;;  %v971_v28 = vsub.f32 %v914_v4, %v968_v60  ;;  %v989_v14 = vsub.f32 %v917_v6, %v986_v26  ;;  %v1317_v58 = vpop.eup %1316 }
 0x1f4   : > { %v1007_v0 = vsub.f32 %v920_v12, %v1004_v29 }
 0x1f5   : > { %v913_v56 = vadd.f32 %v909_v59, %v895_v9  ;;  %v936_v52 = vadd.f32 %v933_v50, %v930_v49  ;;  %v974_v30 = vsel %vm962_vm4, %v971_v28, %v914_v4  ;;  %v992_v19 = vsel %vm962_vm4, %v989_v14, %v917_v6  ;;  %v1020_v9 = vld [vmem:[%s1876_s7 + $0x8] sm:$0xff]  ;;  %v1226_v50 = vld [vmem:[%s1876_s7 + $0x38] sm:$0xff] }
 0x1f6   : > { %v1010_v33 = vsel %vm962_vm4, %v1007_v0, %v920_v12  ;;  %v977_v7 = vmul.f32 0.8, %v974_v30  ;;  %v995_v13 = vmul.f32 0.8, %v992_v19  ;;  %v1219_v12 = vld [vmem:[%s1876_s7 + $0x18] sm:$0xff]  ;;  %v1319_v35 = vpop.eup %1318 }
 0x1f7   : > { %v1760_v45 = vmul.f32 %v913_v56, %v1653_v48  ;;  %v1763_v63 = vmul.f32 %v913_v56, %v1687_v3  ;;  %v1013_v15 = vmul.f32 0.8, %v1010_v33  ;;  %v960_v16 = vmul.f32 %v1317_v58, %v936_v52  ;;  %v1019_v3 = vld [vmem:[%s1876_s7] sm:$0xff] }
 0x1f8   : > { %v980_v27 = vadd.f32 %v977_v7, %v965_v61  ;;  %v998_v17 = vadd.f32 %v995_v13, %v983_v51  ;;  %v1769_v6 = vmul.f32 %v913_v56, %v1685_v1  ;;  %v1225_v1 = vld [vmem:[%s1876_s7 + $0x30] sm:$0xff]  ;;  %vm963_vm5 = vcmp.lt.f32.partialorder %v936_v52, 0.0  ;;  %v1220_v61 = vld [vmem:[%s1876_s7 + $0x20] sm:$0xff] }
 0x1f9   : > { %v925_v4 = vmul.f32 %v1760_v45, %v1659_v54  ;;  %v1016_v48 = vadd.f32 %v1013_v15, %v1001_v11  ;;  %v969_v41 = vmul.f32 %v960_v16, %v1657_v53  ;;  %v987_v39 = vmul.f32 %v960_v16, %v1707_v5 }
 0x1fa   : > { %v1005_v55 = vmul.f32 %v960_v16, %v1709_v43  ;;  %v1022_v21 = vmul.f32 0.05, %v980_v27  ;;  %v1036_v23 = vmul.f32 0.05, %v998_v17  ;;  %v928_v37 = vmul.f32 %v1763_v63, %v1720_v2  ;;  %v1221_v27 = vld [vmem:[%s1876_s7 + $0x28] sm:$0xff] }
 0x1fb   : > { %v1049_v24 = vmul.f32 0.05, %v1016_v48  ;;  %v972_v25 = vsub.f32 %v1741_v38, %v969_v41  ;;  %v990_v32 = vsub.f32 %v1744_v10, %v987_v39  ;;  %v934_v8 = vmul.f32 %v1769_v6, %v1731_v31  ;;  %v1227_v48 = vld [vmem:[%s1876_s7 + $0x40] sm:$0xff] }
 0x1fc   : > { %v1008_v53 = vsub.f32 %v1747_v40, %v1005_v55  ;;  %v1025_v5 = vadd.f32 %v1022_v21, %v1019_v3  ;;  %v1039_v34 = vadd.f32 %v1219_v12, %v1036_v23  ;;  %v931_v43 = vadd.f32 %v928_v37, %v925_v4 }
 0x1fd   : > { %v1052_v22 = vadd.f32 %v1225_v1, %v1049_v24  ;;  %v975_v36 = vsel %vm963_vm5, %v972_v25, %v1741_v38  ;;  %v993_v47 = vsel %vm963_vm5, %v990_v32, %v1744_v10  ;;  %v1002_v51 = vmul.f32 0.2, %v1747_v40 }
 0x1fe   : > { %v1011_v42 = vsel %vm963_vm5, %v1008_v53, %v1747_v40  ;;  %1029 = vst.msk [vmem:[%s1876_s7] sm:$0xff] %vm1028_vm3, %v1025_v5  ;;  %v978_v18 = vmul.f32 0.8, %v975_v36  ;;  %v996_v44 = vmul.f32 0.8, %v993_v47  ;;  %v937_v46 = vadd.f32 %v934_v8, %v931_v43 }
 0x1ff   : > { %1222 = vst.msk [vmem:[%s1876_s7 + $0x18] sm:$0xff] %vm1028_vm3, %v1039_v34  ;;  %v1014_v38 = vmul.f32 0.8, %v1011_v42  ;;  %v985_v19 = vmul.f32 0.2, %v1763_v63 }
 0x200   : > { %1228 = vst.msk [vmem:[%s1876_s7 + $0x30] sm:$0xff] %vm1028_vm3, %v1052_v22  ;;  %v981_v10 = vadd.f32 %v978_v18, %v966_v57  ;;  %v999_v60 = vadd.f32 %v996_v44, %v984_v20  ;;  %v961_v26 = vmul.f32 %v1319_v35, %v937_v46  ;;  %vm964_vm6 = vcmp.lt.f32.partialorder %v937_v46, 0.0  ;;  %v1021_v57 = vld [vmem:[%s1876_s7 + $0x10] sm:$0xff] }
 0x201   : > { %v1017_v29 = vadd.f32 %v1014_v38, %v1002_v51  ;;  %v1003_v13 = vmul.f32 0.2, %v1769_v6 }
 0x202   : > { %v1023_v49 = vmul.f32 0.05, %v981_v10  ;;  %v1037_v40 = vmul.f32 0.05, %v999_v60  ;;  %v970_v59 = vmul.f32 %v961_v26, %v1659_v54  ;;  %v988_v28 = vmul.f32 %v961_v26, %v1720_v2 }
 0x203   : > { %v1050_v14 = vmul.f32 0.05, %v1017_v29  ;;  %v1006_v0 = vmul.f32 %v961_v26, %v1731_v31  ;;  %v967_v54 = vmul.f32 0.2, %v1760_v45 }
 0x204   : > { %v1026_v62 = vadd.f32 %v1023_v49, %v1020_v9  ;;  %v1040_v56 = vadd.f32 %v1220_v61, %v1037_v40  ;;  %v973_v11 = vsub.f32 %v1760_v45, %v970_v59  ;;  %v991_v52 = vsub.f32 %v1763_v63, %v988_v28 }
 0x205   : > { %v1053_v20 = vadd.f32 %v1226_v50, %v1050_v14  ;;  %v1009_v30 = vsub.f32 %v1769_v6, %v1006_v0 }
 0x206   : > { %1030 = vst.msk [vmem:[%s1876_s7 + $0x8] sm:$0xff] %vm1028_vm3, %v1026_v62  ;;  %v976_v2 = vsel %vm964_vm6, %v973_v11, %v1760_v45  ;;  %v994_v31 = vsel %vm964_vm6, %v991_v52, %v1763_v63 }
 0x207   : > { %1223 = vst.msk [vmem:[%s1876_s7 + $0x20] sm:$0xff] %vm1028_vm3, %v1040_v56  ;;  %v979_v33 = vmul.f32 0.8, %v976_v2  ;;  %v997_v58 = vmul.f32 0.8, %v994_v31  ;;  %v1012_v7 = vsel %vm964_vm6, %v1009_v30, %v1769_v6 }
 0x208   : > { %1229 = vst.msk [vmem:[%s1876_s7 + $0x38] sm:$0xff] %vm1028_vm3, %v1053_v20  ;;  %v1015_v15 = vmul.f32 0.8, %v1012_v7 }
 0x209   : > { %v982_v45 = vadd.f32 %v979_v33, %v967_v54  ;;  %v1000_v16 = vadd.f32 %v997_v58, %v985_v19 }
 0x20a   : > { %v1018_v63 = vadd.f32 %v1015_v15, %v1003_v13 }
 0x20b   : > { %v1024_v17 = vmul.f32 0.05, %v982_v45  ;;  %v1038_v4 = vmul.f32 0.05, %v1000_v16 }
 0x20c   : > { %v1051_v3 = vmul.f32 0.05, %v1018_v63 }
 0x20d   : > { %v1027_v6 = vadd.f32 %v1024_v17, %v1021_v57  ;;  %v1041_v12 = vadd.f32 %v1221_v27, %v1038_v4 }
 0x20e   : > { %v1054_v41 = vadd.f32 %v1227_v48, %v1051_v3 }
 0x20f   : > { %1031 = vst.msk [vmem:[%s1876_s7 + $0x10] sm:$0xff] %vm1028_vm3, %v1027_v6 }
 0x210   : > { %1224 = vst.msk [vmem:[%s1876_s7 + $0x28] sm:$0xff] %vm1028_vm3, %v1041_v12 }
 0x211   : > { %1230 = vst.msk [vmem:[%s1876_s7 + $0x40] sm:$0xff] %vm1028_vm3, %v1054_v41 }
 0x212 PF: > { %s17_s26 = sadd.s32 1, %s1342_s26   ;;  %s1877_s24 = smov %s1338_s25 }
 0x213   : > { %p14_p6 = scmp.ge.s32.totalorder %s17_s26, 22   ;;  %s1878_s25 = smov %s1880_s27 }
 0x215   :  { %16 = sbr.rel (!%p14_p6) target bundleno = 2 (0x2), region = 86 }

// kernel: vn_dgcnn_forward.15
= control target key start
LH: loop header
LB: loop body
LE: loop exit
PB: predicated region body
PF: predicated region fallthrough
CT: control target
= control target key end

     0   :  { %s2073_s0 = inlined_call_operand.vmem [shape: f32[2,24,3], index: 0, kind: input, shape index: {}]   ;;  %s2074_s1 = inlined_call_operand.vmem [shape: f32[12,24], index: 1, kind: input, shape index: {}]   ;;  %s2075_s2 = inlined_call_operand.vmem [shape: f32[12,24], index: 2, kind: input, shape index: {}]   ;;  %s2076_s3 = inlined_call_operand.vmem [shape: f32[12,1], index: 3, kind: input, shape index: {}]   ;;  %s2077_s4 = inlined_call_operand.vmem [shape: f32[12,1], index: 4, kind: input, shape index: {}]   ;;  %s2078_s5 = inlined_call_operand.vmem [shape: f32[6,12], index: 5, kind: input, shape index: {}]   ;;  %s2079_s6 = inlined_call_operand.vmem [shape: f32[6,12], index: 6, kind: input, shape index: {}]   ;;  %s2080_s7 = inlined_call_operand.vmem [shape: f32[6,1], index: 7, kind: input, shape index: {}]   ;;  %s2081_s8 = inlined_call_operand.vmem [shape: f32[6,1], index: 8, kind: input, shape index: {}]   ;;  %s2082_s9 = inlined_call_operand.vmem [shape: f32[3,6], index: 9, kind: input, shape index: {}]   ;;  %s2083_s10 = inlined_call_operand.vmem [shape: f32[3,1024], index: 10, kind: input, shape index: {}]   ;;  %s2084_s11 = inlined_call_operand.vmem [shape: f32[1,1024], index: 11, kind: input, shape index: {}]   ;;  %s2085_s12 = inlined_call_operand.hbm [shape: f32[2,24,1024], index: 12, kind: output, shape index: {}]  }
   0x1   :  { %v1420_v0 = vld [vmem:[%s2073_s0 + $0x10] sm:$0xff]  ;;  %v1425_v1 = vld [vmem:[%s2073_s0 + $0x8] sm:$0xff] }
   0x2   :  { %1256 = vmatpush.msra.mxu2 %v1420_v0  ;;  %83 = vmatpush.msra.mxu0 %v1420_v0 }
   0x3   :  { %17 = vsyncpa [#allocation3], 0  ;;  %v1432_v2 = vld [vmem:[%s2073_s0] sm:$0xff]  ;;  %1259 = vmatpush.msra.mxu3 %v1420_v0  ;;  %112 = vmatpush.msra.mxu1 %v1420_v0  ;;  %v1440_v3 = vld [vmem:[%s2074_s1 + $0x8] sm:$0xf]  ;;  %vm63_vm0 = vcmask 195584  }
   0x4   :  { %1257 = vmatpush.msra.mxu2 %v1425_v1  ;;  %84 = vmatpush.msra.mxu0 %v1425_v1  ;;  %v1446_v4 = vld [vmem:[%s2074_s1] sm:$0xff]  ;;  %vm128_vm1 = vcmask 19456   ;;  %vm124_vm2 = vcmask 23552   ;;  %v1471_v11 = vld [vmem:[%s2075_s2 + $0x8] sm:$0xf]  ;;  %v2086_v13 = vmov 0  }
   0x5   :  { %1260 = vmatpush.msra.mxu3 %v1425_v1  ;;  %113 = vmatpush.msra.mxu1 %v1425_v1  ;;  %v1478_v12 = vld [vmem:[%s2075_s2] sm:$0xff]  ;;  %v1488_v36 = vld [vmem:[%s2077_s4 + $0x8] sm:$0xf]  ;;  %vm220_vm8 = vcmask 1043456   ;;  %vm216_vm10 = vcmask 97280   ;;  %vm268_vm11 = vcmask 21504  }
   0x6   :  { %1258 = vmatpush.msra.mxu2 %v1432_v2  ;;  %85 = vmatpush.msra.mxu0 %v1432_v2  ;;  %v1493_v39 = vld [vmem:[%s2076_s3 + $0x8] sm:$0xf]  ;;  %v1500_v43 = vld [vmem:[%s2077_s4] sm:$0xff]  ;;  %s1350_s4 = smov 1024   ;;  %s1351_s23 = smov 64  }
   0x7   :  { %1222 = vmatmul.msk.f32.vlgmr.msra.gmra.mxu2 %vm63_vm0, %v1440_v3  ;;  %1221 = vmatmul.msk.f32.vlgmr.msra.gmra.mxu0 %vm63_vm0, %v1446_v4  ;;  %v1505_v45 = vld [vmem:[%s2076_s3] sm:$0xff]  ;;  %s1209_s3 = sshll.u32 %s2085_s12, 4  ;;  %s1210_s3 = int_to_ptr.hbm [resolvable:$true] %s1209_s3 }
   0x8   :  { %1261 = vmatpush.msra.mxu3 %v1432_v2  ;;  %114 = vmatpush.msra.mxu1 %v1432_v2 }
   0x9   :  { %1224 = vmatmul.msk.f32.vlgmr.msra.gmra.mxu3 %vm63_vm0, %v1471_v11  ;;  %1223 = vmatmul.msk.f32.vlgmr.msra.gmra.mxu1 %vm63_vm0, %v1478_v12 }
   0xa   :  { %1268 = vset.pattern.permute.xlu1 %v2086_v13  ;;  %1269 = vset.pattern.permute.xlu0 %v2086_v13 }
   0xb   :  { %1270 = vset.pattern.permute.xlu2 %v2086_v13 }
  0x84   :  { %v1462_v7 = vpop.f32.mrf.mxu0 }
  0x85   :  { %v122_v9 = vmul.f32 %v1462_v7, %v1462_v7 }
  0x86   :  { %v116_v51 = vpop.f32.mrf.mxu1 }
  0x87   :  { %v125_v10 = vsel %vm124_vm2, %v122_v9, 0.0  ;;  %v184_v52 = vmul.f32 %v116_v51, %v116_v51 }
  0x89   :  { %v186_v53 = vsel %vm124_vm2, %v184_v52, 0.0 }
  0x8a   :  { %v1458_v5 = vpop.f32.mrf.mxu2 }
  0x8b   :  { %v123_v6 = vmul.f32 %v1458_v5, %v1458_v5 }
  0x8c   :  { %v119_v48 = vpop.f32.mrf.mxu3 }
  0x8d   :  { %v129_v8 = vsel %vm128_vm1, %v123_v6, 0.0  ;;  %v185_v49 = vmul.f32 %v119_v48, %v119_v48  ;;  %v1518_v6 = vld [vmem:[%s2073_s0 + $0x28] sm:$0xff] }
  0x8e   :  { %130 = vadd.xlane.f32.xlu0 %v129_v8  ;;  %2122 = vst [vmem:[#allocation5_spill] sm:$0xff] %v1518_v6  ;;  %708 = vmatpush.msrb.mxu0 %v1518_v6 }
  0x8f   :  { %v189_v50 = vsel %vm128_vm1, %v185_v49, 0.0  ;;  %731 = vmatpush.msrb.mxu1 %v1518_v6 }
  0x90   :  { %190 = vadd.xlane.f32.xlu2 %v189_v50 }
  0x96   :  { %126 = vadd.xlane.f32.xlu0 %v125_v10 }
  0x98   :  { %187 = vadd.xlane.f32.xlu2 %v186_v53 }
 0x101   :  { %v131_v14 = vpop.xlane.xlu0 %130 }
 0x102   :  { %1284 = vrsqrt.f32 %v131_v14  ;;  %vm151_vm3 = vcmp.eq.f32.partialorder %v131_v14, inf  ;;  %v154_v26 = vand.u32 2147483648, %v131_v14  ;;  %vm153_vm4 = vcmp.eq.f32.partialorder %v131_v14, 0.0 }
 0x103   :  { %v191_v62 = vpop.xlane.xlu2 %190 }
 0x104   :  { %v193_v63 = vadd.f32 1e-06, %v191_v62 }
 0x108   :  { %v1285_v15 = vpop.eup %1284 }
 0x109   :  { %v145_v16 = vmul.f32 %v1285_v15, %v131_v14  ;;  %v127_v17 = vpop.xlane.xlu0 %126 }
 0x10a   :  { %1286 = vrsqrt.f32 %v127_v17  ;;  %vm139_vm5 = vcmp.eq.f32.partialorder %v127_v17, inf  ;;  %v142_v34 = vand.u32 2147483648, %v127_v17  ;;  %vm141_vm6 = vcmp.eq.f32.partialorder %v127_v17, 0.0 }
 0x10b   :  { %v146_v18 = vmul.f32 %v1285_v15, %v145_v16  ;;  %v188_v8 = vpop.xlane.xlu2 %187 }
 0x10c   :  { %v192_v9 = vadd.f32 1e-06, %v188_v8  ;;  %v1578_v8 = vld [vmem:[%s2081_s8] sm:$0x3f] }
 0x10d   :  { %v147_v19 = vmul.f32 0.5, %v146_v18 }
 0x10f   :  { %v148_v20 = vsub.f32 1.5, %v147_v19 }
 0x110   :  { %v1287_v21 = vpop.eup %1286 }
 0x111   :  { %v149_v22 = vmul.f32 %v1285_v15, %v148_v20  ;;  %v133_v23 = vmul.f32 %v1287_v21, %v127_v17 }
 0x113   :  { %v150_v24 = vmul.f32 %v149_v22, %v131_v14  ;;  %v134_v25 = vmul.f32 %v1287_v21, %v133_v23 }
 0x115   :  { %v135_v27 = vmul.f32 0.5, %v134_v25  ;;  %v152_v28 = vsel %vm151_vm3, %v131_v14, %v150_v24 }
 0x116   :  { %v155_v29 = vsel %vm153_vm4, %v154_v26, %v152_v28 }
 0x117   :  { %v136_v30 = vsub.f32 1.5, %v135_v27  ;;  %v157_v31 = vadd.f32 1e-06, %v155_v29  ;;  %v1549_v27 = vld [vmem:[%s2078_s5] sm:$0x3f] }
 0x119   :  { %v137_v32 = vmul.f32 %v1287_v21, %v136_v30  ;;  %1288 = vrcp.f32 %v157_v31 }
 0x11b   :  { %v138_v33 = vmul.f32 %v137_v32, %v127_v17 }
 0x11d   :  { %v140_v35 = vsel %vm139_vm5, %v127_v17, %v138_v33  ;;  %vm352_vm5 = vcmask 48128  }
 0x11e   :  { %v143_v37 = vsel %vm141_vm6, %v142_v34, %v140_v35 }
 0x11f   :  { %v1289_v38 = vpop.eup %1288  ;;  %v156_v40 = vadd.f32 1e-06, %v143_v37 }
 0x120   :  { %v161_v41 = vmul.f32 %v1289_v38, %v1488_v36  ;;  %v1571_v38 = vld [vmem:[%s2079_s6] sm:$0x3f] }
 0x121   :  { %1290 = vrcp.f32 %v156_v40 }
 0x122   :  { %v163_v42 = vadd.f32 %v161_v41, %v1493_v39  ;;  %1292 = vrcp.f32 %v193_v63 }
 0x123   :  { %1294 = vrcp.f32 %v192_v9 }
 0x124   :  { %171 = vperm.xlu1 %1268, %v163_v42  }
 0x127   :  { %v1291_v44 = vpop.eup %1290 }
 0x128   :  { %v160_v46 = vmul.f32 %v1291_v44, %v1500_v43  ;;  %v1293_v10 = vpop.eup %1292 }
 0x129   :  { %v1295_v18 = vpop.eup %1294 }
 0x12a   :  { %v162_v47 = vadd.f32 %v160_v46, %v1505_v45 }
 0x12c   :  { %166 = vperm.xlu1 %1268, %v162_v47  }
 0x196   :  { %v172_v54 = vpop.permute.xlu1 %171 }
 0x197   :  { %v175_v55 = vmul.f32 %v172_v54, %v1458_v5  ;;  %v1523_v5 = vld [vmem:[%s2073_s0 + $0x20] sm:$0xff] }
 0x198   :  { %709 = vmatpush.msrb.mxu0 %v1523_v5  ;;  %732 = vmatpush.msrb.mxu1 %v1523_v5 }
 0x199   :  { %v177_v56 = vmul.f32 %v175_v55, %v119_v48  ;;  %v203_v21 = vmul.f32 0.2, %v175_v55 }
 0x19b   :  { %v181_v57 = vsel %vm128_vm1, %v177_v56, 0.0 }
 0x19c   :  { %182 = vadd.xlane.f32.xlu0 %v181_v57 }
 0x19e   :  { %v167_v58 = vpop.permute.xlu1 %166 }
 0x19f   :  { %v174_v59 = vmul.f32 %v167_v58, %v1462_v7  ;;  %v1530_v7 = vld [vmem:[%s2073_s0 + $0x18] sm:$0xff] }
 0x1a0   :  { %710 = vmatpush.msrb.mxu0 %v1530_v7  ;;  %733 = vmatpush.msrb.mxu1 %v1530_v7 }
 0x1a1   :  { %v176_v60 = vmul.f32 %v174_v59, %v116_v51  ;;  %1240 = vmatmul.msk.f32.vlgmr.msrb.gmra.mxu0 %vm63_vm0, %v1446_v4  ;;  %1242 = vmatmul.msk.f32.vlgmr.msrb.gmra.mxu1 %vm63_vm0, %v1478_v12  ;;  %v202_v25 = vmul.f32 0.2, %v174_v59 }
 0x1a3   :  { %v178_v61 = vsel %vm124_vm2, %v176_v60, 0.0 }
 0x1a4   :  { %179 = vadd.xlane.f32.xlu1 %v178_v61 }
 0x1a9   :  { %1241 = vmatmul.msk.f32.gmra.mxu0 %vm63_vm0, %v1440_v3  ;;  %1243 = vmatmul.msk.f32.gmra.mxu1 %vm63_vm0, %v1471_v11 }
 0x20f   :  { %v183_v14 = vpop.xlane.xlu0 %182 }
 0x210   :  { %v197_v15 = vmul.f32 %v1293_v10, %v183_v14  ;;  %vm205_vm7 = vcmp.lt.f32.partialorder %v183_v14, 0.0  ;;  %v1583_v14 = vld [vmem:[%s2080_s7] sm:$0x3f] }
 0x212   :  { %v199_v16 = vmul.f32 %v197_v15, %v119_v48 }
 0x214   :  { %v201_v17 = vsub.f32 %v175_v55, %v199_v16 }
 0x216   :  { %v211_v19 = vsel %vm205_vm7, %v201_v17, %v175_v55 }
 0x217   :  { %v213_v4 = vmul.f32 0.8, %v211_v19  ;;  %v180_v20 = vpop.xlane.xlu1 %179 }
 0x218   :  { %v196_v12 = vmul.f32 %v1295_v18, %v180_v20  ;;  %vm204_vm9 = vcmp.lt.f32.partialorder %v180_v20, 0.0 }
 0x219   :  { %v215_v22 = vadd.f32 %v213_v4, %v203_v21 }
 0x21a   :  { %v198_v23 = vmul.f32 %v196_v12, %v116_v51 }
 0x21b   :  { %1225 = vmatpush.msk.msrb.mxu2 %vm220_vm8, %v215_v22  ;;  %1227 = vmatpush.msk.msrb.mxu3 %vm220_vm8, %v215_v22 }
 0x21c   :  { %v200_v24 = vsub.f32 %v174_v59, %v198_v23 }
 0x21e   :  { %v210_v3 = vsel %vm204_vm9, %v200_v24, %v174_v59  ;;  %v1553_v28 = vpop.f32.mrf.mxu0 }
 0x21f   :  { %v212_v11 = vmul.f32 0.8, %v210_v3  ;;  %v741_v35 = vmul.f32 %v1553_v28, %v1553_v28 }
 0x221   :  { %v214_v26 = vadd.f32 %v212_v11, %v202_v25  ;;  %v743_v37 = vsel %vm124_vm2, %v741_v35, 0.0 }
 0x223   :  { %239 = vmatpush.msrb.mxu2 %v214_v26  ;;  %262 = vmatpush.msrb.mxu3 %v214_v26 }
 0x224   :  { %1226 = vmatmul.msk.f32.vlgmr.msrb.gmra.mxu2 %vm216_vm10, %v1549_v27  ;;  %1228 = vmatmul.msk.f32.vlgmr.msrb.gmra.mxu3 %vm216_vm10, %v1571_v38 }
 0x226   :  { %v1555_v29 = vpop.f32.mrf.mxu0 }
 0x227   :  { %v742_v30 = vmul.f32 %v1555_v29, %v1555_v29 }
 0x229   :  { %v746_v31 = vsel %vm128_vm1, %v742_v30, 0.0 }
 0x22a   :  { %747 = vadd.xlane.f32.xlu0 %v746_v31 }
 0x29d   :  { %v748_v22 = vpop.xlane.xlu0 %747 }
 0x29e   :  { %vm768_vm0 = vcmp.eq.f32.partialorder %v748_v22, inf  ;;  %vm770_vm3 = vcmp.eq.f32.partialorder %v748_v22, 0.0 }
 0x2a7   :  { %v1560_v32 = vpop.f32.mrf.mxu2  ;;  %v264_v20 = vpop.f32.mrf.mxu3 }
 0x2a8   :  { %v267_v33 = vmul.f32 %v1560_v32, %v1560_v32  ;;  %v298_v21 = vmul.f32 %v264_v20, %v264_v20 }
 0x2aa   :  { %v269_v34 = vsel %vm268_vm11, %v267_v33, 0.0  ;;  %v299_v12 = vsel %vm268_vm11, %v298_v21, 0.0  ;;  %v771_v33 = vand.u32 2147483648, %v748_v22 }
 0x2ab   :  { %270 = vadd.xlane.f32.xlu2 %v269_v34 }
 0x2b3   :  { %744 = vadd.xlane.f32.xlu2 %v743_v37 }
 0x2bb   :  { %300 = vadd.xlane.f32.xlu2 %v299_v12 }
 0x31e   :  { %v271_v40 = vpop.xlane.xlu2 %270 }
 0x31f   :  { %1296 = vrsqrt.f32 %v271_v40  ;;  %vm279_vm12 = vcmp.eq.f32.partialorder %v271_v40, inf  ;;  %v282_v54 = vand.u32 2147483648, %v271_v40  ;;  %vm281_vm13 = vcmp.eq.f32.partialorder %v271_v40, 0.0 }
 0x325   :  { %v1297_v41 = vpop.eup %1296 }
 0x326   :  { %v273_v42 = vmul.f32 %v1297_v41, %v271_v40  ;;  %v745_v44 = vpop.xlane.xlu2 %744 }
 0x327   :  { %1298 = vrsqrt.f32 %v745_v44  ;;  %vm756_vm14 = vcmp.eq.f32.partialorder %v745_v44, inf  ;;  %v759_v61 = vand.u32 2147483648, %v745_v44  ;;  %vm758_vm15 = vcmp.eq.f32.partialorder %v745_v44, 0.0 }
 0x328   :  { %v274_v46 = vmul.f32 %v1297_v41, %v273_v42 }
 0x32a   :  { %v275_v47 = vmul.f32 0.5, %v274_v46  ;;  %v735_v46 = vpop.f32.mrf.mxu1 }
 0x32c   :  { %v276_v48 = vsub.f32 1.5, %v275_v47  ;;  %v801_v47 = vmul.f32 %v735_v46, %v735_v46 }
 0x32d   :  { %v1299_v49 = vpop.eup %1298 }
 0x32e   :  { %v277_v50 = vmul.f32 %v1297_v41, %v276_v48  ;;  %v750_v51 = vmul.f32 %v1299_v49, %v745_v44  ;;  %v803_v48 = vsel %vm124_vm2, %v801_v47, 0.0 }
 0x330   :  { %v278_v52 = vmul.f32 %v277_v50, %v271_v40  ;;  %v751_v53 = vmul.f32 %v1299_v49, %v750_v51 }
 0x332   :  { %v280_v55 = vsel %vm279_vm12, %v271_v40, %v278_v52  ;;  %v752_v56 = vmul.f32 0.5, %v751_v53  ;;  %v738_v52 = vpop.f32.mrf.mxu1 }
 0x333   :  { %v283_v57 = vsel %vm281_vm13, %v282_v54, %v280_v55  ;;  %v802_v53 = vmul.f32 %v738_v52, %v738_v52 }
 0x334   :  { %v753_v58 = vsub.f32 1.5, %v752_v56  ;;  %v284_v59 = vadd.f32 1e-06, %v283_v57 }
 0x335   :  { %v806_v54 = vsel %vm128_vm1, %v802_v53, 0.0 }
 0x336   :  { %v754_v60 = vmul.f32 %v1299_v49, %v753_v58  ;;  %1300 = vrcp.f32 %v284_v59 }
 0x338   :  { %v755_v62 = vmul.f32 %v754_v60, %v745_v44 }
 0x33a   :  { %v757_v63 = vsel %vm756_vm14, %v745_v44, %v755_v62 }
 0x33b   :  { %v760_v9 = vsel %vm758_vm15, %v759_v61, %v757_v63 }
 0x33c   :  { %v1301_v10 = vpop.eup %1300  ;;  %v773_v15 = vadd.f32 1e-06, %v760_v9 }
 0x33d   :  { %v286_v16 = vmul.f32 %v1301_v10, %v1578_v8 }
 0x33e   :  { %1302 = vrcp.f32 %v773_v15 }
 0x33f   :  { %v287_v17 = vadd.f32 %v286_v16, %v1583_v14  ;;  %1304 = vrsqrt.f32 %v748_v22 }
 0x341   :  { %290 = vperm.xlu0 %1269, %v287_v17  }
 0x344   :  { %v1303_v18 = vpop.eup %1302 }
 0x345   :  { %v777_v19 = vmul.f32 %v1303_v18, %v1500_v43  ;;  %v1305_v23 = vpop.eup %1304 }
 0x346   :  { %v762_v24 = vmul.f32 %v1305_v23, %v748_v22 }
 0x347   :  { %v779_v4 = vadd.f32 %v777_v19, %v1505_v45 }
 0x348   :  { %v763_v3 = vmul.f32 %v1305_v23, %v762_v24 }
 0x349   :  { %783 = vperm.xlu1 %1268, %v779_v4  }
 0x34a   :  { %v764_v25 = vmul.f32 0.5, %v763_v3 }
 0x34c   :  { %v765_v11 = vsub.f32 1.5, %v764_v25 }
 0x34e   :  { %v766_v26 = vmul.f32 %v1305_v23, %v765_v11 }
 0x350   :  { %v767_v31 = vmul.f32 %v766_v26, %v748_v22 }
 0x352   :  { %v769_v34 = vsel %vm768_vm0, %v748_v22, %v767_v31 }
 0x353   :  { %v772_v37 = vsel %vm770_vm3, %v771_v33, %v769_v34 }
 0x354   :  { %v774_v40 = vadd.f32 1e-06, %v772_v37 }
 0x356   :  { %1306 = vrcp.f32 %v774_v40 }
 0x35c   :  { %v1307_v41 = vpop.eup %1306 }
 0x35d   :  { %v778_v42 = vmul.f32 %v1307_v41, %v1488_v36  ;;  %v301_v36 = vpop.xlane.xlu2 %300 }
 0x35f   :  { %v780_v44 = vadd.f32 %v778_v42, %v1493_v39  ;;  %v302_v39 = vadd.f32 1e-06, %v301_v36 }
 0x361   :  { %1308 = vrcp.f32 %v302_v39 }
 0x367   :  { %v1309_v55 = vpop.eup %1308 }
 0x36b   :  { %807 = vadd.xlane.f32.xlu0 %v806_v54 }
 0x3b3   :  { %v291_v30 = vpop.permute.xlu0 %290 }
 0x3b4   :  { %v293_v43 = vmul.f32 %v291_v30, %v1560_v32 }
 0x3b6   :  { %v294_v45 = vmul.f32 %v293_v43, %v264_v20  ;;  %v307_v60 = vmul.f32 0.2, %v293_v43 }
 0x3b8   :  { %v295_v35 = vsel %vm268_vm11, %v294_v45, 0.0 }
 0x3b9   :  { %296 = vadd.xlane.f32.xlu2 %v295_v35 }
 0x3bb   :  { %v784_v32 = vpop.permute.xlu1 %783 }
 0x3bc   :  { %v791_v49 = vmul.f32 %v784_v32, %v1553_v28 }
 0x3be   :  { %v793_v50 = vmul.f32 %v791_v49, %v735_v46 }
 0x3c0   :  { %v795_v51 = vsel %vm124_vm2, %v793_v50, 0.0 }
 0x3d1   :  { %788 = vperm.xlu2 %1270, %v780_v44  }
 0x3de   :  { %v808_v18 = vpop.xlane.xlu0 %807 }
 0x3fa   :  { %804 = vadd.xlane.f32.xlu2 %v803_v48  ;;  %v2089_v48 = vmov 1  }
 0x402   :  { %796 = vadd.xlane.f32.xlu2 %v795_v51 }
 0x42c   :  { %v297_v56 = vpop.xlane.xlu2 %296 }
 0x42d   :  { %v304_v57 = vmul.f32 %v1309_v55, %v297_v56  ;;  %vm308_vm4 = vcmp.lt.f32.partialorder %v297_v56, 0.0 }
 0x42f   :  { %v305_v58 = vmul.f32 %v304_v57, %v264_v20 }
 0x431   :  { %v306_v59 = vsub.f32 %v293_v43, %v305_v58 }
 0x433   :  { %v311_v28 = vsel %vm308_vm4, %v306_v59, %v293_v43  ;;  %v819_v43 = vmul.f32 0.2, %v791_v49 }
 0x434   :  { %v312_v61 = vmul.f32 0.8, %v311_v28  ;;  %v789_v62 = vpop.permute.xlu2 %788 }
 0x435   :  { %v792_v63 = vmul.f32 %v789_v62, %v1555_v29  ;;  %v54_v29 = vld [vmem:[%s2082_s9] sm:$0x7] }
 0x436   :  { %v313_v9 = vadd.f32 %v312_v61, %v307_v60  ;;  %1233 = vmatpush.xpose.msk.msra.mxu3 %vm352_vm5, %v54_v29  ;;  %1252 = vmatpush.xpose.msk.msra.mxu1 %vm352_vm5, %v54_v29 }
 0x437   :  { %v794_v10 = vmul.f32 %v792_v63, %v738_v52  ;;  %v820_v26 = vmul.f32 0.2, %v792_v63 }
 0x438   :  { %1229 = vmatpush.xpose.msk.msra.mxu2 %vm124_vm2, %v313_v9  ;;  %v56_v9 = vld [vmem:[%s2083_s10 + $0x8] sm:$0x77] }
 0x439   :  { %v798_v15 = vsel %vm128_vm1, %v794_v10, 0.0  ;;  %v57_v10 = vld [vmem:[%s2083_s10 + $0x10] sm:$0x77] }
 0x43a   :  { %799 = vadd.xlane.f32.xlu1 %v798_v15 }
 0x43b   :  { %1230 = vmatmul.msk.f32.vlgmr.msra.gmra.mxu2 %vm124_vm2, %v1432_v2  ;;  %v810_v2 = vadd.f32 1e-06, %v808_v18 }
 0x443   :  { %1231 = vmatmul.msk.f32.gmra.mxu2 %vm124_vm2, %v1425_v1 }
 0x44b   :  { %1232 = vmatmul.msk.f32.gmra.mxu2 %vm124_vm2, %v1420_v0 }
 0x46d   :  { %v805_v16 = vpop.xlane.xlu2 %804 }
 0x46e   :  { %v809_v17 = vadd.f32 1e-06, %v805_v16  ;;  %v58_v16 = vld [vmem:[%s2083_s10 + $0x18] sm:$0x77] }
 0x470   :  { %1310 = vrcp.f32 %v809_v17 }
 0x471   :  { %1312 = vrcp.f32 %v810_v2  ;;  %v412_v2 = vperm.slane %v56_v9, 0 }
 0x475   :  { %v797_v4 = vpop.xlane.xlu2 %796 }
 0x476   :  { %v1311_v19 = vpop.eup %1310  ;;  %vm821_vm1 = vcmp.lt.f32.partialorder %v797_v4, 0.0 }
 0x477   :  { %v813_v1 = vmul.f32 %v1311_v19, %v797_v4  ;;  %v1313_v0 = vpop.eup %1312  ;;  %v413_v19 = vperm.slane %v56_v9, 4  ;;  %v414_v4 = vperm.slane %v57_v10, 0 }
 0x479   :  { %v815_v20 = vmul.f32 %v813_v1, %v735_v46 }
 0x47b   :  { %v817_v12 = vsub.f32 %v791_v49, %v815_v20  ;;  %v415_v20 = vperm.slane %v57_v10, 4 }
 0x47d   :  { %v827_v24 = vsel %vm821_vm1, %v817_v12, %v791_v49 }
 0x47e   :  { %v829_v11 = vmul.f32 0.8, %v827_v24  ;;  %v1670_v24 = vperm.slane %v412_v2, 0 }
 0x480   :  { %v831_v45 = vadd.f32 %v829_v11, %v819_v43  ;;  %v1676_v11 = vperm.slane %v415_v20, 0 }
 0x482   :  { %2125 = vst [vmem:[#allocation8_spill] sm:$0xff] %v1676_v11 }
 0x4ad   :  { %v800_v21 = vpop.xlane.xlu1 %799 }
 0x4ae   :  { %v814_v22 = vmul.f32 %v1313_v0, %v800_v21  ;;  %vm822_vm6 = vcmp.lt.f32.partialorder %v800_v21, 0.0  ;;  %v416_v0 = vperm.slane %v58_v16, 0  ;;  %v417_v21 = vperm.slane %v58_v16, 4 }
 0x4b0   :  { %v816_v23 = vmul.f32 %v814_v22, %v738_v52 }
 0x4b2   :  { %v818_v3 = vsub.f32 %v792_v63, %v816_v23 }
 0x4b4   :  { %v828_v25 = vsel %vm822_vm6, %v818_v3, %v792_v63  ;;  %v1672_v3 = vperm.slane %v413_v19, 0 }
 0x4b5   :  { %v830_v30 = vmul.f32 0.8, %v828_v25  ;;  %v1674_v25 = vperm.slane %v414_v4, 0 }
 0x4b7   :  { %v832_v31 = vadd.f32 %v830_v30, %v820_v26  ;;  %2124 = vst [vmem:[#allocation7_spill] sm:$0xff] %v1674_v25  ;;  %v1678_v26 = vperm.slane %v416_v0, 0  ;;  %v1680_v30 = vperm.slane %v417_v21, 0 }
 0x4b9   :  { %1244 = vmatpush.msk.msrb.mxu2 %vm220_vm8, %v832_v31  ;;  %1246 = vmatpush.msk.msrb.mxu3 %vm220_vm8, %v832_v31  ;;  %2126 = vst [vmem:[#allocation9_spill] sm:$0xff] %v1678_v26 }
 0x4ba   :  { %2127 = vst [vmem:[#allocation10_spill] sm:$0xff] %v1680_v30 }
 0x4bb   :  { %851 = vmatpush.msrb.mxu2 %v831_v45  ;;  %871 = vmatpush.msrb.mxu3 %v831_v45  ;;  %v472_v45 = vperm.slane %v56_v9, 1 }
 0x4bc   :  { %1245 = vmatmul.msk.f32.vlgmr.msrb.gmra.mxu2 %vm216_vm10, %v1549_v27 }
 0x4be   :  { %v343_v33 = vpop.f32.mrf.mxu2 }
 0x4bf   :  { %1234 = vmatmul.msk.f32.vlgmr.msra.gmra.mxu3 %vm352_vm5, %v343_v33  ;;  %v473_v33 = vperm.slane %v56_v9, 5 }
 0x4c6   :  { %v346_v34 = vpop.f32.mrf.mxu2 }
 0x4c7   :  { %1235 = vmatmul.msk.f32.gmra.mxu3 %vm352_vm5, %v346_v34  ;;  %v474_v34 = vperm.slane %v57_v10, 1 }
 0x4ce   :  { %v349_v35 = vpop.f32.mrf.mxu2 }
 0x4cf   :  { %1236 = vmatmul.msk.f32.gmra.mxu3 %vm352_vm5, %v349_v35 }
 0x4d7   :  { %1247 = vmatmul.msk.f32.vlgmr.msrb.gmra.mxu3 %vm216_vm10, %v1571_v38  ;;  %v2087_v38 = vmov 2  }
 0x53f   :  { %v853_v37 = vpop.f32.mrf.mxu2 }
 0x540   :  { %v876_v40 = vmul.f32 %v853_v37, %v853_v37 }
 0x542   :  { %v382_v41 = vpop.f32.mrf.mxu3  ;;  %v877_v42 = vsel %vm268_vm11, %v876_v40, 0.0  ;;  %v476_v40 = vperm.slane %v58_v16, 1 }
 0x543   :  { %878 = vadd.xlane.f32.xlu0 %v877_v42 }
 0x54a   :  { %v1622_v44 = vpop.f32.mrf.mxu3 }
 0x552   :  { %v1624_v27 = vpop.f32.mrf.mxu3 }
 0x55a   :  { %v1626_v46 = vpop.f32.mrf.mxu3 }
 0x55b   :  { %v906_v47 = vmul.f32 %v1626_v46, %v1626_v46 }
 0x55d   :  { %v907_v32 = vsel %vm268_vm11, %v906_v47, 0.0  ;;  %v556_v47 = vperm.slane %v56_v9, 2 }
 0x55e   :  { %908 = vadd.xlane.f32.xlu0 %v907_v32  ;;  %v557_v32 = vperm.slane %v56_v9, 6 }
 0x560   :  { %v1706_v9 = vperm.slane %v557_v32, 2 }
 0x562   :  { %2132 = vst [vmem:[#allocation15_spill] sm:$0xff] %v1706_v9 }
 0x572   :  { %393 = vperm.xlu0 %1269, %v382_v41  }
 0x57a   :  { %1274 = vset.pattern.permute.xlu0 %v2087_v38 }
 0x57b   :  { %547 = vperm.xlu0 %1274, %v1622_v44  }
 0x583   :  { %1275 = vset.pattern.permute.xlu0 %v2089_v48 }
 0x584   :  { %459 = vperm.xlu0 %1275, %v382_v41  }
 0x5b6   :  { %v879_v49 = vpop.xlane.xlu0 %878 }
 0x5b7   :  { %1314 = vrsqrt.f32 %v879_v49  ;;  %vm887_vm7 = vcmp.eq.f32.partialorder %v879_v49, inf  ;;  %v890_v55 = vand.u32 2147483648, %v879_v49  ;;  %vm889_vm8 = vcmp.eq.f32.partialorder %v879_v49, 0.0 }
 0x5bd   :  { %v1315_v50 = vpop.eup %1314 }
 0x5be   :  { %v881_v51 = vmul.f32 %v1315_v50, %v879_v49 }
 0x5c0   :  { %v882_v52 = vmul.f32 %v1315_v50, %v881_v51  ;;  %v560_v51 = vperm.slane %v58_v16, 2 }
 0x5c2   :  { %v883_v53 = vmul.f32 0.5, %v882_v52  ;;  %v561_v52 = vperm.slane %v58_v16, 6 }
 0x5c4   :  { %v884_v54 = vsub.f32 1.5, %v883_v53 }
 0x5c6   :  { %v885_v36 = vmul.f32 %v1315_v50, %v884_v54  ;;  %v559_v50 = vperm.slane %v57_v10, 6 }
 0x5c8   :  { %v886_v39 = vmul.f32 %v885_v36, %v879_v49  ;;  %v1686_v36 = vperm.slane %v472_v45, 1 }
 0x5ca   :  { %v888_v56 = vsel %vm887_vm7, %v879_v49, %v886_v39  ;;  %v558_v49 = vperm.slane %v57_v10, 2  ;;  %v1688_v39 = vperm.slane %v473_v33, 1 }
 0x5cb   :  { %v891_v57 = vsel %vm889_vm8, %v890_v55, %v888_v56  ;;  %v1690_v55 = vperm.slane %v474_v34, 1 }
 0x5cc   :  { %v892_v58 = vadd.f32 1e-06, %v891_v57 }
 0x5ce   :  { %1316 = vrcp.f32 %v892_v58 }
 0x5d1   :  { %v1641_v61 = vpop.xlane.xlu0 %908 }
 0x5d4   :  { %v1317_v59 = vpop.eup %1316 }
 0x5d5   :  { %v894_v28 = vmul.f32 %v1317_v59, %v1578_v8  ;;  %v1696_v59 = vperm.slane %v476_v40, 1 }
 0x5d7   :  { %v895_v60 = vadd.f32 %v894_v28, %v1583_v14  ;;  %v55_v14 = vld [vmem:[%s2083_s10] sm:$0x77] }
 0x5d8   :  { %v410_v29 = vperm.slane %v55_v14, 0  ;;  %v411_v18 = vperm.slane %v55_v14, 4  ;;  %v470_v31 = vperm.slane %v55_v14, 1  ;;  %v471_v43 = vperm.slane %v55_v14, 5 }
 0x5d9   :  { %898 = vperm.xlu2 %1270, %v895_v60   ;;  %v554_v35 = vperm.slane %v55_v14, 2  ;;  %v555_v42 = vperm.slane %v55_v14, 6  ;;  %v1704_v14 = vperm.slane %v556_v47, 2 }
 0x5da   :  { %v1666_v22 = vperm.slane %v410_v29, 0  ;;  %v1668_v23 = vperm.slane %v411_v18, 0  ;;  %v1682_v53 = vperm.slane %v470_v31, 1  ;;  %v1684_v54 = vperm.slane %v471_v43, 1 }
 0x5db   :  { %v1692_v57 = vperm.slane %v554_v35, 2  ;;  %2131 = vst [vmem:[#allocation14_spill] sm:$0xff] %v1704_v14  ;;  %v1714_v29 = vperm.slane %v561_v52, 2  ;;  %v59_v35 = vld [vmem:[%s2084_s11] sm:$0xff]  ;;  %s1349_s11 = smov [#allocation2]  }
 0x5dc   :  { %v1751_v6 = vperm.slane %v59_v35, 4  ;;  %s1207_s20 = sshll.u32 %s1349_s11, 4  ;;  %s1208_s20 = int_to_ptr.vmem [resolvable:$true] %s1207_s20 }
 0x5dd   :  { %2128 = vst [vmem:[#allocation11_spill] sm:$0xff] %v1692_v57 }
 0x5de   :  { %2136 = vst [vmem:[#allocation19_spill] sm:$0xff] %v1714_v29 }
 0x5e1   :  { %403 = vperm.xlu2 %1270, %v1624_v27  }
 0x5e4   :  { %v1643_v62 = vpop.permute.xlu0 %393 }
 0x5e5   :  { %v434_v20 = vmul.f32 %v1666_v22, %v1643_v62  ;;  %v435_v43 = vmul.f32 %v1668_v23, %v1643_v62  ;;  %v436_v45 = vmul.f32 %v1670_v24, %v1643_v62  ;;  %v437_v33 = vmul.f32 %v1672_v3, %v1643_v62 }
 0x5e6   :  { %v438_v34 = vmul.f32 %v1674_v25, %v1643_v62  ;;  %v440_v40 = vmul.f32 %v1678_v26, %v1643_v62 }
 0x5e9   :  { %1271 = vset.pattern.permute.xlu2 %v2089_v48  ;;  %v1747_v48 = vperm.slane %v59_v35, 2 }
 0x5ea   :  { %463 = vperm.xlu2 %1271, %v1622_v44  }
 0x5ed   :  { %v1662_v1 = vpop.permute.xlu0 %547 }
 0x5f2   :  { %1273 = vset.pattern.permute.xlu2 %v2087_v38  ;;  %v1745_v38 = vperm.slane %v59_v35, 1 }
 0x5f3   :  { %543 = vperm.xlu2 %1273, %v382_v41   ;;  %v477_v41 = vperm.slane %v58_v16, 5  ;;  %v1712_v16 = vperm.slane %v560_v51, 2 }
 0x5f5   :  { %v1698_v28 = vperm.slane %v477_v41, 1  ;;  %2135 = vst [vmem:[#allocation18_spill] sm:$0xff] %v1712_v16  ;;  %v441_v41 = vmul.f32 %v1680_v30, %v1643_v62 }
 0x5f6   :  { %v460_v56 = vpop.permute.xlu0 %459 }
 0x5f7   :  { %2129 = vst [vmem:[#allocation12_spill] sm:$0xff] %v1698_v28  ;;  %v495_v18 = vmul.f32 %v1684_v54, %v460_v56  ;;  %v496_v2 = vmul.f32 %v1686_v36, %v460_v56  ;;  %v497_v19 = vmul.f32 %v1688_v39, %v460_v56  ;;  %v498_v4 = vmul.f32 %v1690_v55, %v460_v56 }
 0x5f8   :  { %v500_v21 = vmul.f32 %v1696_v59, %v460_v56  ;;  %v501_v31 = vmul.f32 %v1698_v28, %v460_v56 }
 0x5f9   :  { %v519_v47 = vadd.f32 %v495_v18, %v435_v43  ;;  %v520_v32 = vadd.f32 %v496_v2, %v436_v45 }
 0x5fa   :  { %v524_v52 = vadd.f32 %v500_v21, %v440_v40 }
 0x5fb   :  { %1277 = vset.pattern.permute.xlu2 %v2086_v13  ;;  %v1743_v13 = vperm.slane %v59_v35, 0 }
 0x633   :  { %v899_v63 = vpop.permute.xlu2 %898 }
 0x634   :  { %v1645_v8 = vmul.f32 %v899_v63, %v853_v37  ;;  %v475_v37 = vperm.slane %v57_v10, 5  ;;  %v1702_v63 = vperm.slane %v555_v42, 2  ;;  %v1708_v10 = vperm.slane %v558_v49, 2 }
 0x635   :  { %v521_v49 = vadd.f32 %v497_v19, %v437_v33  ;;  %v1761_v33 = vperm.slane %v59_v35, 5 }
 0x636   :  { %v902_v15 = vmul.f32 %v1645_v8, %v1626_v46  ;;  %v1694_v58 = vperm.slane %v475_v37, 1  ;;  %2130 = vst [vmem:[#allocation13_spill] sm:$0xff] %v1702_v63  ;;  %v439_v37 = vmul.f32 %v1676_v11, %v1643_v62 }
 0x637   :  { %2133 = vst [vmem:[#allocation16_spill] sm:$0xff] %v1708_v10 }
 0x638   :  { %v903_v17 = vsel %vm268_vm11, %v902_v15, 0.0  ;;  %v1710_v15 = vperm.slane %v559_v50, 2  ;;  %v499_v0 = vmul.f32 %v1694_v58, %v460_v56  ;;  %v522_v50 = vadd.f32 %v498_v4, %v438_v34 }
 0x639   :  { %904 = vadd.xlane.f32.xlu1 %v903_v17  ;;  %v494_v17 = vmul.f32 %v1682_v53, %v460_v56  ;;  %v525_v56 = vadd.f32 %v501_v31, %v441_v41  ;;  %v1763_v34 = vperm.slane %v59_v35, 6 }
 0x63a   :  { %2134 = vst [vmem:[#allocation17_spill] sm:$0xff] %v1710_v15  ;;  %v523_v51 = vadd.f32 %v499_v0, %v439_v37 }
 0x63b   :  { %v1664_v12 = vpop.permute.xlu2 %403  ;;  %v518_v42 = vadd.f32 %v494_v17, %v434_v20 }
 0x63c   :  { %2123 = vst [vmem:[#allocation6_spill] sm:$0xff] %v1664_v12  ;;  %v1749_v12 = vperm.slane %v59_v35, 3 }
 0x644   :  { %v1700_v60 = vpop.permute.xlu2 %463 }
 0x64d   :  { %v544_v26 = vpop.permute.xlu2 %543 }
 0x64e   :  { %v578_v62 = vmul.f32 %v1692_v57, %v544_v26  ;;  %v579_v17 = vmul.f32 %v1702_v63, %v544_v26  ;;  %v580_v18 = vmul.f32 %v1704_v14, %v544_v26  ;;  %v581_v2 = vmul.f32 %v1706_v9, %v544_v26 }
 0x64f   :  { %v582_v19 = vmul.f32 %v1708_v10, %v544_v26  ;;  %v583_v4 = vmul.f32 %v1710_v15, %v544_v26  ;;  %v584_v20 = vmul.f32 %v1712_v16, %v544_v26  ;;  %v585_v0 = vmul.f32 %v1714_v29, %v544_v26 }
 0x650   :  { %v602_v21 = vadd.f32 %v578_v62, %v518_v42  ;;  %v603_v31 = vadd.f32 %v579_v17, %v519_v47  ;;  %v604_v43 = vadd.f32 %v580_v18, %v520_v32  ;;  %v605_v45 = vadd.f32 %v581_v2, %v521_v49 }
 0x651   :  { %v606_v37 = vadd.f32 %v582_v19, %v522_v50  ;;  %v607_v40 = vadd.f32 %v583_v4, %v523_v51  ;;  %v608_v41 = vadd.f32 %v584_v20, %v524_v52  ;;  %v1769_v26 = vperm.slane %v59_v35, 7 }
 0x652   :  { %v643_v30 = vadd.f32 %v1743_v13, %v602_v21  ;;  %v644_v11 = vadd.f32 %v1745_v38, %v603_v31  ;;  %v645_v25 = vadd.f32 %v1747_v48, %v604_v43  ;;  %398 = vperm.xlu1 %1268, %v1622_v44   ;;  %v609_v42 = vadd.f32 %v585_v0, %v525_v56 }
 0x653   :  { %2137 = vst [vmem:[#allocation20_spill] sm:$0xff] %v1769_v26  ;;  %v646_v47 = vadd.f32 %v1749_v12, %v605_v45  ;;  %v647_v32 = vadd.f32 %v1751_v6, %v606_v37  ;;  %v648_v49 = vadd.f32 %v1761_v33, %v607_v40  ;;  %v649_v50 = vadd.f32 %v1763_v34, %v608_v41 }
 0x654   :  { %667 = vst [vmem:[#allocation2] sm:$0xff] %v643_v30  ;;  %v650_v51 = vadd.f32 %v1769_v26, %v609_v42  ;;  %v2138_v44 = vmov 1   ;;  %v2139_v35 = vmov 2   ;;  %v2140_v30 = vmov 0  }
 0x655   :  { %668 = vst [vmem:[#allocation2 + $0x8] sm:$0xff] %v644_v11  ;;  %v910_v11 = vadd.f32 1e-06, %v1641_v61  ;;  %v915_v2 = vmul.f32 0.2, %v1645_v8  ;;  %v588_v61 = vmul.f32 %v1704_v14, %v1662_v1  ;;  %v589_v20 = vmul.f32 %v1706_v9, %v1662_v1 }
 0x656   :  { %669 = vst [vmem:[#allocation2 + $0x10] sm:$0xff] %v645_v25  ;;  %v591_v0 = vmul.f32 %v1710_v15, %v1662_v1  ;;  %v593_v21 = vmul.f32 %v1714_v29, %v1662_v1  ;;  %v502_v31 = vmul.f32 %v1682_v53, %v1700_v60  ;;  %v503_v43 = vmul.f32 %v1684_v54, %v1700_v60 }
 0x657   :  { %670 = vst [vmem:[#allocation2 + $0x18] sm:$0xff] %v646_v47  ;;  %1318 = vrcp.f32 %v910_v11  ;;  %v504_v45 = vmul.f32 %v1686_v36, %v1700_v60  ;;  %v505_v37 = vmul.f32 %v1688_v39, %v1700_v60  ;;  %v506_v40 = vmul.f32 %v1690_v55, %v1700_v60  ;;  %v2142_v11 = vld [vmem:[#allocation8_spill] sm:$0xff] }
 0x658   :  { %671 = vst [vmem:[#allocation2 + $0x20] sm:$0xff] %v647_v32  ;;  %v508_v41 = vmul.f32 %v1696_v59, %v1700_v60  ;;  %v509_v42 = vmul.f32 %v1698_v28, %v1700_v60 }
 0x659   :  { %672 = vst [vmem:[#allocation2 + $0x28] sm:$0xff] %v648_v49 }
 0x65a   :  { %673 = vst [vmem:[#allocation2 + $0x30] sm:$0xff] %v649_v50  ;;  %1272 = vset.pattern.permute.xlu1 %v2138_v44 }
 0x65b   :  { %674 = vst [vmem:[#allocation2 + $0x38] sm:$0xff] %v650_v51  ;;  %467 = vperm.xlu1 %1272, %v1624_v27   ;;  %v2141_v51 = vld [vmem:[#allocation7_spill] sm:$0xff] }
 0x65d   :  { %v1319_v25 = vpop.eup %1318 }
 0x663   :  { %1276 = vset.pattern.permute.xlu1 %v2139_v35 }
 0x664   :  { %551 = vperm.xlu1 %1276, %v1624_v27   ;;  %v586_v27 = vmul.f32 %v1692_v57, %v1662_v1 }
 0x66c   :  { %1278 = vset.pattern.permute.xlu1 %v2140_v30 }
 0x6ac   :  { %v905_v52 = vpop.xlane.xlu1 %904 }
 0x6ad   :  { %v912_v56 = vmul.f32 %v1319_v25, %v905_v52  ;;  %vm916_vm9 = vcmp.lt.f32.partialorder %v905_v52, 0.0  ;;  %v2143_v52 = vld [vmem:[#allocation9_spill] sm:$0xff] }
 0x6af   :  { %v913_v62 = vmul.f32 %v912_v56, %v1626_v46  ;;  %v587_v46 = vmul.f32 %v1702_v63, %v1662_v1 }
 0x6b1   :  { %v914_v17 = vsub.f32 %v1645_v8, %v913_v62  ;;  %v2144_v62 = vld [vmem:[#allocation10_spill] sm:$0xff] }
 0x6b3   :  { %v919_v18 = vsel %vm916_vm9, %v914_v17, %v1645_v8  ;;  %v590_v8 = vmul.f32 %v1708_v10, %v1662_v1 }
 0x6b4   :  { %v920_v19 = vmul.f32 0.8, %v919_v18 }
 0x6b6   :  { %v921_v4 = vadd.f32 %v920_v19, %v915_v2 }
 0x6b8   :  { %1248 = vmatpush.xpose.msk.msra.mxu0 %vm124_vm2, %v921_v4 }
 0x6bb   :  { %1249 = vmatmul.msk.f32.vlgmr.msra.gmra.mxu0 %vm124_vm2, %v1530_v7  ;;  %v592_v7 = vmul.f32 %v1712_v16, %v1662_v1  ;;  %v507_v1 = vmul.f32 %v1694_v58, %v1700_v60 }
 0x6c3   :  { %1250 = vmatmul.msk.f32.gmra.mxu0 %vm124_vm2, %v1523_v5 }
 0x6c4   :  { %v399_v47 = vpop.permute.xlu1 %398 }
 0x6c5   :  { %v442_v32 = vmul.f32 %v1666_v22, %v399_v47  ;;  %v443_v49 = vmul.f32 %v1668_v23, %v399_v47  ;;  %v444_v50 = vmul.f32 %v1670_v24, %v399_v47  ;;  %v445_v5 = vmul.f32 %v1672_v3, %v399_v47 }
 0x6c6   :  { %v446_v30 = vmul.f32 %v2141_v51, %v399_v47  ;;  %v447_v25 = vmul.f32 %v2142_v11, %v399_v47  ;;  %v448_v56 = vmul.f32 %v2143_v52, %v399_v47  ;;  %v449_v17 = vmul.f32 %v2144_v62, %v399_v47 }
 0x6c7   :  { %v526_v18 = vadd.f32 %v502_v31, %v442_v32  ;;  %v527_v2 = vadd.f32 %v503_v43, %v443_v49  ;;  %v528_v60 = vadd.f32 %v504_v45, %v444_v50  ;;  %v529_v19 = vadd.f32 %v505_v37, %v445_v5  ;;  %v2145_v43 = vld [vmem:[#allocation5_spill] sm:$0xff] }
 0x6c8   :  { %v530_v4 = vadd.f32 %v506_v40, %v446_v30  ;;  %v531_v44 = vadd.f32 %v507_v1, %v447_v25  ;;  %v532_v35 = vadd.f32 %v508_v41, %v448_v56  ;;  %v533_v29 = vadd.f32 %v509_v42, %v449_v17  ;;  %v2147_v37 = vld [vmem:[#allocation9_spill] sm:$0xff]  ;;  %v2148_v41 = vld [vmem:[#allocation12_spill] sm:$0xff]  ;;  %v2149_v17 = vld [vmem:[#allocation11_spill] sm:$0xff] }
 0x6c9   :  { %v610_v16 = vadd.f32 %v586_v27, %v526_v18  ;;  %v611_v15 = vadd.f32 %v587_v46, %v527_v2  ;;  %v612_v10 = vadd.f32 %v588_v61, %v528_v60  ;;  %v613_v9 = vadd.f32 %v589_v20, %v529_v19  ;;  %v2150_v2 = vld [vmem:[#allocation13_spill] sm:$0xff]  ;;  %v2151_v19 = vld [vmem:[#allocation14_spill] sm:$0xff] }
 0x6ca   :  { %v614_v14 = vadd.f32 %v590_v8, %v530_v4  ;;  %v615_v63 = vadd.f32 %v591_v0, %v531_v44  ;;  %v616_v57 = vadd.f32 %v592_v7, %v532_v35  ;;  %v617_v28 = vadd.f32 %v593_v21, %v533_v29  ;;  %v2146_v35 = vld [vmem:[#allocation6_spill] sm:$0xff] }
 0x6cb   :  { %v651_v52 = vadd.f32 %v1743_v13, %v610_v16  ;;  %v652_v47 = vadd.f32 %v1745_v38, %v611_v15  ;;  %v653_v31 = vadd.f32 %v1747_v48, %v612_v10  ;;  %1251 = vmatmul.msk.f32.gmra.mxu0 %vm124_vm2, %v2145_v43  ;;  %v654_v45 = vadd.f32 %v1749_v12, %v613_v9  ;;  %v2153_v43 = vld [vmem:[#allocation16_spill] sm:$0xff] }
 0x6cc   :  { %v655_v27 = vadd.f32 %v1751_v6, %v614_v14  ;;  %v656_v61 = vadd.f32 %v1761_v33, %v615_v63  ;;  %v657_v29 = vadd.f32 %v1763_v34, %v616_v57  ;;  %v658_v16 = vadd.f32 %v1769_v26, %v617_v28 }
 0x6cd   :  { %675 = vst [vmem:[#allocation2 + $0x40] sm:$0xff] %v651_v52  ;;  %v468_v46 = vpop.permute.xlu1 %467  ;;  %v450_v28 = vmul.f32 %v1666_v22, %v2146_v35  ;;  %v451_v20 = vmul.f32 %v1668_v23, %v2146_v35  ;;  %v452_v8 = vmul.f32 %v1670_v24, %v2146_v35  ;;  %v453_v0 = vmul.f32 %v1672_v3, %v2146_v35 }
 0x6ce   :  { %676 = vst [vmem:[#allocation2 + $0x48] sm:$0xff] %v652_v47  ;;  %v510_v10 = vmul.f32 %v1682_v53, %v468_v46  ;;  %v511_v15 = vmul.f32 %v1684_v54, %v468_v46  ;;  %v512_v9 = vmul.f32 %v1686_v36, %v468_v46  ;;  %v513_v14 = vmul.f32 %v1688_v39, %v468_v46  ;;  %v2152_v47 = vld [vmem:[#allocation15_spill] sm:$0xff] }
 0x6cf   :  { %677 = vst [vmem:[#allocation2 + $0x50] sm:$0xff] %v653_v31  ;;  %v514_v44 = vmul.f32 %v1690_v55, %v468_v46  ;;  %v515_v63 = vmul.f32 %v1694_v58, %v468_v46  ;;  %v516_v57 = vmul.f32 %v1696_v59, %v468_v46  ;;  %v454_v7 = vmul.f32 %v2141_v51, %v2146_v35 }
 0x6d0   :  { %678 = vst [vmem:[#allocation2 + $0x58] sm:$0xff] %v654_v45  ;;  %v455_v21 = vmul.f32 %v2142_v11, %v2146_v35  ;;  %v456_v40 = vmul.f32 %v2147_v37, %v2146_v35  ;;  %v457_v1 = vmul.f32 %v2144_v62, %v2146_v35  ;;  %v517_v42 = vmul.f32 %v2148_v41, %v468_v46 }
 0x6d1   :  { %679 = vst [vmem:[#allocation2 + $0x60] sm:$0xff] %v655_v27  ;;  %v534_v32 = vadd.f32 %v510_v10, %v450_v28  ;;  %v535_v49 = vadd.f32 %v511_v15, %v451_v20  ;;  %v536_v50 = vadd.f32 %v512_v9, %v452_v8  ;;  %v537_v5 = vadd.f32 %v513_v14, %v453_v0  ;;  %v2154_v27 = vld [vmem:[#allocation17_spill] sm:$0xff] }
 0x6d2   :  { %680 = vst [vmem:[#allocation2 + $0x68] sm:$0xff] %v656_v61  ;;  %v538_v30 = vadd.f32 %v514_v44, %v454_v7  ;;  %v539_v25 = vadd.f32 %v515_v63, %v455_v21  ;;  %v540_v52 = vadd.f32 %v516_v57, %v456_v40  ;;  %v2155_v61 = vld [vmem:[#allocation18_spill] sm:$0xff]  ;;  %v541_v63 = vadd.f32 %v517_v42, %v457_v1 }
 0x6d3   :  { %681 = vst [vmem:[#allocation2 + $0x70] sm:$0xff] %v657_v29 }
 0x6d4   :  { %682 = vst [vmem:[#allocation2 + $0x78] sm:$0xff] %v658_v16  ;;  %v2156_v16 = vld [vmem:[#allocation19_spill] sm:$0xff] }
 0x6d6   :  { %v552_v56 = vpop.permute.xlu1 %551 }
 0x6d7   :  { %v594_v18 = vmul.f32 %v2149_v17, %v552_v56  ;;  %v595_v60 = vmul.f32 %v2150_v2, %v552_v56  ;;  %v596_v4 = vmul.f32 %v2151_v19, %v552_v56  ;;  %v597_v31 = vmul.f32 %v2152_v47, %v552_v56 }
 0x6d8   :  { %v598_v45 = vmul.f32 %v2153_v43, %v552_v56  ;;  %v599_v46 = vmul.f32 %v2154_v27, %v552_v56  ;;  %v600_v29 = vmul.f32 %v2155_v61, %v552_v56  ;;  %v601_v10 = vmul.f32 %v2156_v16, %v552_v56 }
 0x6d9   :  { %v618_v15 = vadd.f32 %v594_v18, %v534_v32  ;;  %v619_v9 = vadd.f32 %v595_v60, %v535_v49  ;;  %v620_v14 = vadd.f32 %v596_v4, %v536_v50  ;;  %v621_v44 = vadd.f32 %v597_v31, %v537_v5 }
 0x6da   :  { %v622_v57 = vadd.f32 %v598_v45, %v538_v30  ;;  %v623_v35 = vadd.f32 %v599_v46, %v539_v25  ;;  %v624_v28 = vadd.f32 %v600_v29, %v540_v52  ;;  %v625_v7 = vadd.f32 %v601_v10, %v541_v63 }
 0x6db   :  { %v659_v20 = vadd.f32 %v1743_v13, %v618_v15  ;;  %v660_v8 = vadd.f32 %v1745_v38, %v619_v9  ;;  %v661_v0 = vadd.f32 %v1747_v48, %v620_v14  ;;  %v662_v21 = vadd.f32 %v1749_v12, %v621_v44 }
 0x6dc   :  { %v663_v40 = vadd.f32 %v1751_v6, %v622_v57  ;;  %v664_v32 = vadd.f32 %v1761_v33, %v623_v35  ;;  %v665_v1 = vadd.f32 %v1763_v34, %v624_v28  ;;  %v666_v42 = vadd.f32 %v1769_v26, %v625_v7 }
 0x6dd   :  { %683 = vst [vmem:[#allocation2 + $0x80] sm:$0xff] %v659_v20  ;;  %v2157_v52 = vmov 2   ;;  %v2158_v18 = vmov 1  }
 0x6de   :  { %684 = vst [vmem:[#allocation2 + $0x88] sm:$0xff] %v660_v8 }
 0x6df   :  { %685 = vst [vmem:[#allocation2 + $0x90] sm:$0xff] %v661_v0 }
 0x6e0   :  { %686 = vst [vmem:[#allocation2 + $0x98] sm:$0xff] %v662_v21 }
 0x6e1   :  { %687 = vst [vmem:[#allocation2 + $0xa0] sm:$0xff] %v663_v40 }
 0x6e2   :  { %688 = vst [vmem:[#allocation2 + $0xa8] sm:$0xff] %v664_v32 }
 0x6e3   :  { %689 = vst [vmem:[#allocation2 + $0xb0] sm:$0xff] %v665_v1 }
 0x6e4   :  { %690 = vst [vmem:[#allocation2 + $0xb8] sm:$0xff] %v666_v42 }
 0x738   :  { %v951_v49 = vpop.f32.mrf.mxu0 }
 0x739   :  { %1253 = vmatmul.msk.f32.vlgmr.msra.gmra.mxu1 %vm352_vm5, %v951_v49 }
 0x740   :  { %v954_v50 = vpop.f32.mrf.mxu0 }
 0x741   :  { %1254 = vmatmul.msk.f32.gmra.mxu1 %vm352_vm5, %v954_v50 }
 0x748   :  { %v957_v5 = vpop.f32.mrf.mxu0 }
 0x749   :  { %1255 = vmatmul.msk.f32.gmra.mxu1 %vm352_vm5, %v957_v5 }
 0x7b6   :  { %v986_v30 = vpop.f32.mrf.mxu1 }
 0x7b7   :  { %1035 = vperm.xlu0 %1275, %v986_v30   ;;  %997 = vperm.xlu2 %1277, %v986_v30  }
 0x7be   :  { %v989_v25 = vpop.f32.mrf.mxu1 }
 0x7bf   :  { %1002 = vperm.xlu1 %1278, %v989_v25   ;;  %1283 = vset.pattern.permute.xlu0 %v2157_v52 }
 0x7c6   :  { %v992_v56 = vpop.f32.mrf.mxu1 }
 0x7c7   :  { %1279 = vset.pattern.permute.xlu1 %v2158_v18  ;;  %1007 = vperm.xlu2 %1277, %v992_v56  }
 0x7c8   :  { %1039 = vperm.xlu1 %1279, %v989_v25   ;;  %1103 = vperm.xlu0 %1283, %v992_v56  }
 0x7cf   :  { %1280 = vset.pattern.permute.xlu2 %v2158_v18 }
 0x7d0   :  { %1281 = vset.pattern.permute.xlu1 %v2157_v52  ;;  %1043 = vperm.xlu2 %1280, %v992_v56  }
 0x7d1   :  { %1095 = vperm.xlu1 %1281, %v986_v30  }
 0x7d8   :  { %1282 = vset.pattern.permute.xlu2 %v2157_v52 }
 0x7d9   :  { %1099 = vperm.xlu2 %1282, %v989_v25  }
 0x811   :  { %v998_v60 = vpop.permute.xlu2 %997 }
 0x812   :  { %v1890_v45 = vmul.f32 %v998_v60, %v1666_v22  ;;  %v1893_v46 = vmul.f32 %v998_v60, %v1668_v23  ;;  %v1896_v29 = vmul.f32 %v998_v60, %v1670_v24  ;;  %v1899_v10 = vmul.f32 %v998_v60, %v1672_v3 }
 0x813   :  { %v1902_v15 = vmul.f32 %v998_v60, %v2141_v51  ;;  %v1905_v9 = vmul.f32 %v998_v60, %v2142_v11  ;;  %v1908_v14 = vmul.f32 %v998_v60, %v2147_v37  ;;  %v1911_v44 = vmul.f32 %v998_v60, %v2144_v62 }
 0x814   :  { %2159 = vst [vmem:[#allocation7_spill] sm:$0xff] %v1890_v45 }
 0x815   :  { %2160 = vst [vmem:[#allocation8_spill] sm:$0xff] %v1893_v46 }
 0x816   :  { %2161 = vst [vmem:[#allocation10_spill] sm:$0xff] %v1896_v29 }
 0x817   :  { %2162 = vst [vmem:[#allocation5_spill] sm:$0xff] %v1899_v10 }
 0x818   :  { %2163 = vst [vmem:[#allocation6_spill] sm:$0xff] %v1902_v15 }
 0x819   :  { %2164 = vst [vmem:[#allocation9_spill] sm:$0xff] %v1905_v9 }
 0x81a   :  { %2165 = vst [vmem:[#allocation12_spill] sm:$0xff] %v1908_v14 }
 0x81b   :  { %2166 = vst [vmem:[#allocation11_spill] sm:$0xff] %v1911_v44 }
 0x821   :  { %v1008_v4 = vpop.permute.xlu2 %1007 }
 0x822   :  { %v1026_v63 = vmul.f32 %v1008_v4, %v1666_v22  ;;  %v1027_v57 = vmul.f32 %v1008_v4, %v1668_v23  ;;  %v1028_v28 = vmul.f32 %v1008_v4, %v1670_v24  ;;  %v1029_v20 = vmul.f32 %v1008_v4, %v1672_v3 }
 0x823   :  { %v1920_v8 = vmul.f32 %v1008_v4, %v2141_v51  ;;  %v1923_v0 = vmul.f32 %v1008_v4, %v2142_v11  ;;  %v1926_v21 = vmul.f32 %v1008_v4, %v2147_v37  ;;  %v1932_v42 = vmul.f32 %v1008_v4, %v2144_v62 }
 0x825   :  { %2168 = vst [vmem:[#allocation14_spill] sm:$0xff] %v1926_v21 }
 0x826   :  { %2169 = vst [vmem:[#allocation15_spill] sm:$0xff] %v1932_v42 }
 0x829   :  { %v1915_v35 = vpop.permute.xlu0 %1035 }
 0x82a   :  { %v1044_v31 = vpop.permute.xlu2 %1043  ;;  %2167 = vst [vmem:[#allocation13_spill] sm:$0xff] %v1915_v35  ;;  %v1936_v49 = vmul.f32 %v1915_v35, %v1682_v53  ;;  %v1940_v50 = vmul.f32 %v1915_v35, %v1684_v54  ;;  %v1945_v30 = vmul.f32 %v1915_v35, %v1686_v36  ;;  %v1949_v25 = vmul.f32 %v1915_v35, %v1688_v39 }
 0x82b   :  { %v1062_v40 = vmul.f32 %v1044_v31, %v1682_v53  ;;  %v1063_v32 = vmul.f32 %v1044_v31, %v1684_v54  ;;  %v1064_v1 = vmul.f32 %v1044_v31, %v1686_v36  ;;  %v1065_v5 = vmul.f32 %v1044_v31, %v1688_v39 }
 0x82c   :  { %2170 = vst [vmem:[#allocation16_spill] sm:$0xff] %v1936_v49  ;;  %v1953_v52 = vmul.f32 %v1915_v35, %v1690_v55  ;;  %v1957_v56 = vmul.f32 %v1915_v35, %v1694_v58  ;;  %v1961_v18 = vmul.f32 %v1915_v35, %v1696_v59  ;;  %v1066_v60 = vmul.f32 %v1044_v31, %v1690_v55 }
 0x82d   :  { %2171 = vst [vmem:[#allocation17_spill] sm:$0xff] %v1940_v50  ;;  %v1067_v4 = vmul.f32 %v1044_v31, %v1694_v58  ;;  %v1966_v44 = vmul.f32 %v1044_v31, %v1696_v59  ;;  %v1969_v14 = vmul.f32 %v1044_v31, %v2148_v41  ;;  %v1973_v15 = vadd.f32 %v1063_v32, %v1027_v57 }
 0x82e   :  { %2172 = vst [vmem:[#allocation18_spill] sm:$0xff] %v1945_v30  ;;  %v1980_v30 = vadd.f32 %v1065_v5, %v1029_v20 }
 0x82f   :  { %2173 = vst [vmem:[#allocation19_spill] sm:$0xff] %v1949_v25 }
 0x830   :  { %2174 = vst [vmem:[#allocation21_spill] sm:$0xff] %v1953_v52  ;;  %v1971_v52 = vadd.f32 %v1062_v40, %v1026_v63 }
 0x831   :  { %v1003_v7 = vpop.permute.xlu1 %1002  ;;  %2175 = vst [vmem:[#allocation22_spill] sm:$0xff] %v1957_v56  ;;  %v1975_v56 = vadd.f32 %v1064_v1, %v1028_v28 }
 0x832   :  { %2176 = vst [vmem:[#allocation23_spill] sm:$0xff] %v1961_v18  ;;  %v1018_v25 = vmul.f32 %v1003_v7, %v1666_v22  ;;  %v1019_v18 = vmul.f32 %v1003_v7, %v1668_v23  ;;  %v1020_v10 = vmul.f32 %v1003_v7, %v1670_v24  ;;  %v1021_v29 = vmul.f32 %v1003_v7, %v1672_v3 }
 0x833   :  { %2177 = vst [vmem:[#allocation24_spill] sm:$0xff] %v1966_v44  ;;  %v1100_v9 = vpop.permute.xlu2 %1099  ;;  %v1022_v31 = vmul.f32 %v1003_v7, %v2141_v51  ;;  %v1023_v50 = vmul.f32 %v1003_v7, %v2142_v11  ;;  %v1024_v63 = vmul.f32 %v1003_v7, %v2147_v37  ;;  %v1025_v57 = vmul.f32 %v1003_v7, %v2144_v62 }
 0x834   :  { %2178 = vst [vmem:[#allocation25_spill] sm:$0xff] %v1969_v14  ;;  %v1114_v28 = vmul.f32 %v1100_v9, %v2149_v17  ;;  %v1115_v22 = vmul.f32 %v1100_v9, %v2150_v2  ;;  %v1116_v23 = vmul.f32 %v1100_v9, %v2151_v19  ;;  %v1117_v24 = vmul.f32 %v1100_v9, %v2152_v47 }
 0x835   :  { %2179 = vst [vmem:[#allocation26_spill] sm:$0xff] %v1975_v56  ;;  %v1118_v20 = vmul.f32 %v1100_v9, %v2153_v43  ;;  %v1119_v3 = vmul.f32 %v1100_v9, %v2154_v27  ;;  %v1120_v51 = vmul.f32 %v1100_v9, %v2155_v61 }
 0x836   :  { %2180 = vst [vmem:[#allocation27_spill] sm:$0xff] %v1980_v30 }
 0x83a   :  { %v1040_v40 = vpop.permute.xlu1 %1039  ;;  %v1104_v56 = vpop.permute.xlu0 %1103 }
 0x83b   :  { %v1054_v11 = vmul.f32 %v1040_v40, %v1682_v53  ;;  %v1055_v37 = vmul.f32 %v1040_v40, %v1684_v54  ;;  %v1056_v62 = vmul.f32 %v1040_v40, %v1686_v36  ;;  %v1057_v7 = vmul.f32 %v1040_v40, %v1688_v39 }
 0x83c   :  { %v1058_v32 = vmul.f32 %v1040_v40, %v1690_v55  ;;  %v1059_v1 = vmul.f32 %v1040_v40, %v1694_v58  ;;  %v1060_v5 = vmul.f32 %v1040_v40, %v1696_v59  ;;  %v1061_v46 = vmul.f32 %v1040_v40, %v2148_v41 }
 0x83d   :  { %v1078_v49 = vadd.f32 %v1054_v11, %v1018_v25  ;;  %v1079_v45 = vadd.f32 %v1055_v37, %v1019_v18  ;;  %v1080_v14 = vadd.f32 %v1056_v62, %v1020_v10  ;;  %v1081_v42 = vadd.f32 %v1057_v7, %v1021_v29  ;;  %v2188_v37 = vld [vmem:[#allocation25_spill] sm:$0xff] }
 0x83e   :  { %v1082_v35 = vadd.f32 %v1058_v32, %v1022_v31  ;;  %v1083_v53 = vadd.f32 %v1059_v1, %v1023_v50  ;;  %v1084_v30 = vadd.f32 %v1060_v5, %v1024_v63  ;;  %v1085_v54 = vadd.f32 %v1061_v46, %v1025_v57  ;;  %v2182_v31 = vld [vmem:[#allocation20_spill] sm:$0xff]  ;;  %v2183_v57 = vld [vmem:[#allocation14_spill] sm:$0xff] }
 0x83f   :  { %v1138_v44 = vadd.f32 %v1114_v28, %v1078_v49  ;;  %v1139_v36 = vadd.f32 %v1115_v22, %v1079_v45  ;;  %v1140_v21 = vadd.f32 %v1116_v23, %v1080_v14  ;;  %v1141_v39 = vadd.f32 %v1117_v24, %v1081_v42  ;;  %v2184_v28 = vld [vmem:[#allocation24_spill] sm:$0xff]  ;;  %v2185_v24 = vld [vmem:[#allocation27_spill] sm:$0xff] }
 0x840   :  { %v1121_v55 = vmul.f32 %v1100_v9, %v2156_v16  ;;  %v1142_v26 = vadd.f32 %v1118_v20, %v1082_v35  ;;  %v1143_v58 = vadd.f32 %v1119_v3, %v1083_v53  ;;  %v1090_v59 = vadd.f32 %v1066_v60, %v1920_v8  ;;  %v2181_v60 = vld [vmem:[#allocation26_spill] sm:$0xff]  ;;  %v2189_v53 = vld [vmem:[#allocation7_spill] sm:$0xff] }
 0x841   :  { %v1144_v40 = vadd.f32 %v1120_v51, %v1084_v30  ;;  %v1162_v25 = vadd.f32 %v1138_v44, %v1743_v13  ;;  %v1163_v29 = vadd.f32 %v1139_v36, %v1745_v38  ;;  %v1164_v10 = vadd.f32 %v1140_v21, %v1747_v48  ;;  %v2186_v51 = vld [vmem:[#allocation13_spill] sm:$0xff] }
 0x842   :  { %v1145_v50 = vadd.f32 %v1121_v55, %v1085_v54  ;;  %v1165_v46 = vadd.f32 %v1141_v39, %v1749_v12  ;;  %v1166_v45 = vadd.f32 %v1142_v26, %v1751_v6  ;;  %v1091_v14 = vadd.f32 %v1067_v4, %v1923_v0 }
 0x843   :  { %1187 = vst [vmem:[#allocation2 + $0x100] sm:$0xff] %v1162_v25  ;;  %v1122_v9 = vmul.f32 %v1104_v56, %v2149_v17  ;;  %v1123_v35 = vmul.f32 %v1104_v56, %v2150_v2  ;;  %v1124_v8 = vmul.f32 %v1104_v56, %v2151_v19  ;;  %v1125_v44 = vmul.f32 %v1104_v56, %v2152_v47  ;;  %v1096_v3 = vpop.permute.xlu1 %1095  ;;  %v2192_v25 = vld [vmem:[#allocation17_spill] sm:$0xff] }
 0x844   :  { %v1167_v42 = vadd.f32 %v1143_v58, %v1761_v33  ;;  %1188 = vst [vmem:[#allocation2 + $0x108] sm:$0xff] %v1163_v29  ;;  %v1126_v21 = vmul.f32 %v1104_v56, %v2153_v43  ;;  %v1127_v49 = vmul.f32 %v1104_v56, %v2154_v27  ;;  %v1128_v26 = vmul.f32 %v1104_v56, %v2155_v61 }
 0x845   :  { %v1168_v0 = vadd.f32 %v1144_v40, %v1763_v34  ;;  %1189 = vst [vmem:[#allocation2 + $0x110] sm:$0xff] %v1164_v10  ;;  %v1146_v30 = vadd.f32 %v1122_v9, %v1971_v52  ;;  %v1147_v18 = vadd.f32 %v1123_v35, %v1973_v15  ;;  %v1148_v4 = vadd.f32 %v1124_v8, %v2181_v60  ;;  %v2187_v52 = vld [vmem:[#allocation15_spill] sm:$0xff]  ;;  %v2191_v40 = vld [vmem:[#allocation8_spill] sm:$0xff]  ;;  %v2195_v9 = vld [vmem:[#allocation5_spill] sm:$0xff] }
 0x846   :  { %v1169_v63 = vadd.f32 %v1145_v50, %v2182_v31  ;;  %1190 = vst [vmem:[#allocation2 + $0x118] sm:$0xff] %v1165_v46  ;;  %v1092_v22 = vadd.f32 %v2184_v28, %v2183_v57  ;;  %v1129_v23 = vmul.f32 %v1104_v56, %v2156_v16  ;;  %v1149_v20 = vadd.f32 %v1125_v44, %v2185_v24  ;;  %v2190_v56 = vld [vmem:[#allocation16_spill] sm:$0xff]  ;;  %v2193_v46 = vld [vmem:[#allocation10_spill] sm:$0xff]  ;;  %v2196_v35 = vld [vmem:[#allocation19_spill] sm:$0xff] }
 0x847   :  { %v1053_v11 = vmul.f32 %v2186_v51, %v2148_v41  ;;  %1191 = vst [vmem:[#allocation2 + $0x120] sm:$0xff] %v1166_v45  ;;  %v1093_v15 = vadd.f32 %v2188_v37, %v2187_v52  ;;  %v1150_v62 = vadd.f32 %v1126_v21, %v1090_v59  ;;  %v1170_v7 = vadd.f32 %v1146_v30, %v1743_v13  ;;  %v2194_v45 = vld [vmem:[#allocation18_spill] sm:$0xff]  ;;  %v2202_v28 = vld [vmem:[#allocation23_spill] sm:$0xff] }
 0x848   :  { %1192 = vst [vmem:[#allocation2 + $0x128] sm:$0xff] %v1167_v42  ;;  %v1151_v32 = vadd.f32 %v1127_v49, %v1091_v14  ;;  %v1152_v1 = vadd.f32 %v1128_v26, %v1092_v22  ;;  %v1171_v5 = vadd.f32 %v1147_v18, %v1745_v38  ;;  %v1070_v54 = vadd.f32 %v2190_v56, %v2189_v53  ;;  %v2197_v21 = vld [vmem:[#allocation6_spill] sm:$0xff]  ;;  %v2198_v49 = vld [vmem:[#allocation21_spill] sm:$0xff] }
 0x849   :  { %1193 = vst [vmem:[#allocation2 + $0x130] sm:$0xff] %v1168_v0  ;;  %v1172_v36 = vadd.f32 %v1148_v4, %v1747_v48  ;;  %v1106_v41 = vmul.f32 %v1096_v3, %v2149_v17  ;;  %v1107_v39 = vmul.f32 %v1096_v3, %v2150_v2  ;;  %v1108_v55 = vmul.f32 %v1096_v3, %v2151_v19  ;;  %v2199_v18 = vld [vmem:[#allocation9_spill] sm:$0xff]  ;;  %v2200_v60 = vld [vmem:[#allocation22_spill] sm:$0xff] }
 0x84a   :  { %1194 = vst [vmem:[#allocation2 + $0x138] sm:$0xff] %v1169_v63  ;;  %v1153_v58 = vadd.f32 %v1129_v23, %v1093_v15  ;;  %v1173_v59 = vadd.f32 %v1149_v20, %v1749_v12  ;;  %v1071_v29 = vadd.f32 %v2192_v25, %v2191_v40  ;;  %v1109_v10 = vmul.f32 %v1096_v3, %v2152_v47  ;;  %v2203_v20 = vld [vmem:[#allocation11_spill] sm:$0xff] }
 0x84b   :  { %v1174_v50 = vadd.f32 %v1150_v62, %v1751_v6  ;;  %1195 = vst [vmem:[#allocation2 + $0x140] sm:$0xff] %v1170_v7  ;;  %v1072_v14 = vadd.f32 %v2194_v45, %v2193_v46  ;;  %v1110_v17 = vmul.f32 %v1096_v3, %v2153_v43  ;;  %v1130_v2 = vadd.f32 %v1106_v41, %v1070_v54 }
 0x84c   :  { %v1175_v19 = vadd.f32 %v1151_v32, %v1761_v33  ;;  %1196 = vst [vmem:[#allocation2 + $0x148] sm:$0xff] %v1171_v5  ;;  %v1073_v8 = vadd.f32 %v2196_v35, %v2195_v9  ;;  %v1111_v44 = vmul.f32 %v1096_v3, %v2154_v27  ;;  %v1131_v42 = vadd.f32 %v1107_v39, %v1071_v29  ;;  %v2201_v27 = vld [vmem:[#allocation12_spill] sm:$0xff] }
 0x84d   :  { %v1176_v47 = vadd.f32 %v1152_v1, %v1763_v34  ;;  %1197 = vst [vmem:[#allocation2 + $0x150] sm:$0xff] %v1172_v36  ;;  %v1074_v26 = vadd.f32 %v2198_v49, %v2197_v21  ;;  %v1112_v0 = vmul.f32 %v1096_v3, %v2155_v61  ;;  %v1132_v30 = vadd.f32 %v1108_v55, %v1072_v14 }
 0x84e   :  { %v1177_v43 = vadd.f32 %v1153_v58, %v2182_v31  ;;  %1198 = vst [vmem:[#allocation2 + $0x158] sm:$0xff] %v1173_v59  ;;  %v1075_v4 = vadd.f32 %v2200_v60, %v2199_v18  ;;  %v1113_v63 = vmul.f32 %v1096_v3, %v2156_v16  ;;  %v1133_v57 = vadd.f32 %v1109_v10, %v1073_v8 }
 0x84f   :  { %1199 = vst [vmem:[#allocation2 + $0x160] sm:$0xff] %v1174_v50  ;;  %v1076_v22 = vadd.f32 %v2202_v28, %v2201_v27  ;;  %v1134_v23 = vadd.f32 %v1110_v17, %v1074_v26  ;;  %v1154_v24 = vadd.f32 %v1130_v2, %v1743_v13  ;;  %v1077_v61 = vadd.f32 %v1053_v11, %v2203_v20 }
 0x850   :  { %1200 = vst [vmem:[#allocation2 + $0x168] sm:$0xff] %v1175_v19  ;;  %v1135_v51 = vadd.f32 %v1111_v44, %v1075_v4  ;;  %v1155_v52 = vadd.f32 %v1131_v42, %v1745_v38  ;;  %v1156_v15 = vadd.f32 %v1132_v30, %v1747_v48  ;;  %v1157_v3 = vadd.f32 %v1133_v57, %v1749_v12 }
 0x851   :  { %1201 = vst [vmem:[#allocation2 + $0x170] sm:$0xff] %v1176_v47  ;;  %v1136_v37 = vadd.f32 %v1112_v0, %v1076_v22  ;;  %v1137_v16 = vadd.f32 %v1113_v63, %v1077_v61  ;;  %v1158_v62 = vadd.f32 %v1134_v23, %v1751_v6 }
 0x852   :  { %1202 = vst [vmem:[#allocation2 + $0x178] sm:$0xff] %v1177_v43  ;;  %v1159_v7 = vadd.f32 %v1135_v51, %v1761_v33 }
 0x853   :  { %1179 = vst [vmem:[#allocation2 + $0xc0] sm:$0xff] %v1154_v24  ;;  %v1160_v13 = vadd.f32 %v1136_v37, %v1763_v34  ;;  %v1161_v38 = vadd.f32 %v1137_v16, %v2182_v31 }
 0x854   :  { %1180 = vst [vmem:[#allocation2 + $0xc8] sm:$0xff] %v1155_v52 }
 0x855   :  { %1181 = vst [vmem:[#allocation2 + $0xd0] sm:$0xff] %v1156_v15 }
 0x856   :  { %1182 = vst [vmem:[#allocation2 + $0xd8] sm:$0xff] %v1157_v3 }
 0x857   :  { %1183 = vst [vmem:[#allocation2 + $0xe0] sm:$0xff] %v1158_v62 }
 0x858   :  { %1184 = vst [vmem:[#allocation2 + $0xe8] sm:$0xff] %v1159_v7 }
 0x859   :  { %1185 = vst [vmem:[#allocation2 + $0xf0] sm:$0xff] %v1160_v13 }
 0x85a   :  { %1186 = vst [vmem:[#allocation2 + $0xf8] sm:$0xff] %v1161_v38 }
 0x85b   :  { %1215 = dma.vmem_to_hbm [thread:$0]  %s1208_s20, 6144, %s1210_s3, [#allocation3], %s1350_s4, %s1350_s4, %s1351_s23  }
 0x85c   :  { %1344 = dma.done.wait [#allocation3], 6144  }
 0x85d   :  { %1345 = vsyncadd [#allocation3], 4294961152 }
 0x85e   :  { %1220 = vsyncpa [#allocation3], 1 }

// kernel: vn_dgcnn_forward.14
= control target key start
LH: loop header
LB: loop body
LE: loop exit
PB: predicated region body
PF: predicated region fallthrough
CT: control target
= control target key end

     0   :  { %s1106_s15 = smov 0   ;;  %s1108_s16 = smov 0   ;;  %s1315_s0 = inlined_call_operand.vmem [shape: bf16[3,2,72,32], index: 0, kind: input, shape index: {}]   ;;  %s1316_s1 = inlined_call_operand.vmem [shape: bf16[24,72], index: 1, kind: input, shape index: {}]   ;;  %s1317_s2 = inlined_call_operand.vmem [shape: f32[16,1], index: 2, kind: input, shape index: {}]   ;;  %s1318_s3 = inlined_call_operand.vmem [shape: f32[16,1], index: 3, kind: input, shape index: {}]   ;;  %s1319_s4 = inlined_call_operand.vmem [shape: f32[3,2,16,1], index: 4, kind: output, shape index: {}]  }
   0x1   :  { %s1110_s17 = smov 0   ;;  %s1112_s18 = smov 0  }
   0x2   :  { %s1114_s19 = smov 0  }
   0x3 LB: > { %s26_s20 = sadd.s32 1, %s1073_s18  ;;  %s868_s21 = sadd.s32 4294967295, %s1077_s19   ;;  %s1077_s19 = sphi %s1114_s19, %s14_s19   ;;  %s1073_s18 = sphi %s1112_s18, %s1324_s18   ;;  %s1069_s17 = sphi %s1110_s17, %s1323_s17   ;;  %s1065_s16 = sphi %s1108_s16, %s1322_s16   ;;  %s1061_s15 = sphi %s1106_s15, %s1321_s15  }
   0x4   : > { %p28_p0 = scmp.ge.s32.totalorder %s26_s20, 2  ;;  %p42_p1 = scmp.ne.s32.totalorder %s1065_s16, %s1061_s15 }
   0x5   : > { %p43_p2 = scmp.eq.s32.totalorder %s1077_s19, 0  ;;  %p135_p4 = scmp.eq.s32.totalorder %s868_s21, 1 }
   0x6   : > { %s1326_s20 = smov (%p28_p0, %s26_s20), 0  ;;  %s35_s23 = sadd.s32 1, %s1065_s16 }
   0x7   : > { %p44_p3 = por %p43_p2, %p42_p1  ;;  %s30_s22 = ssub.s32 %s1073_s18, %s1326_s20 }
   0x8   : > { %p33_p5 = scmp.eq.s32.totalorder %s30_s22, 0  ;;  %p1141_p6 = por %p135_p4, %p42_p1 }
   0x9   : > { %p871_p7 = scmp.ge.s32.totalorder %s1077_s19, 2 }
   0xa   : > { %s1146_s25 = scalar_select %p33_p5, %s1065_s16, %s35_s23  }
   0xb   : > { %166 = sbr.rel (%p871_p7) target bundleno = 36 (0x24), region = 28 }
  0x10   : > { %169 = sbr.rel (!%p44_p3) target bundleno = 36 (0x24), region = 32  ;;  %s171_s26 = sand.u32 (%p44_p3), 1, %s1065_s16  }
  0x11   : > { %s982_s27 = smul.u32 (%p44_p3), 36, %s1073_s18 }
  0x12   : > { %s981_s28 = smul.u32 (%p44_p3), 108, %s171_s26 }
  0x13   : > { %s177_s5 = scalar_lea.vmem (%p44_p3), %s1315_s0, %s982_s27 }
  0x14   : > { %v194_v0 = vld [vmem:[%s177_s5] sm:$0xff] (%p44_p3)   ;;  %v198_v1 = vld [vmem:[%s177_s5 + $0x8] sm:$0xff] (%p44_p3)   ;;  %v202_v2 = vld [vmem:[%s177_s5 + $0x10] sm:$0xff] (%p44_p3)   ;;  %s173_s6 = scalar_lea.vmem (%p44_p3), [#allocation2], %s981_s28 }
  0x15   : > { %195 = vst [vmem:[%s173_s6] sm:$0xff] %v194_v0   ;;  %v206_v3 = vld [vmem:[%s177_s5 + $0x18] sm:$0xff]   ;;  %v210_v4 = vld [vmem:[%s177_s5 + $0x20] sm:$0xf]  ;;  %v212_v5 = vld [vmem:[%s177_s5 + $0x48] sm:$0xff]  }
  0x16   : > { %199 = vst [vmem:[%s173_s6 + $0x8] sm:$0xff] %v198_v1   ;;  %v216_v6 = vld [vmem:[%s177_s5 + $0x50] sm:$0xff]   ;;  %v220_v7 = vld [vmem:[%s177_s5 + $0x58] sm:$0xff]   ;;  %v224_v8 = vld [vmem:[%s177_s5 + $0x60] sm:$0xff]  }
  0x17   : > { %203 = vst [vmem:[%s173_s6 + $0x10] sm:$0xff] %v202_v2   ;;  %v228_v9 = vld [vmem:[%s177_s5 + $0x68] sm:$0xf]  ;;  %v230_v10 = vld [vmem:[%s177_s5 + $0x90] sm:$0xff]   ;;  %v234_v11 = vld [vmem:[%s177_s5 + $0x98] sm:$0xff]  }
  0x18   : > { %207 = vst [vmem:[%s173_s6 + $0x18] sm:$0xff] %v206_v3   ;;  %v238_v12 = vld [vmem:[%s177_s5 + $0xa0] sm:$0xff]   ;;  %v242_v13 = vld [vmem:[%s177_s5 + $0xa8] sm:$0xff]   ;;  %v246_v14 = vld [vmem:[%s177_s5 + $0xb0] sm:$0xf] }
  0x19   : > { %211 = vst [vmem:[%s173_s6 + $0x20] sm:$0xf] %v210_v4 }
  0x1a   : > { %213 = vst [vmem:[%s173_s6 + $0x24] sm:$0xff] %v212_v5  }
  0x1b   : > { %217 = vst [vmem:[%s173_s6 + $0x2c] sm:$0xff] %v216_v6  }
  0x1c   : > { %221 = vst [vmem:[%s173_s6 + $0x34] sm:$0xff] %v220_v7  }
  0x1d   : > { %225 = vst [vmem:[%s173_s6 + $0x3c] sm:$0xff] %v224_v8  }
  0x1e   : > { %229 = vst [vmem:[%s173_s6 + $0x44] sm:$0xf] %v228_v9 }
  0x1f   : > { %231 = vst [vmem:[%s173_s6 + $0x48] sm:$0xff] %v230_v10  }
  0x20   : > { %235 = vst [vmem:[%s173_s6 + $0x50] sm:$0xff] %v234_v11  }
  0x21   : > { %239 = vst [vmem:[%s173_s6 + $0x58] sm:$0xff] %v238_v12  }
  0x22   : > { %243 = vst [vmem:[%s173_s6 + $0x60] sm:$0xff] %v242_v13  }
  0x23   : > { %247 = vst [vmem:[%s173_s6 + $0x68] sm:$0xf] %v246_v14 }
  0x24 PF: > { %p873_p8 = scmp.ge.s32.totalorder %s1077_s19, 1  ;;  %p324_p9 = scmp.lt.s32.totalorder %s1077_s19, 3 }
  0x26   : > { %p325_p10 = pnand %p873_p8, %p324_p9 }
  0x27   : > { %s331_s7 = sand.u32 (!%p325_p10), 1, %s1061_s15  }
  0x28   : > { %328 = sbr.rel (%p325_p10) target bundleno = 414 (0x19e), region = 73 }
  0x29   : > { %s983_s8 = smul.u32 (!%p325_p10), 108, %s331_s7 }
  0x2a   : > { %s984_s30 = smul.u32 (!%p325_p10), 48, %s331_s7 }
  0x2b   : > { %s1159_s9 = scalar_lea.vmem (!%p325_p10), [#allocation2], %s983_s8 }
  0x2c   : > { %s1238_s15 = scalar_lea.vmem (!%p325_p10), [#allocation3], %s984_s30 }
  0x2d   : > { %v375_v15 = vld [vmem:[%s1159_s9 + $0x20] sm:$0xf]  ;;  %v882_v16 = vld [vmem:[%s1159_s9 + $0x44] sm:$0xf]  ;;  %v891_v17 = vld [vmem:[%s1159_s9 + $0x68] sm:$0xf] }
  0x2e   : > { %v428_v18 = vunpack.c.l.b16 %v375_v15  ;;  %v484_v19 = vunpack.c.l.b16 %v882_v16  ;;  %v532_v20 = vunpack.c.l.b16 %v891_v17  ;;  %vm445_vm0 = vcmask 1043456   ;;  %v965_v27 = vld [vmem:[%s1159_s9 + $0x18] sm:$0xff]  ;;  %v973_v29 = vld [vmem:[%s1159_s9 + $0x60] sm:$0xff]  ;;  %v964_v30 = vld [vmem:[%s1159_s9 + $0x10] sm:$0xff]  ;;  %s975_s5 = sshll.u32 (%p1141_p6), %s1069_s17, 4 }
  0x2f   : > { %v969_v28 = vld [vmem:[%s1159_s9 + $0x3c] sm:$0xff]  ;;  %v968_v31 = vld [vmem:[%s1159_s9 + $0x34] sm:$0xff]  ;;  %v1079_v35 = vmov 0   ;;  %v963_v36 = vld [vmem:[%s1159_s9 + $0x8] sm:$0xff]  ;;  %vm438_vm1 = vcmask 588800   ;;  %vm360_vm7 = vcmask 7168   ;;  %s747_s8 = scalar_lea.vmem (%p1141_p6), %s1319_s4, %s975_s5 }
  0x30   : > { %v433_v21 = vpack.c.b16 %v428_v18, %v428_v18  ;;  %v489_v22 = vpack.c.b16 %v484_v19, %v484_v19  ;;  %v537_v23 = vpack.c.b16 %v532_v20, %v532_v20  ;;  %v401_v32 = vld [vmem:[%s1318_s3] sm:$0xff]  ;;  %1027 = vset.pattern.permute.xlu0 %v1079_v35  ;;  %1028 = vset.pattern.permute.xlu1 %v1079_v35  ;;  %v967_v37 = vld [vmem:[%s1159_s9 + $0x2c] sm:$0xff]  ;;  %v398_v39 = vld [vmem:[%s1316_s1 + $0x8] sm:$0xf]  ;;  %vm694_vm8 = vcmask 261120  }
  0x31   : > { %v399_v33 = vld [vmem:[%s1317_s2] sm:$0xff]  ;;  %603 = vperm.xlu0 %1027, %v401_v32   ;;  %v408_v42 = vunpack.c.l.b16 %v398_v39  ;;  %v402_v43 = vld [vmem:[%s1318_s3 + $0x8] sm:$0xff] }
  0x32   : > { %v447_v24 = vsel %vm445_vm0, %v433_v21, 0  ;;  %v495_v25 = vsel %vm445_vm0, %v489_v22, 0  ;;  %v543_v26 = vsel %vm445_vm0, %v537_v23, 0  ;;  %v972_v34 = vld [vmem:[%s1159_s9 + $0x58] sm:$0xff]  ;;  %615 = vperm.xlu1 %1028, %v399_v33   ;;  %v971_v38 = vld [vmem:[%s1159_s9 + $0x50] sm:$0xff]  ;;  %v962_v40 = vld [vmem:[%s1159_s9] sm:$0xff] }
  0x33   : > { %452 = vmatpush.bf16.msra.mxu0 %v447_v24  ;;  %500 = vmatpush.bf16.msra.mxu1 %v495_v25  ;;  %v966_v41 = vld [vmem:[%s1159_s9 + $0x24] sm:$0xff]  ;;  %v410_v47 = vpack.c.b16 %v408_v42, %v408_v42 }
  0x34   : > { %548 = vmatpush.bf16.msra.mxu2 %v543_v26  ;;  %976 = vmatpush.bf16.msra.mxu3 %v447_v24  ;;  %v400_v44 = vld [vmem:[%s1317_s2 + $0x8] sm:$0xff]  ;;  %v974_v46 = vld [vmem:[%s1316_s1] sm:$0xff] }
  0x35   : > { %v970_v45 = vld [vmem:[%s1159_s9 + $0x48] sm:$0xff] }
  0x37   : > { %453 = vmatpush.bf16.msra.mxu0 %v965_v27  ;;  %501 = vmatpush.bf16.msra.mxu1 %v969_v28 }
  0x38   : > { %549 = vmatpush.bf16.msra.mxu2 %v973_v29  ;;  %977 = vmatpush.bf16.msra.mxu3 %v965_v27 }
  0x39   : > { %608 = vperm.xlu0 %1027, %v402_v43  }
  0x3a   : > { %620 = vperm.xlu1 %1028, %v400_v44  }
  0x3b   : > { %454 = vmatpush.bf16.msra.mxu0 %v964_v30  ;;  %502 = vmatpush.bf16.msra.mxu1 %v968_v31 }
  0x3c   : > { %550 = vmatpush.bf16.msra.mxu2 %v972_v34  ;;  %978 = vmatpush.bf16.msra.mxu3 %v964_v30 }
  0x3f   : > { %455 = vmatpush.bf16.msra.mxu0 %v963_v36  ;;  %503 = vmatpush.bf16.msra.mxu1 %v967_v37 }
  0x40   : > { %551 = vmatpush.bf16.msra.mxu2 %v971_v38  ;;  %979 = vmatpush.bf16.msra.mxu3 %v963_v36 }
  0x43   : > { %456 = vmatpush.bf16.msra.mxu0 %v962_v40  ;;  %504 = vmatpush.bf16.msra.mxu1 %v966_v41 }
  0x44   : > { %552 = vmatpush.bf16.msra.mxu2 %v970_v45  ;;  %980 = vmatpush.bf16.msra.mxu3 %v962_v40 }
  0x46   : > { %912 = vmatmul.msk.bf16.vlgmr.msra.gmra.mxu0 %vm438_vm1, %v974_v46  ;;  %930 = vmatmul.msk.bf16.vlgmr.msra.gmra.mxu1 %vm438_vm1, %v974_v46 }
  0x47   : > { %948 = vmatmul.msk.bf16.vlgmr.msra.gmra.mxu2 %vm438_vm1, %v974_v46  ;;  %913 = vmatmul.msk.bf16.vlgmr.msra.gmra.mxu3 %vm438_vm1, %v410_v47 }
  0x56   : > { %931 = vmatmul.msk.bf16.gmra.mxu1 %vm438_vm1, %v410_v47 }
  0x57   : > { %949 = vmatmul.msk.bf16.gmra.mxu2 %vm438_vm1, %v410_v47 }
  0xa3   : > { %v604_v31 = vpop.permute.xlu0 %603 }
  0xa4   : > { %v616_v35 = vpop.permute.xlu1 %615 }
  0xc3   : > { %v1194_v48 = vpop.f32.mrf.mxu0  ;;  %v1196_v49 = vpop.f32.mrf.mxu1 }
  0xc4   : > { %v563_v50 = vmul.f32 %v1194_v48, %v1194_v48  ;;  %v565_v51 = vmul.f32 %v1196_v49, %v1196_v49 }
  0xc6   : > { %v567_v52 = vadd.f32 %v565_v51, %v563_v50  ;;  %v609_v51 = vpop.permute.xlu0 %608 }
  0xca   : > { %v1202_v53 = vpop.f32.mrf.mxu2  ;;  %v463_v54 = vpop.f32.mrf.mxu3 }
  0xcb   : > { %v569_v55 = vmul.f32 %v1202_v53, %v1202_v53  ;;  %v1206_v56 = vpop.f32.mrf.mxu1  ;;  %v1208_v57 = vpop.f32.mrf.mxu0  ;;  %v644_v9 = vmul.f32 %v463_v54, %v463_v54  ;;  %v631_v39 = vperm.slane %v463_v54, 0 }
  0xcc   : > { %v564_v59 = vmul.f32 %v1208_v57, %v1208_v57  ;;  %v566_v60 = vmul.f32 %v1206_v56, %v1206_v56 }
  0xcd   : > { %v571_v58 = vadd.f32 %v569_v55, %v567_v52 }
  0xce   : > { %v568_v63 = vadd.f32 %v566_v60, %v564_v59 }
  0xcf   : > { %1029 = vrsqrt.f32 %v571_v58  ;;  %vm580_vm2 = vcmp.eq.f32.partialorder %v571_v58, inf  ;;  %v583_v19 = vand.u32 2147483648, %v571_v58  ;;  %vm582_vm3 = vcmp.eq.f32.partialorder %v571_v58, 0.0 }
  0xd2   : > { %v1214_v61 = vpop.f32.mrf.mxu2  ;;  %v465_v62 = vpop.f32.mrf.mxu3 }
  0xd3   : > { %v570_v0 = vmul.f32 %v1214_v61, %v1214_v61  ;;  %v511_v1 = vpop.f32.mrf.mxu1 }
  0xd4   : > { %v645_v10 = vmul.f32 %v511_v1, %v511_v1  ;;  %v634_v40 = vperm.slane %v511_v1, 0 }
  0xd5   : > { %v1030_v2 = vpop.eup %1029  ;;  %v572_v3 = vadd.f32 %v570_v0, %v568_v63 }
  0xd6   : > { %v574_v4 = vmul.f32 %v1030_v2, %v571_v58  ;;  %v646_v15 = vadd.f32 %v645_v10, %v644_v9  ;;  %v1080_v10 = vmov 0.0  }
  0xd7   : > { %1031 = vrsqrt.f32 %v572_v3  ;;  %vm592_vm4 = vcmp.eq.f32.partialorder %v572_v3, inf  ;;  %v595_v30 = vand.u32 2147483648, %v572_v3  ;;  %vm594_vm5 = vcmp.eq.f32.partialorder %v572_v3, 0.0  ;;  %363 = vst.msk [vmem:[%s1238_s15 + $0x10] sm:$0xff] %vm360_vm7, %v1080_v10 }
  0xd8   : > { %v575_v5 = vmul.f32 %v1030_v2, %v574_v4  ;;  %361 = vst.msk [vmem:[%s1238_s15] sm:$0xff] %vm360_vm7, %v1080_v10 }
  0xd9   : > { %362 = vst.msk [vmem:[%s1238_s15 + $0x8] sm:$0xff] %vm360_vm7, %v1080_v10 }
  0xda   : > { %v559_v6 = vpop.f32.mrf.mxu2  ;;  %v576_v7 = vmul.f32 0.5, %v575_v5  ;;  %364 = vst.msk [vmem:[%s1238_s15 + $0x18] sm:$0xff] %vm360_vm7, %v1080_v10 }
  0xdb   : > { %v513_v8 = vpop.f32.mrf.mxu1  ;;  %v647_v16 = vmul.f32 %v559_v6, %v559_v6  ;;  %v1223_v45 = vperm.slane %v559_v6, 0  ;;  %365 = vst.msk [vmem:[%s1238_s15 + $0x20] sm:$0xff] %vm360_vm7, %v1080_v10 }
  0xdc   : > { %v577_v11 = vsub.f32 1.5, %v576_v7  ;;  %366 = vst.msk [vmem:[%s1238_s15 + $0x28] sm:$0xff] %vm360_vm7, %v1080_v10 }
  0xdd   : > { %v1032_v12 = vpop.eup %1031  ;;  %v648_v24 = vadd.f32 %v647_v16, %v646_v15 }
  0xde   : > { %v578_v13 = vmul.f32 %v1030_v2, %v577_v11  ;;  %v586_v14 = vmul.f32 %v1032_v12, %v572_v3 }
  0xdf   : > { %v649_v28 = vadd.f32 1e-06, %v648_v24 }
  0xe0   : > { %v579_v17 = vmul.f32 %v578_v13, %v571_v58  ;;  %v587_v18 = vmul.f32 %v1032_v12, %v586_v14 }
  0xe2   : > { %v581_v20 = vsel %vm580_vm2, %v571_v58, %v579_v17  ;;  %v561_v21 = vpop.f32.mrf.mxu2  ;;  %v588_v22 = vmul.f32 0.5, %v587_v18 }
  0xe3   : > { %v584_v23 = vsel %vm582_vm3, %v583_v19, %v581_v20 }
  0xe4   : > { %v597_v25 = vadd.f32 1e-06, %v584_v23  ;;  %v589_v26 = vsub.f32 1.5, %v588_v22 }
  0xe6   : > { %1033 = vrcp.f32 %v597_v25  ;;  %v590_v27 = vmul.f32 %v1032_v12, %v589_v26 }
  0xe7   : > { %1035 = vrcp.f32 %v649_v28 }
  0xe8   : > { %v591_v29 = vmul.f32 %v590_v27, %v572_v3 }
  0xea   : > { %v593_v32 = vsel %vm592_vm4, %v572_v3, %v591_v29 }
  0xeb   : > { %v596_v33 = vsel %vm594_vm5, %v595_v30, %v593_v32 }
  0xec   : > { %v1034_v34 = vpop.eup %1033  ;;  %v598_v36 = vadd.f32 1e-06, %v596_v33 }
  0xed   : > { %v611_v37 = vmul.f32 %v1034_v34, %v604_v31  ;;  %v1036_v44 = vpop.eup %1035 }
  0xee   : > { %1037 = vrcp.f32 %v598_v36  ;;  %v651_v52 = vperm.slane %v1036_v44, 0 }
  0xef   : > { %v623_v38 = vadd.f32 %v616_v35, %v611_v37 }
  0xf1   : > { %v625_v41 = vmul.f32 %v623_v38, %v1194_v48  ;;  %v627_v42 = vmul.f32 %v623_v38, %v1196_v49  ;;  %v1221_v43 = vmul.f32 %v623_v38, %v1202_v53  ;;  %v621_v48 = vpop.permute.xlu1 %620 }
  0xf3   : > { %v632_v46 = vmul.f32 %v631_v39, %v625_v41  ;;  %v635_v47 = vmul.f32 %v634_v40, %v627_v42  ;;  %v640_v54 = vmul.f32 %v1223_v45, %v1221_v43  ;;  %v668_v8 = vmul.f32 0.2, %v627_v42 }
  0xf4   : > { %v1038_v50 = vpop.eup %1037  ;;  %v680_v38 = vmul.f32 0.2, %v1221_v43 }
  0xf5   : > { %v612_v55 = vmul.f32 %v1038_v50, %v609_v51  ;;  %v637_v58 = vadd.f32 %v635_v47, %v632_v46  ;;  %v950_v47 = vld [vmem:[%s1238_s15 + $0x10] sm:$0xff]  ;;  %v692_v50 = vld [vmem:[%s1238_s15] sm:$0xff] }
  0xf7   : > { %v624_v59 = vadd.f32 %v621_v48, %v612_v55  ;;  %v642_v60 = vadd.f32 %v640_v54, %v637_v58  ;;  %v951_v48 = vld [vmem:[%s1238_s15 + $0x18] sm:$0xff] }
  0xf9   : > { %v626_v49 = vmul.f32 %v624_v59, %v1208_v57  ;;  %v628_v53 = vmul.f32 %v624_v59, %v1206_v56  ;;  %v1232_v62 = vmul.f32 %v624_v59, %v1214_v61  ;;  %v652_v63 = vmul.f32 %v651_v52, %v642_v60 }
  0xfa   : > { %vm654_vm6 = vcmp.lt.f32.partialorder %v642_v60, 0.0  ;;  %v656_v56 = vmul.f32 0.2, %v625_v41  ;;  %v693_v60 = vld [vmem:[%s1238_s15 + $0x8] sm:$0xff] }
  0xfb   : > { %v670_v0 = vmul.f32 %v652_v63, %v634_v40  ;;  %v658_v1 = vmul.f32 %v652_v63, %v631_v39  ;;  %v633_v2 = vmul.f32 %v631_v39, %v626_v49  ;;  %v636_v3 = vmul.f32 %v634_v40, %v628_v53 }
  0xfc   : > { %v641_v7 = vmul.f32 %v1223_v45, %v1232_v62  ;;  %v682_v14 = vmul.f32 %v652_v63, %v1223_v45  ;;  %v669_v24 = vmul.f32 0.2, %v628_v53  ;;  %v657_v28 = vmul.f32 0.2, %v626_v49 }
  0xfd   : > { %v672_v4 = vsub.f32 %v627_v42, %v670_v0  ;;  %v660_v5 = vsub.f32 %v625_v41, %v658_v1  ;;  %v638_v6 = vadd.f32 %v636_v3, %v633_v2  ;;  %v681_v44 = vmul.f32 0.2, %v1232_v62  ;;  %v954_v1 = vld [vmem:[%s1238_s15 + $0x20] sm:$0xff] }
  0xfe   : > { %v684_v23 = vsub.f32 %v1221_v43, %v682_v14 }
  0xff   : > { %v674_v57 = vsel %vm654_vm6, %v672_v4, %v627_v42  ;;  %v662_v61 = vsel %vm654_vm6, %v660_v5, %v625_v41  ;;  %v643_v9 = vadd.f32 %v641_v7, %v638_v6  ;;  %v955_v5 = vld [vmem:[%s1238_s15 + $0x28] sm:$0xff] }
 0x100   : > { %v676_v11 = vmul.f32 0.8, %v674_v57  ;;  %v664_v12 = vmul.f32 0.8, %v662_v61  ;;  %v686_v30 = vsel %vm654_vm6, %v684_v23, %v1221_v43 }
 0x101   : > { %v653_v13 = vmul.f32 %v651_v52, %v643_v9  ;;  %vm655_vm9 = vcmp.lt.f32.partialorder %v643_v9, 0.0  ;;  %v688_v36 = vmul.f32 0.8, %v686_v30 }
 0x102   : > { %v678_v15 = vadd.f32 %v676_v11, %v668_v8  ;;  %v666_v16 = vadd.f32 %v664_v12, %v656_v56 }
 0x103   : > { %v671_v17 = vmul.f32 %v653_v13, %v634_v40  ;;  %v659_v18 = vmul.f32 %v653_v13, %v631_v39  ;;  %v683_v31 = vmul.f32 %v653_v13, %v1223_v45  ;;  %v690_v39 = vadd.f32 %v688_v36, %v680_v38 }
 0x104   : > { %v711_v19 = vsel %vm694_vm8, %v678_v15, 0.0  ;;  %v695_v20 = vsel %vm694_vm8, %v666_v16, 0.0 }
 0x105   : > { %712 = vadd.xlane.f32.xlu0 %v711_v19  ;;  %696 = vadd.xlane.f32.xlu2 %v695_v20  ;;  %v673_v21 = vsub.f32 %v628_v53, %v671_v17  ;;  %v661_v22 = vsub.f32 %v626_v49, %v659_v18  ;;  %v685_v37 = vsub.f32 %v1232_v62, %v683_v31  ;;  %v726_v41 = vsel %vm694_vm8, %v690_v39, 0.0 }
 0x107   : > { %v675_v25 = vsel %vm655_vm9, %v673_v21, %v628_v53  ;;  %v663_v26 = vsel %vm655_vm9, %v661_v22, %v626_v49  ;;  %v687_v40 = vsel %vm655_vm9, %v685_v37, %v1232_v62 }
 0x108   : > { %v677_v27 = vmul.f32 0.8, %v675_v25  ;;  %v665_v29 = vmul.f32 0.8, %v663_v26  ;;  %v689_v42 = vmul.f32 0.8, %v687_v40 }
 0x10a   : > { %v679_v32 = vadd.f32 %v677_v27, %v669_v24  ;;  %v667_v33 = vadd.f32 %v665_v29, %v657_v28  ;;  %v691_v45 = vadd.f32 %v689_v42, %v681_v44 }
 0x10c   : > { %v714_v34 = vsel %vm694_vm8, %v679_v32, 0.0  ;;  %v698_v35 = vsel %vm694_vm8, %v667_v33, 0.0  ;;  %v729_v46 = vsel %vm694_vm8, %v691_v45, 0.0 }
 0x10d   : > { %715 = vadd.xlane.f32.xlu1 %v714_v34  ;;  %699 = vadd.xlane.f32.xlu2 %v698_v35 }
 0x115   : > { %727 = vadd.xlane.f32.xlu2 %v726_v41 }
 0x11d   : > { %730 = vadd.xlane.f32.xlu2 %v729_v46 }
 0x178   : > { %v713_v43 = vpop.xlane.xlu0 %712  ;;  %v697_v51 = vpop.xlane.xlu2 %696 }
 0x179   : > { %v717_v52 = vmul.f32 0.03125, %v713_v43  ;;  %v701_v55 = vmul.f32 0.03125, %v697_v51 }
 0x17b   : > { %v719_v58 = vadd.f32 %v950_v47, %v717_v52  ;;  %v703_v54 = vadd.f32 %v701_v55, %v692_v50 }
 0x17d   : > { %952 = vst.msk [vmem:[%s1238_s15 + $0x10] sm:$0xff] %vm360_vm7, %v719_v58 }
 0x17e   : > { %706 = vst.msk [vmem:[%s1238_s15] sm:$0xff] %vm360_vm7, %v703_v54 }
 0x180   : > { %v716_v59 = vpop.xlane.xlu1 %715  ;;  %v700_v49 = vpop.xlane.xlu2 %699 }
 0x181   : > { %v718_v53 = vmul.f32 0.03125, %v716_v59  ;;  %v702_v62 = vmul.f32 0.03125, %v700_v49 }
 0x183   : > { %v720_v63 = vadd.f32 %v951_v48, %v718_v53  ;;  %v704_v0 = vadd.f32 %v702_v62, %v693_v60 }
 0x184   : > { %v790_v61 = vld [vmem:[%s1238_s15 + $0x10] sm:$0xff] (%p1141_p6) }
 0x185   : > { %953 = vst.msk [vmem:[%s1238_s15 + $0x18] sm:$0xff] %vm360_vm7, %v720_v63  ;;  %v786_v57 = vld [vmem:[%s1238_s15] sm:$0xff] (%p1141_p6) }
 0x186   : > { %707 = vst.msk [vmem:[%s1238_s15 + $0x8] sm:$0xff] %vm360_vm7, %v704_v0 }
 0x187   : > { %787 = vst [vmem:[%s747_s8] sm:$0xff] (%p1141_p6), %v786_v57 }
 0x188   : > { %v728_v2 = vpop.xlane.xlu2 %727  ;;  %791 = vst [vmem:[%s747_s8 + $0x20] sm:$0xff] (%p1141_p6), %v790_v61 }
 0x189   : > { %v732_v3 = vmul.f32 0.03125, %v728_v2 }
 0x18b   : > { %v734_v4 = vadd.f32 %v954_v1, %v732_v3 }
 0x18c   : > { %v792_v9 = vld [vmem:[%s1238_s15 + $0x18] sm:$0xff] (%p1141_p6) }
 0x18d   : > { %956 = vst.msk [vmem:[%s1238_s15 + $0x20] sm:$0xff] %vm360_vm7, %v734_v4  ;;  %v788_v56 = vld [vmem:[%s1238_s15 + $0x8] sm:$0xff] (%p1141_p6) }
 0x18e   : > { %789 = vst [vmem:[%s747_s8 + $0x8] sm:$0xff] (%p1141_p6), %v788_v56 }
 0x18f   : > { %793 = vst [vmem:[%s747_s8 + $0x28] sm:$0xff] (%p1141_p6), %v792_v9 }
 0x190   : > { %v731_v6 = vpop.xlane.xlu2 %730 }
 0x191   : > { %v733_v7 = vmul.f32 0.03125, %v731_v6  ;;  %744 = sbr.rel (!%p1141_p6) target bundleno = 414 (0x19e), region = 85 }
 0x193   : > { %v735_v8 = vadd.f32 %v955_v5, %v733_v7 }
 0x194   : > { %v794_v10 = vld [vmem:[%s1238_s15 + $0x20] sm:$0xff] (%p1141_p6) }
 0x195   : > { %957 = vst.msk [vmem:[%s1238_s15 + $0x28] sm:$0xff] %vm360_vm7, %v735_v8 }
 0x196   : > { %795 = vst [vmem:[%s747_s8 + $0x40] sm:$0xff] %v794_v10 }
 0x19c   : > { %v796_v11 = vld [vmem:[%s1238_s15 + $0x28] sm:$0xff] }
 0x19d   : > { %797 = vst [vmem:[%s747_s8 + $0x48] sm:$0xff] %v796_v11 }
 0x19e PF: > { %s14_s19 = sadd.s32 1, %s1077_s19   ;;  %s1321_s15 = smov %s1065_s16 }
 0x19f   : > { %p11_p11 = scmp.ge.s32.totalorder %s14_s19, 4   ;;  %s1322_s16 = smov %s1146_s25 }
 0x1a0   : > { %s1323_s17 = smov %s1073_s18  ;;  %s1324_s18 = smov %s1326_s20 }
 0x1a1   :  { %13 = sbr.rel (!%p11_p11) target bundleno = 3 (0x3), region = 158 }

</bundles_post_ra>
